<compile_context>
chip_gen: v6e
topology: v6e:2x2x1
jax: 0.10.0
libtpu: 0.0.40
codegen_flags: <defaults>
</compile_context>

<pallas_src>
import functools

import jax
import jax.numpy as jnp
from jax.experimental import pallas as pl
from jax.experimental.pallas import tpu as pltpu


def _round_up(x, m):
    return ((x + m - 1) // m) * m


def _pdc_kernel(x_ref, w_ref, b_ref, o_ref, xpad_ref, *,
                H, W, Cin, Cp, Kp, dilations, pad):
    """One grid step = one batch element.

    x_ref:    (1, H, W, Cin)   un-padded NHWC input tile (f32)
    w_ref:    (4, Kp, Cp)      per-branch im2col weights, BN scale folded, bf16,
                               K rows ordered (kh, kw, cin), zero-padded 9*Cin -> Kp
    b_ref:    (4, 1, Cp)       per-branch folded BN bias (f32, padding lanes are 0)
    o_ref:    (1, H, W, Cp)    output tile (lane-dense: Cp % 128 == 0), f32
    xpad_ref: (Hp, Wp, Cin)    VMEM scratch holding the zero-padded input (f32)
    """
    Wp = W + 2 * pad
    K = 9 * Cin
    f32 = jnp.float32

    # Zero only the pad border strips; the interior is fully overwritten right after.
    # Kept per-step (not program_id-gated) so it is safe under megacore sharding.
    xpad_ref[pl.ds(0, pad), :, :] = jnp.zeros((pad, Wp, Cin), f32)
    xpad_ref[pl.ds(pad + H, pad), :, :] = jnp.zeros((pad, Wp, Cin), f32)
    xpad_ref[pl.ds(pad, H), pl.ds(0, pad), :] = jnp.zeros((H, pad, Cin), f32)
    xpad_ref[pl.ds(pad, H), pl.ds(pad + W, pad), :] = jnp.zeros((H, pad, Cin), f32)
    xpad_ref[pl.ds(pad, H), pl.ds(pad, W), :] = x_ref[0]

    for di, d in enumerate(dilations):
        # im2col gather: nine tap windows, tap order (kh, kw) then cin — must match the
        # wrapper's weight packing. All reshapes below only merge leading dims (free).
        windows = []
        for kh in range(3):
            oh = pad + (kh - 1) * d
            for kw in range(3):
                ow = pad + (kw - 1) * d
                windows.append(xpad_ref[pl.ds(oh, H), pl.ds(ow, W), :])
        if Kp > K:
            windows.append(jnp.zeros((H, W, Kp - K), f32))  # pad K to lane-dense 128
        lhs = jnp.concatenate(windows, axis=-1)             # (H, W, Kp) f32
        lhs = lhs.reshape(H * W, Kp).astype(jnp.bfloat16)   # bf16 MXU operand

        # One matmul per branch: (H*W, Kp) @ (Kp, Cp), f32 accumulation.
        y = jnp.dot(lhs, w_ref[di], preferred_element_type=jnp.float32)

        # Folded-BN bias + ReLU per branch (f32 epilogue), accumulate into the output
        # VMEM block directly (no second live (H*W, Cp) register accumulator).
        contrib = jnp.maximum(y + b_ref[di], 0.0).reshape(H, W, Cp)
        if di == 0:
            o_ref[0] = contrib
        else:
            o_ref[0] = o_ref[0] + contrib


def parallel_dilated_conv(x_nchw, weights, bn_scale, bn_bias, dilations):
    """x_nchw:   (B, Cin, H, W)       float32
       weights:  (4, 3, 3, Cin, Cout) float32, HWIO per branch (no conv bias)
       bn_scale: (4, Cout)            folded BN scale = gamma / sqrt(var + eps)
       bn_bias:  (4, Cout)            folded BN bias  = beta - mean * scale
       returns:  (B, Cout, H, W)      float32
    """
    assert len(dilations) == 4, "Length of dilations should be 4."
    B, Cin, H, W = x_nchw.shape
    Cout = weights.shape[-1]
    dils = tuple(int(d) for d in dilations)
    pad = max(dils)
    Hp, Wp = H + 2 * pad, W + 2 * pad
    Cp = _round_up(Cout, 128)       # lane-dense output-channel count
    K = 9 * Cin
    Kp = _round_up(K, 128)          # lane-dense contraction dim for the im2col matmul

    # Fold BN scale into the conv weights, zero-pad Cout -> Cp (padding lanes have
    # weight 0 and bias 0, so ReLU(0)=0 and they contribute nothing; sliced off below),
    # pack the 3x3xCin taps into im2col order (kh, kw, cin), zero-pad K -> Kp, cast bf16.
    w = weights * bn_scale[:, None, None, None, :]
    w = jnp.pad(w, ((0, 0), (0, 0), (0, 0), (0, 0), (0, Cp - Cout)))
    w_packed = w.reshape(4, K, Cp)
    w_packed = jnp.pad(w_packed, ((0, 0), (0, Kp - K), (0, 0))).astype(jnp.bfloat16)
    b = jnp.pad(bn_bias, ((0, 0), (0, Cp - Cout))).reshape(4, 1, Cp).astype(jnp.float32)

    x_nhwc = jnp.transpose(x_nchw, (0, 2, 3, 1))  # NCHW -> NHWC (lanes = channels)

    kernel = functools.partial(_pdc_kernel, H=H, W=W, Cin=Cin, Cp=Cp, Kp=Kp,
                               dilations=dils, pad=pad)

    out_nhwc = pl.pallas_call(
        kernel,
        out_shape=jax.ShapeDtypeStruct((B, H, W, Cp), jnp.float32),
        grid_spec=pltpu.PrefetchScalarGridSpec(
            num_scalar_prefetch=0,
            grid=(B,),
            in_specs=[
                pl.BlockSpec((1, H, W, Cin), lambda bi: (bi, 0, 0, 0)),
                pl.BlockSpec((4, Kp, Cp), lambda bi: (0, 0, 0)),
                pl.BlockSpec((4, 1, Cp), lambda bi: (0, 0, 0)),
            ],
            out_specs=pl.BlockSpec((1, H, W, Cp), lambda bi: (bi, 0, 0, 0)),
            scratch_shapes=[pltpu.VMEM((Hp, Wp, Cin), jnp.float32)],
        ),
        compiler_params=pltpu.CompilerParams(
            dimension_semantics=("parallel",),
        ),
    )(x_nhwc, w_packed, b)

    out = out_nhwc[..., :Cout]               # drop lane padding
    return jnp.transpose(out, (0, 3, 1, 2))  # NHWC -> NCHW


def _reference(x_nchw, weights, bn_scale, bn_bias, dilations):
    """Pure-JAX f32 reference using lax.conv_general_dilated (PyTorch semantics)."""
    out = None
    for di, d in enumerate(dilations):
        w_oihw = jnp.transpose(weights[di], (3, 2, 0, 1))  # HWIO -> OIHW
        y = jax.lax.conv_general_dilated(
            x_nchw, w_oihw, window_strides=(1, 1),
            padding=((d, d), (d, d)), rhs_dilation=(d, d),
            dimension_numbers=("NCHW", "OIHW", "NCHW"))
        y = y * bn_scale[di][None, :, None, None] + bn_bias[di][None, :, None, None]
        y = jnp.maximum(y, 0.0)
        out = y if out is None else out + y
    return out


if __name__ == "__main__":
    key = jax.random.PRNGKey(0)
    B, Cin, Cout, H, W = 2, 4, 8, 16, 16
    dilations = (1, 2, 4, 8)

    k_x, k_w, k_g, k_b = jax.random.split(key, 4)
    x = jax.random.normal(k_x, (B, Cin, H, W), dtype=jnp.float32)
    # Conv weights per branch, HWIO layout: (4, 3, 3, Cin, Cout), no conv bias.
    weights = jax.random.normal(k_w, (4, 3, 3, Cin, Cout), dtype=jnp.float32) * 0.1
    # Folded BatchNorm (inference): scale = gamma/sqrt(var+eps), bias = beta - mean*scale
    gamma = 1.0 + 0.1 * jax.random.normal(k_g, (4, Cout), dtype=jnp.float32)
    beta = 0.1 * jax.random.normal(k_b, (4, Cout), dtype=jnp.float32)
    running_mean = jnp.zeros((4, Cout), jnp.float32)
    running_var = jnp.ones((4, Cout), jnp.float32)
    eps = 1e-5
    bn_scale = gamma / jnp.sqrt(running_var + eps)
    bn_bias = beta - running_mean * bn_scale

    out = parallel_dilated_conv(x, weights, bn_scale, bn_bias, dilations)
    out = jax.block_until_ready(out)

    ref = _reference(x, weights, bn_scale, bn_bias, dilations)
    assert out.shape == (B, Cout, H, W), out.shape
    # bf16 matmul operands (with f32 accumulation) vs an f32 reference -> loosened tol.
    max_err = float(jnp.max(jnp.abs(out - ref)))
    assert jnp.allclose(out, ref, atol=5e-2, rtol=5e-2), max_err

    print("KERNEL_OK")
</pallas_src>

<mosaic_0001>
module attributes {stable_mosaic.version = 11 : i64} {
  func.func @_pdc_kernel(%arg0: i32, %arg1: memref<1x16x16x4xf32, #tpu.memory_space<vmem>>, %arg2: memref<4x128x128xbf16, #tpu.memory_space<vmem>>, %arg3: memref<4x1x128xf32, #tpu.memory_space<vmem>>, %arg4: memref<1x16x16x128xf32, #tpu.memory_space<vmem>>, %arg5: memref<32x32x4xf32, #tpu.memory_space<vmem>>) attributes {dimension_semantics = [#tpu.dimension_semantics<parallel>], iteration_bounds = array<i64: 2>, scalar_prefetch = 0 : i64, scratch_operands = 1 : i64, tpu.core_type = #tpu.core_type<tc>, window_params = [{transform_indices = @transform_0, window_bounds = array<i64: 1, 16, 16, 4>}, {pipeline_mode = #tpu.pipeline_mode<synchronous>, transform_indices = @transform_1, window_bounds = array<i64: 4, 128, 128>}, {pipeline_mode = #tpu.pipeline_mode<synchronous>, transform_indices = @transform_2, window_bounds = array<i64: 4, 1, 128>}, {transform_indices = @transform_3, window_bounds = array<i64: 1, 16, 16, 128>}]} {
    %cst = arith.constant 0.000000e+00 : f32
    %0 = vector.broadcast %cst : f32 to vector<8x32x4xf32>
    %c0 = arith.constant 0 : index
    %c0_0 = arith.constant 0 : index
    %c0_1 = arith.constant 0 : index
    %1 = vector.load %arg5[%c0, %c0_0, %c0_1] : memref<32x32x4xf32, #tpu.memory_space<vmem>>, vector<8x32x4xf32>
    tpu.vector_store %arg5[%c0, %c0_0, %c0_1], %0 {strides = array<i32>} : memref<32x32x4xf32, #tpu.memory_space<vmem>>, vector<8x32x4xf32>,
    %cst_2 = arith.constant 0.000000e+00 : f32
    %2 = vector.broadcast %cst_2 : f32 to vector<8x32x4xf32>
    %c24 = arith.constant 24 : index
    %c0_3 = arith.constant 0 : index
    %c0_4 = arith.constant 0 : index
    %3 = vector.load %arg5[%c24, %c0_3, %c0_4] : memref<32x32x4xf32, #tpu.memory_space<vmem>>, vector<8x32x4xf32>
    tpu.vector_store %arg5[%c24, %c0_3, %c0_4], %2 {strides = array<i32>} : memref<32x32x4xf32, #tpu.memory_space<vmem>>, vector<8x32x4xf32>,
    %cst_5 = arith.constant 0.000000e+00 : f32
    %4 = vector.broadcast %cst_5 : f32 to vector<16x8x4xf32>
    %c8 = arith.constant 8 : index
    %c0_6 = arith.constant 0 : index
    %c0_7 = arith.constant 0 : index
    %5 = vector.load %arg5[%c8, %c0_6, %c0_7] : memref<32x32x4xf32, #tpu.memory_space<vmem>>, vector<16x8x4xf32>
    tpu.vector_store %arg5[%c8, %c0_6, %c0_7], %4 {strides = array<i32>} : memref<32x32x4xf32, #tpu.memory_space<vmem>>, vector<16x8x4xf32>,
    %cst_8 = arith.constant 0.000000e+00 : f32
    %6 = vector.broadcast %cst_8 : f32 to vector<16x8x4xf32>
    %c8_9 = arith.constant 8 : index
    %c24_10 = arith.constant 24 : index
    %c0_11 = arith.constant 0 : index
    %7 = vector.load %arg5[%c8_9, %c24_10, %c0_11] : memref<32x32x4xf32, #tpu.memory_space<vmem>>, vector<16x8x4xf32>
    tpu.vector_store %arg5[%c8_9, %c24_10, %c0_11], %6 {strides = array<i32>} : memref<32x32x4xf32, #tpu.memory_space<vmem>>, vector<16x8x4xf32>,
    %c0_12 = arith.constant 0 : index
    %c0_13 = arith.constant 0 : index
    %c0_14 = arith.constant 0 : index
    %c0_15 = arith.constant 0 : index
    %8 = vector.load %arg1[%c0_12, %c0_13, %c0_14, %c0_15] : memref<1x16x16x4xf32, #tpu.memory_space<vmem>>, vector<1x16x16x4xf32>
    %9 = vector.shape_cast %8 : vector<1x16x16x4xf32> to vector<16x16x4xf32>
    %c8_16 = arith.constant 8 : index
    %c8_17 = arith.constant 8 : index
    %c0_18 = arith.constant 0 : index
    %10 = vector.load %arg5[%c8_16, %c8_17, %c0_18] : memref<32x32x4xf32, #tpu.memory_space<vmem>>, vector<16x16x4xf32>
    tpu.vector_store %arg5[%c8_16, %c8_17, %c0_18], %9 {strides = array<i32>} : memref<32x32x4xf32, #tpu.memory_space<vmem>>, vector<16x16x4xf32>,
    %c7 = arith.constant 7 : index
    %c7_19 = arith.constant 7 : index
    %c0_20 = arith.constant 0 : index
    %11 = vector.load %arg5[%c7, %c7_19, %c0_20] : memref<32x32x4xf32, #tpu.memory_space<vmem>>, vector<16x16x4xf32>
    %c7_21 = arith.constant 7 : index
    %c8_22 = arith.constant 8 : index
    %c0_23 = arith.constant 0 : index
    %12 = vector.load %arg5[%c7_21, %c8_22, %c0_23] : memref<32x32x4xf32, #tpu.memory_space<vmem>>, vector<16x16x4xf32>
    %c7_24 = arith.constant 7 : index
    %c9 = arith.constant 9 : index
    %c0_25 = arith.constant 0 : index
    %13 = vector.load %arg5[%c7_24, %c9, %c0_25] : memref<32x32x4xf32, #tpu.memory_space<vmem>>, vector<16x16x4xf32>
    %c8_26 = arith.constant 8 : index
    %c7_27 = arith.constant 7 : index
    %c0_28 = arith.constant 0 : index
    %14 = vector.load %arg5[%c8_26, %c7_27, %c0_28] : memref<32x32x4xf32, #tpu.memory_space<vmem>>, vector<16x16x4xf32>
    %c8_29 = arith.constant 8 : index
    %c8_30 = arith.constant 8 : index
    %c0_31 = arith.constant 0 : index
    %15 = vector.load %arg5[%c8_29, %c8_30, %c0_31] : memref<32x32x4xf32, #tpu.memory_space<vmem>>, vector<16x16x4xf32>
    %c8_32 = arith.constant 8 : index
    %c9_33 = arith.constant 9 : index
    %c0_34 = arith.constant 0 : index
    %16 = vector.load %arg5[%c8_32, %c9_33, %c0_34] : memref<32x32x4xf32, #tpu.memory_space<vmem>>, vector<16x16x4xf32>
    %c9_35 = arith.constant 9 : index
    %c7_36 = arith.constant 7 : index
    %c0_37 = arith.constant 0 : index
    %17 = vector.load %arg5[%c9_35, %c7_36, %c0_37] : memref<32x32x4xf32, #tpu.memory_space<vmem>>, vector<16x16x4xf32>
    %c9_38 = arith.constant 9 : index
    %c8_39 = arith.constant 8 : index
    %c0_40 = arith.constant 0 : index
    %18 = vector.load %arg5[%c9_38, %c8_39, %c0_40] : memref<32x32x4xf32, #tpu.memory_space<vmem>>, vector<16x16x4xf32>
    %c9_41 = arith.constant 9 : index
    %c9_42 = arith.constant 9 : index
    %c0_43 = arith.constant 0 : index
    %19 = vector.load %arg5[%c9_41, %c9_42, %c0_43] : memref<32x32x4xf32, #tpu.memory_space<vmem>>, vector<16x16x4xf32>
    %cst_44 = arith.constant 0.000000e+00 : f32
    %20 = vector.broadcast %cst_44 : f32 to vector<16x16x92xf32>
    %21 = tpu.concatenate %11, %12, %13, %14, %15, %16, %17, %18, %19, %20 in 2 : vector<16x16x4xf32>, vector<16x16x4xf32>, vector<16x16x4xf32>, vector<16x16x4xf32>, vector<16x16x4xf32>, vector<16x16x4xf32>, vector<16x16x4xf32>, vector<16x16x4xf32>, vector<16x16x4xf32>, vector<16x16x92xf32> -> vector<16x16x128xf32>
    %22 = vector.shape_cast %21 : vector<16x16x128xf32> to vector<256x128xf32>
    %23 = arith.truncf %22 : vector<256x128xf32> to vector<256x128xbf16>
    %c0_45 = arith.constant 0 : index
    %c0_46 = arith.constant 0 : index
    %c0_47 = arith.constant 0 : index
    %24 = vector.load %arg2[%c0_45, %c0_46, %c0_47] : memref<4x128x128xbf16, #tpu.memory_space<vmem>>, vector<1x128x128xbf16>
    %25 = vector.shape_cast %24 : vector<1x128x128xbf16> to vector<128x128xbf16>
    %cst_48 = arith.constant dense<0.000000e+00> : vector<256x128xf32>
    %26 = tpu.matmul %23, %25, %cst_48 {dimension_numbers = #tpu.dot_dimension_numbers<[1], [0], [0], [1], [0, 0, 1, 1], [], []>} : vector<256x128xbf16>, vector<128x128xbf16>, vector<256x128xf32> -> vector<256x128xf32>
    %c0_49 = arith.constant 0 : index
    %c0_50 = arith.constant 0 : index
    %c0_51 = arith.constant 0 : index
    %27 = vector.load %arg3[%c0_49, %c0_50, %c0_51] : memref<4x1x128xf32, #tpu.memory_space<vmem>>, vector<1x1x128xf32>
    %28 = vector.shape_cast %27 : vector<1x1x128xf32> to vector<1x128xf32>
    %29 = vector.broadcast %28 : vector<1x128xf32> to vector<256x128xf32>
    %30 = arith.addf %26, %29 : vector<256x128xf32>
    %cst_52 = arith.constant 0.000000e+00 : f32
    %31 = vector.broadcast %cst_52 : f32 to vector<256x128xf32>
    %32 = arith.maximumf %30, %31 : vector<256x128xf32>
    %33 = vector.shape_cast %32 : vector<256x128xf32> to vector<16x16x128xf32>
    %c0_53 = arith.constant 0 : index
    %c0_54 = arith.constant 0 : index
    %c0_55 = arith.constant 0 : index
    %c0_56 = arith.constant 0 : index
    %34 = vector.load %arg4[%c0_53, %c0_54, %c0_55, %c0_56] : memref<1x16x16x128xf32, #tpu.memory_space<vmem>>, vector<1x16x16x128xf32>
    %35 = vector.shape_cast %34 : vector<1x16x16x128xf32> to vector<16x16x128xf32>
    %36 = vector.shape_cast %33 : vector<16x16x128xf32> to vector<1x16x16x128xf32>
    tpu.vector_store %arg4[%c0_53, %c0_54, %c0_55, %c0_56], %36 {strides = array<i32>} : memref<1x16x16x128xf32, #tpu.memory_space<vmem>>, vector<1x16x16x128xf32>,
    %c6 = arith.constant 6 : index
    %c6_57 = arith.constant 6 : index
    %c0_58 = arith.constant 0 : index
    %37 = vector.load %arg5[%c6, %c6_57, %c0_58] : memref<32x32x4xf32, #tpu.memory_space<vmem>>, vector<16x16x4xf32>
    %c6_59 = arith.constant 6 : index
    %c8_60 = arith.constant 8 : index
    %c0_61 = arith.constant 0 : index
    %38 = vector.load %arg5[%c6_59, %c8_60, %c0_61] : memref<32x32x4xf32, #tpu.memory_space<vmem>>, vector<16x16x4xf32>
    %c6_62 = arith.constant 6 : index
    %c10 = arith.constant 10 : index
    %c0_63 = arith.constant 0 : index
    %39 = vector.load %arg5[%c6_62, %c10, %c0_63] : memref<32x32x4xf32, #tpu.memory_space<vmem>>, vector<16x16x4xf32>
    %c8_64 = arith.constant 8 : index
    %c6_65 = arith.constant 6 : index
    %c0_66 = arith.constant 0 : index
    %40 = vector.load %arg5[%c8_64, %c6_65, %c0_66] : memref<32x32x4xf32, #tpu.memory_space<vmem>>, vector<16x16x4xf32>
    %c8_67 = arith.constant 8 : index
    %c8_68 = arith.constant 8 : index
    %c0_69 = arith.constant 0 : index
    %41 = vector.load %arg5[%c8_67, %c8_68, %c0_69] : memref<32x32x4xf32, #tpu.memory_space<vmem>>, vector<16x16x4xf32>
    %c8_70 = arith.constant 8 : index
    %c10_71 = arith.constant 10 : index
    %c0_72 = arith.constant 0 : index
    %42 = vector.load %arg5[%c8_70, %c10_71, %c0_72] : memref<32x32x4xf32, #tpu.memory_space<vmem>>, vector<16x16x4xf32>
    %c10_73 = arith.constant 10 : index
    %c6_74 = arith.constant 6 : index
    %c0_75 = arith.constant 0 : index
    %43 = vector.load %arg5[%c10_73, %c6_74, %c0_75] : memref<32x32x4xf32, #tpu.memory_space<vmem>>, vector<16x16x4xf32>
    %c10_76 = arith.constant 10 : index
    %c8_77 = arith.constant 8 : index
    %c0_78 = arith.constant 0 : index
    %44 = vector.load %arg5[%c10_76, %c8_77, %c0_78] : memref<32x32x4xf32, #tpu.memory_space<vmem>>, vector<16x16x4xf32>
    %c10_79 = arith.constant 10 : index
    %c10_80 = arith.constant 10 : index
    %c0_81 = arith.constant 0 : index
    %45 = vector.load %arg5[%c10_79, %c10_80, %c0_81] : memref<32x32x4xf32, #tpu.memory_space<vmem>>, vector<16x16x4xf32>
    %cst_82 = arith.constant 0.000000e+00 : f32
    %46 = vector.broadcast %cst_82 : f32 to vector<16x16x92xf32>
    %47 = tpu.concatenate %37, %38, %39, %40, %41, %42, %43, %44, %45, %46 in 2 : vector<16x16x4xf32>, vector<16x16x4xf32>, vector<16x16x4xf32>, vector<16x16x4xf32>, vector<16x16x4xf32>, vector<16x16x4xf32>, vector<16x16x4xf32>, vector<16x16x4xf32>, vector<16x16x4xf32>, vector<16x16x92xf32> -> vector<16x16x128xf32>
    %48 = vector.shape_cast %47 : vector<16x16x128xf32> to vector<256x128xf32>
    %49 = arith.truncf %48 : vector<256x128xf32> to vector<256x128xbf16>
    %c1 = arith.constant 1 : index
    %c0_83 = arith.constant 0 : index
    %c0_84 = arith.constant 0 : index
    %50 = vector.load %arg2[%c1, %c0_83, %c0_84] : memref<4x128x128xbf16, #tpu.memory_space<vmem>>, vector<1x128x128xbf16>
    %51 = vector.shape_cast %50 : vector<1x128x128xbf16> to vector<128x128xbf16>
    %cst_85 = arith.constant dense<0.000000e+00> : vector<256x128xf32>
    %52 = tpu.matmul %49, %51, %cst_85 {dimension_numbers = #tpu.dot_dimension_numbers<[1], [0], [0], [1], [0, 0, 1, 1], [], []>} : vector<256x128xbf16>, vector<128x128xbf16>, vector<256x128xf32> -> vector<256x128xf32>
    %c1_86 = arith.constant 1 : index
    %c0_87 = arith.constant 0 : index
    %c0_88 = arith.constant 0 : index
    %53 = vector.load %arg3[%c1_86, %c0_87, %c0_88] : memref<4x1x128xf32, #tpu.memory_space<vmem>>, vector<1x1x128xf32>
    %54 = vector.shape_cast %53 : vector<1x1x128xf32> to vector<1x128xf32>
    %55 = vector.broadcast %54 : vector<1x128xf32> to vector<256x128xf32>
    %56 = arith.addf %52, %55 : vector<256x128xf32>
    %cst_89 = arith.constant 0.000000e+00 : f32
    %57 = vector.broadcast %cst_89 : f32 to vector<256x128xf32>
    %58 = arith.maximumf %56, %57 : vector<256x128xf32>
    %59 = vector.shape_cast %58 : vector<256x128xf32> to vector<16x16x128xf32>
    %c0_90 = arith.constant 0 : index
    %c0_91 = arith.constant 0 : index
    %c0_92 = arith.constant 0 : index
    %c0_93 = arith.constant 0 : index
    %60 = vector.load %arg4[%c0_90, %c0_91, %c0_92, %c0_93] : memref<1x16x16x128xf32, #tpu.memory_space<vmem>>, vector<1x16x16x128xf32>
    %61 = vector.shape_cast %60 : vector<1x16x16x128xf32> to vector<16x16x128xf32>
    %62 = arith.addf %61, %59 : vector<16x16x128xf32>
    %c0_94 = arith.constant 0 : index
    %c0_95 = arith.constant 0 : index
    %c0_96 = arith.constant 0 : index
    %c0_97 = arith.constant 0 : index
    %63 = vector.load %arg4[%c0_94, %c0_95, %c0_96, %c0_97] : memref<1x16x16x128xf32, #tpu.memory_space<vmem>>, vector<1x16x16x128xf32>
    %64 = vector.shape_cast %63 : vector<1x16x16x128xf32> to vector<16x16x128xf32>
    %65 = vector.shape_cast %62 : vector<16x16x128xf32> to vector<1x16x16x128xf32>
    tpu.vector_store %arg4[%c0_94, %c0_95, %c0_96, %c0_97], %65 {strides = array<i32>} : memref<1x16x16x128xf32, #tpu.memory_space<vmem>>, vector<1x16x16x128xf32>,
    %c4 = arith.constant 4 : index
    %c4_98 = arith.constant 4 : index
    %c0_99 = arith.constant 0 : index
    %66 = vector.load %arg5[%c4, %c4_98, %c0_99] : memref<32x32x4xf32, #tpu.memory_space<vmem>>, vector<16x16x4xf32>
    %c4_100 = arith.constant 4 : index
    %c8_101 = arith.constant 8 : index
    %c0_102 = arith.constant 0 : index
    %67 = vector.load %arg5[%c4_100, %c8_101, %c0_102] : memref<32x32x4xf32, #tpu.memory_space<vmem>>, vector<16x16x4xf32>
    %c4_103 = arith.constant 4 : index
    %c12 = arith.constant 12 : index
    %c0_104 = arith.constant 0 : index
    %68 = vector.load %arg5[%c4_103, %c12, %c0_104] : memref<32x32x4xf32, #tpu.memory_space<vmem>>, vector<16x16x4xf32>
    %c8_105 = arith.constant 8 : index
    %c4_106 = arith.constant 4 : index
    %c0_107 = arith.constant 0 : index
    %69 = vector.load %arg5[%c8_105, %c4_106, %c0_107] : memref<32x32x4xf32, #tpu.memory_space<vmem>>, vector<16x16x4xf32>
    %c8_108 = arith.constant 8 : index
    %c8_109 = arith.constant 8 : index
    %c0_110 = arith.constant 0 : index
    %70 = vector.load %arg5[%c8_108, %c8_109, %c0_110] : memref<32x32x4xf32, #tpu.memory_space<vmem>>, vector<16x16x4xf32>
    %c8_111 = arith.constant 8 : index
    %c12_112 = arith.constant 12 : index
    %c0_113 = arith.constant 0 : index
    %71 = vector.load %arg5[%c8_111, %c12_112, %c0_113] : memref<32x32x4xf32, #tpu.memory_space<vmem>>, vector<16x16x4xf32>
    %c12_114 = arith.constant 12 : index
    %c4_115 = arith.constant 4 : index
    %c0_116 = arith.constant 0 : index
    %72 = vector.load %arg5[%c12_114, %c4_115, %c0_116] : memref<32x32x4xf32, #tpu.memory_space<vmem>>, vector<16x16x4xf32>
    %c12_117 = arith.constant 12 : index
    %c8_118 = arith.constant 8 : index
    %c0_119 = arith.constant 0 : index
    %73 = vector.load %arg5[%c12_117, %c8_118, %c0_119] : memref<32x32x4xf32, #tpu.memory_space<vmem>>, vector<16x16x4xf32>
    %c12_120 = arith.constant 12 : index
    %c12_121 = arith.constant 12 : index
    %c0_122 = arith.constant 0 : index
    %74 = vector.load %arg5[%c12_120, %c12_121, %c0_122] : memref<32x32x4xf32, #tpu.memory_space<vmem>>, vector<16x16x4xf32>
    %cst_123 = arith.constant 0.000000e+00 : f32
    %75 = vector.broadcast %cst_123 : f32 to vector<16x16x92xf32>
    %76 = tpu.concatenate %66, %67, %68, %69, %70, %71, %72, %73, %74, %75 in 2 : vector<16x16x4xf32>, vector<16x16x4xf32>, vector<16x16x4xf32>, vector<16x16x4xf32>, vector<16x16x4xf32>, vector<16x16x4xf32>, vector<16x16x4xf32>, vector<16x16x4xf32>, vector<16x16x4xf32>, vector<16x16x92xf32> -> vector<16x16x128xf32>
    %77 = vector.shape_cast %76 : vector<16x16x128xf32> to vector<256x128xf32>
    %78 = arith.truncf %77 : vector<256x128xf32> to vector<256x128xbf16>
    %c2 = arith.constant 2 : index
    %c0_124 = arith.constant 0 : index
    %c0_125 = arith.constant 0 : index
    %79 = vector.load %arg2[%c2, %c0_124, %c0_125] : memref<4x128x128xbf16, #tpu.memory_space<vmem>>, vector<1x128x128xbf16>
    %80 = vector.shape_cast %79 : vector<1x128x128xbf16> to vector<128x128xbf16>
    %cst_126 = arith.constant dense<0.000000e+00> : vector<256x128xf32>
    %81 = tpu.matmul %78, %80, %cst_126 {dimension_numbers = #tpu.dot_dimension_numbers<[1], [0], [0], [1], [0, 0, 1, 1], [], []>} : vector<256x128xbf16>, vector<128x128xbf16>, vector<256x128xf32> -> vector<256x128xf32>
    %c2_127 = arith.constant 2 : index
    %c0_128 = arith.constant 0 : index
    %c0_129 = arith.constant 0 : index
    %82 = vector.load %arg3[%c2_127, %c0_128, %c0_129] : memref<4x1x128xf32, #tpu.memory_space<vmem>>, vector<1x1x128xf32>
    %83 = vector.shape_cast %82 : vector<1x1x128xf32> to vector<1x128xf32>
    %84 = vector.broadcast %83 : vector<1x128xf32> to vector<256x128xf32>
    %85 = arith.addf %81, %84 : vector<256x128xf32>
    %cst_130 = arith.constant 0.000000e+00 : f32
    %86 = vector.broadcast %cst_130 : f32 to vector<256x128xf32>
    %87 = arith.maximumf %85, %86 : vector<256x128xf32>
    %88 = vector.shape_cast %87 : vector<256x128xf32> to vector<16x16x128xf32>
    %c0_131 = arith.constant 0 : index
    %c0_132 = arith.constant 0 : index
    %c0_133 = arith.constant 0 : index
    %c0_134 = arith.constant 0 : index
    %89 = vector.load %arg4[%c0_131, %c0_132, %c0_133, %c0_134] : memref<1x16x16x128xf32, #tpu.memory_space<vmem>>, vector<1x16x16x128xf32>
    %90 = vector.shape_cast %89 : vector<1x16x16x128xf32> to vector<16x16x128xf32>
    %91 = arith.addf %90, %88 : vector<16x16x128xf32>
    %c0_135 = arith.constant 0 : index
    %c0_136 = arith.constant 0 : index
    %c0_137 = arith.constant 0 : index
    %c0_138 = arith.constant 0 : index
    %92 = vector.load %arg4[%c0_135, %c0_136, %c0_137, %c0_138] : memref<1x16x16x128xf32, #tpu.memory_space<vmem>>, vector<1x16x16x128xf32>
    %93 = vector.shape_cast %92 : vector<1x16x16x128xf32> to vector<16x16x128xf32>
    %94 = vector.shape_cast %91 : vector<16x16x128xf32> to vector<1x16x16x128xf32>
    tpu.vector_store %arg4[%c0_135, %c0_136, %c0_137, %c0_138], %94 {strides = array<i32>} : memref<1x16x16x128xf32, #tpu.memory_space<vmem>>, vector<1x16x16x128xf32>,
    %c0_139 = arith.constant 0 : index
    %c0_140 = arith.constant 0 : index
    %c0_141 = arith.constant 0 : index
    %95 = vector.load %arg5[%c0_139, %c0_140, %c0_141] : memref<32x32x4xf32, #tpu.memory_space<vmem>>, vector<16x16x4xf32>
    %c0_142 = arith.constant 0 : index
    %c8_143 = arith.constant 8 : index
    %c0_144 = arith.constant 0 : index
    %96 = vector.load %arg5[%c0_142, %c8_143, %c0_144] : memref<32x32x4xf32, #tpu.memory_space<vmem>>, vector<16x16x4xf32>
    %c0_145 = arith.constant 0 : index
    %c16 = arith.constant 16 : index
    %c0_146 = arith.constant 0 : index
    %97 = vector.load %arg5[%c0_145, %c16, %c0_146] : memref<32x32x4xf32, #tpu.memory_space<vmem>>, vector<16x16x4xf32>
    %c8_147 = arith.constant 8 : index
    %c0_148 = arith.constant 0 : index
    %c0_149 = arith.constant 0 : index
    %98 = vector.load %arg5[%c8_147, %c0_148, %c0_149] : memref<32x32x4xf32, #tpu.memory_space<vmem>>, vector<16x16x4xf32>
    %c8_150 = arith.constant 8 : index
    %c8_151 = arith.constant 8 : index
    %c0_152 = arith.constant 0 : index
    %99 = vector.load %arg5[%c8_150, %c8_151, %c0_152] : memref<32x32x4xf32, #tpu.memory_space<vmem>>, vector<16x16x4xf32>
    %c8_153 = arith.constant 8 : index
    %c16_154 = arith.constant 16 : index
    %c0_155 = arith.constant 0 : index
    %100 = vector.load %arg5[%c8_153, %c16_154, %c0_155] : memref<32x32x4xf32, #tpu.memory_space<vmem>>, vector<16x16x4xf32>
    %c16_156 = arith.constant 16 : index
    %c0_157 = arith.constant 0 : index
    %c0_158 = arith.constant 0 : index
    %101 = vector.load %arg5[%c16_156, %c0_157, %c0_158] : memref<32x32x4xf32, #tpu.memory_space<vmem>>, vector<16x16x4xf32>
    %c16_159 = arith.constant 16 : index
    %c8_160 = arith.constant 8 : index
    %c0_161 = arith.constant 0 : index
    %102 = vector.load %arg5[%c16_159, %c8_160, %c0_161] : memref<32x32x4xf32, #tpu.memory_space<vmem>>, vector<16x16x4xf32>
    %c16_162 = arith.constant 16 : index
    %c16_163 = arith.constant 16 : index
    %c0_164 = arith.constant 0 : index
    %103 = vector.load %arg5[%c16_162, %c16_163, %c0_164] : memref<32x32x4xf32, #tpu.memory_space<vmem>>, vector<16x16x4xf32>
    %cst_165 = arith.constant 0.000000e+00 : f32
    %104 = vector.broadcast %cst_165 : f32 to vector<16x16x92xf32>
    %105 = tpu.concatenate %95, %96, %97, %98, %99, %100, %101, %102, %103, %104 in 2 : vector<16x16x4xf32>, vector<16x16x4xf32>, vector<16x16x4xf32>, vector<16x16x4xf32>, vector<16x16x4xf32>, vector<16x16x4xf32>, vector<16x16x4xf32>, vector<16x16x4xf32>, vector<16x16x4xf32>, vector<16x16x92xf32> -> vector<16x16x128xf32>
    %106 = vector.shape_cast %105 : vector<16x16x128xf32> to vector<256x128xf32>
    %107 = arith.truncf %106 : vector<256x128xf32> to vector<256x128xbf16>
    %c3 = arith.constant 3 : index
    %c0_166 = arith.constant 0 : index
    %c0_167 = arith.constant 0 : index
    %108 = vector.load %arg2[%c3, %c0_166, %c0_167] : memref<4x128x128xbf16, #tpu.memory_space<vmem>>, vector<1x128x128xbf16>
    %109 = vector.shape_cast %108 : vector<1x128x128xbf16> to vector<128x128xbf16>
    %cst_168 = arith.constant dense<0.000000e+00> : vector<256x128xf32>
    %110 = tpu.matmul %107, %109, %cst_168 {dimension_numbers = #tpu.dot_dimension_numbers<[1], [0], [0], [1], [0, 0, 1, 1], [], []>} : vector<256x128xbf16>, vector<128x128xbf16>, vector<256x128xf32> -> vector<256x128xf32>
    %c3_169 = arith.constant 3 : index
    %c0_170 = arith.constant 0 : index
    %c0_171 = arith.constant 0 : index
    %111 = vector.load %arg3[%c3_169, %c0_170, %c0_171] : memref<4x1x128xf32, #tpu.memory_space<vmem>>, vector<1x1x128xf32>
    %112 = vector.shape_cast %111 : vector<1x1x128xf32> to vector<1x128xf32>
    %113 = vector.broadcast %112 : vector<1x128xf32> to vector<256x128xf32>
    %114 = arith.addf %110, %113 : vector<256x128xf32>
    %cst_172 = arith.constant 0.000000e+00 : f32
    %115 = vector.broadcast %cst_172 : f32 to vector<256x128xf32>
    %116 = arith.maximumf %114, %115 : vector<256x128xf32>
    %117 = vector.shape_cast %116 : vector<256x128xf32> to vector<16x16x128xf32>
    %c0_173 = arith.constant 0 : index
    %c0_174 = arith.constant 0 : index
    %c0_175 = arith.constant 0 : index
    %c0_176 = arith.constant 0 : index
    %118 = vector.load %arg4[%c0_173, %c0_174, %c0_175, %c0_176] : memref<1x16x16x128xf32, #tpu.memory_space<vmem>>, vector<1x16x16x128xf32>
    %119 = vector.shape_cast %118 : vector<1x16x16x128xf32> to vector<16x16x128xf32>
    %120 = arith.addf %119, %117 : vector<16x16x128xf32>
    %c0_177 = arith.constant 0 : index
    %c0_178 = arith.constant 0 : index
    %c0_179 = arith.constant 0 : index
    %c0_180 = arith.constant 0 : index
    %121 = vector.load %arg4[%c0_177, %c0_178, %c0_179, %c0_180] : memref<1x16x16x128xf32, #tpu.memory_space<vmem>>, vector<1x16x16x128xf32>
    %122 = vector.shape_cast %121 : vector<1x16x16x128xf32> to vector<16x16x128xf32>
    %123 = vector.shape_cast %120 : vector<16x16x128xf32> to vector<1x16x16x128xf32>
    tpu.vector_store %arg4[%c0_177, %c0_178, %c0_179, %c0_180], %123 {strides = array<i32>} : memref<1x16x16x128xf32, #tpu.memory_space<vmem>>, vector<1x16x16x128xf32>,
    return
  }
  func.func @transform_0(%arg0: i32) -> (i32, i32, i32, i32) {
    %c0_i32 = arith.constant 0 : i32
    %c0_i32_0 = arith.constant 0 : i32
    %c0_i32_1 = arith.constant 0 : i32
    %c0_i32_2 = arith.constant 0 : i32
    return %arg0, %c0_i32, %c0_i32_0, %c0_i32_1 : i32, i32, i32, i32
  }
  func.func @transform_1(%arg0: i32) -> (i32, i32, i32) {
    %c0_i32 = arith.constant 0 : i32
    %c0_i32_0 = arith.constant 0 : i32
    %c0_i32_1 = arith.constant 0 : i32
    %c0_i32_2 = arith.constant 0 : i32
    return %c0_i32, %c0_i32_0, %c0_i32_1 : i32, i32, i32
  }
  func.func @transform_2(%arg0: i32) -> (i32, i32, i32) {
    %c0_i32 = arith.constant 0 : i32
    %c0_i32_0 = arith.constant 0 : i32
    %c0_i32_1 = arith.constant 0 : i32
    %c0_i32_2 = arith.constant 0 : i32
    return %c0_i32, %c0_i32_0, %c0_i32_1 : i32, i32, i32
  }
  func.func @transform_3(%arg0: i32) -> (i32, i32, i32, i32) {
    %c0_i32 = arith.constant 0 : i32
    %c0_i32_0 = arith.constant 0 : i32
    %c0_i32_1 = arith.constant 0 : i32
    %c0_i32_2 = arith.constant 0 : i32
    return %arg0, %c0_i32, %c0_i32_0, %c0_i32_1 : i32, i32, i32, i32
  }
}

</mosaic_0001>

<bundles_post_ra>
// kernel: tpu_custom_call.1
= control target key start
LH: loop header
LB: loop body
LE: loop exit
PB: predicated region body
PF: predicated region fallthrough
CT: control target
= control target key end

     0   :  { %8 = vsyncpa [#allocation4], 0  ;;  %s18798_s0 = inlined_call_operand.vmem [shape: f32[2,16,16,4], index: 0, kind: input, shape index: {}]   ;;  %s18799_s1 = inlined_call_operand.vmem [shape: bf16[4,128,128], index: 1, kind: input, shape index: {}]   ;;  %s18800_s2 = inlined_call_operand.vmem [shape: f32[4,1,128], index: 2, kind: input, shape index: {}]   ;;  %s18801_s3 = inlined_call_operand.hbm [shape: f32[2,16,16,128], index: 3, kind: output, shape index: {}]  }
   0x1   :  { %10 = vsyncpa [#allocation4 + $0x1], 0  ;;  %s11420_s12 = smov 0   ;;  %s11422_s13 = smov 0  }
   0x2   :  { %s11424_s14 = smov 0   ;;  %s11426_s15 = smov 0  }
   0x3 LB: > { %s11441_s16 = sadd.s32 4294967295, %s11387_s15   ;;  %s8014_s17 = sadd.s32 4294967294, %s11387_s15   ;;  %s11387_s15 = sphi %s11426_s15, %s20538_s15   ;;  %s11383_s14 = sphi %s11424_s14, %s20537_s14   ;;  %s11379_s13 = sphi %s11422_s13, %s20536_s13   ;;  %s11375_s12 = sphi %s11420_s12, %s20535_s12  }
   0x4   : > { %s11445_s18 = sadd.s32 1, %s11387_s15   ;;  %s91_s19 = sadd.s32 1, %s11383_s14 }
   0x5   : > { %s88_s20 = ssub.s32 %s11387_s15, %s11445_s18  ;;  %p101_p0 = scmp.ne.s32.totalorder %s11383_s14, %s11379_s13 }
   0x6   : > { %p89_p1 = scmp.eq.s32.totalorder %s88_s20, 0  ;;  %p102_p2 = scmp.eq.s32.totalorder %s11441_s16, 1 }
   0x7   : > { %p107_p3 = scmp.ne.s32.totalorder %s11379_s13, %s11375_s12  ;;  %p108_p4 = scmp.eq.s32.totalorder %s8014_s17, 1 }
   0x8   : > { %s11456_s21 = scalar_select %p89_p1, %s11383_s14, %s91_s19  }
   0x9   : > { %p11458_p5 = por %p102_p2, %p101_p0  ;;  %p11462_p6 = por %p108_p4, %p107_p3 }
   0xa   : > { %p8017_p7 = scmp.ge.s32.totalorder %s11387_s15, 1  ;;  %p140_p8 = scmp.lt.s32.totalorder %s11387_s15, 3 }
   0xc   : > { %p141_p9 = pnand %p8017_p7, %p140_p8 }
   0xe   : > { %144 = sbr.rel (%p141_p9) target bundleno = 1493 (0x5d5), region = 32 }
  0x13   : > { %vm170_vm0 = vcmask 31744   ;;  %p164_p10 = scmp.lt.s32.totalorder %s11441_s16, 1  ;;  %v11389_v0 = vmov 0.0   ;;  %s11390_s29 = smov 4   ;;  %vm1679_vm1 = vcmask 64512   ;;  %vm1712_vm2 = vcmask 97280  }
  0x14   : > { %200 = vst.msk [vmem:[#allocation2 + $0xe8] sm:$0xff] %vm170_vm0, %v11389_v0  ;;  %201 = vst.msk [vmem:[#allocation2 + $0xf0] sm:$0xff] %vm170_vm0, %v11389_v0  ;;  %s11391_s30 = smov 8   ;;  %s11392_s4 = smov 12   ;;  %vm1745_vm3 = vcmask 130048   ;;  %vm1778_vm4 = vcmask 162816  }
  0x15   : > { %171 = vst.msk [vmem:[#allocation2] sm:$0xff] %vm170_vm0, %v11389_v0  ;;  %172 = vst.msk [vmem:[#allocation2 + $0x8] sm:$0xff] %vm170_vm0, %v11389_v0  ;;  %s165_s24 = scalar_select %p164_p10, %s11441_s16, 1  ;;  %vm1811_vm5 = vcmask 195584   ;;  %vm1844_vm6 = vcmask 228352   ;;  %vm1877_vm7 = vcmask 261120  }
  0x16   : > { %173 = vst.msk [vmem:[#allocation2 + $0x10] sm:$0xff] %vm170_vm0, %v11389_v0  ;;  %174 = vst.msk [vmem:[#allocation2 + $0x18] sm:$0xff] %vm170_vm0, %v11389_v0  ;;  %s11393_s5 = smov 16   ;;  %s11394_s6 = smov 20   ;;  %vm1910_vm8 = vcmask 293888  }
  0x17   : > { %175 = vst.msk [vmem:[#allocation2 + $0x20] sm:$0xff] %vm170_vm0, %v11389_v0  ;;  %176 = vst.msk [vmem:[#allocation2 + $0x28] sm:$0xff] %vm170_vm0, %v11389_v0  ;;  %s8305_s25 = sshll.u32 %s165_s24, 8  ;;  %s11395_s7 = smov 24  }
  0x18   : > { %177 = vst.msk [vmem:[#allocation2 + $0x30] sm:$0xff] %vm170_vm0, %v11389_v0  ;;  %178 = vst.msk [vmem:[#allocation2 + $0x38] sm:$0xff] %vm170_vm0, %v11389_v0  ;;  %s11667_s28 = scalar_lea.vmem %s18798_s0, %s8305_s25  ;;  %s11396_s17 = smov 28  }
  0x19   : > { %179 = vst.msk [vmem:[#allocation2 + $0x40] sm:$0xff] %vm170_vm0, %v11389_v0  ;;  %180 = vst.msk [vmem:[#allocation2 + $0x48] sm:$0xff] %vm170_vm0, %v11389_v0  ;;  %v271_v1 = vld [vmem:[%s11667_s28 + $0x10] sm:$0xff]  ;;  %v272_v2 = vld [vmem:[%s11667_s28 + $0x18] sm:$0xff]  ;;  %s11397_s20 = smov 32   ;;  %s161_s9 = sand.u32 1, %s11379_s13  }
  0x1a   : > { %181 = vst.msk [vmem:[#allocation2 + $0x50] sm:$0xff] %vm170_vm0, %v11389_v0  ;;  %182 = vst.msk [vmem:[#allocation2 + $0x58] sm:$0xff] %vm170_vm0, %v11389_v0  ;;  %v269_v3 = vld [vmem:[%s11667_s28] sm:$0xff]  ;;  %v270_v4 = vld [vmem:[%s11667_s28 + $0x8] sm:$0xff]  ;;  %s14710_s19 = sshll.u32 %s161_s9, 8 }
  0x1b   : > { %183 = vst.msk [vmem:[#allocation2 + $0x60] sm:$0xff] %vm170_vm0, %v11389_v0  ;;  %184 = vst.msk [vmem:[#allocation2 + $0x68] sm:$0xff] %vm170_vm0, %v11389_v0  ;;  %v273_v5 = vld [vmem:[%s11667_s28 + $0x20] sm:$0xff]  ;;  %v274_v6 = vld [vmem:[%s11667_s28 + $0x28] sm:$0xff]  ;;  %s14786_s24 = scalar_lea.vmem [#allocation3], %s14710_s19 }
  0x1c   : > { %185 = vst.msk [vmem:[#allocation2 + $0x70] sm:$0xff] %vm170_vm0, %v11389_v0  ;;  %186 = vst.msk [vmem:[#allocation2 + $0x78] sm:$0xff] %vm170_vm0, %v11389_v0  ;;  %v366_v7 = vld [vmem:[#allocation2 + $0xe8] sm:$0xff]  ;;  %v367_v8 = vld [vmem:[#allocation2 + $0xf0] sm:$0xff] }
  0x1d   : > { %187 = vst.msk [vmem:[#allocation2 + $0x80] sm:$0xff] %vm170_vm0, %v11389_v0  ;;  %188 = vst.msk [vmem:[#allocation2 + $0x88] sm:$0xff] %vm170_vm0, %v11389_v0  ;;  %v275_v9 = vld [vmem:[%s11667_s28 + $0x30] sm:$0xff]  ;;  %v8644_v10 = vpack.i.bf16 %v367_v8, %v366_v7  ;;  %v276_v11 = vld [vmem:[%s11667_s28 + $0x38] sm:$0xff] }
  0x1e   : > { %189 = vst.msk [vmem:[#allocation2 + $0x90] sm:$0xff] %vm170_vm0, %v11389_v0  ;;  %190 = vst.msk [vmem:[#allocation2 + $0x98] sm:$0xff] %vm170_vm0, %v11389_v0  ;;  %v277_v12 = vld [vmem:[%s11667_s28 + $0x40] sm:$0xff]  ;;  %v278_v13 = vld [vmem:[%s11667_s28 + $0x48] sm:$0xff] }
  0x1f   : > { %191 = vst.msk [vmem:[#allocation2 + $0xa0] sm:$0xff] %vm170_vm0, %v11389_v0  ;;  %192 = vst.msk [vmem:[#allocation2 + $0xa8] sm:$0xff] %vm170_vm0, %v11389_v0  ;;  %v279_v14 = vld [vmem:[%s11667_s28 + $0x50] sm:$0xff]  ;;  %v280_v15 = vld [vmem:[%s11667_s28 + $0x58] sm:$0xff]  ;;  %8645 = vrot.lane.b32.xlu0 %v8644_v10, %s11390_s29 }
  0x20   : > { %193 = vst.msk [vmem:[#allocation2 + $0xb0] sm:$0xff] %vm170_vm0, %v11389_v0  ;;  %194 = vst.msk [vmem:[#allocation2 + $0xb8] sm:$0xff] %vm170_vm0, %v11389_v0  ;;  %v281_v16 = vld [vmem:[%s11667_s28 + $0x60] sm:$0xff]  ;;  %v282_v17 = vld [vmem:[%s11667_s28 + $0x68] sm:$0xff] }
  0x21   : > { %195 = vst.msk [vmem:[#allocation2 + $0xc0] sm:$0xff] %vm170_vm0, %v11389_v0  ;;  %196 = vst.msk [vmem:[#allocation2 + $0xc8] sm:$0xff] %vm170_vm0, %v11389_v0  ;;  %v283_v18 = vld [vmem:[%s11667_s28 + $0x70] sm:$0xff]  ;;  %v284_v19 = vld [vmem:[%s11667_s28 + $0x78] sm:$0xff] }
  0x22   : > { %197 = vst.msk [vmem:[#allocation2 + $0xd0] sm:$0xff] %vm170_vm0, %v11389_v0  ;;  %198 = vst.msk [vmem:[#allocation2 + $0xd8] sm:$0xff] %vm170_vm0, %v11389_v0  ;;  %v285_v20 = vld [vmem:[%s11667_s28 + $0x80] sm:$0xff]  ;;  %v286_v21 = vld [vmem:[%s11667_s28 + $0x88] sm:$0xff] }
  0x23   : > { %199 = vst.msk [vmem:[#allocation2 + $0xe0] sm:$0xff] %vm170_vm0, %v11389_v0  ;;  %202 = vst.msk [vmem:[#allocation2 + $0xf8] sm:$0xff] %vm170_vm0, %v11389_v0  ;;  %v287_v22 = vld [vmem:[%s11667_s28 + $0x90] sm:$0xff]  ;;  %v288_v23 = vld [vmem:[%s11667_s28 + $0x98] sm:$0xff] }
  0x24   : > { %204 = vst.msk [vmem:[#allocation2 + $0x300] sm:$0xff] %vm170_vm0, %v11389_v0  ;;  %205 = vst.msk [vmem:[#allocation2 + $0x308] sm:$0xff] %vm170_vm0, %v11389_v0  ;;  %v289_v24 = vld [vmem:[%s11667_s28 + $0xa0] sm:$0xff]  ;;  %v290_v25 = vld [vmem:[%s11667_s28 + $0xa8] sm:$0xff] }
  0x25   : > { %206 = vst.msk [vmem:[#allocation2 + $0x310] sm:$0xff] %vm170_vm0, %v11389_v0  ;;  %207 = vst.msk [vmem:[#allocation2 + $0x318] sm:$0xff] %vm170_vm0, %v11389_v0  ;;  %v291_v35 = vld [vmem:[%s11667_s28 + $0xb0] sm:$0xff]  ;;  %v292_v36 = vld [vmem:[%s11667_s28 + $0xb8] sm:$0xff] }
  0x26   : > { %208 = vst.msk [vmem:[#allocation2 + $0x320] sm:$0xff] %vm170_vm0, %v11389_v0  ;;  %209 = vst.msk [vmem:[#allocation2 + $0x328] sm:$0xff] %vm170_vm0, %v11389_v0  ;;  %v293_v50 = vld [vmem:[%s11667_s28 + $0xc0] sm:$0xff]  ;;  %v294_v51 = vld [vmem:[%s11667_s28 + $0xc8] sm:$0xff] }
  0x27   : > { %210 = vst.msk [vmem:[#allocation2 + $0x330] sm:$0xff] %vm170_vm0, %v11389_v0  ;;  %211 = vst.msk [vmem:[#allocation2 + $0x338] sm:$0xff] %vm170_vm0, %v11389_v0  ;;  %v295_v52 = vld [vmem:[%s11667_s28 + $0xd0] sm:$0xff]  ;;  %v296_v53 = vld [vmem:[%s11667_s28 + $0xd8] sm:$0xff] }
  0x28   : > { %212 = vst.msk [vmem:[#allocation2 + $0x340] sm:$0xff] %vm170_vm0, %v11389_v0  ;;  %213 = vst.msk [vmem:[#allocation2 + $0x348] sm:$0xff] %vm170_vm0, %v11389_v0  ;;  %v297_v54 = vld [vmem:[%s11667_s28 + $0xe0] sm:$0xff]  ;;  %v298_v55 = vld [vmem:[%s11667_s28 + $0xe8] sm:$0xff] }
  0x29   : > { %214 = vst.msk [vmem:[#allocation2 + $0x350] sm:$0xff] %vm170_vm0, %v11389_v0  ;;  %215 = vst.msk [vmem:[#allocation2 + $0x358] sm:$0xff] %vm170_vm0, %v11389_v0 }
  0x2a   : > { %216 = vst.msk [vmem:[#allocation2 + $0x360] sm:$0xff] %vm170_vm0, %v11389_v0  ;;  %217 = vst.msk [vmem:[#allocation2 + $0x368] sm:$0xff] %vm170_vm0, %v11389_v0 }
  0x2b   : > { %218 = vst.msk [vmem:[#allocation2 + $0x370] sm:$0xff] %vm170_vm0, %v11389_v0  ;;  %219 = vst.msk [vmem:[#allocation2 + $0x378] sm:$0xff] %vm170_vm0, %v11389_v0 }
  0x2c   : > { %220 = vst.msk [vmem:[#allocation2 + $0x380] sm:$0xff] %vm170_vm0, %v11389_v0  ;;  %221 = vst.msk [vmem:[#allocation2 + $0x388] sm:$0xff] %vm170_vm0, %v11389_v0 }
  0x2d   : > { %222 = vst.msk [vmem:[#allocation2 + $0x390] sm:$0xff] %vm170_vm0, %v11389_v0  ;;  %223 = vst.msk [vmem:[#allocation2 + $0x398] sm:$0xff] %vm170_vm0, %v11389_v0 }
  0x2e   : > { %224 = vst.msk [vmem:[#allocation2 + $0x3a0] sm:$0xff] %vm170_vm0, %v11389_v0  ;;  %225 = vst.msk [vmem:[#allocation2 + $0x3a8] sm:$0xff] %vm170_vm0, %v11389_v0 }
  0x2f   : > { %226 = vst.msk [vmem:[#allocation2 + $0x3b0] sm:$0xff] %vm170_vm0, %v11389_v0  ;;  %227 = vst.msk [vmem:[#allocation2 + $0x3b8] sm:$0xff] %vm170_vm0, %v11389_v0 }
  0x30   : > { %228 = vst.msk [vmem:[#allocation2 + $0x3c0] sm:$0xff] %vm170_vm0, %v11389_v0  ;;  %229 = vst.msk [vmem:[#allocation2 + $0x3c8] sm:$0xff] %vm170_vm0, %v11389_v0 }
  0x31   : > { %230 = vst.msk [vmem:[#allocation2 + $0x3d0] sm:$0xff] %vm170_vm0, %v11389_v0  ;;  %231 = vst.msk [vmem:[#allocation2 + $0x3d8] sm:$0xff] %vm170_vm0, %v11389_v0 }
  0x32   : > { %232 = vst.msk [vmem:[#allocation2 + $0x3e0] sm:$0xff] %vm170_vm0, %v11389_v0  ;;  %233 = vst.msk [vmem:[#allocation2 + $0x3e8] sm:$0xff] %vm170_vm0, %v11389_v0 }
  0x33   : > { %234 = vst.msk [vmem:[#allocation2 + $0x3f0] sm:$0xff] %vm170_vm0, %v11389_v0  ;;  %235 = vst.msk [vmem:[#allocation2 + $0x3f8] sm:$0xff] %vm170_vm0, %v11389_v0 }
  0x34   : > { %237 = vst.msk [vmem:[#allocation2 + $0x100] sm:$0xff] %vm170_vm0, %v11389_v0  ;;  %238 = vst.msk [vmem:[#allocation2 + $0x120] sm:$0xff] %vm170_vm0, %v11389_v0 }
  0x35   : > { %239 = vst.msk [vmem:[#allocation2 + $0x140] sm:$0xff] %vm170_vm0, %v11389_v0  ;;  %240 = vst.msk [vmem:[#allocation2 + $0x160] sm:$0xff] %vm170_vm0, %v11389_v0 }
  0x36   : > { %241 = vst.msk [vmem:[#allocation2 + $0x180] sm:$0xff] %vm170_vm0, %v11389_v0  ;;  %242 = vst.msk [vmem:[#allocation2 + $0x1a0] sm:$0xff] %vm170_vm0, %v11389_v0 }
  0x37   : > { %243 = vst.msk [vmem:[#allocation2 + $0x1c0] sm:$0xff] %vm170_vm0, %v11389_v0  ;;  %244 = vst.msk [vmem:[#allocation2 + $0x1e0] sm:$0xff] %vm170_vm0, %v11389_v0 }
  0x38   : > { %245 = vst.msk [vmem:[#allocation2 + $0x200] sm:$0xff] %vm170_vm0, %v11389_v0  ;;  %246 = vst.msk [vmem:[#allocation2 + $0x220] sm:$0xff] %vm170_vm0, %v11389_v0 }
  0x39   : > { %247 = vst.msk [vmem:[#allocation2 + $0x240] sm:$0xff] %vm170_vm0, %v11389_v0  ;;  %248 = vst.msk [vmem:[#allocation2 + $0x260] sm:$0xff] %vm170_vm0, %v11389_v0 }
  0x3a   : > { %249 = vst.msk [vmem:[#allocation2 + $0x280] sm:$0xff] %vm170_vm0, %v11389_v0  ;;  %250 = vst.msk [vmem:[#allocation2 + $0x2a0] sm:$0xff] %vm170_vm0, %v11389_v0 }
  0x3b   : > { %251 = vst.msk [vmem:[#allocation2 + $0x2c0] sm:$0xff] %vm170_vm0, %v11389_v0  ;;  %252 = vst.msk [vmem:[#allocation2 + $0x2e0] sm:$0xff] %vm170_vm0, %v11389_v0 }
  0x3c   : > { %253 = vst.msk [vmem:[#allocation2 + $0x118] sm:$0xff] %vm170_vm0, %v11389_v0  ;;  %254 = vst.msk [vmem:[#allocation2 + $0x138] sm:$0xff] %vm170_vm0, %v11389_v0 }
  0x3d   : > { %255 = vst.msk [vmem:[#allocation2 + $0x158] sm:$0xff] %vm170_vm0, %v11389_v0  ;;  %256 = vst.msk [vmem:[#allocation2 + $0x178] sm:$0xff] %vm170_vm0, %v11389_v0 }
  0x3e   : > { %257 = vst.msk [vmem:[#allocation2 + $0x198] sm:$0xff] %vm170_vm0, %v11389_v0  ;;  %258 = vst.msk [vmem:[#allocation2 + $0x1b8] sm:$0xff] %vm170_vm0, %v11389_v0 }
  0x3f   : > { %259 = vst.msk [vmem:[#allocation2 + $0x1d8] sm:$0xff] %vm170_vm0, %v11389_v0  ;;  %260 = vst.msk [vmem:[#allocation2 + $0x1f8] sm:$0xff] %vm170_vm0, %v11389_v0 }
  0x40   : > { %261 = vst.msk [vmem:[#allocation2 + $0x218] sm:$0xff] %vm170_vm0, %v11389_v0  ;;  %262 = vst.msk [vmem:[#allocation2 + $0x238] sm:$0xff] %vm170_vm0, %v11389_v0 }
  0x41   : > { %263 = vst.msk [vmem:[#allocation2 + $0x258] sm:$0xff] %vm170_vm0, %v11389_v0  ;;  %264 = vst.msk [vmem:[#allocation2 + $0x278] sm:$0xff] %vm170_vm0, %v11389_v0 }
  0x42   : > { %265 = vst.msk [vmem:[#allocation2 + $0x298] sm:$0xff] %vm170_vm0, %v11389_v0  ;;  %266 = vst.msk [vmem:[#allocation2 + $0x2b8] sm:$0xff] %vm170_vm0, %v11389_v0 }
  0x43   : > { %267 = vst.msk [vmem:[#allocation2 + $0x2d8] sm:$0xff] %vm170_vm0, %v11389_v0  ;;  %268 = vst.msk [vmem:[#allocation2 + $0x2f8] sm:$0xff] %vm170_vm0, %v11389_v0 }
  0x44   : > { %303 = vst.msk [vmem:[#allocation2 + $0x128] sm:$0xff] %vm170_vm0, %v271_v1  ;;  %304 = vst.msk [vmem:[#allocation2 + $0x130] sm:$0xff] %vm170_vm0, %v272_v2 }
  0x45   : > { %301 = vst.msk [vmem:[#allocation2 + $0x108] sm:$0xff] %vm170_vm0, %v269_v3  ;;  %302 = vst.msk [vmem:[#allocation2 + $0x110] sm:$0xff] %vm170_vm0, %v270_v4 }
  0x46   : > { %305 = vst.msk [vmem:[#allocation2 + $0x148] sm:$0xff] %vm170_vm0, %v273_v5  ;;  %306 = vst.msk [vmem:[#allocation2 + $0x150] sm:$0xff] %vm170_vm0, %v274_v6 }
  0x47   : > { %307 = vst.msk [vmem:[#allocation2 + $0x168] sm:$0xff] %vm170_vm0, %v275_v9  ;;  %308 = vst.msk [vmem:[#allocation2 + $0x170] sm:$0xff] %vm170_vm0, %v276_v11 }
  0x48   : > { %309 = vst.msk [vmem:[#allocation2 + $0x188] sm:$0xff] %vm170_vm0, %v277_v12  ;;  %310 = vst.msk [vmem:[#allocation2 + $0x190] sm:$0xff] %vm170_vm0, %v278_v13 }
  0x49   : > { %311 = vst.msk [vmem:[#allocation2 + $0x1a8] sm:$0xff] %vm170_vm0, %v279_v14  ;;  %312 = vst.msk [vmem:[#allocation2 + $0x1b0] sm:$0xff] %vm170_vm0, %v280_v15  ;;  %v398_v14 = vld [vmem:[#allocation2 + $0xe9] sm:$0xff]  ;;  %v399_v15 = vld [vmem:[#allocation2 + $0xf1] sm:$0xff] }
  0x4a   : > { %313 = vst.msk [vmem:[#allocation2 + $0x1c8] sm:$0xff] %vm170_vm0, %v281_v16  ;;  %314 = vst.msk [vmem:[#allocation2 + $0x1d0] sm:$0xff] %vm170_vm0, %v282_v17  ;;  %v8724_v17 = vpack.i.bf16 %v399_v15, %v398_v14 }
  0x4b   : > { %315 = vst.msk [vmem:[#allocation2 + $0x1e8] sm:$0xff] %vm170_vm0, %v283_v18  ;;  %316 = vst.msk [vmem:[#allocation2 + $0x1f0] sm:$0xff] %vm170_vm0, %v284_v19  ;;  %v370_v26 = vld [vmem:[#allocation2 + $0x128] sm:$0xff]  ;;  %v371_v27 = vld [vmem:[#allocation2 + $0x130] sm:$0xff] }
  0x4c   : > { %317 = vst.msk [vmem:[#allocation2 + $0x208] sm:$0xff] %vm170_vm0, %v285_v20  ;;  %318 = vst.msk [vmem:[#allocation2 + $0x210] sm:$0xff] %vm170_vm0, %v286_v21  ;;  %v368_v28 = vld [vmem:[#allocation2 + $0x108] sm:$0xff]  ;;  %v11714_v29 = vpack.i.bf16 %v371_v27, %v370_v26  ;;  %v369_v30 = vld [vmem:[#allocation2 + $0x110] sm:$0xff] }
  0x4d   : > { %319 = vst.msk [vmem:[#allocation2 + $0x228] sm:$0xff] %vm170_vm0, %v287_v22  ;;  %320 = vst.msk [vmem:[#allocation2 + $0x230] sm:$0xff] %vm170_vm0, %v288_v23  ;;  %v372_v31 = vld [vmem:[#allocation2 + $0x148] sm:$0xff]  ;;  %v373_v32 = vld [vmem:[#allocation2 + $0x150] sm:$0xff]  ;;  %v11716_v33 = vpack.i.bf16 %v369_v30, %v368_v28 }
  0x4e   : > { %321 = vst.msk [vmem:[#allocation2 + $0x248] sm:$0xff] %vm170_vm0, %v289_v24  ;;  %322 = vst.msk [vmem:[#allocation2 + $0x250] sm:$0xff] %vm170_vm0, %v290_v25  ;;  %v374_v34 = vld [vmem:[#allocation2 + $0x168] sm:$0xff]  ;;  %8655 = vrot.lane.b32.xlu1 %v11714_v29, %s11390_s29  ;;  %v11722_v37 = vpack.i.bf16 %v373_v32, %v372_v31  ;;  %v375_v38 = vld [vmem:[#allocation2 + $0x170] sm:$0xff] }
  0x4f   : > { %323 = vst.msk [vmem:[#allocation2 + $0x268] sm:$0xff] %vm170_vm0, %v291_v35  ;;  %324 = vst.msk [vmem:[#allocation2 + $0x270] sm:$0xff] %vm170_vm0, %v292_v36  ;;  %8650 = vrot.lane.b32.xlu0 %v11716_v33, %s11390_s29  ;;  %v11728_v39 = vpack.i.bf16 %v375_v38, %v374_v34  ;;  %v376_v40 = vld [vmem:[#allocation2 + $0x188] sm:$0xff]  ;;  %v377_v41 = vld [vmem:[#allocation2 + $0x190] sm:$0xff] }
  0x50   : > { %v378_v42 = vld [vmem:[#allocation2 + $0x1a8] sm:$0xff]  ;;  %v379_v43 = vld [vmem:[#allocation2 + $0x1b0] sm:$0xff]  ;;  %v11732_v45 = vpack.i.bf16 %v377_v41, %v376_v40  ;;  %325 = vst.msk [vmem:[#allocation2 + $0x288] sm:$0xff] %vm170_vm0, %v293_v50  ;;  %326 = vst.msk [vmem:[#allocation2 + $0x290] sm:$0xff] %vm170_vm0, %v294_v51 }
  0x51   : > { %v380_v44 = vld [vmem:[#allocation2 + $0x1c8] sm:$0xff]  ;;  %v381_v46 = vld [vmem:[#allocation2 + $0x1d0] sm:$0xff]  ;;  %v11736_v49 = vpack.i.bf16 %v379_v43, %v378_v42  ;;  %327 = vst.msk [vmem:[#allocation2 + $0x2a8] sm:$0xff] %vm170_vm0, %v295_v52  ;;  %328 = vst.msk [vmem:[#allocation2 + $0x2b0] sm:$0xff] %vm170_vm0, %v296_v53 }
  0x52   : > { %8660 = vrot.lane.b32.xlu1 %v11722_v37, %s11390_s29  ;;  %v382_v47 = vld [vmem:[#allocation2 + $0x1e8] sm:$0xff]  ;;  %v383_v48 = vld [vmem:[#allocation2 + $0x1f0] sm:$0xff]  ;;  %329 = vst.msk [vmem:[#allocation2 + $0x2c8] sm:$0xff] %vm170_vm0, %v297_v54  ;;  %330 = vst.msk [vmem:[#allocation2 + $0x2d0] sm:$0xff] %vm170_vm0, %v298_v55  ;;  %v11752_v56 = vpack.i.bf16 %v381_v46, %v380_v44 }
  0x53   : > { %8665 = vrot.lane.b32.xlu0 %v11728_v39, %s11390_s29  ;;  %v11756_v57 = vpack.i.bf16 %v383_v48, %v382_v47  ;;  %v384_v58 = vld [vmem:[#allocation2 + $0x208] sm:$0xff]  ;;  %v385_v59 = vld [vmem:[#allocation2 + $0x210] sm:$0xff]  ;;  %v300_v30 = vld [vmem:[%s11667_s28 + $0xf8] sm:$0xff] }
  0x54   : > { %v386_v60 = vld [vmem:[#allocation2 + $0x228] sm:$0xff]  ;;  %v387_v61 = vld [vmem:[#allocation2 + $0x230] sm:$0xff]  ;;  %v11760_v62 = vpack.i.bf16 %v385_v59, %v384_v58  ;;  %332 = vst.msk [vmem:[#allocation2 + $0x2f0] sm:$0xff] %vm170_vm0, %v300_v30  ;;  %vm13383_vm9 = vmpackc.low %vm1910_vm8, %vm1910_vm8 }
  0x55   : > { %v11764_v63 = vpack.i.bf16 %v387_v61, %v386_v60  ;;  %v388_v0 = vld [vmem:[#allocation2 + $0x248] sm:$0xff]  ;;  %v389_v1 = vld [vmem:[#allocation2 + $0x250] sm:$0xff] }
  0x56   : > { %8670 = vrot.lane.b32.xlu1 %v11732_v45, %s11390_s29  ;;  %v390_v2 = vld [vmem:[#allocation2 + $0x268] sm:$0xff]  ;;  %v391_v3 = vld [vmem:[#allocation2 + $0x270] sm:$0xff]  ;;  %v11768_v4 = vpack.i.bf16 %v389_v1, %v388_v0 }
  0x57   : > { %8675 = vrot.lane.b32.xlu0 %v11736_v49, %s11390_s29  ;;  %v11772_v5 = vpack.i.bf16 %v391_v3, %v390_v2  ;;  %v392_v6 = vld [vmem:[#allocation2 + $0x288] sm:$0xff]  ;;  %v393_v7 = vld [vmem:[#allocation2 + $0x290] sm:$0xff] }
  0x58   : > { %v394_v8 = vld [vmem:[#allocation2 + $0x2a8] sm:$0xff]  ;;  %v395_v9 = vld [vmem:[#allocation2 + $0x2b0] sm:$0xff]  ;;  %v11776_v10 = vpack.i.bf16 %v393_v7, %v392_v6 }
  0x59   : > { %v11780_v11 = vpack.i.bf16 %v395_v9, %v394_v8  ;;  %v396_v12 = vld [vmem:[#allocation2 + $0x2c8] sm:$0xff]  ;;  %v397_v13 = vld [vmem:[#allocation2 + $0x2d0] sm:$0xff] }
  0x5a   : > { %8680 = vrot.lane.b32.xlu1 %v11752_v56, %s11390_s29  ;;  %v11784_v16 = vpack.i.bf16 %v397_v13, %v396_v12  ;;  %v400_v18 = vld [vmem:[#allocation2 + $0x109] sm:$0xff]  ;;  %v401_v19 = vld [vmem:[#allocation2 + $0x111] sm:$0xff] }
  0x5b   : > { %8685 = vrot.lane.b32.xlu0 %v11756_v57, %s11390_s29  ;;  %v402_v20 = vld [vmem:[#allocation2 + $0x129] sm:$0xff]  ;;  %v403_v21 = vld [vmem:[#allocation2 + $0x131] sm:$0xff]  ;;  %v11790_v22 = vpack.i.bf16 %v401_v19, %v400_v18 }
  0x5c   : > { %v11793_v23 = vpack.i.bf16 %v403_v21, %v402_v20  ;;  %v404_v24 = vld [vmem:[#allocation2 + $0x149] sm:$0xff]  ;;  %v405_v25 = vld [vmem:[#allocation2 + $0x151] sm:$0xff] }
  0x5d   : > { %v406_v26 = vld [vmem:[#allocation2 + $0x169] sm:$0xff]  ;;  %v407_v27 = vld [vmem:[#allocation2 + $0x171] sm:$0xff]  ;;  %v11801_v34 = vpack.i.bf16 %v405_v25, %v404_v24 }
  0x5e   : > { %8690 = vrot.lane.b32.xlu1 %v11760_v62, %s11390_s29  ;;  %v299_v28 = vld [vmem:[%s11667_s28 + $0xf0] sm:$0xff]  ;;  %v11805_v38 = vpack.i.bf16 %v407_v27, %v406_v26  ;;  %v11847_v14 = vld [vmem:[#allocation2 + $0x107] sm:$0xff]  ;;  %s11398_s28 = smov [#allocation3]  }
  0x5f   : > { %8695 = vrot.lane.b32.xlu0 %v11764_v63, %s11390_s29  ;;  %v408_v31 = vld [vmem:[#allocation2 + $0x189] sm:$0xff]  ;;  %v409_v32 = vld [vmem:[#allocation2 + $0x191] sm:$0xff]  ;;  %331 = vst.msk [vmem:[#allocation2 + $0x2e8] sm:$0xff] %vm170_vm0, %v299_v28  ;;  %s11331_s8 = sshll.u32 %s11398_s28, 4  ;;  %s11332_s8 = int_to_ptr.vmem [resolvable:$false] %s11331_s8 }
  0x60   : > { %v410_v35 = vld [vmem:[#allocation2 + $0x1a9] sm:$0xff]  ;;  %v411_v36 = vld [vmem:[#allocation2 + $0x1b1] sm:$0xff]  ;;  %v11809_v42 = vpack.i.bf16 %v409_v32, %v408_v31  ;;  %s11333_s10 = scalar_lea.vmem %s11332_s8, 8192 }
  0x61   : > { %v412_v40 = vld [vmem:[#allocation2 + $0x1c9] sm:$0xff]  ;;  %v413_v41 = vld [vmem:[#allocation2 + $0x1d1] sm:$0xff]  ;;  %v11813_v43 = vpack.i.bf16 %v411_v36, %v410_v35 }
  0x62   : > { %8700 = vrot.lane.b32.xlu1 %v11768_v4, %s11390_s29  ;;  %v414_v44 = vld [vmem:[#allocation2 + $0x1e9] sm:$0xff]  ;;  %v415_v46 = vld [vmem:[#allocation2 + $0x1f1] sm:$0xff]  ;;  %v11817_v50 = vpack.i.bf16 %v413_v41, %v412_v40 }
  0x63   : > { %8705 = vrot.lane.b32.xlu0 %v11772_v5, %s11390_s29  ;;  %v416_v47 = vld [vmem:[#allocation2 + $0x209] sm:$0xff]  ;;  %v417_v48 = vld [vmem:[#allocation2 + $0x211] sm:$0xff]  ;;  %v11821_v53 = vpack.i.bf16 %v415_v46, %v414_v44 }
  0x64   : > { %v418_v51 = vld [vmem:[#allocation2 + $0x229] sm:$0xff]  ;;  %v419_v52 = vld [vmem:[#allocation2 + $0x231] sm:$0xff]  ;;  %v11825_v58 = vpack.i.bf16 %v417_v48, %v416_v47 }
  0x65   : > { %v420_v54 = vld [vmem:[#allocation2 + $0x249] sm:$0xff]  ;;  %v421_v55 = vld [vmem:[#allocation2 + $0x251] sm:$0xff]  ;;  %v11829_v61 = vpack.i.bf16 %v419_v52, %v418_v51 }
  0x66   : > { %8710 = vrot.lane.b32.xlu1 %v11776_v10, %s11390_s29  ;;  %v422_v59 = vld [vmem:[#allocation2 + $0x269] sm:$0xff]  ;;  %v423_v60 = vld [vmem:[#allocation2 + $0x271] sm:$0xff]  ;;  %v11833_v2 = vpack.i.bf16 %v421_v55, %v420_v54 }
  0x67   : > { %8715 = vrot.lane.b32.xlu0 %v11780_v11, %s11390_s29  ;;  %v424_v0 = vld [vmem:[#allocation2 + $0x289] sm:$0xff]  ;;  %v425_v1 = vld [vmem:[#allocation2 + $0x291] sm:$0xff]  ;;  %v11837_v6 = vpack.i.bf16 %v423_v60, %v422_v59 }
  0x68   : > { %v426_v3 = vld [vmem:[#allocation2 + $0x2a9] sm:$0xff]  ;;  %v427_v7 = vld [vmem:[#allocation2 + $0x2b1] sm:$0xff]  ;;  %v11841_v8 = vpack.i.bf16 %v425_v1, %v424_v0 }
  0x69   : > { %v11845_v9 = vpack.i.bf16 %v427_v7, %v426_v3  ;;  %v428_v12 = vld [vmem:[#allocation2 + $0x2c9] sm:$0xff]  ;;  %v429_v13 = vld [vmem:[#allocation2 + $0x2d1] sm:$0xff] }
  0x6a   : > { %8720 = vrot.lane.b32.xlu1 %v11784_v16, %s11390_s29  ;;  %v11849_v15 = vld [vmem:[#allocation2 + $0x10f] sm:$0xff]  ;;  %v11859_v19 = vld [vmem:[#allocation2 + $0x127] sm:$0xff] }
  0x6b   : > { %8725 = vrot.lane.b32.xlu0 %v8724_v17, %s11391_s30  ;;  %v11853_v17 = vpack.i.bf16 %v429_v13, %v428_v12  ;;  %v8804_v18 = vpack.i.bf16 %v11849_v15, %v11847_v14  ;;  %v11861_v20 = vld [vmem:[#allocation2 + $0x12f] sm:$0xff]  ;;  %v11863_v21 = vld [vmem:[#allocation2 + $0x147] sm:$0xff] }
  0x6c   : > { %v11865_v24 = vld [vmem:[#allocation2 + $0x14f] sm:$0xff]  ;;  %v11871_v25 = vpack.i.bf16 %v11861_v20, %v11859_v19  ;;  %v11878_v27 = vld [vmem:[#allocation2 + $0x167] sm:$0xff] }
  0x6d   : > { %v11876_v26 = vpack.i.bf16 %v11865_v24, %v11863_v21  ;;  %v11880_v28 = vld [vmem:[#allocation2 + $0x16f] sm:$0xff]  ;;  %v11882_v30 = vld [vmem:[#allocation2 + $0x187] sm:$0xff] }
  0x6e   : > { %8730 = vrot.lane.b32.xlu1 %v11790_v22, %s11391_s30  ;;  %v11884_v31 = vld [vmem:[#allocation2 + $0x18f] sm:$0xff]  ;;  %v11890_v32 = vpack.i.bf16 %v11880_v28, %v11878_v27  ;;  %v11898_v36 = vld [vmem:[#allocation2 + $0x1a7] sm:$0xff] }
  0x6f   : > { %8735 = vrot.lane.b32.xlu0 %v11793_v23, %s11391_s30  ;;  %v11896_v35 = vpack.i.bf16 %v11884_v31, %v11882_v30  ;;  %v11900_v40 = vld [vmem:[#allocation2 + $0x1af] sm:$0xff]  ;;  %v11902_v41 = vld [vmem:[#allocation2 + $0x1c7] sm:$0xff] }
  0x70   : > { %19304 = vst [vmem:[#allocation6_spill] sm:$0xff] %v11902_v41  ;;  %v11904_v44 = vld [vmem:[#allocation2 + $0x1cf] sm:$0xff]  ;;  %v11910_v46 = vpack.i.bf16 %v11900_v40, %v11898_v36  ;;  %v11918_v48 = vld [vmem:[#allocation2 + $0x1e7] sm:$0xff] }
  0x71   : > { %v11916_v47 = vpack.i.bf16 %v11904_v44, %v11902_v41  ;;  %19305 = vst [vmem:[#allocation7_spill] sm:$0xff] %v11918_v48  ;;  %v11920_v51 = vld [vmem:[#allocation2 + $0x1ef] sm:$0xff]  ;;  %v11922_v52 = vld [vmem:[#allocation2 + $0x207] sm:$0xff] }
  0x72   : > { %8740 = vrot.lane.b32.xlu1 %v11801_v34, %s11391_s30  ;;  %19306 = vst [vmem:[#allocation8_spill] sm:$0xff] %v11920_v51  ;;  %19307 = vst [vmem:[#allocation9_spill] sm:$0xff] %v11922_v52  ;;  %v11924_v54 = vld [vmem:[#allocation2 + $0x20f] sm:$0xff]  ;;  %v11930_v55 = vpack.i.bf16 %v11920_v51, %v11918_v48  ;;  %v11938_v60 = vld [vmem:[#allocation2 + $0x227] sm:$0xff] }
  0x73   : > { %8745 = vrot.lane.b32.xlu0 %v11805_v38, %s11391_s30  ;;  %19308 = vst [vmem:[#allocation10_spill] sm:$0xff] %v11924_v54  ;;  %v11936_v59 = vpack.i.bf16 %v11924_v54, %v11922_v52  ;;  %19309 = vst [vmem:[#allocation11_spill] sm:$0xff] %v11938_v60  ;;  %v11940_v0 = vld [vmem:[#allocation2 + $0x22f] sm:$0xff]  ;;  %v11942_v1 = vld [vmem:[#allocation2 + $0x247] sm:$0xff] }
  0x74   : > { %19310 = vst [vmem:[#allocation12_spill] sm:$0xff] %v11940_v0  ;;  %19311 = vst [vmem:[#allocation13_spill] sm:$0xff] %v11942_v1  ;;  %v11944_v3 = vld [vmem:[#allocation2 + $0x24f] sm:$0xff]  ;;  %v11950_v7 = vpack.i.bf16 %v11940_v0, %v11938_v60  ;;  %v11958_v13 = vld [vmem:[#allocation2 + $0x267] sm:$0xff] }
  0x75   : > { %19312 = vst [vmem:[#allocation14_spill] sm:$0xff] %v11944_v3  ;;  %v11956_v12 = vpack.i.bf16 %v11944_v3, %v11942_v1  ;;  %19313 = vst [vmem:[#allocation15_spill] sm:$0xff] %v11958_v13  ;;  %v11962_v52 = vld [vmem:[#allocation2 + $0x287] sm:$0xff]  ;;  %v11964_v54 = vld [vmem:[#allocation2 + $0x28f] sm:$0xff] }
  0x76   : > { %8750 = vrot.lane.b32.xlu1 %v11809_v42, %s11391_s30  ;;  %19315 = vst [vmem:[#allocation17_spill] sm:$0xff] %v11962_v52  ;;  %19316 = vst [vmem:[#allocation18_spill] sm:$0xff] %v11964_v54  ;;  %v11976_v1 = vpack.i.bf16 %v11964_v54, %v11962_v52  ;;  %v11978_v3 = vld [vmem:[#allocation2 + $0x2a7] sm:$0xff]  ;;  %v11980_v0 = vld [vmem:[#allocation2 + $0x2af] sm:$0xff] }
  0x77   : > { %8755 = vrot.lane.b32.xlu0 %v11813_v43, %s11391_s30  ;;  %v11982_v48 = vld [vmem:[#allocation2 + $0x2c7] sm:$0xff]  ;;  %v11984_v51 = vld [vmem:[#allocation2 + $0x2cf] sm:$0xff] }
  0x78   : > { %v11996_v52 = vpack.i.bf16 %v11984_v51, %v11982_v48  ;;  %v460_v54 = vld [vmem:[#allocation2 + $0x2e7] sm:$0xff] }
  0x7a   : > { %8760 = vrot.lane.b32.xlu1 %v11817_v50, %s11391_s30 }
  0x7b   : > { %8765 = vrot.lane.b32.xlu0 %v11821_v53, %s11391_s30 }
  0x7e   : > { %8770 = vrot.lane.b32.xlu1 %v11825_v58, %s11391_s30 }
  0x7f   : > { %8775 = vrot.lane.b32.xlu0 %v11829_v61, %s11391_s30 }
  0x82   : > { %8780 = vrot.lane.b32.xlu1 %v11833_v2, %s11391_s30 }
  0x83   : > { %8785 = vrot.lane.b32.xlu0 %v11837_v6, %s11391_s30 }
  0x86   : > { %8790 = vrot.lane.b32.xlu1 %v11841_v8, %s11391_s30 }
  0x87   : > { %8795 = vrot.lane.b32.xlu0 %v11845_v9, %s11391_s30 }
  0x8a   : > { %8800 = vrot.lane.b32.xlu1 %v11853_v17, %s11391_s30 }
  0x8b   : > { %8805 = vrot.lane.b32.xlu0 %v8804_v18, %s11392_s4  ;;  %v11960_v18 = vld [vmem:[#allocation2 + $0x26f] sm:$0xff] }
  0x8c   : > { %19314 = vst [vmem:[#allocation16_spill] sm:$0xff] %v11960_v18  ;;  %v11970_v60 = vpack.i.bf16 %v11960_v18, %v11958_v13  ;;  %v11990_v13 = vpack.i.bf16 %v11980_v0, %v11978_v3  ;;  %v461_v18 = vld [vmem:[#allocation2 + $0x2ef] sm:$0xff] }
  0x8d   : > { %v12000_v41 = vpack.i.bf16 %v461_v18, %v460_v54 }
  0x8e   : > { %8810 = vrot.lane.b32.xlu1 %v11871_v25, %s11392_s4 }
  0x8f   : > { %8815 = vrot.lane.b32.xlu0 %v11876_v26, %s11392_s4 }
  0x92   : > { %8820 = vrot.lane.b32.xlu1 %v11890_v32, %s11392_s4 }
  0x93   : > { %8825 = vrot.lane.b32.xlu0 %v11896_v35, %s11392_s4 }
  0x96   : > { %8830 = vrot.lane.b32.xlu1 %v11910_v46, %s11392_s4 }
  0x97   : > { %8835 = vrot.lane.b32.xlu0 %v11916_v47, %s11392_s4 }
  0x9a   : > { %8840 = vrot.lane.b32.xlu1 %v11930_v55, %s11392_s4 }
  0x9b   : > { %8845 = vrot.lane.b32.xlu0 %v11936_v59, %s11392_s4 }
  0x9e   : > { %8850 = vrot.lane.b32.xlu1 %v11950_v7, %s11392_s4 }
  0x9f   : > { %8855 = vrot.lane.b32.xlu0 %v11956_v12, %s11392_s4 }
  0xa2   : > { %8860 = vrot.lane.b32.xlu1 %v11970_v60, %s11392_s4 }
  0xa3   : > { %8865 = vrot.lane.b32.xlu0 %v11976_v1, %s11392_s4 }
  0xa6   : > { %8870 = vrot.lane.b32.xlu1 %v11990_v13, %s11392_s4 }
  0xa7   : > { %8875 = vrot.lane.b32.xlu0 %v11996_v52, %s11392_s4 }
  0xaa   : > { %8880 = vrot.lane.b32.xlu1 %v12000_v41, %s11392_s4 }
  0xab   : > { %8885 = vrot.lane.b32.xlu0 %v11716_v33, %s11393_s5 }
  0xae   : > { %8890 = vrot.lane.b32.xlu1 %v11714_v29, %s11393_s5  ;;  %v12024_v29 = vpop.permute.xlu0 %8645 }
  0xaf   : > { %8895 = vrot.lane.b32.xlu0 %v11722_v37, %s11393_s5 }
  0xb2   : > { %8900 = vrot.lane.b32.xlu1 %v11728_v39, %s11393_s5  ;;  %v492_v39 = vld [vmem:[#allocation2 + $0x2e8] sm:$0xff] }
  0xb3   : > { %8905 = vrot.lane.b32.xlu0 %v11732_v45, %s11393_s5  ;;  %v493_v45 = vld [vmem:[#allocation2 + $0x2f0] sm:$0xff] }
  0xb6   : > { %8910 = vrot.lane.b32.xlu1 %v11736_v49, %s11393_s5 }
  0xb7   : > { %8915 = vrot.lane.b32.xlu0 %v11752_v56, %s11393_s5 }
  0xba   : > { %8920 = vrot.lane.b32.xlu1 %v11756_v57, %s11393_s5  ;;  %v12044_v57 = vpack.i.bf16 %v493_v45, %v492_v39 }
  0xbb   : > { %8925 = vrot.lane.b32.xlu0 %v11760_v62, %s11393_s5 }
  0xbe   : > { %8930 = vrot.lane.b32.xlu1 %v11764_v63, %s11393_s5 }
  0xbf   : > { %8935 = vrot.lane.b32.xlu0 %v11768_v4, %s11393_s5 }
  0xc0   : > { %v12030_v33 = vpop.permute.xlu1 %8655 }
  0xc1   : > { %v12032_v37 = vpop.permute.xlu0 %8650 }
  0xc2   : > { %8940 = vrot.lane.b32.xlu1 %v11772_v5, %s11393_s5 }
  0xc3   : > { %8945 = vrot.lane.b32.xlu0 %v11776_v10, %s11393_s5 }
  0xc4   : > { %v12038_v49 = vpop.permute.xlu1 %8660 }
  0xc5   : > { %v12040_v56 = vpop.permute.xlu0 %8665 }
  0xc6   : > { %8950 = vrot.lane.b32.xlu1 %v11780_v11, %s11393_s5 }
  0xc7   : > { %8955 = vrot.lane.b32.xlu0 %v11784_v16, %s11393_s5 }
  0xc8   : > { %v12048_v62 = vpop.permute.xlu1 %8670 }
  0xc9   : > { %v12050_v63 = vpop.permute.xlu0 %8675 }
  0xca   : > { %8960 = vrot.lane.b32.xlu1 %v12044_v57, %s11393_s5 }
  0xcb   : > { %8965 = vrot.lane.b32.xlu0 %v11790_v22, %s11394_s6 }
  0xcc   : > { %v12056_v4 = vpop.permute.xlu1 %8680 }
  0xcd   : > { %v12058_v5 = vpop.permute.xlu0 %8685 }
  0xce   : > { %8970 = vrot.lane.b32.xlu1 %v11793_v23, %s11394_s6 }
  0xcf   : > { %8975 = vrot.lane.b32.xlu0 %v11801_v34, %s11394_s6 }
  0xd0   : > { %v12064_v10 = vpop.permute.xlu1 %8690 }
  0xd1   : > { %v12066_v11 = vpop.permute.xlu0 %8695 }
  0xd2   : > { %8980 = vrot.lane.b32.xlu1 %v11805_v38, %s11394_s6 }
  0xd3   : > { %8985 = vrot.lane.b32.xlu0 %v11809_v42, %s11394_s6 }
  0xd4   : > { %v12072_v16 = vpop.permute.xlu1 %8700 }
  0xd5   : > { %v12074_v22 = vpop.permute.xlu0 %8705 }
  0xd6   : > { %8990 = vrot.lane.b32.xlu1 %v11813_v43, %s11394_s6 }
  0xd7   : > { %8995 = vrot.lane.b32.xlu0 %v11817_v50, %s11394_s6 }
  0xd8   : > { %v12080_v23 = vpop.permute.xlu1 %8710 }
  0xd9   : > { %v12082_v34 = vpop.permute.xlu0 %8715 }
  0xda   : > { %9000 = vrot.lane.b32.xlu1 %v11821_v53, %s11394_s6  ;;  %v524_v53 = vld [vmem:[#allocation2 + $0x2e9] sm:$0xff] }
  0xdb   : > { %9005 = vrot.lane.b32.xlu0 %v11825_v58, %s11394_s6  ;;  %v525_v58 = vld [vmem:[#allocation2 + $0x2f1] sm:$0xff] }
  0xdc   : > { %v12088_v38 = vpop.permute.xlu1 %8720 }
  0xdd   : > { %v12090_v42 = vpop.permute.xlu0 %8725 }
  0xde   : > { %9010 = vrot.lane.b32.xlu1 %v11829_v61, %s11394_s6  ;;  %v12110_v61 = vpack.i.bf16 %v525_v58, %v524_v53  ;;  %v559_v58 = vld [vmem:[#allocation2 + $0x128] sm:$0xff] }
  0xdf   : > { %9015 = vrot.lane.b32.xlu0 %v11833_v2, %s11394_s6 }
  0xe0   : > { %v12096_v43 = vpop.permute.xlu1 %8730 }
  0xe1   : > { %v12098_v50 = vpop.permute.xlu0 %8735 }
  0xe2   : > { %9020 = vrot.lane.b32.xlu1 %v11837_v6, %s11394_s6 }
  0xe3   : > { %9025 = vrot.lane.b32.xlu0 %v11841_v8, %s11394_s6 }
  0xe4   : > { %v12104_v54 = vpop.permute.xlu1 %8740 }
  0xe5   : > { %v12106_v18 = vpop.permute.xlu0 %8745 }
  0xe6   : > { %9030 = vrot.lane.b32.xlu1 %v11845_v9, %s11394_s6 }
  0xe7   : > { %9035 = vrot.lane.b32.xlu0 %v11853_v17, %s11394_s6 }
  0xe8   : > { %v12114_v2 = vpop.permute.xlu1 %8750 }
  0xe9   : > { %v12116_v6 = vpop.permute.xlu0 %8755 }
  0xea   : > { %19317 = vst [vmem:[#allocation19_spill] sm:$0xff] %v12116_v6  ;;  %9040 = vrot.lane.b32.xlu1 %v12110_v61, %s11394_s6  ;;  %v2293_v6 = vld [vmem:[#allocation2 + $0x110] sm:$0xff] }
  0xeb   : > { %9045 = vrot.lane.b32.xlu0 %v11871_v25, %s11395_s7 }
  0xec   : > { %v12122_v8 = vpop.permute.xlu1 %8760 }
  0xed   : > { %19318 = vst [vmem:[#allocation20_spill] sm:$0xff] %v12122_v8  ;;  %v12124_v39 = vpop.permute.xlu0 %8765 }
  0xee   : > { %19319 = vst [vmem:[#allocation21_spill] sm:$0xff] %v12124_v39  ;;  %9050 = vrot.lane.b32.xlu1 %v11876_v26, %s11395_s7 }
  0xef   : > { %9055 = vrot.lane.b32.xlu0 %v11890_v32, %s11395_s7 }
  0xf0   : > { %v12130_v9 = vpop.permute.xlu1 %8770 }
  0xf1   : > { %19320 = vst [vmem:[#allocation22_spill] sm:$0xff] %v12130_v9  ;;  %v12132_v17 = vpop.permute.xlu0 %8775 }
  0xf2   : > { %19321 = vst [vmem:[#allocation23_spill] sm:$0xff] %v12132_v17  ;;  %9060 = vrot.lane.b32.xlu1 %v11896_v35, %s11395_s7  ;;  %v580_v17 = vld [vmem:[#allocation2 + $0x270] sm:$0xff] }
  0xf3   : > { %9065 = vrot.lane.b32.xlu0 %v11910_v46, %s11395_s7 }
  0xf4   : > { %v12138_v25 = vpop.permute.xlu1 %8780 }
  0xf5   : > { %19322 = vst [vmem:[#allocation24_spill] sm:$0xff] %v12138_v25  ;;  %v12140_v45 = vpop.permute.xlu0 %8785 }
  0xf6   : > { %19323 = vst [vmem:[#allocation25_spill] sm:$0xff] %v12140_v45  ;;  %9070 = vrot.lane.b32.xlu1 %v11916_v47, %s11395_s7  ;;  %v576_v45 = vld [vmem:[#allocation2 + $0x230] sm:$0xff] }
  0xf7   : > { %9075 = vrot.lane.b32.xlu0 %v11930_v55, %s11395_s7 }
  0xf8   : > { %v12146_v26 = vpop.permute.xlu1 %8790 }
  0xf9   : > { %19324 = vst [vmem:[#allocation26_spill] sm:$0xff] %v12146_v26  ;;  %v12148_v32 = vpop.permute.xlu0 %8795 }
  0xfa   : > { %19325 = vst [vmem:[#allocation27_spill] sm:$0xff] %v12148_v32  ;;  %9080 = vrot.lane.b32.xlu1 %v11936_v59, %s11395_s7  ;;  %v557_v59 = vld [vmem:[#allocation2 + $0x307] sm:$0xff] }
  0xfb   : > { %9085 = vrot.lane.b32.xlu0 %v11950_v7, %s11395_s7  ;;  %v558_v7 = vld [vmem:[#allocation2 + $0x30f] sm:$0xff] }
  0xfc   : > { %v12154_v35 = vpop.permute.xlu1 %8800 }
  0xfd   : > { %19326 = vst [vmem:[#allocation28_spill] sm:$0xff] %v12154_v35  ;;  %v12156_v46 = vpop.permute.xlu0 %8805  ;;  %v563_v35 = vld [vmem:[#allocation2 + $0x168] sm:$0xff] }
  0xfe   : > { %19327 = vst [vmem:[#allocation29_spill] sm:$0xff] %v12156_v46  ;;  %9090 = vrot.lane.b32.xlu1 %v11956_v12, %s11395_s7  ;;  %v560_v46 = vld [vmem:[#allocation2 + $0x130] sm:$0xff] }
  0xff   : > { %9095 = vrot.lane.b32.xlu0 %v11970_v60, %s11395_s7  ;;  %v11204_v60 = vld [vmem:[%s18799_s1 + $0x38] sm:$0xff]  }
 0x100   : > { %v12162_v47 = vpop.permute.xlu1 %8810  ;;  %8403 = vmatprep.subr.bf16.mxu0 %v11204_v60 }
 0x101   : > { %19328 = vst [vmem:[#allocation30_spill] sm:$0xff] %v12162_v47  ;;  %v12164_v55 = vpop.permute.xlu0 %8815  ;;  %v562_v47 = vld [vmem:[#allocation2 + $0x150] sm:$0xff]  ;;  %8404 = vmatpush3.bf16.msra.mxu0 %v11204_v60  ;;  %v567_v60 = vld [vmem:[#allocation2 + $0x1a8] sm:$0xff] }
 0x102   : > { %19329 = vst [vmem:[#allocation31_spill] sm:$0xff] %v12164_v55  ;;  %9100 = vrot.lane.b32.xlu1 %v11976_v1, %s11395_s7  ;;  %v9119_v55 = vpack.i.bf16 %v558_v7, %v557_v59  ;;  %v12181_v1 = vpack.i.bf16 %v560_v46, %v559_v58  ;;  %v565_v46 = vld [vmem:[#allocation2 + $0x188] sm:$0xff]  ;;  %v566_v7 = vld [vmem:[#allocation2 + $0x190] sm:$0xff] }
 0x103   : > { %9105 = vrot.lane.b32.xlu0 %v11990_v13, %s11395_s7  ;;  %v561_v13 = vld [vmem:[#allocation2 + $0x148] sm:$0xff] }
 0x104   : > { %v12170_v53 = vpop.permute.xlu1 %8820  ;;  %v12191_v59 = vpack.i.bf16 %v562_v47, %v561_v13  ;;  %v11206_v47 = vld [vmem:[%s18799_s1 + $0x28] sm:$0xff]   ;;  %v570_v13 = vld [vmem:[#allocation2 + $0x1d0] sm:$0xff] }
 0x105   : > { %19330 = vst [vmem:[#allocation32_spill] sm:$0xff] %v12170_v53  ;;  %v12172_v12 = vpop.permute.xlu0 %8825 }
 0x106   : > { %19331 = vst [vmem:[#allocation33_spill] sm:$0xff] %v12172_v12  ;;  %9110 = vrot.lane.b32.xlu1 %v11996_v52, %s11395_s7  ;;  %v564_v12 = vld [vmem:[#allocation2 + $0x170] sm:$0xff] }
 0x107   : > { %9115 = vrot.lane.b32.xlu0 %v12000_v41, %s11395_s7  ;;  %v11205_v52 = vld [vmem:[%s18799_s1 + $0x30] sm:$0xff]   ;;  %v12195_v41 = vpack.i.bf16 %v564_v12, %v563_v35  ;;  %v569_v12 = vld [vmem:[#allocation2 + $0x1c8] sm:$0xff] }
 0x108   : > { %v12183_v53 = vpop.permute.xlu1 %8830  ;;  %8405 = vmatprep.subr.bf16.mxu0 %v11205_v52 }
 0x109   : > { %19332 = vst [vmem:[#allocation34_spill] sm:$0xff] %v12183_v53  ;;  %v12185_v32 = vpop.permute.xlu0 %8835  ;;  %8406 = vmatpush3.bf16.msra.mxu0 %v11205_v52 }
 0x10a   : > { %19333 = vst [vmem:[#allocation35_spill] sm:$0xff] %v12185_v32  ;;  %9120 = vrot.lane.b32.xlu1 %v9119_v55, %s11395_s7  ;;  %v568_v32 = vld [vmem:[#allocation2 + $0x1b0] sm:$0xff]  ;;  %v12206_v55 = vpack.i.bf16 %v566_v7, %v565_v46  ;;  %8407 = vmatprep.subr.bf16.mxu0 %v11206_v47  ;;  %v11207_v46 = vld [vmem:[%s18799_s1 + $0x20] sm:$0xff]   ;;  %v12221_v7 = vpack.i.bf16 %v570_v13, %v569_v12  ;;  %v11208_v12 = vld [vmem:[%s18799_s1 + $0x18] sm:$0xff]  }
 0x10b   : > { %9125 = vrot.lane.b32.xlu0 %v12181_v1, %s11396_s17  ;;  %v12210_v35 = vpack.i.bf16 %v568_v32, %v567_v60  ;;  %v573_v60 = vld [vmem:[#allocation2 + $0x208] sm:$0xff] }
 0x10c   : > { %v12197_v58 = vpop.permute.xlu1 %8840  ;;  %19338 = vst [vmem:[#allocation40_spill] sm:$0xff] %v12221_v7 }
 0x10d   : > { %19334 = vst [vmem:[#allocation36_spill] sm:$0xff] %v12197_v58  ;;  %v12199_v53 = vpop.permute.xlu0 %8845  ;;  %v572_v58 = vld [vmem:[#allocation2 + $0x1f0] sm:$0xff]  ;;  %8408 = vmatpush3.bf16.msra.mxu0 %v11206_v47 }
 0x10e   : > { %19335 = vst [vmem:[#allocation37_spill] sm:$0xff] %v12199_v53  ;;  %9130 = vrot.lane.b32.xlu1 %v12191_v59, %s11396_s17  ;;  %v571_v53 = vld [vmem:[#allocation2 + $0x1e8] sm:$0xff]  ;;  %8409 = vmatprep.subr.bf16.mxu0 %v11207_v46 }
 0x10f   : > { %9135 = vrot.lane.b32.xlu0 %v12195_v41, %s11396_s17  ;;  %v12225_v32 = vpack.i.bf16 %v572_v58, %v571_v53  ;;  %v577_v58 = vld [vmem:[#allocation2 + $0x248] sm:$0xff] }
 0x110   : > { %v12212_v52 = vpop.permute.xlu1 %8850 }
 0x111   : > { %19336 = vst [vmem:[#allocation38_spill] sm:$0xff] %v12212_v52  ;;  %v12214_v26 = vpop.permute.xlu0 %8855  ;;  %19339 = vst [vmem:[#allocation41_spill] sm:$0xff] %v12225_v32  ;;  %v574_v52 = vld [vmem:[#allocation2 + $0x210] sm:$0xff]  ;;  %8410 = vmatpush3.bf16.msra.mxu0 %v11207_v46 }
 0x112   : > { %19337 = vst [vmem:[#allocation39_spill] sm:$0xff] %v12214_v26  ;;  %9140 = vrot.lane.b32.xlu1 %v12206_v55, %s11396_s17  ;;  %v575_v26 = vld [vmem:[#allocation2 + $0x228] sm:$0xff]  ;;  %v12236_v13 = vpack.i.bf16 %v574_v52, %v573_v60  ;;  %8411 = vmatprep.subr.bf16.mxu0 %v11208_v12  ;;  %v11209_v52 = vld [vmem:[%s18799_s1 + $0x10] sm:$0xff]  }
 0x113   : > { %9145 = vrot.lane.b32.xlu0 %v12210_v35, %s11396_s17  ;;  %v12240_v53 = vpack.i.bf16 %v576_v45, %v575_v26  ;;  %v581_v26 = vld [vmem:[#allocation2 + $0x288] sm:$0xff] }
 0x114   : > { %v12227_v47 = vpop.permute.xlu1 %8860  ;;  %19342 = vst [vmem:[#allocation44_spill] sm:$0xff] %v12236_v13 }
 0x115   : > { %19340 = vst [vmem:[#allocation42_spill] sm:$0xff] %v12227_v47  ;;  %v12229_v25 = vpop.permute.xlu0 %8865  ;;  %19343 = vst [vmem:[#allocation45_spill] sm:$0xff] %v12240_v53  ;;  %v578_v47 = vld [vmem:[#allocation2 + $0x250] sm:$0xff]  ;;  %8412 = vmatpush3.bf16.msra.mxu0 %v11208_v12 }
 0x116   : > { %19341 = vst [vmem:[#allocation43_spill] sm:$0xff] %v12229_v25  ;;  %9150 = vrot.lane.b32.xlu1 %v12221_v7, %s11396_s17  ;;  %v579_v25 = vld [vmem:[#allocation2 + $0x268] sm:$0xff]  ;;  %v12251_v60 = vpack.i.bf16 %v578_v47, %v577_v58  ;;  %8413 = vmatprep.subr.bf16.mxu0 %v11209_v52 }
 0x117   : > { %9155 = vrot.lane.b32.xlu0 %v12225_v32, %s11396_s17  ;;  %v12255_v45 = vpack.i.bf16 %v580_v17, %v579_v25  ;;  %v584_v32 = vld [vmem:[#allocation2 + $0x2b0] sm:$0xff]  ;;  %v11210_v47 = vld [vmem:[%s18799_s1 + $0x8] sm:$0xff]  }
 0x118   : > { %v12242_v46 = vpop.permute.xlu1 %8870  ;;  %19346 = vst [vmem:[#allocation48_spill] sm:$0xff] %v12251_v60  ;;  %v585_v25 = vld [vmem:[#allocation2 + $0x2c8] sm:$0xff] }
 0x119   : > { %19344 = vst [vmem:[#allocation46_spill] sm:$0xff] %v12242_v46  ;;  %v12244_v9 = vpop.permute.xlu0 %8875  ;;  %19347 = vst [vmem:[#allocation49_spill] sm:$0xff] %v12255_v45  ;;  %v582_v46 = vld [vmem:[#allocation2 + $0x290] sm:$0xff]  ;;  %8414 = vmatpush3.bf16.msra.mxu0 %v11209_v52 }
 0x11a   : > { %19345 = vst [vmem:[#allocation47_spill] sm:$0xff] %v12244_v9  ;;  %9160 = vrot.lane.b32.xlu1 %v12236_v13, %s11396_s17  ;;  %v583_v9 = vld [vmem:[#allocation2 + $0x2a8] sm:$0xff]  ;;  %v12266_v58 = vpack.i.bf16 %v582_v46, %v581_v26  ;;  %8415 = vmatprep.subr.bf16.mxu0 %v11210_v47  ;;  %v596_v13 = vld [vmem:[#allocation2 + $0x171] sm:$0xff] }
 0x11b   : > { %9165 = vrot.lane.b32.xlu0 %v12240_v53, %s11396_s17  ;;  %v12270_v17 = vpack.i.bf16 %v584_v32, %v583_v9  ;;  %v11211_v53 = vld [vmem:[%s18799_s1] sm:$0xff]   ;;  %v589_v9 = vld [vmem:[#allocation2 + $0x308] sm:$0xff]  ;;  %v590_v32 = vld [vmem:[#allocation2 + $0x310] sm:$0xff] }
 0x11c   : > { %v12257_v12 = vpop.permute.xlu1 %8880  ;;  %19350 = vst [vmem:[#allocation52_spill] sm:$0xff] %v12266_v58 }
 0x11d   : > { %19348 = vst [vmem:[#allocation50_spill] sm:$0xff] %v12257_v12  ;;  %v12259_v39 = vpop.permute.xlu0 %8885  ;;  %19351 = vst [vmem:[#allocation53_spill] sm:$0xff] %v12270_v17  ;;  %v586_v12 = vld [vmem:[#allocation2 + $0x2d0] sm:$0xff]  ;;  %8416 = vmatpush3.bf16.msra.mxu0 %v11210_v47 }
 0x11e   : > { %19349 = vst [vmem:[#allocation51_spill] sm:$0xff] %v12259_v39  ;;  %9170 = vrot.lane.b32.xlu1 %v12251_v60, %s11396_s17  ;;  %v9189_v46 = vpack.i.bf16 %v586_v12, %v585_v25  ;;  %8417 = vmatprep.subr.bf16.mxu0 %v11211_v53  ;;  %v592_v47 = vld [vmem:[#allocation2 + $0x131] sm:$0xff]  ;;  %v593_v25 = vld [vmem:[#allocation2 + $0x149] sm:$0xff] }
 0x11f   : > { %9175 = vrot.lane.b32.xlu0 %v12255_v45, %s11396_s17  ;;  %v9199_v45 = vpack.i.bf16 %v590_v32, %v589_v9  ;;  %v595_v60 = vld [vmem:[#allocation2 + $0x169] sm:$0xff]  ;;  %v598_v32 = vld [vmem:[#allocation2 + $0x191] sm:$0xff] }
 0x120   : > { %v12272_v52 = vpop.permute.xlu1 %8890  ;;  %v597_v9 = vld [vmem:[#allocation2 + $0x189] sm:$0xff] }
 0x121   : > { %19352 = vst [vmem:[#allocation54_spill] sm:$0xff] %v12272_v52  ;;  %v12274_v39 = vpop.permute.xlu0 %8895  ;;  %v591_v52 = vld [vmem:[#allocation2 + $0x129] sm:$0xff]  ;;  %8418 = vmatpush3.bf16.msra.mxu0 %v11211_v53 }
 0x122   : > { %19353 = vst [vmem:[#allocation55_spill] sm:$0xff] %v12274_v39  ;;  %9180 = vrot.lane.b32.xlu1 %v12266_v58, %s11396_s17  ;;  %v9204_v12 = vpack.i.bf16 %v592_v47, %v591_v52  ;;  %v594_v58 = vld [vmem:[#allocation2 + $0x151] sm:$0xff] }
 0x123   : > { %9185 = vrot.lane.b32.xlu0 %v12270_v17, %s11396_s17  ;;  %v9209_v53 = vpack.i.bf16 %v594_v58, %v593_v25  ;;  %v600_v52 = vld [vmem:[#allocation2 + $0x1b1] sm:$0xff] }
 0x124   : > { %v12283_v26 = vpop.permute.xlu1 %8900  ;;  %v602_v58 = vld [vmem:[#allocation2 + $0x1d1] sm:$0xff] }
 0x125   : > { %19354 = vst [vmem:[#allocation56_spill] sm:$0xff] %v12283_v26  ;;  %v12285_v39 = vpop.permute.xlu0 %8905  ;;  %v605_v26 = vld [vmem:[#allocation2 + $0x209] sm:$0xff] }
 0x126   : > { %19355 = vst [vmem:[#allocation57_spill] sm:$0xff] %v12285_v39  ;;  %9190 = vrot.lane.b32.xlu1 %v9189_v46, %s11396_s17  ;;  %v9214_v46 = vpack.i.bf16 %v596_v13, %v595_v60  ;;  %v604_v13 = vld [vmem:[#allocation2 + $0x1f1] sm:$0xff] }
 0x127   : > { %9195 = vrot.lane.b32.xlu0 %v12044_v57, %s11396_s17  ;;  %v599_v57 = vld [vmem:[#allocation2 + $0x1a9] sm:$0xff] }
 0x128   : > { %v12290_v17 = vpop.permute.xlu1 %8910 }
 0x129   : > { %19356 = vst [vmem:[#allocation58_spill] sm:$0xff] %v12290_v17  ;;  %v12292_v8 = vpop.permute.xlu0 %8915  ;;  %v9219_v17 = vpack.i.bf16 %v598_v32, %v597_v9  ;;  %v608_v32 = vld [vmem:[#allocation2 + $0x231] sm:$0xff] }
 0x12a   : > { %19357 = vst [vmem:[#allocation59_spill] sm:$0xff] %v12292_v8  ;;  %9200 = vrot.lane.b32.xlu1 %v9199_v45, %s11396_s17  ;;  %v9224_v8 = vpack.i.bf16 %v600_v52, %v599_v57  ;;  %v601_v45 = vld [vmem:[#allocation2 + $0x1c9] sm:$0xff] }
 0x12b   : > { %9205 = vrot.lane.b32.xlu0 %v9204_v12, %s11397_s20  ;;  %v603_v12 = vld [vmem:[#allocation2 + $0x1e9] sm:$0xff] }
 0x12c   : > { %v12296_v39 = vpop.permute.xlu1 %8920 }
 0x12d   : > { %19358 = vst [vmem:[#allocation60_spill] sm:$0xff] %v12296_v39  ;;  %v12298_v47 = vpop.permute.xlu0 %8925  ;;  %v9229_v39 = vpack.i.bf16 %v602_v58, %v601_v45  ;;  %v612_v58 = vld [vmem:[#allocation2 + $0x271] sm:$0xff] }
 0x12e   : > { %19359 = vst [vmem:[#allocation61_spill] sm:$0xff] %v12298_v47  ;;  %9210 = vrot.lane.b32.xlu1 %v9209_v53, %s11397_s20  ;;  %v9234_v47 = vpack.i.bf16 %v604_v13, %v603_v12  ;;  %v606_v53 = vld [vmem:[#allocation2 + $0x211] sm:$0xff] }
 0x12f   : > { %9215 = vrot.lane.b32.xlu0 %v9214_v46, %s11397_s20  ;;  %v607_v46 = vld [vmem:[#allocation2 + $0x229] sm:$0xff]  ;;  %v9239_v52 = vpack.i.bf16 %v606_v53, %v605_v26  ;;  %v616_v53 = vld [vmem:[#allocation2 + $0x2b1] sm:$0xff] }
 0x130   : > { %v12302_v25 = vpop.permute.xlu1 %8930 }
 0x131   : > { %19360 = vst [vmem:[#allocation62_spill] sm:$0xff] %v12302_v25  ;;  %v12304_v60 = vpop.permute.xlu0 %8935  ;;  %v609_v25 = vld [vmem:[#allocation2 + $0x249] sm:$0xff] }
 0x132   : > { %19361 = vst [vmem:[#allocation63_spill] sm:$0xff] %v12304_v60  ;;  %9220 = vrot.lane.b32.xlu1 %v9219_v17, %s11397_s20  ;;  %v9244_v60 = vpack.i.bf16 %v608_v32, %v607_v46  ;;  %v610_v17 = vld [vmem:[#allocation2 + $0x251] sm:$0xff] }
 0x133   : > { %9225 = vrot.lane.b32.xlu0 %v9224_v8, %s11397_s20  ;;  %v611_v8 = vld [vmem:[#allocation2 + $0x269] sm:$0xff]  ;;  %v9249_v13 = vpack.i.bf16 %v610_v17, %v609_v25 }
 0x134   : > { %v12308_v9 = vpop.permute.xlu1 %8940 }
 0x135   : > { %19362 = vst [vmem:[#allocation64_spill] sm:$0xff] %v12308_v9  ;;  %v12310_v57 = vpop.permute.xlu0 %8945  ;;  %v613_v9 = vld [vmem:[#allocation2 + $0x289] sm:$0xff] }
 0x136   : > { %19363 = vst [vmem:[#allocation65_spill] sm:$0xff] %v12310_v57  ;;  %9230 = vrot.lane.b32.xlu1 %v9229_v39, %s11397_s20  ;;  %v9254_v57 = vpack.i.bf16 %v612_v58, %v611_v8  ;;  %v614_v39 = vld [vmem:[#allocation2 + $0x291] sm:$0xff]  ;;  %v621_v8 = vld [vmem:[#allocation2 + $0x309] sm:$0xff] }
 0x137   : > { %9235 = vrot.lane.b32.xlu0 %v9234_v47, %s11397_s20  ;;  %v615_v47 = vld [vmem:[#allocation2 + $0x2a9] sm:$0xff]  ;;  %v9259_v32 = vpack.i.bf16 %v614_v39, %v613_v9  ;;  %v622_v58 = vld [vmem:[#allocation2 + $0x311] sm:$0xff] }
 0x138   : > { %v12314_v45 = vpop.permute.xlu1 %8950  ;;  %v2289_v9 = vld [vmem:[#allocation2 + $0xd0] sm:$0xff] }
 0x139   : > { %19364 = vst [vmem:[#allocation66_spill] sm:$0xff] %v12314_v45  ;;  %v12316_v12 = vpop.permute.xlu0 %8955  ;;  %v617_v45 = vld [vmem:[#allocation2 + $0x2c9] sm:$0xff] }
 0x13a   : > { %19365 = vst [vmem:[#allocation67_spill] sm:$0xff] %v12316_v12  ;;  %9240 = vrot.lane.b32.xlu1 %v9239_v52, %s11397_s20  ;;  %v9264_v12 = vpack.i.bf16 %v616_v53, %v615_v47  ;;  %v618_v52 = vld [vmem:[#allocation2 + $0x2d1] sm:$0xff]  ;;  %v8647_v47 = vunpack.i.l.bf16 %v12024_v29  ;;  %v334_v53 = vld [vmem:[#allocation2 + $0xe7] sm:$0xff] }
 0x13b   : > { %9245 = vrot.lane.b32.xlu0 %v9244_v60, %s11397_s20  ;;  %v9269_v17 = vpack.i.bf16 %v618_v52, %v617_v45  ;;  %v8657_v45 = vunpack.i.l.bf16 %v12030_v33  ;;  %v2290_v52 = vld [vmem:[#allocation2 + $0xe8] sm:$0xff] }
 0x13c   : > { %v12320_v26 = vpop.permute.xlu1 %8960 }
 0x13d   : > { %19366 = vst [vmem:[#allocation68_spill] sm:$0xff] %v12320_v26  ;;  %v12322_v46 = vpop.permute.xlu0 %8965 }
 0x13e   : > { %19367 = vst [vmem:[#allocation69_spill] sm:$0xff] %v12322_v46  ;;  %9250 = vrot.lane.b32.xlu1 %v9249_v13, %s11397_s20  ;;  %v2288_v13 = vld [vmem:[#allocation2 + $0xc8] sm:$0xff] }
 0x13f   : > { %9255 = vrot.lane.b32.xlu0 %v9254_v57, %s11397_s20  ;;  %v8648_v57 = vunpack.i.h.bf16 %v12024_v29  ;;  %v2292_v46 = vld [vmem:[#allocation2 + $0x108] sm:$0xff]  ;;  %v8653_v29 = vunpack.i.h.bf16 %v12032_v37 }
 0x140   : > { %v12326_v25 = vpop.permute.xlu1 %8970 }
 0x141   : > { %19368 = vst [vmem:[#allocation70_spill] sm:$0xff] %v12326_v25  ;;  %v12328_v60 = vpop.permute.xlu0 %8975  ;;  %v8658_v25 = vunpack.i.h.bf16 %v12030_v33  ;;  %v8668_v33 = vunpack.i.h.bf16 %v12040_v56 }
 0x142   : > { %19369 = vst [vmem:[#allocation71_spill] sm:$0xff] %v12328_v60  ;;  %9260 = vrot.lane.b32.xlu1 %v9259_v32, %s11397_s20  ;;  %v9279_v60 = vpack.i.bf16 %v622_v58, %v621_v8  ;;  %v335_v32 = vld [vmem:[#allocation2 + $0xef] sm:$0xff]  ;;  %v8663_v8 = vunpack.i.h.bf16 %v12038_v49  ;;  %v8662_v58 = vunpack.i.l.bf16 %v12038_v49  ;;  %v8673_v49 = vunpack.i.h.bf16 %v12048_v62 }
 0x143   : > { %9265 = vrot.lane.b32.xlu0 %v9264_v12, %s11397_s20  ;;  %v9284_v12 = vpack.i.bf16 %v2289_v9, %v2288_v13  ;;  %v12355_v13 = vsel %vm170_vm0, %v335_v32, %v8648_v57  ;;  %v12370_v57 = vsel %vm170_vm0, %v11861_v20, %v8658_v25  ;;  %v8682_v25 = vunpack.i.l.bf16 %v12056_v4 }
 0x144   : > { %v12332_v26 = vpop.permute.xlu1 %8980  ;;  %v12387_v20 = vsel %vm170_vm0, %v11865_v24, %v8663_v8  ;;  %v8687_v32 = vunpack.i.l.bf16 %v12058_v5 }
 0x145   : > { %19370 = vst [vmem:[#allocation72_spill] sm:$0xff] %v12332_v26  ;;  %v12334_v39 = vpop.permute.xlu0 %8985  ;;  %v2291_v26 = vld [vmem:[#allocation2 + $0xf0] sm:$0xff] }
 0x146   : > { %19371 = vst [vmem:[#allocation73_spill] sm:$0xff] %v12334_v39  ;;  %9270 = vrot.lane.b32.xlu1 %v9269_v17, %s11397_s20  ;;  %v8652_v17 = vunpack.i.l.bf16 %v12032_v37  ;;  %v9289_v9 = vpack.i.bf16 %v2291_v26, %v2290_v52  ;;  %v12361_v37 = vsel %vm170_vm0, %v11859_v19, %v8657_v45  ;;  %v8678_v26 = vunpack.i.h.bf16 %v12050_v63 }
 0x147   : > { %9275 = vrot.lane.b32.xlu0 %v12110_v61, %s11397_s20  ;;  %v12352_v61 = vsel %vm170_vm0, %v334_v53, %v8647_v47  ;;  %v12366_v47 = vpack.i.bf16 %v2293_v6, %v2292_v46  ;;  %v8672_v53 = vunpack.i.l.bf16 %v12048_v62  ;;  %v12383_v6 = vsel %vm170_vm0, %v11849_v15, %v8653_v29 }
 0x148   : > { %v12343_v39 = vpop.permute.xlu1 %8990  ;;  %v12391_v62 = vsel %vm170_vm0, %v11863_v21, %v8662_v58  ;;  %v8688_v15 = vunpack.i.h.bf16 %v12058_v5  ;;  %v12409_v21 = vsel %vm170_vm0, %v11884_v31, %v8673_v49  ;;  %v8692_v5 = vunpack.i.l.bf16 %v12064_v10 }
 0x149   : > { %19372 = vst [vmem:[#allocation74_spill] sm:$0xff] %v12343_v39  ;;  %v12349_v7 = vpop.permute.xlu0 %8995  ;;  %v8667_v39 = vunpack.i.l.bf16 %v12040_v56  ;;  %19374 = vst [vmem:[#allocation76_spill] sm:$0xff] %v12366_v47  ;;  %v12379_v56 = vsel %vm170_vm0, %v11847_v14, %v8652_v17  ;;  %v8683_v14 = vunpack.i.h.bf16 %v12056_v4  ;;  %v12417_v4 = vsel %vm170_vm0, %v11882_v30, %v8672_v53  ;;  %v19383_v53 = vld [vmem:[#allocation9_spill] sm:$0xff] }
 0x14a   : > { %19373 = vst [vmem:[#allocation75_spill] sm:$0xff] %v12349_v7  ;;  %9280 = vrot.lane.b32.xlu1 %v9279_v60, %s11397_s20  ;;  %v8677_v60 = vunpack.i.l.bf16 %v12050_v63  ;;  %v12397_v63 = vsel %vm170_vm0, %v11880_v28, %v8668_v33  ;;  %v8693_v28 = vunpack.i.h.bf16 %v12064_v10  ;;  %v8698_v45 = vunpack.i.h.bf16 %v12066_v11  ;;  %v19380_v10 = vld [vmem:[#allocation8_spill] sm:$0xff]  ;;  %v19382_v33 = vld [vmem:[#allocation10_spill] sm:$0xff] }
 0x14b   : > { %9285 = vrot.lane.b32.xlu0 %v9284_v12, %s11390_s29  ;;  %v12405_v24 = vsel %vm170_vm0, %v11878_v27, %v8667_v39  ;;  %v12421_v27 = vsel %vm170_vm0, %v11900_v40, %v8678_v26  ;;  %v8697_v12 = vunpack.i.l.bf16 %v12066_v11  ;;  %v8703_v52 = vunpack.i.h.bf16 %v12072_v16 }
 0x14c   : > { %v12375_v19 = vpop.permute.xlu1 %9000  ;;  %v12425_v31 = vsel %vm170_vm0, %v11898_v36, %v8677_v60  ;;  %v8702_v30 = vunpack.i.l.bf16 %v12072_v16  ;;  %v12438_v40 = vsel %vm170_vm0, %v11904_v44, %v8683_v14  ;;  %v19379_v36 = vld [vmem:[#allocation6_spill] sm:$0xff]  ;;  %v12446_v8 = vsel %vm170_vm0, %v19380_v10, %v8688_v15  ;;  %v19381_v16 = vld [vmem:[#allocation7_spill] sm:$0xff]  ;;  %v19385_v15 = vld [vmem:[#allocation12_spill] sm:$0xff] }
 0x14d   : > { %19375 = vst [vmem:[#allocation77_spill] sm:$0xff] %v12375_v19  ;;  %v12393_v46 = vpop.permute.xlu0 %9005  ;;  %v12442_v17 = vsel %vm170_vm0, %v19379_v36, %v8682_v25  ;;  %v8708_v11 = vunpack.i.h.bf16 %v12074_v22  ;;  %v12453_v58 = vsel %vm170_vm0, %v19381_v16, %v8687_v32  ;;  %v12457_v44 = vsel %vm170_vm0, %v19382_v33, %v8693_v28  ;;  %v19386_v32 = vld [vmem:[#allocation11_spill] sm:$0xff]  ;;  %v19388_v36 = vld [vmem:[#allocation13_spill] sm:$0xff] }
 0x14e   : > { %19376 = vst [vmem:[#allocation78_spill] sm:$0xff] %v12393_v46  ;;  %9290 = vrot.lane.b32.xlu1 %v9289_v9, %s11390_s29  ;;  %v8707_v9 = vunpack.i.l.bf16 %v12074_v22  ;;  %v8713_v49 = vunpack.i.h.bf16 %v12080_v23  ;;  %v12465_v26 = vsel %vm170_vm0, %v19383_v53, %v8692_v5  ;;  %v8718_v60 = vunpack.i.h.bf16 %v12082_v34  ;;  %v2333_v46 = vld [vmem:[#allocation2 + $0x192] sm:$0xff] }
 0x14f   : > { %9295 = vrot.lane.b32.xlu0 %v12366_v47, %s11390_s29  ;;  %v8717_v14 = vunpack.i.l.bf16 %v12082_v34  ;;  %v12474_v22 = vsel %vm170_vm0, %v19385_v15, %v8698_v45  ;;  %v12478_v28 = vsel %vm170_vm0, %v19386_v32, %v8697_v12  ;;  %v19390_v34 = vld [vmem:[#allocation16_spill] sm:$0xff]  ;;  %v8723_v45 = vunpack.i.h.bf16 %v12088_v38  ;;  %v19411_v47 = vld [vmem:[#allocation25_spill] sm:$0xff] }
 0x150   : > { %v12428_v39 = vpop.permute.xlu1 %9010  ;;  %v12492_v16 = vsel %vm170_vm0, %v19390_v34, %v8708_v11  ;;  %v8722_v33 = vunpack.i.l.bf16 %v12088_v38  ;;  %v8728_v12 = vunpack.i.h.bf16 %v12090_v42  ;;  %v8727_v11 = vunpack.i.l.bf16 %v12090_v42  ;;  %v19393_v38 = vld [vmem:[#allocation17_spill] sm:$0xff] }
 0x151   : > { %19377 = vst [vmem:[#allocation79_spill] sm:$0xff] %v12428_v39  ;;  %v12434_v29 = vpop.permute.xlu0 %9015  ;;  %v8732_v32 = vunpack.i.l.bf16 %v12096_v43  ;;  %v8743_v34 = vunpack.i.h.bf16 %v12104_v54  ;;  %v19410_v39 = vld [vmem:[#allocation24_spill] sm:$0xff] }
 0x152   : > { %19378 = vst [vmem:[#allocation80_spill] sm:$0xff] %v12434_v29  ;;  %9300 = vrot.lane.b32.xlu1 %v12181_v1, %s11390_s29  ;;  %v8712_v1 = vunpack.i.l.bf16 %v12080_v23  ;;  %v12486_v23 = vsel %vm170_vm0, %v19388_v36, %v8702_v30  ;;  %v19392_v30 = vld [vmem:[#allocation18_spill] sm:$0xff]  ;;  %v8738_v36 = vunpack.i.h.bf16 %v12098_v50 }
 0x153   : > { %9305 = vrot.lane.b32.xlu0 %v12191_v59, %s11390_s29  ;;  %v19387_v59 = vld [vmem:[#allocation14_spill] sm:$0xff]  ;;  %v12505_v15 = vsel %vm170_vm0, %v19392_v30, %v8713_v49  ;;  %v8733_v49 = vunpack.i.h.bf16 %v12096_v43  ;;  %v12542_v43 = vsel %vm1679_vm1, %v12355_v13, %v8728_v12  ;;  %v19396_v13 = vld [vmem:[#allocation40_spill] sm:$0xff] }
 0x154   : > { %v12470_v25 = vpop.permute.xlu1 %9020  ;;  %v12482_v5 = vsel %vm170_vm0, %v19387_v59, %v8703_v52  ;;  %v19391_v52 = vld [vmem:[#allocation15_spill] sm:$0xff]  ;;  %v12513_v59 = vsel %vm170_vm0, %v19393_v38, %v8712_v1  ;;  %v8742_v1 = vunpack.i.l.bf16 %v12104_v54  ;;  %v12549_v54 = vsel %vm1679_vm1, %v12352_v61, %v8727_v11 }
 0x155   : > { %19384 = vst [vmem:[#allocation6_spill] sm:$0xff] %v12470_v25  ;;  %v12488_v10 = vpop.permute.xlu0 %9025  ;;  %v12501_v53 = vsel %vm170_vm0, %v19391_v52, %v8707_v9  ;;  %v12521_v9 = vsel %vm170_vm0, %v11978_v3, %v8717_v14  ;;  %v12538_v3 = vsel %vm170_vm0, %v11982_v48, %v8722_v33  ;;  %v8748_v48 = vunpack.i.h.bf16 %v12106_v18  ;;  %v19408_v25 = vld [vmem:[#allocation45_spill] sm:$0xff] }
 0x156   : > { %19389 = vst [vmem:[#allocation8_spill] sm:$0xff] %v12488_v10  ;;  %9310 = vrot.lane.b32.xlu1 %v12195_v41, %s11390_s29  ;;  %v12517_v41 = vsel %vm170_vm0, %v11980_v0, %v8718_v60  ;;  %v12534_v0 = vsel %vm170_vm0, %v11984_v51, %v8723_v45  ;;  %v12553_v51 = vsel %vm1679_vm1, %v12379_v56, %v8732_v32  ;;  %v8753_v60 = vunpack.i.h.bf16 %v12114_v2  ;;  %v19397_v45 = vld [vmem:[#allocation19_spill] sm:$0xff] }
 0x157   : > { %9315 = vrot.lane.b32.xlu0 %v12206_v55, %s11390_s29  ;;  %v8737_v55 = vunpack.i.l.bf16 %v12098_v50  ;;  %v8747_v50 = vunpack.i.l.bf16 %v12106_v18  ;;  %v12561_v14 = vsel %vm1679_vm1, %v12383_v6, %v8733_v49  ;;  %v8758_v61 = vunpack.i.h.bf16 %v19397_v45  ;;  %v12568_v56 = vld [vmem:[#allocation2 + $0xca] sm:$0xff]  ;;  %v12570_v18 = vld [vmem:[#allocation2 + $0xd2] sm:$0xff] }
 0x158   : > { %v12524_v42 = vpop.permute.xlu1 %9030  ;;  %v8757_v33 = vunpack.i.l.bf16 %v19397_v45  ;;  %v12574_v30 = vsel %vm1679_vm1, %v12370_v57, %v8738_v36  ;;  %v12586_v11 = vsel %vm1679_vm1, %v12391_v62, %v8742_v1  ;;  %v19400_v57 = vld [vmem:[#allocation20_spill] sm:$0xff]  ;;  %v12605_v62 = vsel %vm1679_vm1, %v12397_v63, %v8748_v48  ;;  %v19404_v48 = vld [vmem:[#allocation22_spill] sm:$0xff] }
 0x159   : > { %19394 = vst [vmem:[#allocation7_spill] sm:$0xff] %v12524_v42  ;;  %v12530_v52 = vpop.permute.xlu0 %9035  ;;  %v12578_v6 = vsel %vm1679_vm1, %v12361_v37, %v8737_v55  ;;  %v12592_v38 = vsel %vm1679_vm1, %v12405_v24, %v8747_v50  ;;  %v8763_v49 = vunpack.i.h.bf16 %v19400_v57  ;;  %v8762_v36 = vunpack.i.l.bf16 %v19400_v57  ;;  %v19401_v37 = vld [vmem:[#allocation21_spill] sm:$0xff]  ;;  %v19403_v50 = vld [vmem:[#allocation44_spill] sm:$0xff] }
 0x15a   : > { %19395 = vst [vmem:[#allocation10_spill] sm:$0xff] %v12530_v52  ;;  %9320 = vrot.lane.b32.xlu1 %v12210_v35, %s11390_s29  ;;  %v8752_v35 = vunpack.i.l.bf16 %v12114_v2  ;;  %v12582_v2 = vsel %vm1679_vm1, %v12387_v20, %v8743_v34  ;;  %v8767_v55 = vunpack.i.l.bf16 %v19401_v37  ;;  %v12599_v20 = vld [vmem:[#allocation2 + $0xea] sm:$0xff]  ;;  %v12601_v34 = vld [vmem:[#allocation2 + $0xf2] sm:$0xff]  ;;  %v12609_v24 = vsel %vm1679_vm1, %v12409_v21, %v8753_v60 }
 0x15b   : > { %9325 = vrot.lane.b32.xlu0 %v19396_v13, %s11390_s29  ;;  %v19402_v13 = vld [vmem:[#allocation41_spill] sm:$0xff]  ;;  %v8768_v1 = vunpack.i.h.bf16 %v19401_v37  ;;  %v2324_v57 = vld [vmem:[#allocation2 + $0x10a] sm:$0xff]  ;;  %v12622_v63 = vsel %vm1679_vm1, %v12425_v31, %v8757_v33  ;;  %v12626_v21 = vsel %vm1679_vm1, %v12421_v27, %v8758_v61  ;;  %v8773_v60 = vunpack.i.h.bf16 %v19404_v48 }
 0x15c   : > { %v12566_v12 = vpop.permute.xlu1 %9040  ;;  %v8772_v45 = vunpack.i.l.bf16 %v19404_v48  ;;  %v19406_v52 = vld [vmem:[#allocation23_spill] sm:$0xff]  ;;  %v2327_v33 = vld [vmem:[#allocation2 + $0x132] sm:$0xff]  ;;  %v12640_v10 = vsel %vm1679_vm1, %v12438_v40, %v8763_v49  ;;  %v12644_v48 = vsel %vm1679_vm1, %v12442_v17, %v8762_v36  ;;  %v8783_v40 = vunpack.i.h.bf16 %v19410_v39 }
 0x15d   : > { %19398 = vst [vmem:[#allocation9_spill] sm:$0xff] %v12566_v12  ;;  %v12588_v32 = vpop.permute.xlu0 %9045  ;;  %v12618_v12 = vsel %vm1679_vm1, %v12417_v4, %v8752_v35  ;;  %v8778_v42 = vunpack.i.h.bf16 %v19406_v52  ;;  %v8777_v4 = vunpack.i.l.bf16 %v19406_v52  ;;  %v2328_v27 = vld [vmem:[#allocation2 + $0x14a] sm:$0xff]  ;;  %v2329_v61 = vld [vmem:[#allocation2 + $0x152] sm:$0xff]  ;;  %v12648_v52 = vsel %vm1679_vm1, %v12453_v58, %v8767_v55 }
 0x15e   : > { %19399 = vst [vmem:[#allocation12_spill] sm:$0xff] %v12588_v32  ;;  %9330 = vrot.lane.b32.xlu1 %v19402_v13, %s11390_s29  ;;  %v2325_v13 = vld [vmem:[#allocation2 + $0x112] sm:$0xff]  ;;  %v12656_v31 = vsel %vm1679_vm1, %v12446_v8, %v8768_v1  ;;  %v8782_v49 = vunpack.i.l.bf16 %v19410_v39  ;;  %v8787_v17 = vunpack.i.l.bf16 %v19411_v47  ;;  %v2330_v58 = vld [vmem:[#allocation2 + $0x16a] sm:$0xff]  ;;  %v12672_v1 = vpack.i.bf16 %v2329_v61, %v2328_v27 }
 0x15f   : > { %9335 = vrot.lane.b32.xlu0 %v19403_v50, %s11390_s29  ;;  %v2326_v50 = vld [vmem:[#allocation2 + $0x12a] sm:$0xff]  ;;  %v12652_v29 = vpack.i.bf16 %v2325_v13, %v2324_v57  ;;  %v2331_v55 = vld [vmem:[#allocation2 + $0x172] sm:$0xff]  ;;  %v8788_v57 = vunpack.i.h.bf16 %v19411_v47  ;;  %v12676_v19 = vsel %vm1679_vm1, %v12465_v26, %v8772_v45  ;;  %v19416_v47 = vld [vmem:[#allocation26_spill] sm:$0xff] }
 0x160   : > { %v12629_v37 = vpop.permute.xlu1 %9050  ;;  %v19412_v36 = vld [vmem:[#allocation48_spill] sm:$0xff]  ;;  %v12670_v8 = vpack.i.bf16 %v2327_v33, %v2326_v50  ;;  %19415 = vst [vmem:[#allocation18_spill] sm:$0xff] %v12672_v1  ;;  %v8792_v27 = vunpack.i.l.bf16 %v19416_v47  ;;  %v19418_v61 = vld [vmem:[#allocation27_spill] sm:$0xff]  ;;  %v19419_v45 = vld [vmem:[#allocation49_spill] sm:$0xff] }
 0x161   : > { %19405 = vst [vmem:[#allocation11_spill] sm:$0xff] %v12629_v37  ;;  %v12634_v35 = vpop.permute.xlu0 %9055  ;;  %19409 = vst [vmem:[#allocation13_spill] sm:$0xff] %v12652_v29  ;;  %v2332_v39 = vld [vmem:[#allocation2 + $0x18a] sm:$0xff]  ;;  %v8797_v26 = vunpack.i.l.bf16 %v19418_v61  ;;  %v19424_v37 = vld [vmem:[#allocation29_spill] sm:$0xff] }
 0x162   : > { %19407 = vst [vmem:[#allocation14_spill] sm:$0xff] %v12634_v35  ;;  %9340 = vrot.lane.b32.xlu1 %v19408_v25, %s11390_s29  ;;  %v12665_v25 = vsel %vm1679_vm1, %v12457_v44, %v8773_v60  ;;  %19414 = vst [vmem:[#allocation15_spill] sm:$0xff] %v12670_v8  ;;  %v12684_v44 = vsel %vm1679_vm1, %v12474_v22, %v8778_v42  ;;  %v8793_v60 = vunpack.i.h.bf16 %v19416_v47  ;;  %v2334_v33 = vld [vmem:[#allocation2 + $0x1aa] sm:$0xff]  ;;  %v2337_v22 = vld [vmem:[#allocation2 + $0x1d2] sm:$0xff] }
 0x163   : > { %9345 = vrot.lane.b32.xlu0 %v19412_v36, %s11390_s29  ;;  %v12680_v36 = vsel %vm1679_vm1, %v12478_v28, %v8777_v4  ;;  %v12694_v28 = vpack.i.bf16 %v2331_v55, %v2330_v58  ;;  %v2335_v4 = vld [vmem:[#allocation2 + $0x1b2] sm:$0xff]  ;;  %v2336_v35 = vld [vmem:[#allocation2 + $0x1ca] sm:$0xff]  ;;  %v12698_v42 = vsel %vm1679_vm1, %v12482_v5, %v8783_v40  ;;  %v12706_v47 = vsel %vm1679_vm1, %v12501_v53, %v8787_v17 }
 0x164   : > { %v12668_v13 = vpop.permute.xlu1 %9060  ;;  %v12710_v58 = vpack.i.bf16 %v2333_v46, %v2332_v39  ;;  %v12714_v55 = vsel %vm1679_vm1, %v12492_v16, %v8788_v57  ;;  %v12721_v32 = vld [vmem:[#allocation2 + $0x1ea] sm:$0xff]  ;;  %v12723_v53 = vld [vmem:[#allocation2 + $0x1f2] sm:$0xff]  ;;  %v12727_v46 = vsel %vm1679_vm1, %v12505_v15, %v8793_v60  ;;  %v8808_v17 = vunpack.i.h.bf16 %v19424_v37  ;;  %v19429_v60 = vld [vmem:[#allocation30_spill] sm:$0xff] }
 0x165   : > { %19413 = vst [vmem:[#allocation16_spill] sm:$0xff] %v12668_v13  ;;  %v12687_v50 = vpop.permute.xlu0 %9065  ;;  %v8798_v13 = vunpack.i.h.bf16 %v19418_v61  ;;  %19420 = vst [vmem:[#allocation40_spill] sm:$0xff] %v12694_v28  ;;  %v19421_v61 = vld [vmem:[#allocation52_spill] sm:$0xff]  ;;  %v12732_v57 = vpack.i.bf16 %v2335_v4, %v2334_v33  ;;  %v12734_v39 = vpack.i.bf16 %v2337_v22, %v2336_v35  ;;  %v12746_v15 = vsel %vm1679_vm1, %v12521_v9, %v8797_v26  ;;  %v19430_v35 = vld [vmem:[#allocation53_spill] sm:$0xff] }
 0x166   : > { %19417 = vst [vmem:[#allocation17_spill] sm:$0xff] %v12687_v50  ;;  %9350 = vrot.lane.b32.xlu1 %v19419_v45, %s11390_s29  ;;  %v12702_v50 = vsel %vm1679_vm1, %v12486_v23, %v8782_v49  ;;  %19422 = vst [vmem:[#allocation19_spill] sm:$0xff] %v12710_v58  ;;  %v19423_v45 = vld [vmem:[#allocation28_spill] sm:$0xff]  ;;  %v8807_v23 = vunpack.i.l.bf16 %v19424_v37  ;;  %v8812_v33 = vunpack.i.l.bf16 %v19429_v60 }
 0x167   : > { %9355 = vrot.lane.b32.xlu0 %v19421_v61, %s11390_s29  ;;  %v8803_v5 = vunpack.i.h.bf16 %v19423_v45  ;;  %v8802_v40 = vunpack.i.l.bf16 %v19423_v45  ;;  %19427 = vst [vmem:[#allocation41_spill] sm:$0xff] %v12732_v57  ;;  %19428 = vst [vmem:[#allocation44_spill] sm:$0xff] %v12734_v39  ;;  %v12736_v61 = vld [vmem:[#allocation2 + $0x20a] sm:$0xff]  ;;  %v12738_v45 = vld [vmem:[#allocation2 + $0x212] sm:$0xff]  ;;  %v12750_v37 = vsel %vm1679_vm1, %v12517_v41, %v8798_v13  ;;  %v19432_v41 = vpack.i.bf16 %v12570_v18, %v12568_v56 }
 0x168   : > { %v12719_v49 = vpop.permute.xlu1 %9070  ;;  %v12755_v4 = vld [vmem:[#allocation2 + $0x22a] sm:$0xff]  ;;  %v12757_v22 = vld [vmem:[#allocation2 + $0x232] sm:$0xff] }
 0x169   : > { %19425 = vst [vmem:[#allocation20_spill] sm:$0xff] %v12719_v49  ;;  %v12730_v16 = vpop.permute.xlu0 %9075  ;;  %v12742_v49 = vsel %vm1679_vm1, %v12513_v59, %v8792_v27  ;;  %v8813_v59 = vunpack.i.h.bf16 %v19429_v60  ;;  %v19431_v27 = vld [vmem:[#allocation31_spill] sm:$0xff]  ;;  %v12774_v7 = vsel %vm1679_vm1, %v12534_v0, %v8803_v5  ;;  %v12778_v60 = vsel %vm1679_vm1, %v12538_v3, %v8802_v40  ;;  %v19437_v13 = vld [vmem:[#allocation32_spill] sm:$0xff]  ;;  %v19441_v18 = vld [vmem:[#allocation33_spill] sm:$0xff] }
 0x16a   : > { %19426 = vst [vmem:[#allocation21_spill] sm:$0xff] %v12730_v16  ;;  %9360 = vrot.lane.b32.xlu1 %v19430_v35, %s11390_s29  ;;  %v8818_v16 = vunpack.i.h.bf16 %v19431_v27  ;;  %v8817_v9 = vunpack.i.l.bf16 %v19431_v27  ;;  %v12768_v26 = vld [vmem:[#allocation2 + $0x24a] sm:$0xff]  ;;  %v12770_v35 = vld [vmem:[#allocation2 + $0x252] sm:$0xff]  ;;  %19434 = vst [vmem:[#allocation23_spill] sm:$0xff] %v12774_v7  ;;  %v12782_v27 = vsel %vm1712_vm2, %v12549_v54, %v8807_v23  ;;  %v8823_v0 = vunpack.i.h.bf16 %v19437_v13 }
 0x16b   : > { %9365 = vrot.lane.b32.xlu0 %v19432_v41, %s11391_s30  ;;  %19433 = vst [vmem:[#allocation22_spill] sm:$0xff] %v12768_v26  ;;  %19435 = vst [vmem:[#allocation45_spill] sm:$0xff] %v12778_v60  ;;  %v12790_v41 = vsel %vm1712_vm2, %v12542_v43, %v8808_v17  ;;  %v8822_v5 = vunpack.i.l.bf16 %v19437_v13  ;;  %v12798_v54 = vld [vmem:[#allocation2 + $0x26a] sm:$0xff]  ;;  %v12800_v40 = vld [vmem:[#allocation2 + $0x272] sm:$0xff]  ;;  %v12804_v23 = vsel %vm1712_vm2, %v12553_v51, %v8812_v33  ;;  %v8828_v43 = vunpack.i.h.bf16 %v19441_v18 }
 0x16c   : > { %v12784_v56 = vpop.permute.xlu1 %9080  ;;  %19439 = vst [vmem:[#allocation48_spill] sm:$0xff] %v12798_v54  ;;  %19440 = vst [vmem:[#allocation26_spill] sm:$0xff] %v12800_v40  ;;  %v8827_v17 = vunpack.i.l.bf16 %v19441_v18  ;;  %v19442_v13 = vpack.i.bf16 %v12601_v34, %v12599_v20  ;;  %v12814_v60 = vld [vmem:[#allocation2 + $0x28a] sm:$0xff]  ;;  %v12820_v51 = vsel %vm1712_vm2, %v12561_v14, %v8813_v59  ;;  %v12824_v33 = vsel %vm1712_vm2, %v12578_v6, %v8817_v9  ;;  %v19446_v20 = vld [vmem:[#allocation34_spill] sm:$0xff] }
 0x16d   : > { %19436 = vst [vmem:[#allocation24_spill] sm:$0xff] %v12784_v56  ;;  %v12794_v7 = vpop.permute.xlu0 %9085  ;;  %19443 = vst [vmem:[#allocation27_spill] sm:$0xff] %v12814_v60  ;;  %v12828_v18 = vsel %vm1712_vm2, %v12574_v30, %v8818_v16  ;;  %v8832_v34 = vunpack.i.l.bf16 %v19446_v20  ;;  %v8833_v3 = vunpack.i.h.bf16 %v19446_v20  ;;  %v19448_v56 = vld [vmem:[#allocation35_spill] sm:$0xff]  ;;  %v12842_v30 = vld [vmem:[#allocation2 + $0x2b2] sm:$0xff]  ;;  %v12854_v20 = vsel %vm1712_vm2, %v12582_v2, %v8823_v0 }
 0x16e   : > { %19438 = vst [vmem:[#allocation25_spill] sm:$0xff] %v12794_v7  ;;  %9370 = vrot.lane.b32.xlu1 %v19442_v13, %s11391_s30  ;;  %v12816_v7 = vld [vmem:[#allocation2 + $0x292] sm:$0xff]  ;;  %19445 = vst [vmem:[#allocation52_spill] sm:$0xff] %v12828_v18  ;;  %v12833_v13 = vld [vmem:[#allocation2 + $0x2aa] sm:$0xff]  ;;  %v8838_v14 = vunpack.i.h.bf16 %v19448_v56  ;;  %v8837_v59 = vunpack.i.l.bf16 %v19448_v56  ;;  %v12865_v40 = vsel %vm1712_vm2, %v12592_v38, %v8827_v17 }
 0x16f   : > { %19444 = vst [vmem:[#allocation49_spill] sm:$0xff] %v12816_v7  ;;  %9375 = vrot.lane.b32.xlu0 %v12652_v29, %s11391_s30  ;;  %19447 = vst [vmem:[#allocation28_spill] sm:$0xff] %v12833_v13  ;;  %v12844_v16 = vld [vmem:[#allocation2 + $0x106] sm:$0xff]  ;;  %v12846_v9 = vld [vmem:[#allocation2 + $0x10e] sm:$0xff]  ;;  %v12850_v29 = vsel %vm1712_vm2, %v12586_v11, %v8822_v5  ;;  %v12869_v11 = vsel %vm1712_vm2, %v12605_v62, %v8828_v43  ;;  %v12879_v7 = vsel %vm1712_vm2, %v12618_v12, %v8832_v34 }
 0x170   : > { %v12838_v26 = vpop.permute.xlu1 %9090  ;;  %19450 = vst [vmem:[#allocation30_spill] sm:$0xff] %v12844_v16  ;;  %19451 = vst [vmem:[#allocation53_spill] sm:$0xff] %v12846_v9  ;;  %v19452_v56 = vld [vmem:[#allocation36_spill] sm:$0xff]  ;;  %v12861_v54 = vld [vmem:[#allocation2 + $0x126] sm:$0xff]  ;;  %v12890_v17 = vsel %vm1712_vm2, %v12609_v24, %v8833_v3  ;;  %v12898_v12 = vsel %vm1712_vm2, %v12626_v21, %v8838_v14 }
 0x171   : > { %19449 = vst [vmem:[#allocation29_spill] sm:$0xff] %v12838_v26  ;;  %v8842_v18 = vunpack.i.l.bf16 %v19452_v56  ;;  %v12857_v26 = vpop.permute.xlu0 %9095  ;;  %19454 = vst [vmem:[#allocation32_spill] sm:$0xff] %v12861_v54  ;;  %v8843_v2 = vunpack.i.h.bf16 %v19452_v56  ;;  %v19455_v0 = vld [vmem:[#allocation37_spill] sm:$0xff]  ;;  %v2356_v6 = vld [vmem:[#allocation2 + $0x146] sm:$0xff]  ;;  %v12894_v56 = vsel %vm1712_vm2, %v12622_v63, %v8837_v59 }
 0x172   : > { %19453 = vst [vmem:[#allocation31_spill] sm:$0xff] %v12857_v26  ;;  %v8847_v5 = vunpack.i.l.bf16 %v19455_v0  ;;  %9380 = vrot.lane.b32.xlu1 %v12670_v8, %s11391_s30  ;;  %v12875_v26 = vld [vmem:[#allocation2 + $0x12e] sm:$0xff]  ;;  %v8848_v38 = vunpack.i.h.bf16 %v19455_v0  ;;  %v19457_v34 = vld [vmem:[#allocation38_spill] sm:$0xff] }
 0x173   : > { %19456 = vst [vmem:[#allocation33_spill] sm:$0xff] %v12875_v26  ;;  %v2357_v60 = vld [vmem:[#allocation2 + $0x14e] sm:$0xff]  ;;  %9385 = vrot.lane.b32.xlu0 %v12672_v1, %s11391_s30  ;;  %v8852_v0 = vunpack.i.l.bf16 %v19457_v34  ;;  %v2358_v62 = vld [vmem:[#allocation2 + $0x166] sm:$0xff]  ;;  %v12905_v43 = vsel %vm1712_vm2, %v12644_v48, %v8842_v18  ;;  %v8853_v24 = vunpack.i.h.bf16 %v19457_v34 }
 0x174   : > { %v12901_v1 = vpop.permute.xlu1 %9100  ;;  %v12912_v59 = vpack.i.bf16 %v2357_v60, %v2356_v6  ;;  %v2359_v21 = vld [vmem:[#allocation2 + $0x16e] sm:$0xff]  ;;  %v2360_v14 = vld [vmem:[#allocation2 + $0x186] sm:$0xff]  ;;  %v12920_v48 = vsel %vm1712_vm2, %v12648_v52, %v8847_v5  ;;  %v12928_v60 = vsel %vm1712_vm2, %v12656_v31, %v8848_v38 }
 0x175   : > { %19458 = vst [vmem:[#allocation34_spill] sm:$0xff] %v12901_v1  ;;  %v12908_v3 = vpop.permute.xlu0 %9105  ;;  %v2361_v8 = vld [vmem:[#allocation2 + $0x18e] sm:$0xff]  ;;  %v12916_v1 = vsel %vm1712_vm2, %v12640_v10, %v8843_v2  ;;  %v19462_v6 = vld [vmem:[#allocation42_spill] sm:$0xff]  ;;  %v12942_v31 = vpack.i.bf16 %v2359_v21, %v2358_v62  ;;  %v12948_v16 = vsel %vm1712_vm2, %v12665_v25, %v8853_v24 }
 0x176   : > { %19459 = vst [vmem:[#allocation35_spill] sm:$0xff] %v12908_v3  ;;  %19460 = vst [vmem:[#allocation36_spill] sm:$0xff] %v12912_v59  ;;  %v19461_v18 = vld [vmem:[#allocation39_spill] sm:$0xff]  ;;  %9390 = vrot.lane.b32.xlu1 %v12694_v28, %s11391_s30  ;;  %v8863_v63 = vunpack.i.h.bf16 %v19462_v6  ;;  %v8862_v10 = vunpack.i.l.bf16 %v19462_v6  ;;  %v12944_v38 = vpack.i.bf16 %v2361_v8, %v2360_v14 }
 0x177   : > { %v8858_v34 = vunpack.i.h.bf16 %v19461_v18  ;;  %v8857_v3 = vunpack.i.l.bf16 %v19461_v18  ;;  %v19463_v2 = vld [vmem:[#allocation43_spill] sm:$0xff]  ;;  %9395 = vrot.lane.b32.xlu0 %v12710_v58, %s11391_s30  ;;  %v12937_v18 = vsel %vm1712_vm2, %v12676_v19, %v8852_v0  ;;  %19466 = vst [vmem:[#allocation39_spill] sm:$0xff] %v12942_v31  ;;  %v19468_v58 = vld [vmem:[#allocation46_spill] sm:$0xff] }
 0x178   : > { %v8867_v59 = vunpack.i.l.bf16 %v19463_v2  ;;  %v2362_v52 = vld [vmem:[#allocation2 + $0x1a6] sm:$0xff]  ;;  %v2363_v5 = vld [vmem:[#allocation2 + $0x1ae] sm:$0xff]  ;;  %19464 = vst [vmem:[#allocation37_spill] sm:$0xff] %v12937_v18  ;;  %v8868_v28 = vunpack.i.h.bf16 %v19463_v2  ;;  %v12940_v54 = vpop.permute.xlu1 %9110  ;;  %19467 = vst [vmem:[#allocation42_spill] sm:$0xff] %v12944_v38  ;;  %v8873_v9 = vunpack.i.h.bf16 %v19468_v58  ;;  %v8872_v13 = vunpack.i.l.bf16 %v19468_v58 }
 0x179   : > { %19465 = vst [vmem:[#allocation38_spill] sm:$0xff] %v12940_v54  ;;  %v2364_v6 = vld [vmem:[#allocation2 + $0x1c6] sm:$0xff]  ;;  %v2365_v26 = vld [vmem:[#allocation2 + $0x1ce] sm:$0xff]  ;;  %v12953_v18 = vpop.permute.xlu0 %9115  ;;  %v12957_v8 = vsel %vm1712_vm2, %v12680_v36, %v8857_v3  ;;  %v12961_v62 = vsel %vm1712_vm2, %v12684_v44, %v8858_v34  ;;  %v12966_v58 = vpack.i.bf16 %v2363_v5, %v2362_v52  ;;  %v12970_v14 = vsel %vm1712_vm2, %v12702_v50, %v8862_v10 }
 0x17a   : > { %v19469_v19 = vld [vmem:[#allocation47_spill] sm:$0xff]  ;;  %19470 = vst [vmem:[#allocation43_spill] sm:$0xff] %v12953_v18  ;;  %9400 = vrot.lane.b32.xlu1 %v12732_v57, %s11391_s30  ;;  %v12974_v36 = vsel %vm1712_vm2, %v12698_v42, %v8863_v63  ;;  %v12978_v44 = vsel %vm1712_vm2, %v12706_v47, %v8867_v59  ;;  %v12982_v3 = vpack.i.bf16 %v2365_v26, %v2364_v6 }
 0x17b   : > { %v8877_v0 = vunpack.i.l.bf16 %v19469_v19  ;;  %v2366_v2 = vld [vmem:[#allocation2 + $0x1e6] sm:$0xff]  ;;  %v2367_v54 = vld [vmem:[#allocation2 + $0x1ee] sm:$0xff]  ;;  %v8878_v25 = vunpack.i.h.bf16 %v19469_v19  ;;  %19471 = vst [vmem:[#allocation46_spill] sm:$0xff] %v12966_v58  ;;  %9405 = vrot.lane.b32.xlu0 %v12734_v39, %s11391_s30  ;;  %v12986_v52 = vsel %vm1712_vm2, %v12714_v55, %v8868_v28  ;;  %v12996_v26 = vsel %vm1712_vm2, %v12742_v49, %v8872_v13 }
 0x17c   : > { %v2368_v24 = vld [vmem:[#allocation2 + $0x206] sm:$0xff]  ;;  %v2369_v21 = vld [vmem:[#allocation2 + $0x20e] sm:$0xff]  ;;  %19472 = vst [vmem:[#allocation47_spill] sm:$0xff] %v12982_v3  ;;  %v12990_v42 = vpop.permute.xlu1 %9120  ;;  %v12992_v63 = vpack.i.bf16 %v2367_v54, %v2366_v2  ;;  %v13000_v6 = vsel %vm1712_vm2, %v12727_v46, %v8873_v9 }
 0x17d   : > { %v2370_v34 = vld [vmem:[#allocation2 + $0x226] sm:$0xff]  ;;  %v2371_v47 = vld [vmem:[#allocation2 + $0x22e] sm:$0xff]  ;;  %v13004_v28 = vsel %vm1712_vm2, %v12746_v15, %v8877_v0  ;;  %v13006_v55 = vpop.permute.xlu0 %9125  ;;  %v13012_v2 = vsel %vm1712_vm2, %v12750_v37, %v8878_v25  ;;  %v19479_v15 = vpack.i.bf16 %v12723_v53, %v12721_v32  ;;  %v19481_v37 = vpack.i.bf16 %v12738_v45, %v12736_v61 }
 0x17e   : > { %v19473_v50 = vld [vmem:[#allocation51_spill] sm:$0xff]  ;;  %19475 = vst [vmem:[#allocation81_spill] sm:$0xff] %v12992_v63  ;;  %v19477_v39 = vld [vmem:[#allocation54_spill] sm:$0xff] }
 0x17f   : > { %v8888_v10 = vunpack.i.h.bf16 %v19473_v50  ;;  %v8887_v5 = vunpack.i.l.bf16 %v19473_v50  ;;  %19474 = vst [vmem:[#allocation51_spill] sm:$0xff] %v12990_v42  ;;  %v2372_v59 = vld [vmem:[#allocation2 + $0x246] sm:$0xff]  ;;  %v2373_v19 = vld [vmem:[#allocation2 + $0x24e] sm:$0xff]  ;;  %v13008_v50 = vpack.i.bf16 %v2369_v21, %v2368_v24  ;;  %v8893_v49 = vunpack.i.h.bf16 %v19477_v39  ;;  %9410 = vrot.lane.b32.xlu1 %v19479_v15, %s11391_s30  ;;  %9415 = vrot.lane.b32.xlu0 %v19481_v37, %s11391_s30 }
 0x180   : > { %v2374_v54 = vld [vmem:[#allocation2 + $0x266] sm:$0xff]  ;;  %v8892_v13 = vunpack.i.l.bf16 %v19477_v39  ;;  %v2375_v9 = vld [vmem:[#allocation2 + $0x26e] sm:$0xff]  ;;  %v13027_v39 = vpack.i.bf16 %v2371_v47, %v2370_v34  ;;  %v13029_v25 = vpack.i.bf16 %v2373_v19, %v2372_v59  ;;  %v13041_v21 = vpop.permute.xlu1 %9130  ;;  %v19485_v34 = vld [vmem:[#allocation57_spill] sm:$0xff] }
 0x181   : > { %19476 = vst [vmem:[#allocation82_spill] sm:$0xff] %v13008_v50  ;;  %v19478_v57 = vld [vmem:[#allocation55_spill] sm:$0xff]  ;;  %v13033_v32 = vsel %vm1745_vm3, %v12782_v27, %v8887_v5  ;;  %v13037_v53 = vsel %vm1745_vm3, %v12790_v41, %v8888_v10  ;;  %v19484_v42 = vld [vmem:[#allocation56_spill] sm:$0xff]  ;;  %v8907_v47 = vunpack.i.l.bf16 %v19485_v34  ;;  %v13045_v59 = vpop.permute.xlu0 %9135  ;;  %v13047_v19 = vpack.i.bf16 %v2375_v9, %v2374_v54 }
 0x182   : > { %v8897_v46 = vunpack.i.l.bf16 %v19478_v57  ;;  %v2376_v0 = vld [vmem:[#allocation2 + $0x286] sm:$0xff]  ;;  %v2377_v24 = vld [vmem:[#allocation2 + $0x28e] sm:$0xff]  ;;  %19482 = vst [vmem:[#allocation54_spill] sm:$0xff] %v13027_v39  ;;  %19483 = vst [vmem:[#allocation55_spill] sm:$0xff] %v13029_v25  ;;  %v8898_v15 = vunpack.i.h.bf16 %v19478_v57  ;;  %v8902_v18 = vunpack.i.l.bf16 %v19484_v42  ;;  %v8903_v45 = vunpack.i.h.bf16 %v19484_v42 }
 0x183   : > { %v2378_v61 = vld [vmem:[#allocation2 + $0x2a6] sm:$0xff]  ;;  %19486 = vst [vmem:[#allocation56_spill] sm:$0xff] %v13047_v19  ;;  %v13049_v27 = vpack.i.bf16 %v2377_v24, %v2376_v0  ;;  %v2379_v5 = vld [vmem:[#allocation2 + $0x2ae] sm:$0xff]  ;;  %v13053_v57 = vsel %vm1745_vm3, %v12804_v23, %v8892_v13  ;;  %v13057_v37 = vsel %vm1745_vm3, %v12820_v51, %v8893_v49  ;;  %v8908_v54 = vunpack.i.h.bf16 %v19485_v34 }
 0x184   : > { %v2380_v41 = vld [vmem:[#allocation2 + $0x2c6] sm:$0xff]  ;;  %v2381_v10 = vld [vmem:[#allocation2 + $0x2ce] sm:$0xff]  ;;  %v13061_v42 = vsel %vm1745_vm3, %v12824_v33, %v8897_v46  ;;  %v19488_v9 = vpack.i.bf16 %v12757_v22, %v12755_v4  ;;  %v13082_v4 = vsel %vm1745_vm3, %v12850_v29, %v8902_v18  ;;  %v13084_v22 = vpop.permute.xlu1 %9140 }
 0x185   : > { %19487 = vst [vmem:[#allocation57_spill] sm:$0xff] %v13049_v27  ;;  %v19489_v0 = vld [vmem:[#allocation58_spill] sm:$0xff]  ;;  %v19490_v13 = vld [vmem:[#allocation59_spill] sm:$0xff]  ;;  %v19493_v19 = vld [vmem:[#allocation52_spill] sm:$0xff]  ;;  %v13100_v29 = vpop.permute.xlu0 %9145 }
 0x186   : > { %9420 = vrot.lane.b32.xlu1 %v19488_v9, %s11391_s30  ;;  %v8913_v24 = vunpack.i.h.bf16 %v19489_v0  ;;  %v8912_v23 = vunpack.i.l.bf16 %v19489_v0  ;;  %v8918_v27 = vunpack.i.h.bf16 %v19490_v13  ;;  %v8917_v51 = vunpack.i.l.bf16 %v19490_v13  ;;  %v19491_v49 = vld [vmem:[#allocation22_spill] sm:$0xff]  ;;  %v2383_v34 = vld [vmem:[#allocation2 + $0x2ee] sm:$0xff] }
 0x187   : > { %v19492_v33 = vpack.i.bf16 %v12770_v35, %v19491_v49  ;;  %v2382_v46 = vld [vmem:[#allocation2 + $0x2e6] sm:$0xff]  ;;  %v13078_v25 = vsel %vm1745_vm3, %v19493_v19, %v8898_v15  ;;  %v13086_v9 = vpack.i.bf16 %v2379_v5, %v2378_v61  ;;  %v13088_v0 = vpack.i.bf16 %v2381_v10, %v2380_v41  ;;  %v19496_v15 = vld [vmem:[#allocation60_spill] sm:$0xff]  ;;  %19497 = vst [vmem:[#allocation22_spill] sm:$0xff] %v13100_v29  ;;  %v19499_v5 = vld [vmem:[#allocation61_spill] sm:$0xff] }
 0x188   : > { %v13092_v35 = vsel %vm1745_vm3, %v12854_v20, %v8903_v45  ;;  %v13096_v13 = vsel %vm1745_vm3, %v12865_v40, %v8907_v47  ;;  %v8923_v19 = vunpack.i.h.bf16 %v19496_v15  ;;  %v8922_v49 = vunpack.i.l.bf16 %v19496_v15  ;;  %v13102_v18 = vld [vmem:[#allocation2 + $0x128] sm:$0xff]  ;;  %v19500_v45 = vld [vmem:[#allocation26_spill] sm:$0xff]  ;;  %v19501_v40 = vld [vmem:[#allocation48_spill] sm:$0xff] }
 0x189   : > { %9425 = vrot.lane.b32.xlu0 %v19492_v33, %s11391_s30  ;;  %19494 = vst [vmem:[#allocation58_spill] sm:$0xff] %v13086_v9  ;;  %19495 = vst [vmem:[#allocation59_spill] sm:$0xff] %v13088_v0  ;;  %v13106_v61 = vsel %vm1745_vm3, %v12869_v11, %v8908_v54  ;;  %v8928_v41 = vunpack.i.h.bf16 %v19499_v5  ;;  %v8927_v20 = vunpack.i.l.bf16 %v19499_v5  ;;  %v19502_v47 = vpack.i.bf16 %v19500_v45, %v19501_v40  ;;  %v13116_v33 = vld [vmem:[#allocation2 + $0x130] sm:$0xff]  ;;  %v2388_v15 = vld [vmem:[#allocation2 + $0x148] sm:$0xff] }
 0x18a   : > { %19498 = vst [vmem:[#allocation52_spill] sm:$0xff] %v13102_v18  ;;  %v13114_v10 = vpack.i.bf16 %v2383_v34, %v2382_v46  ;;  %19504 = vst [vmem:[#allocation61_spill] sm:$0xff] %v13116_v33  ;;  %v2389_v0 = vld [vmem:[#allocation2 + $0x150] sm:$0xff]  ;;  %v13120_v9 = vsel %vm1745_vm3, %v12879_v7, %v8912_v23  ;;  %v13124_v11 = vsel %vm1745_vm3, %v12890_v17, %v8913_v24  ;;  %v19505_v34 = vld [vmem:[#allocation49_spill] sm:$0xff] }
 0x18b   : > { %9430 = vrot.lane.b32.xlu1 %v19502_v47, %s11391_s30  ;;  %v13128_v54 = vsel %vm1745_vm3, %v12894_v56, %v8917_v51  ;;  %v13132_v46 = vsel %vm1745_vm3, %v12898_v12, %v8918_v27  ;;  %v19506_v5 = vld [vmem:[#allocation27_spill] sm:$0xff]  ;;  %v19508_v7 = vld [vmem:[#allocation62_spill] sm:$0xff]  ;;  %v13142_v56 = vpop.permute.xlu1 %9150  ;;  %v2391_v51 = vld [vmem:[#allocation2 + $0x170] sm:$0xff]  ;;  %v13146_v29 = vsel %vm1745_vm3, %v12905_v43, %v8922_v49  ;;  %v13164_v43 = vsel %vm1745_vm3, %v12928_v60, %v8928_v41 }
 0x18c   : > { %19503 = vst [vmem:[#allocation60_spill] sm:$0xff] %v13114_v10  ;;  %v19507_v45 = vpack.i.bf16 %v19505_v34, %v19506_v5  ;;  %v2390_v40 = vld [vmem:[#allocation2 + $0x168] sm:$0xff]  ;;  %v8933_v23 = vunpack.i.h.bf16 %v19508_v7  ;;  %v8932_v47 = vunpack.i.l.bf16 %v19508_v7  ;;  %19510 = vst [vmem:[#allocation26_spill] sm:$0xff] %v13142_v56  ;;  %v2393_v27 = vld [vmem:[#allocation2 + $0x190] sm:$0xff]  ;;  %v13150_v34 = vsel %vm1745_vm3, %v12916_v1, %v8923_v19  ;;  %v13152_v5 = vpop.permute.xlu0 %9155 }
 0x18d   : > { %v19509_v17 = vld [vmem:[#allocation63_spill] sm:$0xff]  ;;  %19511 = vst [vmem:[#allocation48_spill] sm:$0xff] %v13146_v29  ;;  %19512 = vst [vmem:[#allocation49_spill] sm:$0xff] %v13152_v5  ;;  %v13156_v7 = vpack.i.bf16 %v2389_v0, %v2388_v15  ;;  %v13160_v56 = vsel %vm1745_vm3, %v12920_v48, %v8927_v20  ;;  %v19515_v49 = vld [vmem:[#allocation64_spill] sm:$0xff]  ;;  %v13178_v33 = vpack.i.bf16 %v2391_v51, %v2390_v40 }
 0x18e   : > { %9435 = vrot.lane.b32.xlu0 %v19507_v45, %s11391_s30  ;;  %v8938_v24 = vunpack.i.h.bf16 %v19509_v17  ;;  %v8937_v10 = vunpack.i.l.bf16 %v19509_v17  ;;  %v2392_v12 = vld [vmem:[#allocation2 + $0x188] sm:$0xff]  ;;  %19514 = vst [vmem:[#allocation62_spill] sm:$0xff] %v13164_v43  ;;  %v8943_v29 = vunpack.i.h.bf16 %v19515_v49  ;;  %v8942_v1 = vunpack.i.l.bf16 %v19515_v49  ;;  %v19516_v19 = vld [vmem:[#allocation28_spill] sm:$0xff]  ;;  %v19519_v20 = vld [vmem:[#allocation53_spill] sm:$0xff] }
 0x18f   : > { %19513 = vst [vmem:[#allocation27_spill] sm:$0xff] %v13156_v7  ;;  %v2394_v17 = vld [vmem:[#allocation2 + $0x1a8] sm:$0xff]  ;;  %v19517_v5 = vpack.i.bf16 %v12842_v30, %v19516_v19  ;;  %v2395_v0 = vld [vmem:[#allocation2 + $0x1b0] sm:$0xff]  ;;  %v19518_v7 = vld [vmem:[#allocation65_spill] sm:$0xff]  ;;  %v13180_v49 = vpack.i.bf16 %v2393_v27, %v2392_v12  ;;  %v13198_v40 = vpop.permute.xlu1 %9160 }
 0x190   : > { %v2396_v15 = vld [vmem:[#allocation2 + $0x1c8] sm:$0xff]  ;;  %v2397_v45 = vld [vmem:[#allocation2 + $0x1d0] sm:$0xff]  ;;  %v8948_v18 = vunpack.i.h.bf16 %v19518_v7  ;;  %v8947_v48 = vunpack.i.l.bf16 %v19518_v7  ;;  %v19520_v60 = vld [vmem:[#allocation30_spill] sm:$0xff]  ;;  %v13192_v7 = vsel %vm1745_vm3, %v12957_v8, %v8937_v10  ;;  %v13196_v19 = vsel %vm1745_vm3, %v12961_v62, %v8938_v24 }
 0x191   : > { %9440 = vrot.lane.b32.xlu1 %v19517_v5, %s11391_s30  ;;  %v19521_v41 = vpack.i.bf16 %v19519_v20, %v19520_v60  ;;  %v19522_v43 = vld [vmem:[#allocation37_spill] sm:$0xff]  ;;  %v13188_v5 = vsel %vm1745_vm3, %v12948_v16, %v8933_v23  ;;  %19523 = vst [vmem:[#allocation63_spill] sm:$0xff] %v13192_v7  ;;  %19524 = vst [vmem:[#allocation64_spill] sm:$0xff] %v13196_v19  ;;  %v2398_v51 = vld [vmem:[#allocation2 + $0x1e8] sm:$0xff]  ;;  %v13204_v20 = vpack.i.bf16 %v2395_v0, %v2394_v17 }
 0x192   : > { %v13184_v30 = vsel %vm1745_vm3, %v19522_v43, %v8932_v47  ;;  %v19525_v12 = vld [vmem:[#allocation66_spill] sm:$0xff]  ;;  %v13202_v43 = vpop.permute.xlu0 %9165  ;;  %v13206_v16 = vpack.i.bf16 %v2397_v45, %v2396_v15  ;;  %v2399_v23 = vld [vmem:[#allocation2 + $0x1f0] sm:$0xff]  ;;  %v2400_v8 = vld [vmem:[#allocation2 + $0x208] sm:$0xff]  ;;  %v13210_v62 = vsel %vm1745_vm3, %v12970_v14, %v8942_v1  ;;  %v13214_v24 = vsel %vm1745_vm3, %v12974_v36, %v8943_v29 }
 0x193   : > { %9445 = vrot.lane.b32.xlu0 %v19521_v41, %s11392_s4  ;;  %v8953_v27 = vunpack.i.h.bf16 %v19525_v12  ;;  %v8952_v47 = vunpack.i.l.bf16 %v19525_v12  ;;  %19526 = vst [vmem:[#allocation28_spill] sm:$0xff] %v13204_v20  ;;  %v2401_v10 = vld [vmem:[#allocation2 + $0x210] sm:$0xff]  ;;  %19528 = vst [vmem:[#allocation53_spill] sm:$0xff] %v13210_v62  ;;  %v19530_v60 = vld [vmem:[#allocation67_spill] sm:$0xff]  ;;  %v13224_v19 = vsel %vm1745_vm3, %v12978_v44, %v8947_v48  ;;  %v13228_v14 = vsel %vm1745_vm3, %v12986_v52, %v8948_v18  ;;  %v13236_v44 = vpop.permute.xlu1 %9170 }
 0x194   : > { %19527 = vst [vmem:[#allocation65_spill] sm:$0xff] %v13206_v16  ;;  %19529 = vst [vmem:[#allocation30_spill] sm:$0xff] %v13214_v24  ;;  %v8958_v41 = vunpack.i.h.bf16 %v19530_v60  ;;  %v8957_v12 = vunpack.i.l.bf16 %v19530_v60  ;;  %v19531_v17 = vld [vmem:[#allocation33_spill] sm:$0xff]  ;;  %v19532_v0 = vld [vmem:[#allocation32_spill] sm:$0xff]  ;;  %v13238_v48 = vpack.i.bf16 %v2399_v23, %v2398_v51  ;;  %v13240_v52 = vpack.i.bf16 %v2401_v10, %v2400_v8 }
 0x195   : > { %v19533_v45 = vpack.i.bf16 %v19531_v17, %v19532_v0  ;;  %v2402_v15 = vld [vmem:[#allocation2 + $0x228] sm:$0xff]  ;;  %19534 = vst [vmem:[#allocation37_spill] sm:$0xff] %v13224_v19  ;;  %19535 = vst [vmem:[#allocation66_spill] sm:$0xff] %v13228_v14  ;;  %v19536_v36 = vld [vmem:[#allocation69_spill] sm:$0xff] }
 0x196   : > { %v8968_v29 = vunpack.i.h.bf16 %v19536_v36  ;;  %v8967_v1 = vunpack.i.l.bf16 %v19536_v36  ;;  %v19537_v60 = vld [vmem:[#allocation36_spill] sm:$0xff]  ;;  %v2404_v62 = vld [vmem:[#allocation2 + $0x248] sm:$0xff]  ;;  %v19538_v0 = vld [vmem:[#allocation70_spill] sm:$0xff]  ;;  %v13244_v36 = vsel %vm1745_vm3, %v12996_v26, %v8952_v47  ;;  %v13252_v20 = vpop.permute.xlu0 %9175  ;;  %v13256_v8 = vsel %vm1745_vm3, %v13004_v28, %v8957_v12 }
 0x197   : > { %9450 = vrot.lane.b32.xlu1 %v19533_v45, %s11392_s4  ;;  %9455 = vrot.lane.b32.xlu0 %v19537_v60, %s11392_s4  ;;  %v2403_v24 = vld [vmem:[#allocation2 + $0x230] sm:$0xff]  ;;  %v8973_v45 = vunpack.i.h.bf16 %v19538_v0  ;;  %v8972_v16 = vunpack.i.l.bf16 %v19538_v0  ;;  %v2406_v18 = vld [vmem:[#allocation2 + $0x268] sm:$0xff]  ;;  %v13248_v60 = vsel %vm1745_vm3, %v13000_v6, %v8953_v27  ;;  %19540 = vst [vmem:[#allocation67_spill] sm:$0xff] %v13256_v8  ;;  %v13260_v26 = vsel %vm1745_vm3, %v13012_v2, %v8958_v41 }
 0x198   : > { %v2405_v17 = vld [vmem:[#allocation2 + $0x250] sm:$0xff]  ;;  %v19539_v19 = vld [vmem:[#allocation71_spill] sm:$0xff]  ;;  %19541 = vst [vmem:[#allocation33_spill] sm:$0xff] %v13260_v26  ;;  %v13264_v6 = vpack.i.bf16 %v2403_v24, %v2402_v15  ;;  %v1780_v47 = vsel %vm1778_vm4, %v13037_v53, %v8968_v29  ;;  %v13282_v15 = vpop.permute.xlu1 %9180 }
 0x199   : > { %v2407_v14 = vld [vmem:[#allocation2 + $0x270] sm:$0xff]  ;;  %v8978_v7 = vunpack.i.h.bf16 %v19539_v19  ;;  %v8977_v0 = vunpack.i.l.bf16 %v19539_v19  ;;  %v2408_v51 = vld [vmem:[#allocation2 + $0x288] sm:$0xff]  ;;  %v13266_v27 = vpack.i.bf16 %v2405_v17, %v2404_v62  ;;  %v1779_v19 = vsel %vm1778_vm4, %v13033_v32, %v8967_v1 }
 0x19a   : > { %v2409_v23 = vld [vmem:[#allocation2 + $0x290] sm:$0xff]  ;;  %v13275_v2 = vpack.i.bf16 %v2407_v14, %v2406_v18  ;;  %v2410_v41 = vld [vmem:[#allocation2 + $0x2a8] sm:$0xff]  ;;  %v1781_v24 = vsel %vm1778_vm4, %v13053_v57, %v8972_v16  ;;  %v1782_v62 = vsel %vm1778_vm4, %v13057_v37, %v8973_v45  ;;  %v19543_v18 = vld [vmem:[#allocation73_spill] sm:$0xff]  ;;  %v13292_v37 = vpop.permute.xlu0 %9185 }
 0x19b   : > { %9460 = vrot.lane.b32.xlu1 %v12942_v31, %s11392_s4  ;;  %v19542_v10 = vld [vmem:[#allocation72_spill] sm:$0xff]  ;;  %9465 = vrot.lane.b32.xlu0 %v12944_v38, %s11392_s4  ;;  %v13284_v53 = vpack.i.bf16 %v2409_v23, %v2408_v51  ;;  %v2412_v29 = vld [vmem:[#allocation2 + $0x2c8] sm:$0xff]  ;;  %v1783_v14 = vsel %vm1778_vm4, %v13061_v42, %v8977_v0  ;;  %v1784_v17 = vsel %vm1778_vm4, %v13078_v25, %v8978_v7  ;;  %v8988_v57 = vunpack.i.h.bf16 %v19543_v18  ;;  %v19544_v45 = vld [vmem:[#allocation74_spill] sm:$0xff] }
 0x19c   : > { %v8982_v28 = vunpack.i.l.bf16 %v19542_v10  ;;  %v2411_v12 = vld [vmem:[#allocation2 + $0x2b0] sm:$0xff]  ;;  %v8983_v32 = vunpack.i.h.bf16 %v19542_v10  ;;  %v8987_v16 = vunpack.i.l.bf16 %v19543_v18  ;;  %v8993_v10 = vunpack.i.h.bf16 %v19544_v45  ;;  %v19545_v23 = vld [vmem:[#allocation75_spill] sm:$0xff] }
 0x19d   : > { %v2413_v1 = vld [vmem:[#allocation2 + $0x2d0] sm:$0xff]  ;;  %v8992_v51 = vunpack.i.l.bf16 %v19544_v45  ;;  %v8997_v38 = vunpack.i.l.bf16 %v19545_v23  ;;  %v13299_v42 = vpack.i.bf16 %v2411_v12, %v2410_v41  ;;  %v8998_v7 = vunpack.i.h.bf16 %v19545_v23  ;;  %v2414_v45 = vld [vmem:[#allocation2 + $0x2e8] sm:$0xff]  ;;  %v13318_v23 = vpop.permute.xlu1 %9190 }
 0x19e   : > { %v13303_v25 = vsel %vm1778_vm4, %v13082_v4, %v8982_v28  ;;  %v19546_v0 = vld [vmem:[#allocation12_spill] sm:$0xff]  ;;  %v13309_v31 = vpack.i.bf16 %v2413_v1, %v2412_v29  ;;  %v19547_v12 = vld [vmem:[#allocation11_spill] sm:$0xff]  ;;  %v13322_v8 = vsel %vm1778_vm4, %v13096_v13, %v8987_v16  ;;  %v13326_v29 = vsel %vm1778_vm4, %v13106_v61, %v8988_v57  ;;  %v19548_v1 = vld [vmem:[#allocation14_spill] sm:$0xff] }
 0x19f   : > { %9470 = vrot.lane.b32.xlu1 %v12966_v58, %s11392_s4  ;;  %v9047_v18 = vunpack.i.l.bf16 %v19546_v0  ;;  %9475 = vrot.lane.b32.xlu0 %v12982_v3, %s11392_s4  ;;  %v2415_v26 = vld [vmem:[#allocation2 + $0x2f0] sm:$0xff]  ;;  %v13313_v58 = vsel %vm1778_vm4, %v13092_v35, %v8983_v32  ;;  %v9048_v41 = vunpack.i.h.bf16 %v19546_v0  ;;  %v9053_v4 = vunpack.i.h.bf16 %v19547_v12  ;;  %v13330_v32 = vpop.permute.xlu0 %9195 }
 0x1a0   : > { %v9052_v28 = vunpack.i.l.bf16 %v19547_v12  ;;  %v9058_v3 = vunpack.i.h.bf16 %v19548_v1  ;;  %v9057_v35 = vunpack.i.l.bf16 %v19548_v1  ;;  %v13334_v0 = vsel %vm1778_vm4, %v13120_v9, %v8992_v51 }
 0x1a1   : > { %v13338_v12 = vsel %vm1778_vm4, %v13124_v11, %v8993_v10  ;;  %v13342_v13 = vsel %vm1778_vm4, %v13128_v54, %v8997_v38  ;;  %v13346_v61 = vpack.i.bf16 %v2415_v26, %v2414_v45  ;;  %v13350_v57 = vsel %vm1778_vm4, %v13132_v46, %v8998_v7  ;;  %v13360_v10 = vpop.permute.xlu1 %9200 }
 0x1a2   : > { %v9128_v9 = vunpack.i.h.bf16 %v13006_v55  ;;  %v9127_v16 = vunpack.i.l.bf16 %v13006_v55  ;;  %v1812_v11 = vsel %vm1811_vm5, %v1779_v19, %v9047_v18  ;;  %v1814_v38 = vsel %vm1811_vm5, %v1781_v24, %v9052_v28  ;;  %v19549_v55 = vld [vmem:[#allocation16_spill] sm:$0xff] }
 0x1a3   : > { %9480 = vrot.lane.b32.xlu1 %v12992_v63, %s11392_s4  ;;  %9485 = vrot.lane.b32.xlu0 %v13008_v50, %s11392_s4  ;;  %v1815_v54 = vsel %vm1811_vm5, %v1782_v62, %v9053_v4  ;;  %v9132_v26 = vunpack.i.l.bf16 %v13041_v21  ;;  %v1813_v46 = vsel %vm1811_vm5, %v1780_v47, %v9048_v41  ;;  %v1816_v51 = vsel %vm1811_vm5, %v1783_v14, %v9057_v35  ;;  %v9206_v50 = vpop.permute.xlu0 %9205  ;;  %v19550_v41 = vld [vmem:[#allocation17_spill] sm:$0xff]  ;;  %v19559_v63 = vld [vmem:[#allocation58_spill] sm:$0xff] }
 0x1a4   : > { %v1817_v7 = vsel %vm1811_vm5, %v1784_v17, %v9058_v3  ;;  %v9063_v45 = vunpack.i.h.bf16 %v19549_v55  ;;  %v9133_v1 = vunpack.i.h.bf16 %v13041_v21  ;;  %v9138_v19 = vunpack.i.h.bf16 %v13045_v59  ;;  %v19551_v3 = vld [vmem:[#allocation55_spill] sm:$0xff] }
 0x1a5   : > { %v9137_v24 = vunpack.i.l.bf16 %v13045_v59  ;;  %v9208_v62 = vunpack.i.h.bf16 %v9206_v50  ;;  %v9207_v18 = vunpack.i.l.bf16 %v9206_v50  ;;  %v9062_v47 = vunpack.i.l.bf16 %v19549_v55  ;;  %v9211_v28 = vpop.permute.xlu1 %9210 }
 0x1a6   : > { %v9068_v14 = vunpack.i.h.bf16 %v19550_v41  ;;  %v1845_v17 = vsel %vm1844_vm6, %v1812_v11, %v9127_v16  ;;  %v1846_v21 = vsel %vm1844_vm6, %v1813_v46, %v9128_v9  ;;  %v9067_v4 = vunpack.i.l.bf16 %v19550_v41 }
 0x1a7   : > { %9490 = vrot.lane.b32.xlu1 %v13027_v39, %s11392_s4  ;;  %9495 = vrot.lane.b32.xlu0 %v19551_v3, %s11392_s4  ;;  %v1847_v59 = vsel %vm1844_vm6, %v1814_v38, %v9132_v26  ;;  %v1878_v50 = vsel %vm1877_vm7, %v1845_v17, %v9207_v18  ;;  %v1879_v35 = vsel %vm1877_vm7, %v1846_v21, %v9208_v62  ;;  %v19552_v55 = vmov 0  ;;  %v9216_v9 = vpop.permute.xlu0 %9215  ;;  %v19555_v62 = vld [vmem:[#allocation56_spill] sm:$0xff] }
 0x1a8   : > { %v19553_v55 = vsel %vm13383_vm9, 4294967295, %v19552_v55  ;;  %v1848_v3 = vsel %vm1844_vm6, %v1815_v54, %v9133_v1  ;;  %v9213_v16 = vunpack.i.h.bf16 %v9211_v28  ;;  %v9212_v11 = vunpack.i.l.bf16 %v9211_v28  ;;  %v19556_v1 = vld [vmem:[#allocation57_spill] sm:$0xff] }
 0x1a9   : > { %19554 = vst [vmem:[#allocation32_spill] sm:$0xff] %v19553_v55  ;;  %v8031_v46 = vpack.c.bf16 %v1879_v35, %v1878_v50  ;;  %v1849_v41 = vsel %vm1844_vm6, %v1816_v51, %v9137_v24  ;;  %v1850_v38 = vsel %vm1844_vm6, %v1817_v7, %v9138_v19  ;;  %v9218_v26 = vunpack.i.h.bf16 %v9216_v9  ;;  %v19557_v51 = vld [vmem:[#allocation22_spill] sm:$0xff]  ;;  %v9221_v28 = vpop.permute.xlu1 %9220  ;;  %v2478_v55 = vld [vmem:[#allocation2 + $0x30e] sm:$0xff] }
 0x1aa   : > { %v9217_v18 = vunpack.i.l.bf16 %v9216_v9  ;;  %v9143_v17 = vunpack.i.h.bf16 %v13084_v22  ;;  %v9142_v21 = vunpack.i.l.bf16 %v13084_v22  ;;  %v1880_v39 = vsel %vm1877_vm7, %v1847_v59, %v9212_v11 }
 0x1ab   : > { %9500 = vrot.lane.b32.xlu1 %v19555_v62, %s11392_s4  ;;  %v1881_v54 = vsel %vm1877_vm7, %v1848_v3, %v9213_v16  ;;  %9505 = vrot.lane.b32.xlu0 %v19556_v1, %s11392_s4  ;;  %v9148_v7 = vunpack.i.h.bf16 %v19557_v51  ;;  %v1883_v24 = vsel %vm1877_vm7, %v1850_v38, %v9218_v26  ;;  %v9147_v22 = vunpack.i.l.bf16 %v19557_v51  ;;  %v9226_v11 = vpop.permute.xlu0 %9225  ;;  %v19558_v16 = vld [vmem:[#allocation77_spill] sm:$0xff] }
 0x1ac   : > { %8419 = vmatprep.mubr.msk.bf16.mxu0 %vm13383_vm9, %v8031_v46  ;;  %v1882_v19 = vsel %vm1877_vm7, %v1849_v41, %v9217_v18  ;;  %v8034_v50 = vpack.c.bf16 %v1881_v54, %v1880_v39  ;;  %v9223_v35 = vunpack.i.h.bf16 %v9221_v28  ;;  %v9222_v59 = vunpack.i.l.bf16 %v9221_v28  ;;  %v19560_v41 = vld [vmem:[#allocation78_spill] sm:$0xff]  ;;  %v19561_v54 = vld [vmem:[#allocation59_spill] sm:$0xff] }
 0x1ad   : > { %v8037_v3 = vpack.c.bf16 %v1883_v24, %v1882_v19  ;;  %v9003_v9 = vunpack.i.h.bf16 %v19558_v16  ;;  %v9002_v1 = vunpack.i.l.bf16 %v19558_v16  ;;  %v9228_v62 = vunpack.i.h.bf16 %v9226_v11  ;;  %v19566_v16 = vld [vmem:[#allocation76_spill] sm:$0xff] }
 0x1ae   : > { %v9227_v46 = vunpack.i.l.bf16 %v9226_v11  ;;  %8420 = vmatmul.mubr.msk.bf16.vlgmr.msra.gmra.mxu0 %vm13383_vm9, %v8034_v50  ;;  %v9008_v39 = vunpack.i.h.bf16 %v19560_v41  ;;  %v9007_v38 = vunpack.i.l.bf16 %v19560_v41  ;;  %v1818_v26 = vsel %vm1811_vm5, %v13303_v25, %v9062_v47  ;;  %v9231_v25 = vpop.permute.xlu1 %9230  ;;  %v19568_v41 = vld [vmem:[#allocation49_spill] sm:$0xff] }
 0x1af   : > { %9510 = vrot.lane.b32.xlu1 %v19559_v63, %s11392_s4  ;;  %v1819_v18 = vsel %vm1811_vm5, %v13313_v58, %v9063_v45  ;;  %9515 = vrot.lane.b32.xlu0 %v19561_v54, %s11392_s4  ;;  %v1820_v51 = vsel %vm1811_vm5, %v13322_v8, %v9067_v4  ;;  %v1821_v19 = vsel %vm1811_vm5, %v13326_v29, %v9068_v14  ;;  %v9236_v11 = vpop.permute.xlu0 %9235 }
 0x1b0   : > { %8423 = vmatprep.mubr.msk.bf16.mxu0 %vm13383_vm9, %v8037_v3  ;;  %v1851_v24 = vsel %vm1844_vm6, %v1818_v26, %v9142_v21  ;;  %v1852_v28 = vsel %vm1844_vm6, %v1819_v18, %v9143_v17  ;;  %v1853_v47 = vsel %vm1844_vm6, %v1820_v51, %v9147_v22  ;;  %v1854_v58 = vsel %vm1844_vm6, %v1821_v19, %v9148_v7  ;;  %v19562_v3 = vld [vmem:[#allocation48_spill] sm:$0xff] }
 0x1b1   : > { %v1884_v45 = vsel %vm1877_vm7, %v1851_v24, %v9222_v59  ;;  %v1885_v50 = vsel %vm1877_vm7, %v1852_v28, %v9223_v35  ;;  %v13432_v8 = vsel %vm1778_vm4, %v19562_v3, %v9002_v1  ;;  %v13436_v29 = vsel %vm1778_vm4, %v13150_v34, %v9003_v9  ;;  %v19563_v17 = vld [vmem:[#allocation60_spill] sm:$0xff]  ;;  %v19565_v35 = vld [vmem:[#allocation21_spill] sm:$0xff]  ;;  %v19567_v34 = vld [vmem:[#allocation26_spill] sm:$0xff] }
 0x1b2   : > { %v1886_v14 = vsel %vm1877_vm7, %v1853_v47, %v9227_v46  ;;  %v1887_v4 = vsel %vm1877_vm7, %v1854_v58, %v9228_v62  ;;  %v19564_v21 = vld [vmem:[#allocation20_spill] sm:$0xff]  ;;  %v9078_v59 = vunpack.i.h.bf16 %v19565_v35  ;;  %v9077_v1 = vunpack.i.l.bf16 %v19565_v35  ;;  %v13451_v26 = vpop.permute.xlu1 %9240  ;;  %v19569_v3 = vld [vmem:[#allocation62_spill] sm:$0xff] }
 0x1b3   : > { %9520 = vrot.lane.b32.xlu1 %v19563_v17, %s11392_s4  ;;  %v9073_v7 = vunpack.i.h.bf16 %v19564_v21  ;;  %v9072_v22 = vunpack.i.l.bf16 %v19564_v21  ;;  %9525 = vrot.lane.b32.xlu0 %v19566_v16, %s11393_s5  ;;  %v9153_v9 = vunpack.i.h.bf16 %v19567_v34  ;;  %v9152_v46 = vunpack.i.l.bf16 %v19567_v34  ;;  %v13454_v28 = vpop.permute.xlu0 %9245  ;;  %v19570_v34 = vld [vmem:[#allocation61_spill] sm:$0xff]  ;;  %v19571_v17 = vld [vmem:[#allocation52_spill] sm:$0xff] }
 0x1b4   : > { %v9158_v62 = vunpack.i.h.bf16 %v19568_v41  ;;  %v8040_v18 = vpack.c.bf16 %v1885_v50, %v1884_v45  ;;  %v9157_v51 = vunpack.i.l.bf16 %v19568_v41  ;;  %v9233_v19 = vunpack.i.h.bf16 %v9231_v25 }
 0x1b5   : > { %v9232_v24 = vunpack.i.l.bf16 %v9231_v25  ;;  %v8043_v47 = vpack.c.bf16 %v1887_v4, %v1886_v14  ;;  %v1795_v58 = vsel %vm1778_vm4, %v13160_v56, %v9007_v38  ;;  %v1796_v21 = vsel %vm1778_vm4, %v19569_v3, %v9008_v39  ;;  %v19573_v25 = vld [vmem:[#allocation79_spill] sm:$0xff] }
 0x1b6   : > { %v9238_v35 = vunpack.i.h.bf16 %v9236_v11  ;;  %v9237_v16 = vunpack.i.l.bf16 %v9236_v11  ;;  %v19572_v54 = vpack.i.bf16 %v19570_v34, %v19571_v17  ;;  %8424 = vmatmul.mubr.msk.bf16.gmra.mxu0 %vm13383_vm9, %v8040_v18  ;;  %v9013_v45 = vunpack.i.h.bf16 %v19573_v25  ;;  %v19574_v38 = vld [vmem:[#allocation27_spill] sm:$0xff] }
 0x1b7   : > { %v9012_v50 = vunpack.i.l.bf16 %v19573_v25  ;;  %v1822_v56 = vsel %vm1811_vm5, %v13334_v0, %v9072_v22  ;;  %v1823_v39 = vsel %vm1811_vm5, %v13338_v12, %v9073_v7  ;;  %9535 = vrot.lane.b32.xlu0 %v19574_v38, %s11393_s5  ;;  %8427 = vmatprep.mubr.msk.bf16.mxu0 %vm13383_vm9, %v8043_v47  ;;  %v1825_v11 = vsel %vm1811_vm5, %v13350_v57, %v9078_v59  ;;  %v13482_v0 = vpop.permute.xlu1 %9250  ;;  %v13488_v41 = vpop.permute.xlu0 %9255 }
 0x1b8   : > { %9530 = vrot.lane.b32.xlu1 %v19572_v54, %s11393_s5  ;;  %v1824_v54 = vsel %vm1811_vm5, %v13342_v13, %v9077_v1  ;;  %v1855_v14 = vsel %vm1844_vm6, %v1822_v56, %v9152_v46  ;;  %v1856_v4 = vsel %vm1844_vm6, %v1823_v39, %v9153_v9  ;;  %v1858_v17 = vsel %vm1844_vm6, %v1825_v11, %v9158_v62  ;;  %v19575_v13 = vld [vmem:[#allocation80_spill] sm:$0xff] }
 0x1b9   : > { %v1857_v12 = vsel %vm1844_vm6, %v1824_v54, %v9157_v51  ;;  %v1888_v7 = vsel %vm1877_vm7, %v1855_v14, %v9232_v24  ;;  %v1889_v22 = vsel %vm1877_vm7, %v1856_v4, %v9233_v19  ;;  %v9018_v1 = vunpack.i.h.bf16 %v19575_v13  ;;  %v19576_v46 = vld [vmem:[#allocation24_spill] sm:$0xff]  ;;  %v19577_v51 = vld [vmem:[#allocation25_spill] sm:$0xff] }
 0x1ba   : > { %v9017_v57 = vunpack.i.l.bf16 %v19575_v13  ;;  %v1890_v59 = vsel %vm1877_vm7, %v1857_v12, %v9237_v16  ;;  %v1891_v9 = vsel %vm1877_vm7, %v1858_v17, %v9238_v35  ;;  %v9083_v18 = vunpack.i.h.bf16 %v19576_v46  ;;  %v19578_v17 = vld [vmem:[#allocation28_spill] sm:$0xff] }
 0x1bb   : > { %v9082_v62 = vunpack.i.l.bf16 %v19576_v46  ;;  %v9088_v24 = vunpack.i.h.bf16 %v19577_v51  ;;  %v9087_v19 = vunpack.i.l.bf16 %v19577_v51  ;;  %9545 = vrot.lane.b32.xlu0 %v13180_v49, %s11393_s5  ;;  %v9163_v47 = vunpack.i.h.bf16 %v13198_v40  ;;  %v13505_v16 = vpop.permute.xlu1 %9260  ;;  %v13510_v54 = vpop.permute.xlu0 %9265 }
 0x1bc   : > { %9540 = vrot.lane.b32.xlu1 %v13178_v33, %s11393_s5  ;;  %v9162_v3 = vunpack.i.l.bf16 %v13198_v40  ;;  %v9168_v35 = vunpack.i.h.bf16 %v13202_v43  ;;  %v8046_v34 = vpack.c.bf16 %v1889_v22, %v1888_v7  ;;  %v9167_v25 = vunpack.i.l.bf16 %v13202_v43  ;;  %v19579_v43 = vld [vmem:[#allocation68_spill] sm:$0xff]  ;;  %v19580_v7 = vld [vmem:[#allocation63_spill] sm:$0xff] }
 0x1bd   : > { %v9243_v56 = vunpack.i.h.bf16 %v13451_v26  ;;  %v9242_v39 = vunpack.i.l.bf16 %v13451_v26  ;;  %v8049_v11 = vpack.c.bf16 %v1891_v9, %v1890_v59  ;;  %v1797_v14 = vsel %vm1778_vm4, %v13184_v30, %v9012_v50 }
 0x1be   : > { %v1798_v40 = vsel %vm1778_vm4, %v13188_v5, %v9013_v45  ;;  %v9248_v4 = vunpack.i.h.bf16 %v13454_v28  ;;  %v9247_v12 = vunpack.i.l.bf16 %v13454_v28  ;;  %8428 = vmatmul.mubr.msk.bf16.gmra.mxu0 %vm13383_vm9, %v8046_v34  ;;  %v8963_v26 = vunpack.i.h.bf16 %v19579_v43  ;;  %v19581_v45 = vld [vmem:[#allocation65_spill] sm:$0xff]  ;;  %v19585_v34 = vld [vmem:[#allocation31_spill] sm:$0xff] }
 0x1bf   : > { %v1799_v22 = vsel %vm1778_vm4, %v19580_v7, %v9017_v57  ;;  %v1826_v30 = vsel %vm1811_vm5, %v13432_v8, %v9082_v62  ;;  %v1827_v5 = vsel %vm1811_vm5, %v13436_v29, %v9083_v18  ;;  %9555 = vrot.lane.b32.xlu0 %v19581_v45, %s11393_s5  ;;  %8431 = vmatprep.mubr.msk.bf16.mxu0 %vm13383_vm9, %v8049_v11  ;;  %v13537_v59 = vpop.permute.xlu1 %9270  ;;  %v13543_v18 = vpop.permute.xlu0 %9275  ;;  %v19582_v62 = vld [vmem:[#allocation64_spill] sm:$0xff]  ;;  %v9178_v11 = vunpack.i.h.bf16 %v13252_v20 }
 0x1c0   : > { %9550 = vrot.lane.b32.xlu1 %v19578_v17, %s11393_s5  ;;  %v1828_v28 = vsel %vm1811_vm5, %v1795_v58, %v9087_v19  ;;  %v1829_v50 = vsel %vm1811_vm5, %v1796_v21, %v9088_v24  ;;  %v1859_v13 = vsel %vm1844_vm6, %v1826_v30, %v9162_v3  ;;  %v1860_v57 = vsel %vm1844_vm6, %v1827_v5, %v9163_v47  ;;  %v19583_v21 = vld [vmem:[#allocation6_spill] sm:$0xff]  ;;  %v19584_v47 = vld [vmem:[#allocation29_spill] sm:$0xff] }
 0x1c1   : > { %v1861_v8 = vsel %vm1844_vm6, %v1828_v28, %v9167_v25  ;;  %v1862_v29 = vsel %vm1844_vm6, %v1829_v50, %v9168_v35  ;;  %v1892_v9 = vsel %vm1877_vm7, %v1859_v13, %v9242_v39  ;;  %v1893_v46 = vsel %vm1877_vm7, %v1860_v57, %v9243_v56  ;;  %v19586_v57 = vld [vmem:[#allocation8_spill] sm:$0xff] }
 0x1c2   : > { %v1800_v58 = vsel %vm1778_vm4, %v19582_v62, %v9018_v1  ;;  %v9022_v51 = vunpack.i.l.bf16 %v19583_v21  ;;  %v1894_v24 = vsel %vm1877_vm7, %v1861_v8, %v9247_v12  ;;  %v1895_v19 = vsel %vm1877_vm7, %v1862_v29, %v9248_v4 }
 0x1c3   : > { %v9093_v3 = vunpack.i.h.bf16 %v19584_v47  ;;  %v9092_v35 = vunpack.i.l.bf16 %v19584_v47  ;;  %v9098_v25 = vunpack.i.h.bf16 %v19585_v34  ;;  %v9097_v56 = vunpack.i.l.bf16 %v19585_v34  ;;  %9565 = vrot.lane.b32.xlu0 %v13240_v52, %s11393_s5  ;;  %v13561_v4 = vpop.permute.xlu1 %9280  ;;  %v13566_v28 = vpop.permute.xlu0 %9285  ;;  %v19588_v34 = vld [vmem:[#allocation30_spill] sm:$0xff] }
 0x1c4   : > { %9560 = vrot.lane.b32.xlu1 %v13238_v48, %s11393_s5  ;;  %v9173_v1 = vunpack.i.h.bf16 %v13236_v44  ;;  %v9172_v39 = vunpack.i.l.bf16 %v13236_v44  ;;  %v8052_v12 = vpack.c.bf16 %v1893_v46, %v1892_v9  ;;  %v9177_v7 = vunpack.i.l.bf16 %v13252_v20  ;;  %v19587_v20 = vld [vmem:[#allocation53_spill] sm:$0xff] }
 0x1c5   : > { %v9253_v30 = vunpack.i.h.bf16 %v13482_v0  ;;  %v9252_v5 = vunpack.i.l.bf16 %v13482_v0  ;;  %v8055_v50 = vpack.c.bf16 %v1895_v19, %v1894_v24  ;;  %v9023_v13 = vunpack.i.h.bf16 %v19583_v21 }
 0x1c6   : > { %v9027_v8 = vunpack.i.l.bf16 %v19586_v57  ;;  %v9258_v44 = vunpack.i.h.bf16 %v13488_v41  ;;  %v9257_v29 = vunpack.i.l.bf16 %v13488_v41  ;;  %8432 = vmatmul.mubr.msk.bf16.gmra.mxu0 %vm13383_vm9, %v8052_v12  ;;  %v1801_v0 = vsel %vm1778_vm4, %v19587_v20, %v9022_v51 }
 0x1c7   : > { %v9028_v9 = vunpack.i.h.bf16 %v19586_v57  ;;  %v1830_v46 = vsel %vm1811_vm5, %v1797_v14, %v9092_v35  ;;  %v1831_v62 = vsel %vm1811_vm5, %v1798_v40, %v9093_v3  ;;  %9575 = vrot.lane.b32.xlu0 %v13266_v27, %s11393_s5  ;;  %8435 = vmatprep.mubr.msk.bf16.mxu0 %vm13383_vm9, %v8055_v50  ;;  %v1832_v41 = vsel %vm1811_vm5, %v1799_v22, %v9097_v56  ;;  %v13589_v19 = vpop.permute.xlu1 %9290  ;;  %v13595_v35 = vpop.permute.xlu0 %9295 }
 0x1c8   : > { %9570 = vrot.lane.b32.xlu1 %v13264_v6, %s11393_s5  ;;  %v1833_v21 = vsel %vm1811_vm5, %v1800_v58, %v9098_v25  ;;  %v1863_v24 = vsel %vm1844_vm6, %v1830_v46, %v9172_v39  ;;  %v1864_v51 = vsel %vm1844_vm6, %v1831_v62, %v9173_v1  ;;  %v1865_v14 = vsel %vm1844_vm6, %v1832_v41, %v9177_v7  ;;  %v19589_v58 = vld [vmem:[#allocation37_spill] sm:$0xff]  ;;  %v19590_v39 = vld [vmem:[#allocation34_spill] sm:$0xff]  ;;  %v19591_v7 = vld [vmem:[#allocation35_spill] sm:$0xff] }
 0x1c9   : > { %v1866_v40 = vsel %vm1844_vm6, %v1833_v21, %v9178_v11  ;;  %v1896_v47 = vsel %vm1877_vm7, %v1863_v24, %v9252_v5  ;;  %v1897_v3 = vsel %vm1877_vm7, %v1864_v51, %v9253_v30  ;;  %v1802_v22 = vsel %vm1778_vm4, %v19588_v34, %v9023_v13  ;;  %v19592_v21 = vld [vmem:[#allocation66_spill] sm:$0xff]  ;;  %v19593_v51 = vld [vmem:[#allocation7_spill] sm:$0xff] }
 0x1ca   : > { %v1803_v25 = vsel %vm1778_vm4, %v19589_v58, %v9027_v8  ;;  %v1898_v56 = vsel %vm1877_vm7, %v1865_v14, %v9257_v29  ;;  %v1899_v1 = vsel %vm1877_vm7, %v1866_v40, %v9258_v44  ;;  %v9103_v11 = vunpack.i.h.bf16 %v19590_v39 }
 0x1cb   : > { %v9102_v12 = vunpack.i.l.bf16 %v19590_v39  ;;  %v9108_v30 = vunpack.i.h.bf16 %v19591_v7  ;;  %v9107_v5 = vunpack.i.l.bf16 %v19591_v7  ;;  %9585 = vrot.lane.b32.xlu0 %v13284_v53, %s11393_s5  ;;  %v9183_v50 = vunpack.i.h.bf16 %v13282_v15  ;;  %v13614_v8 = vpop.permute.xlu1 %9300  ;;  %v13619_v62 = vpop.permute.xlu0 %9305 }
 0x1cc   : > { %9580 = vrot.lane.b32.xlu1 %v13275_v2, %s11393_s5  ;;  %v9182_v13 = vunpack.i.l.bf16 %v13282_v15  ;;  %v9188_v57 = vunpack.i.h.bf16 %v13292_v37  ;;  %v8058_v44 = vpack.c.bf16 %v1897_v3, %v1896_v47  ;;  %v9187_v29 = vunpack.i.l.bf16 %v13292_v37 }
 0x1cd   : > { %v9263_v20 = vunpack.i.h.bf16 %v13505_v16  ;;  %v9262_v46 = vunpack.i.l.bf16 %v13505_v16  ;;  %v8061_v41 = vpack.c.bf16 %v1899_v1, %v1898_v56  ;;  %v1804_v24 = vsel %vm1778_vm4, %v19592_v21, %v9028_v9  ;;  %v19594_v16 = vld [vmem:[#allocation10_spill] sm:$0xff] }
 0x1ce   : > { %v9032_v14 = vunpack.i.l.bf16 %v19593_v51  ;;  %v9268_v15 = vunpack.i.h.bf16 %v13510_v54  ;;  %v9267_v40 = vunpack.i.l.bf16 %v13510_v54  ;;  %8436 = vmatmul.mubr.msk.bf16.gmra.mxu0 %vm13383_vm9, %v8058_v44  ;;  %v9033_v37 = vunpack.i.h.bf16 %v19593_v51  ;;  %v19596_v44 = vld [vmem:[#allocation43_spill] sm:$0xff] }
 0x1cf   : > { %v9038_v47 = vunpack.i.h.bf16 %v19594_v16  ;;  %v1834_v3 = vsel %vm1811_vm5, %v1801_v0, %v9102_v12  ;;  %v1835_v9 = vsel %vm1811_vm5, %v1802_v22, %v9103_v11  ;;  %9595 = vrot.lane.b32.xlu0 %v13309_v31, %s11393_s5  ;;  %8439 = vmatprep.mubr.msk.bf16.mxu0 %vm13383_vm9, %v8061_v41  ;;  %v1836_v54 = vsel %vm1811_vm5, %v1803_v25, %v9107_v5  ;;  %v13642_v1 = vpop.permute.xlu1 %9310  ;;  %v13648_v12 = vpop.permute.xlu0 %9315 }
 0x1d0   : > { %9590 = vrot.lane.b32.xlu1 %v13299_v42, %s11393_s5  ;;  %v1837_v34 = vsel %vm1811_vm5, %v1804_v24, %v9108_v30  ;;  %v1867_v58 = vsel %vm1844_vm6, %v1834_v3, %v9182_v13  ;;  %v1868_v56 = vsel %vm1844_vm6, %v1835_v9, %v9183_v50  ;;  %v1869_v0 = vsel %vm1844_vm6, %v1836_v54, %v9187_v29  ;;  %v19595_v50 = vld [vmem:[#allocation38_spill] sm:$0xff]  ;;  %v19598_v54 = vld [vmem:[#allocation67_spill] sm:$0xff] }
 0x1d1   : > { %v1870_v22 = vsel %vm1844_vm6, %v1837_v34, %v9188_v57  ;;  %v1900_v39 = vsel %vm1877_vm7, %v1867_v58, %v9262_v46  ;;  %v1901_v11 = vsel %vm1877_vm7, %v1868_v56, %v9263_v20  ;;  %v1805_v25 = vsel %vm1778_vm4, %v13244_v36, %v9032_v14  ;;  %v19597_v46 = vld [vmem:[#allocation13_spill] sm:$0xff]  ;;  %v19599_v56 = vld [vmem:[#allocation15_spill] sm:$0xff] }
 0x1d2   : > { %v9037_v7 = vunpack.i.l.bf16 %v19594_v16  ;;  %v1902_v30 = vsel %vm1877_vm7, %v1869_v0, %v9267_v40  ;;  %v1903_v5 = vsel %vm1877_vm7, %v1870_v22, %v9268_v15  ;;  %v9113_v13 = vunpack.i.h.bf16 %v19595_v50  ;;  %v19601_v22 = vld [vmem:[#allocation18_spill] sm:$0xff] }
 0x1d3   : > { %v9112_v57 = vunpack.i.l.bf16 %v19595_v50  ;;  %v9118_v29 = vunpack.i.h.bf16 %v19596_v44  ;;  %v9117_v20 = vunpack.i.l.bf16 %v19596_v44  ;;  %9605 = vrot.lane.b32.xlu0 %v19597_v46, %s11394_s6  ;;  %v9193_v36 = vunpack.i.h.bf16 %v13318_v23  ;;  %v13666_v24 = vpop.permute.xlu1 %9320  ;;  %v13671_v16 = vpop.permute.xlu0 %9325 }
 0x1d4   : > { %9600 = vrot.lane.b32.xlu1 %v13346_v61, %s11393_s5  ;;  %v9192_v41 = vunpack.i.l.bf16 %v13318_v23  ;;  %v9198_v21 = vunpack.i.h.bf16 %v13330_v32  ;;  %v8064_v51 = vpack.c.bf16 %v1901_v11, %v1900_v39  ;;  %v9197_v14 = vunpack.i.l.bf16 %v13330_v32 }
 0x1d5   : > { %v9273_v15 = vunpack.i.h.bf16 %v13537_v59  ;;  %v9272_v40 = vunpack.i.l.bf16 %v13537_v59  ;;  %v8067_v3 = vpack.c.bf16 %v1903_v5, %v1902_v30  ;;  %v1806_v9 = vsel %vm1778_vm4, %v13248_v60, %v9033_v37  ;;  %v19600_v59 = vld [vmem:[#allocation33_spill] sm:$0xff] }
 0x1d6   : > { %v1807_v23 = vsel %vm1778_vm4, %v19598_v54, %v9037_v7  ;;  %v9278_v34 = vunpack.i.h.bf16 %v13543_v18  ;;  %v9277_v58 = vunpack.i.l.bf16 %v13543_v18  ;;  %8440 = vmatmul.mubr.msk.bf16.gmra.mxu0 %vm13383_vm9, %v8064_v51  ;;  %v8962_v32 = vunpack.i.l.bf16 %v19579_v43 }
 0x1d7   : > { %v1808_v0 = vsel %vm1778_vm4, %v19600_v59, %v9038_v47  ;;  %v1838_v60 = vsel %vm1811_vm5, %v1805_v25, %v9112_v57  ;;  %v1839_v37 = vsel %vm1811_vm5, %v1806_v9, %v9113_v13  ;;  %9615 = vrot.lane.b32.xlu0 %v19601_v22, %s11394_s6  ;;  %8443 = vmatprep.mubr.msk.bf16.mxu0 %vm13383_vm9, %v8067_v3  ;;  %v13696_v30 = vpop.permute.xlu1 %9330  ;;  %v13702_v13 = vpop.permute.xlu0 %9335  ;;  %v19602_v57 = vld [vmem:[#allocation9_spill] sm:$0xff]  ;;  %v19609_v9 = vld [vmem:[#allocation51_spill] sm:$0xff] }
 0x1d8   : > { %9610 = vrot.lane.b32.xlu1 %v19599_v56, %s11394_s6  ;;  %v1840_v18 = vsel %vm1811_vm5, %v1807_v23, %v9117_v20  ;;  %v1841_v39 = vsel %vm1811_vm5, %v1808_v0, %v9118_v29  ;;  %v1871_v11 = vsel %vm1844_vm6, %v1838_v60, %v9192_v41  ;;  %v1872_v7 = vsel %vm1844_vm6, %v1839_v37, %v9193_v36  ;;  %v19603_v36 = vld [vmem:[#allocation40_spill] sm:$0xff]  ;;  %v19604_v41 = vld [vmem:[#allocation50_spill] sm:$0xff] }
 0x1d9   : > { %v1873_v47 = vsel %vm1844_vm6, %v1840_v18, %v9197_v14  ;;  %v1874_v25 = vsel %vm1844_vm6, %v1841_v39, %v9198_v21  ;;  %v1904_v5 = vsel %vm1877_vm7, %v1871_v11, %v9272_v40  ;;  %v1905_v50 = vsel %vm1877_vm7, %v1872_v7, %v9273_v15  ;;  %v19606_v21 = vld [vmem:[#allocation45_spill] sm:$0xff]  ;;  %v19608_v40 = vld [vmem:[#allocation23_spill] sm:$0xff] }
 0x1da   : > { %v9043_v44 = vunpack.i.h.bf16 %v19602_v57  ;;  %v9042_v29 = vunpack.i.l.bf16 %v19602_v57  ;;  %v1906_v20 = vsel %vm1877_vm7, %v1873_v47, %v9277_v58  ;;  %v1907_v46 = vsel %vm1877_vm7, %v1874_v25, %v9278_v34  ;;  %v19610_v58 = vld [vmem:[#allocation19_spill] sm:$0xff]  ;;  %v2431_v56 = vld [vmem:[#allocation2 + $0x1f2] sm:$0xff] }
 0x1db   : > { %v19605_v51 = vunpack.i.l.bf16 %v19604_v41  ;;  %v19607_v15 = vunpack.i.h.bf16 %v19604_v41  ;;  %v9123_v54 = vunpack.i.h.bf16 %v19609_v9  ;;  %v9122_v23 = vunpack.i.l.bf16 %v19609_v9  ;;  %9625 = vrot.lane.b32.xlu0 %v19610_v58, %s11394_s6  ;;  %v2430_v34 = vld [vmem:[#allocation2 + $0x1ea] sm:$0xff]  ;;  %v13725_v37 = vpop.permute.xlu1 %9340  ;;  %v2433_v39 = vld [vmem:[#allocation2 + $0x212] sm:$0xff]  ;;  %v13732_v25 = vpop.permute.xlu0 %9345 }
 0x1dc   : > { %9620 = vrot.lane.b32.xlu1 %v19603_v36, %s11394_s6  ;;  %v9203_v0 = vunpack.i.h.bf16 %v13360_v10  ;;  %v9202_v60 = vunpack.i.l.bf16 %v13360_v10  ;;  %v8070_v22 = vpack.c.bf16 %v1905_v50, %v1904_v5  ;;  %v2432_v18 = vld [vmem:[#allocation2 + $0x20a] sm:$0xff]  ;;  %v9283_v7 = vunpack.i.h.bf16 %v13561_v4  ;;  %v19611_v36 = vld [vmem:[#allocation41_spill] sm:$0xff] }
 0x1dd   : > { %v1743_v14 = vsel %vm1712_vm2, %v19606_v21, %v19605_v51  ;;  %v1744_v3 = vsel %vm1712_vm2, %v19608_v40, %v19607_v15  ;;  %v9282_v47 = vunpack.i.l.bf16 %v13561_v4  ;;  %v13740_v43 = vpack.i.bf16 %v2431_v56, %v2430_v34  ;;  %v19612_v4 = vld [vmem:[#allocation44_spill] sm:$0xff] }
 0x1de   : > { %v1776_v59 = vsel %vm1745_vm3, %v1743_v14, %v8962_v32  ;;  %v1777_v11 = vsel %vm1745_vm3, %v1744_v3, %v8963_v26  ;;  %v8073_v32 = vpack.c.bf16 %v1907_v46, %v1906_v20  ;;  %8444 = vmatmul.mubr.msk.bf16.gmra.mxu0 %vm13383_vm9, %v8070_v22  ;;  %v13748_v50 = vpack.i.bf16 %v2433_v39, %v2432_v18  ;;  %v2436_v51 = vld [vmem:[#allocation2 + $0x24a] sm:$0xff]  ;;  %v2437_v21 = vld [vmem:[#allocation2 + $0x252] sm:$0xff] }
 0x1df   : > { %v1809_v57 = vsel %vm1778_vm4, %v1776_v59, %v9042_v29  ;;  %v1810_v10 = vsel %vm1778_vm4, %v1777_v11, %v9043_v44  ;;  %9635 = vrot.lane.b32.xlu0 %v19612_v4, %s11394_s6  ;;  %v2434_v44 = vld [vmem:[#allocation2 + $0x22a] sm:$0xff]  ;;  %v2435_v29 = vld [vmem:[#allocation2 + $0x232] sm:$0xff]  ;;  %v13752_v41 = vpop.permute.xlu1 %9350  ;;  %v13756_v40 = vpop.permute.xlu0 %9355  ;;  %v13764_v9 = vpack.i.bf16 %v2437_v21, %v2436_v51 }
 0x1e0   : > { %9630 = vrot.lane.b32.xlu1 %v19611_v36, %s11394_s6  ;;  %v1842_v26 = vsel %vm1811_vm5, %v1809_v57, %v9122_v23  ;;  %v1843_v5 = vsel %vm1811_vm5, %v1810_v10, %v9123_v54  ;;  %8447 = vmatprep.mubr.msk.bf16.mxu0 %vm13383_vm9, %v8073_v32  ;;  %v13760_v3 = vpack.i.bf16 %v2435_v29, %v2434_v44  ;;  %v2438_v54 = vld [vmem:[#allocation2 + $0x26a] sm:$0xff]  ;;  %v2439_v23 = vld [vmem:[#allocation2 + $0x272] sm:$0xff] }
 0x1e1   : > { %v1875_v20 = vsel %vm1844_vm6, %v1842_v26, %v9202_v60  ;;  %v1876_v46 = vsel %vm1844_vm6, %v1843_v5, %v9203_v0  ;;  %v2440_v56 = vld [vmem:[#allocation2 + $0x28a] sm:$0xff]  ;;  %v2441_v59 = vld [vmem:[#allocation2 + $0x292] sm:$0xff]  ;;  %v13774_v60 = vpack.i.bf16 %v2439_v23, %v2438_v54 }
 0x1e2   : > { %v1908_v14 = vsel %vm1877_vm7, %v1875_v20, %v9282_v47  ;;  %v1909_v15 = vsel %vm1877_vm7, %v1876_v46, %v9283_v7  ;;  %v13778_v22 = vpack.i.bf16 %v2441_v59, %v2440_v56  ;;  %v2442_v18 = vld [vmem:[#allocation2 + $0x2aa] sm:$0xff]  ;;  %v2443_v39 = vld [vmem:[#allocation2 + $0x2b2] sm:$0xff] }
 0x1e3   : > { %9645 = vrot.lane.b32.xlu0 %v13748_v50, %s11394_s6  ;;  %v13766_v58 = vpop.permute.xlu1 %9360  ;;  %v8076_v34 = vpack.c.bf16 %v1909_v15, %v1908_v14  ;;  %v13768_v0 = vpop.permute.xlu0 %9365  ;;  %v2444_v7 = vld [vmem:[#allocation2 + $0x2ca] sm:$0xff]  ;;  %v2445_v47 = vld [vmem:[#allocation2 + $0x2d2] sm:$0xff]  ;;  %v13786_v57 = vpack.i.bf16 %v2443_v39, %v2442_v18  ;;  %v19615_v15 = vld [vmem:[#allocation42_spill] sm:$0xff] }
 0x1e4   : > { %9640 = vrot.lane.b32.xlu1 %v13740_v43, %s11394_s6  ;;  %v13790_v10 = vpack.i.bf16 %v2445_v47, %v2444_v7  ;;  %v2446_v36 = vld [vmem:[#allocation2 + $0x2ea] sm:$0xff]  ;;  %v2447_v26 = vld [vmem:[#allocation2 + $0x2f2] sm:$0xff]  ;;  %v19622_v7 = vld [vmem:[#allocation82_spill] sm:$0xff] }
 0x1e5   : > { %v13798_v44 = vpack.i.bf16 %v2447_v26, %v2446_v36  ;;  %v19613_v46 = vld [vmem:[#allocation36_spill] sm:$0xff]  ;;  %v19614_v14 = vld [vmem:[#allocation39_spill] sm:$0xff]  ;;  %v19621_v39 = vld [vmem:[#allocation81_spill] sm:$0xff] }
 0x1e6   : > { %8448 = vmatmul.mubr.msk.bf16.gmra.mxu0 %vm13383_vm9, %v8076_v34  ;;  %v19617_v34 = vld [vmem:[#allocation46_spill] sm:$0xff]  ;;  %v19618_v56 = vld [vmem:[#allocation47_spill] sm:$0xff] }
 0x1e7   : > { %9655 = vrot.lane.b32.xlu0 %v13764_v9, %s11394_s6  ;;  %v13780_v11 = vpop.permute.xlu1 %9370  ;;  %v13782_v32 = vpop.permute.xlu0 %9375  ;;  %v19625_v26 = vld [vmem:[#allocation54_spill] sm:$0xff] }
 0x1e8   : > { %9650 = vrot.lane.b32.xlu1 %v13760_v3, %s11394_s6 }
 0x1eb   : > { %9665 = vrot.lane.b32.xlu0 %v13778_v22, %s11394_s6  ;;  %v13792_v5 = vpop.permute.xlu1 %9380  ;;  %v13794_v4 = vpop.permute.xlu0 %9385 }
 0x1ec   : > { %9660 = vrot.lane.b32.xlu1 %v13774_v60, %s11394_s6 }
 0x1ef   : > { %9675 = vrot.lane.b32.xlu0 %v13790_v10, %s11394_s6  ;;  %v13802_v29 = vpop.permute.xlu1 %9390  ;;  %v13804_v20 = vpop.permute.xlu0 %9395 }
 0x1f0   : > { %9670 = vrot.lane.b32.xlu1 %v13786_v57, %s11394_s6 }
 0x1f3   : > { %9685 = vrot.lane.b32.xlu0 %v19613_v46, %s11395_s7  ;;  %v13810_v51 = vpop.permute.xlu1 %9400  ;;  %v13812_v21 = vpop.permute.xlu0 %9405  ;;  %v19626_v46 = vld [vmem:[#allocation55_spill] sm:$0xff] }
 0x1f4   : > { %9680 = vrot.lane.b32.xlu1 %v13798_v44, %s11394_s6 }
 0x1f7   : > { %9695 = vrot.lane.b32.xlu0 %v19615_v15, %s11395_s7  ;;  %v13818_v54 = vpop.permute.xlu1 %9410  ;;  %v13820_v23 = vpop.permute.xlu0 %9415 }
 0x1f8   : > { %9690 = vrot.lane.b32.xlu1 %v19614_v14, %s11395_s7  ;;  %19616 = vst [vmem:[#allocation69_spill] sm:$0xff] %v13820_v23 }
 0x1fb   : > { %9705 = vrot.lane.b32.xlu0 %v19618_v56, %s11395_s7  ;;  %v13826_v59 = vpop.permute.xlu1 %9420  ;;  %v13828_v18 = vpop.permute.xlu0 %9425  ;;  %v19630_v56 = vld [vmem:[#allocation57_spill] sm:$0xff] }
 0x1fc   : > { %9700 = vrot.lane.b32.xlu1 %v19617_v34, %s11395_s7  ;;  %19619 = vst [vmem:[#allocation70_spill] sm:$0xff] %v13826_v59  ;;  %19620 = vst [vmem:[#allocation71_spill] sm:$0xff] %v13828_v18  ;;  %v19629_v34 = vld [vmem:[#allocation56_spill] sm:$0xff] }
 0x1ff   : > { %9715 = vrot.lane.b32.xlu0 %v19622_v7, %s11395_s7  ;;  %v13834_v47 = vpop.permute.xlu1 %9430  ;;  %v2477_v7 = vld [vmem:[#allocation2 + $0x306] sm:$0xff] }
 0x200   : > { %9710 = vrot.lane.b32.xlu1 %v19621_v39, %s11395_s7  ;;  %19623 = vst [vmem:[#allocation72_spill] sm:$0xff] %v13834_v47  ;;  %v13836_v36 = vpop.permute.xlu0 %9435 }
 0x201   : > { %19624 = vst [vmem:[#allocation73_spill] sm:$0xff] %v13836_v36 }
 0x203   : > { %9725 = vrot.lane.b32.xlu0 %v19626_v46, %s11395_s7  ;;  %v13842_v14 = vpop.permute.xlu1 %9440  ;;  %v9754_v46 = vpack.i.bf16 %v2478_v55, %v2477_v7  ;;  %v11213_v7 = vld [vmem:[%s18799_s1 + $0x70] sm:$0xff]  }
 0x204   : > { %9720 = vrot.lane.b32.xlu1 %v19625_v26, %s11395_s7  ;;  %19627 = vst [vmem:[#allocation74_spill] sm:$0xff] %v13842_v14  ;;  %v19633_v26 = vld [vmem:[#allocation59_spill] sm:$0xff] }
 0x205   : > { %v13844_v15 = vpop.permute.xlu0 %9445  ;;  %v2480_v14 = vld [vmem:[#allocation2 + $0x32e] sm:$0xff] }
 0x206   : > { %19628 = vst [vmem:[#allocation75_spill] sm:$0xff] %v13844_v15  ;;  %v2479_v15 = vld [vmem:[#allocation2 + $0x326] sm:$0xff] }
 0x207   : > { %9735 = vrot.lane.b32.xlu0 %v19630_v56, %s11395_s7  ;;  %v11212_v56 = vld [vmem:[%s18799_s1 + $0x78] sm:$0xff]  }
 0x208   : > { %9730 = vrot.lane.b32.xlu1 %v19629_v34, %s11395_s7  ;;  %8451 = vmatprep.subr.bf16.mxu1 %v11212_v56 }
 0x209   : > { %v13850_v39 = vpop.permute.xlu1 %9450  ;;  %v13852_v36 = vpop.permute.xlu0 %9455  ;;  %8452 = vmatpush3.bf16.msra.mxu1 %v11212_v56  ;;  %v11217_v56 = vld [vmem:[%s18799_s1 + $0x50] sm:$0xff]  }
 0x20a   : > { %19631 = vst [vmem:[#allocation12_spill] sm:$0xff] %v13850_v39  ;;  %19632 = vst [vmem:[#allocation11_spill] sm:$0xff] %v13852_v36  ;;  %v19636_v39 = vld [vmem:[#allocation60_spill] sm:$0xff]  ;;  %v9759_v36 = vpack.i.bf16 %v2480_v14, %v2479_v15  ;;  %8453 = vmatprep.subr.bf16.mxu1 %v11213_v7  ;;  %v11214_v15 = vld [vmem:[%s18799_s1 + $0x68] sm:$0xff]  }
 0x20b   : > { %9745 = vrot.lane.b32.xlu0 %v19633_v26, %s11395_s7  ;;  %v11215_v26 = vld [vmem:[%s18799_s1 + $0x60] sm:$0xff]  }
 0x20c   : > { %9740 = vrot.lane.b32.xlu1 %v19559_v63, %s11395_s7 }
 0x20d   : > { %v13858_v47 = vpop.permute.xlu1 %9460  ;;  %v13860_v34 = vpop.permute.xlu0 %9465  ;;  %8454 = vmatpush3.bf16.msra.mxu1 %v11213_v7  ;;  %v11218_v7 = vld [vmem:[%s18799_s1 + $0x48] sm:$0xff]  }
 0x20e   : > { %19634 = vst [vmem:[#allocation14_spill] sm:$0xff] %v13858_v47  ;;  %19635 = vst [vmem:[#allocation16_spill] sm:$0xff] %v13860_v34  ;;  %8455 = vmatprep.subr.bf16.mxu1 %v11214_v15  ;;  %v9332_v47 = vunpack.i.l.bf16 %v13696_v30 }
 0x20f   : > { %9755 = vrot.lane.b32.xlu0 %v9754_v46, %s11395_s7  ;;  %v11216_v46 = vld [vmem:[%s18799_s1 + $0x58] sm:$0xff]  }
 0x210   : > { %9750 = vrot.lane.b32.xlu1 %v19636_v39, %s11395_s7 }
 0x211   : > { %v13868_v63 = vpop.permute.xlu1 %9470  ;;  %v13870_v55 = vpop.permute.xlu0 %9475  ;;  %8456 = vmatpush3.bf16.msra.mxu1 %v11214_v15  ;;  %v2510_v15 = vld [vmem:[#allocation2 + $0x310] sm:$0xff] }
 0x212   : > { %19637 = vst [vmem:[#allocation17_spill] sm:$0xff] %v13868_v63  ;;  %19638 = vst [vmem:[#allocation22_spill] sm:$0xff] %v13870_v55  ;;  %8457 = vmatprep.subr.bf16.mxu1 %v11215_v26  ;;  %v14054_v55 = vld [vmem:[#allocation2 + $0xc8] sm:$0xff] }
 0x213   : > { %9765 = vrot.lane.b32.xlu0 %v19574_v38, %s11396_s17  ;;  %v11243_v63 = vld [vmem:[#allocation2 + $0x166] sm:$0xff] }
 0x214   : > { %9760 = vrot.lane.b32.xlu1 %v9759_v36, %s11395_s7 }
 0x215   : > { %v13878_v39 = vpop.permute.xlu1 %9480  ;;  %v13880_v14 = vpop.permute.xlu0 %9485  ;;  %8458 = vmatpush3.bf16.msra.mxu1 %v11215_v26 }
 0x216   : > { %19639 = vst [vmem:[#allocation77_spill] sm:$0xff] %v13878_v39  ;;  %19640 = vst [vmem:[#allocation58_spill] sm:$0xff] %v13880_v14  ;;  %8459 = vmatprep.subr.bf16.mxu1 %v11216_v46 }
 0x217   : > { %9775 = vrot.lane.b32.xlu0 %v13180_v49, %s11396_s17 }
 0x218   : > { %9770 = vrot.lane.b32.xlu1 %v13178_v33, %s11396_s17 }
 0x219   : > { %v13889_v36 = vpop.permute.xlu1 %9490  ;;  %v13891_v38 = vpop.permute.xlu0 %9495  ;;  %8460 = vmatpush3.bf16.msra.mxu1 %v11216_v46  ;;  %v11219_v46 = vld [vmem:[%s18799_s1 + $0x40] sm:$0xff]  }
 0x21a   : > { %19641 = vst [vmem:[#allocation78_spill] sm:$0xff] %v13889_v36  ;;  %19642 = vst [vmem:[#allocation48_spill] sm:$0xff] %v13891_v38  ;;  %8461 = vmatprep.subr.bf16.mxu1 %v11217_v56  ;;  %v11241_v36 = vld [vmem:[#allocation2 + $0x146] sm:$0xff] }
 0x21b   : > { %9785 = vrot.lane.b32.xlu0 %v19581_v45, %s11396_s17 }
 0x21c   : > { %9780 = vrot.lane.b32.xlu1 %v19578_v17, %s11396_s17 }
 0x21d   : > { %v13900_v33 = vpop.permute.xlu1 %9500  ;;  %v13902_v49 = vpop.permute.xlu0 %9505  ;;  %8462 = vmatpush3.bf16.msra.mxu1 %v11217_v56  ;;  %v2512_v56 = vld [vmem:[#allocation2 + $0x330] sm:$0xff] }
 0x21e   : > { %19643 = vst [vmem:[#allocation20_spill] sm:$0xff] %v13900_v33  ;;  %19644 = vst [vmem:[#allocation21_spill] sm:$0xff] %v13902_v49  ;;  %8463 = vmatprep.subr.bf16.mxu1 %v11218_v7 }
 0x21f   : > { %9795 = vrot.lane.b32.xlu0 %v13240_v52, %s11396_s17 }
 0x220   : > { %9790 = vrot.lane.b32.xlu1 %v13238_v48, %s11396_s17 }
 0x221   : > { %v13911_v17 = vpop.permute.xlu1 %9510  ;;  %v13913_v45 = vpop.permute.xlu0 %9515  ;;  %8464 = vmatpush3.bf16.msra.mxu1 %v11218_v7  ;;  %v2514_v7 = vld [vmem:[#allocation2 + $0x152] sm:$0xff] }
 0x222   : > { %19645 = vst [vmem:[#allocation76_spill] sm:$0xff] %v13911_v17  ;;  %19646 = vst [vmem:[#allocation26_spill] sm:$0xff] %v13913_v45  ;;  %8465 = vmatprep.subr.bf16.mxu1 %v11219_v46  ;;  %v2515_v45 = vld [vmem:[#allocation2 + $0x16a] sm:$0xff]  ;;  %v2518_v17 = vld [vmem:[#allocation2 + $0x192] sm:$0xff] }
 0x223   : > { %9805 = vrot.lane.b32.xlu0 %v13266_v27, %s11396_s17  ;;  %v2509_v27 = vld [vmem:[#allocation2 + $0x308] sm:$0xff] }
 0x224   : > { %9800 = vrot.lane.b32.xlu1 %v13264_v6, %s11396_s17 }
 0x225   : > { %v13922_v48 = vpop.permute.xlu1 %9520  ;;  %v13924_v52 = vpop.permute.xlu0 %9525  ;;  %8466 = vmatpush3.bf16.msra.mxu1 %v11219_v46 }
 0x226   : > { %19647 = vst [vmem:[#allocation49_spill] sm:$0xff] %v13922_v48  ;;  %19648 = vst [vmem:[#allocation62_spill] sm:$0xff] %v13924_v52  ;;  %v2513_v52 = vld [vmem:[#allocation2 + $0x14a] sm:$0xff] }
 0x227   : > { %9815 = vrot.lane.b32.xlu0 %v13284_v53, %s11396_s17  ;;  %v2511_v53 = vld [vmem:[#allocation2 + $0x328] sm:$0xff] }
 0x228   : > { %9810 = vrot.lane.b32.xlu1 %v13275_v2, %s11396_s17  ;;  %v9834_v2 = vpack.i.bf16 %v2510_v15, %v2509_v27  ;;  %v9839_v48 = vpack.i.bf16 %v2512_v56, %v2511_v53  ;;  %v2517_v15 = vld [vmem:[#allocation2 + $0x18a] sm:$0xff] }
 0x229   : > { %v13935_v26 = vpop.permute.xlu0 %9535 }
 0x22a   : > { %v13933_v6 = vpop.permute.xlu1 %9530  ;;  %19650 = vst [vmem:[#allocation52_spill] sm:$0xff] %v13935_v26 }
 0x22b   : > { %19649 = vst [vmem:[#allocation61_spill] sm:$0xff] %v13933_v6  ;;  %9825 = vrot.lane.b32.xlu0 %v13309_v31, %s11396_s17  ;;  %v2516_v31 = vld [vmem:[#allocation2 + $0x172] sm:$0xff] }
 0x22c   : > { %9820 = vrot.lane.b32.xlu1 %v13299_v42, %s11396_s17  ;;  %v9844_v42 = vpack.i.bf16 %v2514_v7, %v2513_v52  ;;  %v9849_v46 = vpack.i.bf16 %v2516_v31, %v2515_v45  ;;  %v2522_v52 = vld [vmem:[#allocation2 + $0x1d2] sm:$0xff]  ;;  %v9287_v45 = vunpack.i.l.bf16 %v13566_v28 }
 0x22d   : > { %v13946_v26 = vpop.permute.xlu0 %9545  ;;  %v2257_v31 = vld [vmem:[#allocation2 + $0xce] sm:$0xff] }
 0x22e   : > { %v13944_v6 = vpop.permute.xlu1 %9540  ;;  %19652 = vst [vmem:[#allocation27_spill] sm:$0xff] %v13946_v26  ;;  %v9854_v26 = vpack.i.bf16 %v2518_v17, %v2517_v15  ;;  %v2256_v17 = vld [vmem:[#allocation2 + $0xc6] sm:$0xff]  ;;  %v9293_v15 = vunpack.i.h.bf16 %v13589_v19 }
 0x22f   : > { %19651 = vst [vmem:[#allocation79_spill] sm:$0xff] %v13944_v6  ;;  %9835 = vrot.lane.b32.xlu0 %v9834_v2, %s11396_s17  ;;  %v2519_v6 = vld [vmem:[#allocation2 + $0x1aa] sm:$0xff] }
 0x230   : > { %9830 = vrot.lane.b32.xlu1 %v13346_v61, %s11396_s17  ;;  %v2520_v61 = vld [vmem:[#allocation2 + $0x1b2] sm:$0xff]  ;;  %v2521_v2 = vld [vmem:[#allocation2 + $0x1ca] sm:$0xff] }
 0x231   : > { %v13953_v49 = vpop.permute.xlu0 %9555  ;;  %v9859_v7 = vpack.i.bf16 %v2520_v61, %v2519_v6  ;;  %v2258_v6 = vld [vmem:[#allocation2 + $0xe6] sm:$0xff]  ;;  %v9302_v61 = vunpack.i.l.bf16 %v13614_v8 }
 0x232   : > { %v13951_v27 = vpop.permute.xlu1 %9550  ;;  %19654 = vst [vmem:[#allocation24_spill] sm:$0xff] %v13953_v49  ;;  %v9864_v49 = vpack.i.bf16 %v2522_v52, %v2521_v2  ;;  %v9308_v2 = vunpack.i.h.bf16 %v13619_v62  ;;  %v13982_v52 = vsel %vm170_vm0, %v2256_v17, %v9287_v45  ;;  %v9313_v45 = vunpack.i.h.bf16 %v13642_v1 }
 0x233   : > { %19653 = vst [vmem:[#allocation80_spill] sm:$0xff] %v13951_v27  ;;  %9845 = vrot.lane.b32.xlu0 %v9844_v42, %s11397_s20 }
 0x234   : > { %9840 = vrot.lane.b32.xlu1 %v9839_v48, %s11396_s17  ;;  %v9288_v48 = vunpack.i.h.bf16 %v13566_v28  ;;  %v9303_v28 = vunpack.i.h.bf16 %v13614_v8 }
 0x235   : > { %v13959_v56 = vpop.permute.xlu0 %9565 }
 0x236   : > { %v13957_v53 = vpop.permute.xlu1 %9560  ;;  %19656 = vst [vmem:[#allocation28_spill] sm:$0xff] %v13959_v56  ;;  %v9298_v56 = vunpack.i.h.bf16 %v13595_v35 }
 0x237   : > { %19655 = vst [vmem:[#allocation25_spill] sm:$0xff] %v13957_v53  ;;  %9855 = vrot.lane.b32.xlu0 %v9854_v26, %s11397_s20  ;;  %v9292_v53 = vunpack.i.l.bf16 %v13589_v19  ;;  %v9297_v26 = vunpack.i.l.bf16 %v13595_v35  ;;  %v13979_v19 = vsel %vm170_vm0, %v2257_v31, %v9288_v48  ;;  %v13987_v35 = vld [vmem:[#allocation2 + $0x30a] sm:$0xff] }
 0x238   : > { %9850 = vrot.lane.b32.xlu1 %v9849_v46, %s11397_s20  ;;  %v2259_v46 = vld [vmem:[#allocation2 + $0xee] sm:$0xff]  ;;  %v11237_v31 = vld [vmem:[#allocation2 + $0x106] sm:$0xff] }
 0x239   : > { %v13970_v27 = vpop.permute.xlu0 %9575  ;;  %v13992_v8 = vsel %vm170_vm0, %v2259_v46, %v9293_v15  ;;  %v13995_v33 = vsel %vm170_vm0, %v2258_v6, %v9292_v53  ;;  %v9312_v15 = vunpack.i.l.bf16 %v13642_v1  ;;  %v9318_v46 = vunpack.i.h.bf16 %v13648_v12  ;;  %v14015_v6 = vld [vmem:[#allocation2 + $0x88] sm:$0xff] }
 0x23a   : > { %v13965_v42 = vpop.permute.xlu1 %9570  ;;  %19658 = vst [vmem:[#allocation63_spill] sm:$0xff] %v13970_v27  ;;  %v9307_v27 = vunpack.i.l.bf16 %v13619_v62  ;;  %v14003_v62 = vld [vmem:[#allocation2 + $0x32a] sm:$0xff]  ;;  %v9317_v53 = vunpack.i.l.bf16 %v13648_v12 }
 0x23b   : > { %19657 = vst [vmem:[#allocation68_spill] sm:$0xff] %v13965_v42  ;;  %9865 = vrot.lane.b32.xlu0 %v9864_v49, %s11397_s20  ;;  %v11236_v49 = vld [vmem:[#allocation2 + $0x10e] sm:$0xff]  ;;  %v14059_v34 = vsel %vm170_vm0, %v11243_v63, %v9312_v15  ;;  %v9338_v63 = vunpack.i.h.bf16 %v13702_v13  ;;  %v9337_v15 = vunpack.i.l.bf16 %v13702_v13 }
 0x23c   : > { %9860 = vrot.lane.b32.xlu1 %v9859_v7, %s11397_s20  ;;  %v13989_v7 = vld [vmem:[#allocation2 + $0x312] sm:$0xff]  ;;  %v13998_v48 = vsel %vm170_vm0, %v11236_v49, %v9298_v56  ;;  %v14033_v14 = vsel %vm170_vm0, %v11241_v36, %v9307_v27  ;;  %v9333_v27 = vunpack.i.h.bf16 %v13696_v30  ;;  %v11247_v30 = vld [vmem:[#allocation2 + $0x1a6] sm:$0xff] }
 0x23d   : > { %v14001_v17 = vpop.permute.xlu0 %9585  ;;  %v14013_v56 = vld [vmem:[#allocation2 + $0x332] sm:$0xff] }
 0x23e   : > { %v13985_v42 = vpop.permute.xlu1 %9580  ;;  %19660 = vst [vmem:[#allocation64_spill] sm:$0xff] %v14001_v17  ;;  %v14017_v49 = vld [vmem:[#allocation2 + $0x90] sm:$0xff] }
 0x23f   : > { %19659 = vst [vmem:[#allocation65_spill] sm:$0xff] %v13985_v42  ;;  %v14006_v42 = vsel %vm170_vm0, %v11237_v31, %v9297_v26  ;;  %v11238_v17 = vld [vmem:[#allocation2 + $0x12e] sm:$0xff]  ;;  %v11239_v26 = vld [vmem:[#allocation2 + $0x126] sm:$0xff]  ;;  %9875 = vrot.lane.b32.xlu0 %v13748_v50, %s11397_s20 }
 0x240   : > { %9870 = vrot.lane.b32.xlu1 %v13740_v43, %s11397_s20  ;;  %v14020_v38 = vsel %vm170_vm0, %v11238_v17, %v9303_v28  ;;  %v14023_v1 = vsel %vm170_vm0, %v11239_v26, %v9302_v61  ;;  %v11240_v31 = vld [vmem:[#allocation2 + $0x14e] sm:$0xff]  ;;  %v9323_v28 = vunpack.i.h.bf16 %v13666_v24  ;;  %v9322_v17 = vunpack.i.l.bf16 %v13666_v24 }
 0x241   : > { %v14026_v12 = vsel %vm170_vm0, %v11240_v31, %v9308_v2  ;;  %v9328_v61 = vunpack.i.h.bf16 %v13671_v16  ;;  %v14040_v2 = vld [vmem:[#allocation2 + $0xa8] sm:$0xff]  ;;  %v14042_v31 = vld [vmem:[#allocation2 + $0xb0] sm:$0xff]  ;;  %v9327_v43 = vunpack.i.l.bf16 %v13671_v16  ;;  %v14048_v36 = vpop.permute.xlu0 %9595 }
 0x242   : > { %v14038_v26 = vpop.permute.xlu1 %9590  ;;  %19662 = vst [vmem:[#allocation29_spill] sm:$0xff] %v14040_v2  ;;  %19663 = vst [vmem:[#allocation31_spill] sm:$0xff] %v14042_v31  ;;  %v11242_v50 = vld [vmem:[#allocation2 + $0x16e] sm:$0xff]  ;;  %v11245_v16 = vld [vmem:[#allocation2 + $0x186] sm:$0xff]  ;;  %v14089_v59 = vsel %vm170_vm0, %v11247_v30, %v9322_v17  ;;  %v9348_v17 = vunpack.i.h.bf16 %v13732_v25 }
 0x243   : > { %19661 = vst [vmem:[#allocation6_spill] sm:$0xff] %v14038_v26  ;;  %v14045_v39 = vsel %vm170_vm0, %v11242_v50, %v9313_v45  ;;  %19664 = vst [vmem:[#allocation8_spill] sm:$0xff] %v14048_v36  ;;  %v14056_v26 = vld [vmem:[#allocation2 + $0xd0] sm:$0xff]  ;;  %v14065_v36 = vsel %vm170_vm0, %v11245_v16, %v9317_v53  ;;  %v14070_v24 = vld [vmem:[#allocation2 + $0xe8] sm:$0xff]  ;;  %9885 = vrot.lane.b32.xlu0 %v13764_v9, %s11397_s20 }
 0x244   : > { %v11244_v45 = vld [vmem:[#allocation2 + $0x18e] sm:$0xff]  ;;  %9880 = vrot.lane.b32.xlu1 %v13760_v3, %s11397_s20  ;;  %v11249_v2 = vld [vmem:[#allocation2 + $0x1c6] sm:$0xff] }
 0x245   : > { %v14062_v50 = vsel %vm170_vm0, %v11244_v45, %v9318_v46  ;;  %v14079_v53 = vld [vmem:[#allocation2 + $0xf0] sm:$0xff]  ;;  %v14081_v45 = vld [vmem:[#allocation2 + $0x108] sm:$0xff]  ;;  %v14099_v31 = vsel %vm170_vm0, %v11249_v2, %v9327_v43  ;;  %v14104_v30 = vpop.permute.xlu0 %9605  ;;  %v9347_v46 = vunpack.i.l.bf16 %v13732_v25 }
 0x246   : > { %19665 = vst [vmem:[#allocation53_spill] sm:$0xff] %v14081_v45  ;;  %v14083_v16 = vld [vmem:[#allocation2 + $0x110] sm:$0xff]  ;;  %v14094_v23 = vpop.permute.xlu1 %9600  ;;  %19670 = vst [vmem:[#allocation66_spill] sm:$0xff] %v14099_v31  ;;  %v14120_v2 = vld [vmem:[#allocation2 + $0x148] sm:$0xff]  ;;  %v9352_v45 = vunpack.i.l.bf16 %v13752_v41 }
 0x247   : > { %19666 = vst [vmem:[#allocation30_spill] sm:$0xff] %v14083_v16  ;;  %v11246_v3 = vld [vmem:[#allocation2 + $0x1ae] sm:$0xff]  ;;  %19669 = vst [vmem:[#allocation35_spill] sm:$0xff] %v14094_v23  ;;  %9895 = vrot.lane.b32.xlu0 %v13778_v22, %s11397_s20 }
 0x248   : > { %v14086_v18 = vsel %vm170_vm0, %v11246_v3, %v9323_v28  ;;  %v11248_v13 = vld [vmem:[#allocation2 + $0x1ce] sm:$0xff]  ;;  %v9343_v28 = vunpack.i.h.bf16 %v13725_v37  ;;  %v9342_v3 = vunpack.i.l.bf16 %v13725_v37  ;;  %19671 = vst [vmem:[#allocation7_spill] sm:$0xff] %v14104_v30  ;;  %9890 = vrot.lane.b32.xlu1 %v13774_v60, %s11397_s20  ;;  %19675 = vst [vmem:[#allocation13_spill] sm:$0xff] %v14120_v2  ;;  %v9353_v37 = vunpack.i.h.bf16 %v13752_v41  ;;  %v11255_v41 = vld [vmem:[#allocation2 + $0x226] sm:$0xff] }
 0x249   : > { %19667 = vst [vmem:[#allocation37_spill] sm:$0xff] %v14086_v18  ;;  %v14092_v9 = vsel %vm170_vm0, %v11248_v13, %v9328_v61  ;;  %v14106_v18 = vld [vmem:[#allocation2 + $0x128] sm:$0xff]  ;;  %v14108_v61 = vld [vmem:[#allocation2 + $0x130] sm:$0xff] }
 0x24a   : > { %19668 = vst [vmem:[#allocation34_spill] sm:$0xff] %v14092_v9  ;;  %19672 = vst [vmem:[#allocation10_spill] sm:$0xff] %v14106_v18  ;;  %v11250_v13 = vld [vmem:[#allocation2 + $0x1ee] sm:$0xff]  ;;  %v11251_v9 = vld [vmem:[#allocation2 + $0x1e6] sm:$0xff]  ;;  %v14141_v16 = vpop.permute.xlu1 %9610 }
 0x24b   : > { %19673 = vst [vmem:[#allocation38_spill] sm:$0xff] %v14108_v61  ;;  %v14111_v23 = vsel %vm170_vm0, %v11250_v13, %v9333_v27  ;;  %v14122_v30 = vld [vmem:[#allocation2 + $0x150] sm:$0xff]  ;;  %v14125_v31 = vsel %vm170_vm0, %v11251_v9, %v9332_v47  ;;  %v11253_v13 = vld [vmem:[#allocation2 + $0x206] sm:$0xff]  ;;  %v9358_v47 = vunpack.i.h.bf16 %v13756_v40  ;;  %v9357_v9 = vunpack.i.l.bf16 %v13756_v40  ;;  %19680 = vst [vmem:[#allocation9_spill] sm:$0xff] %v14141_v16  ;;  %9905 = vrot.lane.b32.xlu0 %v13790_v10, %s11397_s20 }
 0x24c   : > { %19674 = vst [vmem:[#allocation43_spill] sm:$0xff] %v14111_v23  ;;  %19676 = vst [vmem:[#allocation67_spill] sm:$0xff] %v14122_v30  ;;  %v11252_v27 = vld [vmem:[#allocation2 + $0x20e] sm:$0xff]  ;;  %v14131_v60 = vsel %vm170_vm0, %v11253_v13, %v9337_v15  ;;  %v14160_v23 = vpop.permute.xlu0 %9615  ;;  %v11257_v18 = vld [vmem:[#allocation2 + $0x246] sm:$0xff]  ;;  %9900 = vrot.lane.b32.xlu1 %v13786_v57, %s11397_s20 }
 0x24d   : > { %v14128_v25 = vsel %vm170_vm0, %v11252_v27, %v9338_v63  ;;  %19678 = vst [vmem:[#allocation33_spill] sm:$0xff] %v14131_v60  ;;  %v14136_v43 = vld [vmem:[#allocation2 + $0x168] sm:$0xff]  ;;  %v14145_v15 = vld [vmem:[#allocation2 + $0x170] sm:$0xff]  ;;  %v14155_v60 = vsel %vm170_vm0, %v11255_v41, %v9342_v3  ;;  %19684 = vst [vmem:[#allocation23_spill] sm:$0xff] %v14160_v23  ;;  %v14165_v61 = vsel %vm170_vm0, %v11257_v18, %v9347_v46  ;;  %v9367_v3 = vunpack.i.l.bf16 %v13768_v0 }
 0x24e   : > { %19677 = vst [vmem:[#allocation15_spill] sm:$0xff] %v14128_v25  ;;  %19679 = vst [vmem:[#allocation18_spill] sm:$0xff] %v14136_v43  ;;  %v14147_v27 = vld [vmem:[#allocation2 + $0x188] sm:$0xff]  ;;  %v14149_v13 = vld [vmem:[#allocation2 + $0x190] sm:$0xff]  ;;  %v9368_v18 = vunpack.i.h.bf16 %v13768_v0  ;;  %v14200_v43 = vpop.permute.xlu1 %9620 }
 0x24f   : > { %19681 = vst [vmem:[#allocation40_spill] sm:$0xff] %v14145_v15  ;;  %19682 = vst [vmem:[#allocation50_spill] sm:$0xff] %v14147_v27  ;;  %v11254_v22 = vld [vmem:[#allocation2 + $0x22e] sm:$0xff]  ;;  %v11259_v2 = vld [vmem:[#allocation2 + $0x266] sm:$0xff]  ;;  %v9373_v27 = vunpack.i.h.bf16 %v13780_v11 }
 0x250   : > { %19683 = vst [vmem:[#allocation45_spill] sm:$0xff] %v14149_v13  ;;  %v14152_v25 = vsel %vm170_vm0, %v11254_v22, %v9343_v28  ;;  %v11256_v40 = vld [vmem:[#allocation2 + $0x24e] sm:$0xff]  ;;  %v9363_v28 = vunpack.i.h.bf16 %v13766_v58  ;;  %v9362_v22 = vunpack.i.l.bf16 %v13766_v58  ;;  %v14191_v30 = vsel %vm170_vm0, %v11259_v2, %v9352_v45  ;;  %19686 = vst [vmem:[#allocation19_spill] sm:$0xff] %v14200_v43  ;;  %v14207_v2 = vpop.permute.xlu0 %9625  ;;  %9910 = vrot.lane.b32.xlu1 %v13798_v44, %s11397_s20 }
 0x251   : > { %v14158_v16 = vsel %vm170_vm0, %v11256_v40, %v9348_v17  ;;  %v14172_v17 = vld [vmem:[#allocation2 + $0x1a8] sm:$0xff]  ;;  %v14174_v41 = vld [vmem:[#allocation2 + $0x1b0] sm:$0xff]  ;;  %v9372_v58 = vunpack.i.l.bf16 %v13780_v11  ;;  %v9378_v13 = vunpack.i.h.bf16 %v13782_v32  ;;  %v9377_v45 = vunpack.i.l.bf16 %v13782_v32  ;;  %19687 = vst [vmem:[#allocation41_spill] sm:$0xff] %v14207_v2 }
 0x252   : > { %v11258_v40 = vld [vmem:[#allocation2 + $0x26e] sm:$0xff]  ;;  %v11263_v11 = vld [vmem:[#allocation2 + $0x2a6] sm:$0xff]  ;;  %v14225_v32 = vsel %vm1679_vm1, %v13982_v52, %v9367_v3  ;;  %v14233_v2 = vsel %vm1679_vm1, %v13979_v19, %v9368_v18  ;;  %v19689_v52 = vpack.i.bf16 %v13989_v7, %v13987_v35  ;;  %v9388_v19 = vunpack.i.h.bf16 %v13794_v4  ;;  %v14251_v18 = vpop.permute.xlu1 %9630 }
 0x253   : > { %v14177_v63 = vsel %vm170_vm0, %v11258_v40, %v9353_v37  ;;  %v14186_v57 = vld [vmem:[#allocation2 + $0x1c8] sm:$0xff]  ;;  %v14188_v23 = vld [vmem:[#allocation2 + $0x1d0] sm:$0xff]  ;;  %19690 = vst [vmem:[#allocation36_spill] sm:$0xff] %v14251_v18  ;;  %v9393_v18 = vunpack.i.h.bf16 %v13802_v29 }
 0x254   : > { %v11260_v37 = vld [vmem:[#allocation2 + $0x28e] sm:$0xff]  ;;  %v11261_v40 = vld [vmem:[#allocation2 + $0x286] sm:$0xff]  ;;  %9915 = vrot.lane.b32.xlu0 %v19689_v52, %s11397_s20  ;;  %v14263_v52 = vsel %vm1679_vm1, %v13992_v8, %v9373_v27  ;;  %v9397_v8 = vunpack.i.l.bf16 %v13804_v20 }
 0x255   : > { %v14194_v0 = vsel %vm170_vm0, %v11260_v37, %v9358_v47  ;;  %v14197_v10 = vsel %vm170_vm0, %v11261_v40, %v9357_v9  ;;  %v14202_v46 = vld [vmem:[#allocation2 + $0x1e8] sm:$0xff]  ;;  %v14211_v37 = vld [vmem:[#allocation2 + $0x1f0] sm:$0xff] }
 0x256   : > { %19685 = vst [vmem:[#allocation51_spill] sm:$0xff] %v14194_v0  ;;  %v14213_v9 = vld [vmem:[#allocation2 + $0x208] sm:$0xff]  ;;  %v14215_v40 = vld [vmem:[#allocation2 + $0x210] sm:$0xff]  ;;  %v14221_v0 = vsel %vm170_vm0, %v11263_v11, %v9362_v22  ;;  %v9387_v22 = vunpack.i.l.bf16 %v13794_v4  ;;  %v14248_v11 = vsel %vm1679_vm1, %v13995_v33, %v9372_v58  ;;  %v14267_v33 = vsel %vm1679_vm1, %v14006_v42, %v9377_v45 }
 0x257   : > { %19688 = vst [vmem:[#allocation44_spill] sm:$0xff] %v14213_v9  ;;  %v11262_v43 = vld [vmem:[#allocation2 + $0x2ae] sm:$0xff]  ;;  %v14271_v4 = vsel %vm1679_vm1, %v13998_v48, %v9378_v13  ;;  %v9392_v58 = vunpack.i.l.bf16 %v13802_v29  ;;  %v9398_v9 = vunpack.i.h.bf16 %v13804_v20  ;;  %v19695_v42 = vpack.i.bf16 %v14013_v56, %v14003_v62 }
 0x258   : > { %v14218_v15 = vsel %vm170_vm0, %v11262_v43, %v9363_v28  ;;  %v9383_v43 = vunpack.i.h.bf16 %v13792_v5  ;;  %v9382_v28 = vunpack.i.l.bf16 %v13792_v5  ;;  %v14242_v3 = vld [vmem:[#allocation2 + $0x228] sm:$0xff]  ;;  %v14244_v44 = vld [vmem:[#allocation2 + $0x230] sm:$0xff]  ;;  %v14274_v5 = vpop.permute.xlu0 %9635  ;;  %v14303_v62 = vsel %vm1679_vm1, %v14033_v14, %v9387_v22  ;;  %v14318_v14 = vpop.permute.xlu1 %9640 }
 0x259   : > { %v14257_v35 = vld [vmem:[#allocation2 + $0x248] sm:$0xff]  ;;  %v14259_v7 = vld [vmem:[#allocation2 + $0x250] sm:$0xff]  ;;  %19693 = vst [vmem:[#allocation46_spill] sm:$0xff] %v14274_v5  ;;  %9920 = vrot.lane.b32.xlu1 %v19695_v42, %s11397_s20  ;;  %v19699_v56 = vpack.i.bf16 %v14017_v49, %v14015_v6  ;;  %19700 = vst [vmem:[#allocation55_spill] sm:$0xff] %v14318_v14  ;;  %v14326_v6 = vsel %vm1679_vm1, %v14059_v34, %v9392_v58  ;;  %v9408_v49 = vunpack.i.h.bf16 %v13812_v21  ;;  %v9412_v58 = vunpack.i.l.bf16 %v13818_v54 }
 0x25a   : > { %19691 = vst [vmem:[#allocation39_spill] sm:$0xff] %v14257_v35  ;;  %19692 = vst [vmem:[#allocation42_spill] sm:$0xff] %v14259_v7  ;;  %v14276_v47 = vld [vmem:[#allocation2 + $0x268] sm:$0xff]  ;;  %v14287_v27 = vld [vmem:[#allocation2 + $0x270] sm:$0xff]  ;;  %v14295_v29 = vsel %vm1679_vm1, %v14023_v1, %v9382_v28  ;;  %v14299_v20 = vsel %vm1679_vm1, %v14020_v38, %v9383_v43  ;;  %v14313_v1 = vsel %vm1679_vm1, %v14026_v12, %v9388_v19  ;;  %v9403_v28 = vunpack.i.h.bf16 %v13810_v51 }
 0x25b   : > { %19694 = vst [vmem:[#allocation47_spill] sm:$0xff] %v14276_v47  ;;  %19696 = vst [vmem:[#allocation81_spill] sm:$0xff] %v14287_v27  ;;  %v14289_v13 = vld [vmem:[#allocation2 + $0x8c] sm:$0xff]  ;;  %v14291_v45 = vld [vmem:[#allocation2 + $0x94] sm:$0xff]  ;;  %9925 = vrot.lane.b32.xlu0 %v19699_v56, %s11390_s29  ;;  %v9402_v38 = vunpack.i.l.bf16 %v13810_v51  ;;  %v9407_v43 = vunpack.i.l.bf16 %v13812_v21  ;;  %v14341_v14 = vsel %vm1679_vm1, %v14045_v39, %v9393_v18  ;;  %v14345_v34 = vsel %vm1679_vm1, %v14065_v36, %v9397_v8 }
 0x25c   : > { %19697 = vst [vmem:[#allocation82_spill] sm:$0xff] %v14289_v13  ;;  %19698 = vst [vmem:[#allocation54_spill] sm:$0xff] %v14291_v45  ;;  %v14320_v22 = vld [vmem:[#allocation2 + $0xac] sm:$0xff]  ;;  %v14322_v48 = vld [vmem:[#allocation2 + $0xb4] sm:$0xff]  ;;  %v14329_v12 = vpop.permute.xlu0 %9645  ;;  %v14349_v21 = vsel %vm1679_vm1, %v14062_v50, %v9398_v9  ;;  %v9413_v39 = vunpack.i.h.bf16 %v13818_v54  ;;  %v19711_v50 = vpack.i.bf16 %v14056_v26, %v14054_v55  ;;  %v14385_v26 = vpop.permute.xlu1 %9650 }
 0x25d   : > { %19701 = vst [vmem:[#allocation56_spill] sm:$0xff] %v14320_v22  ;;  %19702 = vst [vmem:[#allocation57_spill] sm:$0xff] %v14322_v48  ;;  %v14335_v56 = vld [vmem:[#allocation2 + $0xcc] sm:$0xff]  ;;  %v14337_v42 = vld [vmem:[#allocation2 + $0xd4] sm:$0xff]  ;;  %v14375_v54 = vsel %vm1679_vm1, %v14089_v59, %v9402_v38 }
 0x25e   : > { %19703 = vst [vmem:[#allocation59_spill] sm:$0xff] %v14329_v12  ;;  %19704 = vst [vmem:[#allocation60_spill] sm:$0xff] %v14335_v56  ;;  %v19706_v51 = vld [vmem:[#allocation31_spill] sm:$0xff]  ;;  %v19707_v19 = vld [vmem:[#allocation29_spill] sm:$0xff] }
 0x25f   : > { %19705 = vst [vmem:[#allocation83_spill] sm:$0xff] %v14337_v42  ;;  %v19708_v12 = vpack.i.bf16 %v19706_v51, %v19707_v19  ;;  %v14356_v5 = vld [vmem:[#allocation2 + $0xec] sm:$0xff]  ;;  %v19710_v18 = vld [vmem:[#allocation69_spill] sm:$0xff]  ;;  %9935 = vrot.lane.b32.xlu0 %v19711_v50, %s11390_s29  ;;  %v19716_v45 = vld [vmem:[#allocation66_spill] sm:$0xff] }
 0x260   : > { %19709 = vst [vmem:[#allocation31_spill] sm:$0xff] %v14356_v5  ;;  %v9418_v13 = vunpack.i.h.bf16 %v19710_v18  ;;  %v9417_v36 = vunpack.i.l.bf16 %v19710_v18  ;;  %v14367_v8 = vld [vmem:[#allocation2 + $0xf4] sm:$0xff]  ;;  %v14369_v19 = vld [vmem:[#allocation2 + $0x10c] sm:$0xff]  ;;  %v14383_v55 = vsel %vm1679_vm1, %v19716_v45, %v9407_v43  ;;  %v19718_v9 = vld [vmem:[#allocation34_spill] sm:$0xff]  ;;  %v14404_v43 = vsel %vm1679_vm1, %v14125_v31, %v9412_v58 }
 0x261   : > { %9930 = vrot.lane.b32.xlu1 %v19708_v12, %s11390_s29  ;;  %19712 = vst [vmem:[#allocation29_spill] sm:$0xff] %v14367_v8  ;;  %19713 = vst [vmem:[#allocation69_spill] sm:$0xff] %v14369_v19  ;;  %v14371_v12 = vld [vmem:[#allocation2 + $0x114] sm:$0xff]  ;;  %v14391_v22 = vsel %vm1679_vm1, %v19718_v9, %v9408_v49  ;;  %v19719_v48 = vld [vmem:[#allocation70_spill] sm:$0xff]  ;;  %v19723_v49 = vpack.i.bf16 %v14079_v53, %v14070_v24 }
 0x262   : > { %19714 = vst [vmem:[#allocation84_spill] sm:$0xff] %v14371_v12  ;;  %v19715_v51 = vld [vmem:[#allocation37_spill] sm:$0xff]  ;;  %v9423_v59 = vunpack.i.h.bf16 %v19719_v48  ;;  %v9422_v38 = vunpack.i.l.bf16 %v19719_v48  ;;  %v19720_v47 = vld [vmem:[#allocation71_spill] sm:$0xff]  ;;  %v19729_v9 = vld [vmem:[#allocation30_spill] sm:$0xff] }
 0x263   : > { %v14379_v18 = vsel %vm1679_vm1, %v19715_v51, %v9403_v28  ;;  %19717 = vst [vmem:[#allocation37_spill] sm:$0xff] %v14385_v26  ;;  %v9427_v28 = vunpack.i.l.bf16 %v19720_v47  ;;  %v14396_v51 = vpop.permute.xlu0 %9655  ;;  %v14398_v27 = vld [vmem:[#allocation2 + $0x12c] sm:$0xff]  ;;  %v14400_v45 = vld [vmem:[#allocation2 + $0x134] sm:$0xff]  ;;  %v9428_v50 = vunpack.i.h.bf16 %v19720_v47 }
 0x264   : > { %19721 = vst [vmem:[#allocation66_spill] sm:$0xff] %v14396_v51  ;;  %19722 = vst [vmem:[#allocation34_spill] sm:$0xff] %v14400_v45  ;;  %v14415_v51 = vld [vmem:[#allocation2 + $0x14c] sm:$0xff]  ;;  %v14417_v26 = vld [vmem:[#allocation2 + $0x154] sm:$0xff] }
 0x265   : > { %9940 = vrot.lane.b32.xlu1 %v19723_v49, %s11390_s29  ;;  %19724 = vst [vmem:[#allocation70_spill] sm:$0xff] %v14417_v26  ;;  %v19725_v56 = vld [vmem:[#allocation43_spill] sm:$0xff]  ;;  %v19726_v47 = vld [vmem:[#allocation33_spill] sm:$0xff]  ;;  %v19728_v49 = vld [vmem:[#allocation72_spill] sm:$0xff] }
 0x266   : > { %v14421_v31 = vsel %vm1679_vm1, %v19725_v56, %v9413_v39  ;;  %v14425_v58 = vsel %vm1679_vm1, %v19726_v47, %v9417_v36  ;;  %v19727_v24 = vld [vmem:[#allocation15_spill] sm:$0xff]  ;;  %v9432_v48 = vunpack.i.l.bf16 %v19728_v49  ;;  %v19730_v12 = vld [vmem:[#allocation53_spill] sm:$0xff]  ;;  %v9433_v56 = vunpack.i.h.bf16 %v19728_v49  ;;  %v14441_v47 = vpop.permute.xlu1 %9660 }
 0x267   : > { %v14429_v53 = vsel %vm1679_vm1, %v19727_v24, %v9418_v13  ;;  %v19731_v5 = vpack.i.bf16 %v19729_v9, %v19730_v12  ;;  %v14436_v8 = vld [vmem:[#allocation2 + $0x16c] sm:$0xff]  ;;  %v19732_v39 = vld [vmem:[#allocation73_spill] sm:$0xff]  ;;  %19733 = vst [vmem:[#allocation71_spill] sm:$0xff] %v14441_v47  ;;  %v14457_v12 = vsel %vm1679_vm1, %v14152_v25, %v9423_v59  ;;  %v14461_v9 = vsel %vm1679_vm1, %v14165_v61, %v9427_v28  ;;  %v14463_v49 = vpop.permute.xlu0 %9665  ;;  %v19739_v47 = vld [vmem:[#allocation74_spill] sm:$0xff] }
 0x268   : > { %v9438_v42 = vunpack.i.h.bf16 %v19732_v39  ;;  %v9437_v36 = vunpack.i.l.bf16 %v19732_v39  ;;  %v14445_v24 = vld [vmem:[#allocation2 + $0x174] sm:$0xff]  ;;  %v14447_v35 = vld [vmem:[#allocation2 + $0x18c] sm:$0xff]  ;;  %19736 = vst [vmem:[#allocation15_spill] sm:$0xff] %v14457_v12  ;;  %19737 = vst [vmem:[#allocation72_spill] sm:$0xff] %v14463_v49  ;;  %v14469_v13 = vsel %vm1679_vm1, %v14158_v16, %v9428_v50  ;;  %v14484_v39 = vsel %vm1679_vm1, %v14191_v30, %v9432_v48 }
 0x269   : > { %9945 = vrot.lane.b32.xlu0 %v19731_v5, %s11390_s29  ;;  %19734 = vst [vmem:[#allocation43_spill] sm:$0xff] %v14445_v24  ;;  %v14449_v7 = vld [vmem:[#allocation2 + $0x194] sm:$0xff]  ;;  %v14453_v5 = vsel %vm1679_vm1, %v14155_v60, %v9422_v38  ;;  %19738 = vst [vmem:[#allocation30_spill] sm:$0xff] %v14469_v13  ;;  %v9443_v60 = vunpack.i.h.bf16 %v19739_v47  ;;  %v9442_v38 = vunpack.i.l.bf16 %v19739_v47  ;;  %v19740_v45 = vld [vmem:[#allocation75_spill] sm:$0xff]  ;;  %v14501_v30 = vsel %vm1679_vm1, %v14177_v63, %v9433_v56 }
 0x26a   : > { %19735 = vst [vmem:[#allocation33_spill] sm:$0xff] %v14449_v7  ;;  %v9447_v25 = vunpack.i.l.bf16 %v19740_v45  ;;  %v19741_v59 = vld [vmem:[#allocation38_spill] sm:$0xff]  ;;  %v14478_v28 = vld [vmem:[#allocation2 + $0x1ac] sm:$0xff]  ;;  %v14480_v49 = vld [vmem:[#allocation2 + $0x1b4] sm:$0xff]  ;;  %v9448_v16 = vunpack.i.h.bf16 %v19740_v45  ;;  %v14505_v45 = vsel %vm1679_vm1, %v14197_v10, %v9437_v36  ;;  %v14512_v13 = vpop.permute.xlu1 %9670 }
 0x26b   : > { %v19742_v12 = vld [vmem:[#allocation10_spill] sm:$0xff]  ;;  %19744 = vst [vmem:[#allocation53_spill] sm:$0xff] %v14480_v49  ;;  %19745 = vst [vmem:[#allocation73_spill] sm:$0xff] %v14484_v39  ;;  %v19746_v50 = vld [vmem:[#allocation67_spill] sm:$0xff]  ;;  %v14519_v56 = vpop.permute.xlu0 %9675 }
 0x26c   : > { %v19743_v61 = vpack.i.bf16 %v19741_v59, %v19742_v12  ;;  %v19747_v47 = vld [vmem:[#allocation13_spill] sm:$0xff]  ;;  %v14495_v59 = vld [vmem:[#allocation2 + $0x1cc] sm:$0xff]  ;;  %19753 = vst [vmem:[#allocation38_spill] sm:$0xff] %v14512_v13  ;;  %19755 = vst [vmem:[#allocation10_spill] sm:$0xff] %v14519_v56  ;;  %v14531_v13 = vsel %vm1679_vm1, %v14221_v0, %v9442_v38  ;;  %v14549_v0 = vsel %vm1712_vm2, %v14233_v2, %v9448_v16 }
 0x26d   : > { %v19748_v26 = vpack.i.bf16 %v19746_v50, %v19747_v47  ;;  %v19750_v48 = vld [vmem:[#allocation51_spill] sm:$0xff]  ;;  %v19752_v50 = vld [vmem:[#allocation12_spill] sm:$0xff]  ;;  %v19762_v56 = vld [vmem:[#allocation18_spill] sm:$0xff] }
 0x26e   : > { %9950 = vrot.lane.b32.xlu1 %v19743_v61, %s11390_s29  ;;  %v14497_v61 = vld [vmem:[#allocation2 + $0x1d4] sm:$0xff]  ;;  %v9452_v47 = vunpack.i.l.bf16 %v19752_v50  ;;  %v14514_v12 = vld [vmem:[#allocation2 + $0x1ec] sm:$0xff]  ;;  %v9453_v7 = vunpack.i.h.bf16 %v19752_v50  ;;  %19758 = vst [vmem:[#allocation51_spill] sm:$0xff] %v14531_v13  ;;  %v14535_v50 = vsel %vm1679_vm1, %v14218_v15, %v9443_v60  ;;  %v19764_v38 = vld [vmem:[#allocation14_spill] sm:$0xff]  ;;  %v14567_v16 = vpop.permute.xlu1 %9680 }
 0x26f   : > { %9955 = vrot.lane.b32.xlu0 %v19748_v26, %s11390_s29  ;;  %19749 = vst [vmem:[#allocation74_spill] sm:$0xff] %v14497_v61  ;;  %v14509_v26 = vsel %vm1679_vm1, %v19750_v48, %v9438_v42  ;;  %v19754_v24 = vld [vmem:[#allocation11_spill] sm:$0xff]  ;;  %v14523_v36 = vld [vmem:[#allocation2 + $0x1f4] sm:$0xff]  ;;  %19759 = vst [vmem:[#allocation12_spill] sm:$0xff] %v14535_v50  ;;  %v9463_v13 = vunpack.i.h.bf16 %v19764_v38  ;;  %v9462_v15 = vunpack.i.l.bf16 %v19764_v38 }
 0x270   : > { %19751 = vst [vmem:[#allocation75_spill] sm:$0xff] %v14509_v26  ;;  %v9458_v39 = vunpack.i.h.bf16 %v19754_v24  ;;  %v9457_v63 = vunpack.i.l.bf16 %v19754_v24  ;;  %19756 = vst [vmem:[#allocation67_spill] sm:$0xff] %v14523_v36  ;;  %v14525_v42 = vld [vmem:[#allocation2 + $0x20c] sm:$0xff]  ;;  %v14527_v48 = vld [vmem:[#allocation2 + $0x214] sm:$0xff]  ;;  %v14539_v24 = vsel %vm1712_vm2, %v14225_v32, %v9447_v25 }
 0x271   : > { %19757 = vst [vmem:[#allocation13_spill] sm:$0xff] %v14527_v48  ;;  %19760 = vst [vmem:[#allocation11_spill] sm:$0xff] %v14539_v24  ;;  %v19761_v10 = vld [vmem:[#allocation40_spill] sm:$0xff]  ;;  %v19766_v32 = vld [vmem:[#allocation45_spill] sm:$0xff] }
 0x272   : > { %v19763_v49 = vpack.i.bf16 %v19761_v10, %v19762_v56  ;;  %v19765_v60 = vld [vmem:[#allocation16_spill] sm:$0xff]  ;;  %v19767_v25 = vld [vmem:[#allocation50_spill] sm:$0xff]  ;;  %v14564_v10 = vsel %vm1712_vm2, %v14248_v11, %v9452_v47  ;;  %19769 = vst [vmem:[#allocation40_spill] sm:$0xff] %v14567_v16  ;;  %v14583_v11 = vsel %vm1712_vm2, %v14267_v33, %v9457_v63  ;;  %v14587_v47 = vsel %vm1712_vm2, %v14271_v4, %v9458_v39  ;;  %v14590_v16 = vpop.permute.xlu0 %9685 }
 0x273   : > { %v9467_v50 = vunpack.i.l.bf16 %v19765_v60  ;;  %v19768_v24 = vpack.i.bf16 %v19766_v32, %v19767_v25  ;;  %v14558_v56 = vld [vmem:[#allocation2 + $0x22c] sm:$0xff]  ;;  %v9468_v2 = vunpack.i.h.bf16 %v19765_v60  ;;  %v14579_v25 = vsel %vm1712_vm2, %v14263_v52, %v9453_v7  ;;  %v19771_v60 = vld [vmem:[#allocation17_spill] sm:$0xff]  ;;  %19772 = vst [vmem:[#allocation14_spill] sm:$0xff] %v14590_v16  ;;  %v19773_v48 = vld [vmem:[#allocation22_spill] sm:$0xff] }
 0x274   : > { %9960 = vrot.lane.b32.xlu1 %v19763_v49, %s11390_s29  ;;  %v14560_v49 = vld [vmem:[#allocation2 + $0x234] sm:$0xff]  ;;  %v14573_v32 = vld [vmem:[#allocation2 + $0x24c] sm:$0xff]  ;;  %v9472_v38 = vunpack.i.l.bf16 %v19771_v60  ;;  %v9473_v26 = vunpack.i.h.bf16 %v19771_v60  ;;  %v9478_v36 = vunpack.i.h.bf16 %v19773_v48  ;;  %v9477_v61 = vunpack.i.l.bf16 %v19773_v48  ;;  %v14605_v39 = vld [vmem:[#allocation2 + $0x104] sm:$0xff] }
 0x275   : > { %9965 = vrot.lane.b32.xlu0 %v19768_v24, %s11390_s29  ;;  %v14575_v24 = vld [vmem:[#allocation2 + $0x254] sm:$0xff]  ;;  %v19774_v7 = vpack.i.bf16 %v14174_v41, %v14172_v17  ;;  %v14601_v33 = vld [vmem:[#allocation2 + $0x26c] sm:$0xff]  ;;  %19776 = vst [vmem:[#allocation45_spill] sm:$0xff] %v14605_v39  ;;  %v14609_v63 = vsel %vm1712_vm2, %v14295_v29, %v9462_v15  ;;  %v14613_v48 = vsel %vm1712_vm2, %v14299_v20, %v9463_v13  ;;  %v19779_v13 = vld [vmem:[#allocation58_spill] sm:$0xff] }
 0x276   : > { %19770 = vst [vmem:[#allocation18_spill] sm:$0xff] %v14575_v24  ;;  %v14603_v4 = vld [vmem:[#allocation2 + $0x274] sm:$0xff]  ;;  %v14617_v17 = vsel %vm1712_vm2, %v14303_v62, %v9467_v50  ;;  %v19777_v41 = vpack.i.bf16 %v14188_v23, %v14186_v57  ;;  %v14627_v29 = vsel %vm1712_vm2, %v14313_v1, %v9468_v2  ;;  %v9487_v62 = vunpack.i.l.bf16 %v19779_v13  ;;  %v14632_v50 = vpop.permute.xlu1 %9690  ;;  %v14634_v52 = vld [vmem:[#allocation2 + $0x124] sm:$0xff] }
 0x277   : > { %19775 = vst [vmem:[#allocation16_spill] sm:$0xff] %v14603_v4  ;;  %v19778_v15 = vld [vmem:[#allocation77_spill] sm:$0xff]  ;;  %19780 = vst [vmem:[#allocation50_spill] sm:$0xff] %v14632_v50  ;;  %v14638_v23 = vsel %vm1712_vm2, %v14326_v6, %v9472_v38  ;;  %v9488_v57 = vunpack.i.h.bf16 %v19779_v13  ;;  %v14651_v60 = vsel %vm1712_vm2, %v14341_v14, %v9473_v26  ;;  %v14655_v6 = vsel %vm1712_vm2, %v14345_v34, %v9477_v61  ;;  %v19784_v13 = vld [vmem:[#allocation78_spill] sm:$0xff] }
 0x278   : > { %9970 = vrot.lane.b32.xlu1 %v19774_v7, %s11390_s29  ;;  %v9483_v7 = vunpack.i.h.bf16 %v19778_v15  ;;  %v9482_v20 = vunpack.i.l.bf16 %v19778_v15  ;;  %19781 = vst [vmem:[#allocation17_spill] sm:$0xff] %v14634_v52  ;;  %v14647_v15 = vld [vmem:[#allocation2 + $0x144] sm:$0xff]  ;;  %v14659_v38 = vsel %vm1712_vm2, %v14349_v21, %v9478_v36  ;;  %v19785_v2 = vpack.i.bf16 %v14211_v37, %v14202_v46  ;;  %v19788_v61 = vld [vmem:[#allocation48_spill] sm:$0xff]  ;;  %v19796_v46 = vld [vmem:[#allocation21_spill] sm:$0xff] }
 0x279   : > { %9975 = vrot.lane.b32.xlu0 %v19777_v41, %s11390_s29  ;;  %v14641_v41 = vpop.permute.xlu0 %9695  ;;  %19783 = vst [vmem:[#allocation77_spill] sm:$0xff] %v14647_v15  ;;  %v14667_v1 = vld [vmem:[#allocation2 + $0x164] sm:$0xff]  ;;  %v9493_v34 = vunpack.i.h.bf16 %v19784_v13  ;;  %v9498_v26 = vunpack.i.h.bf16 %v19788_v61  ;;  %v9497_v21 = vunpack.i.l.bf16 %v19788_v61  ;;  %v19789_v36 = vld [vmem:[#allocation44_spill] sm:$0xff]  ;;  %v19824_v39 = vld [vmem:[#allocation61_spill] sm:$0xff] }
 0x27a   : > { %19782 = vst [vmem:[#allocation22_spill] sm:$0xff] %v14641_v41  ;;  %v9492_v41 = vunpack.i.l.bf16 %v19784_v13  ;;  %19786 = vst [vmem:[#allocation58_spill] sm:$0xff] %v14667_v1  ;;  %v14669_v14 = vld [vmem:[#allocation2 + $0x184] sm:$0xff]  ;;  %v19790_v50 = vpack.i.bf16 %v14215_v40, %v19789_v36  ;;  %v14682_v37 = vsel %vm1712_vm2, %v14375_v54, %v9482_v20  ;;  %v14690_v13 = vsel %vm1712_vm2, %v14383_v55, %v9487_v62  ;;  %v14692_v61 = vpop.permute.xlu1 %9700  ;;  %v14697_v40 = vld [vmem:[%s18800_s2] ss:$0 sm:$0xff]  ;;  %v8421_v62 = vpop.f32.mrf.mxu0 }
 0x27b   : > { %19787 = vst [vmem:[#allocation78_spill] sm:$0xff] %v14669_v14  ;;  %19791 = vst [vmem:[#allocation48_spill] sm:$0xff] %v14692_v61  ;;  %v14703_v54 = vsel %vm1712_vm2, %v14391_v22, %v9488_v57  ;;  %v14716_v36 = vld [vmem:[#allocation2 + $0x1a4] sm:$0xff]  ;;  %v9507_v61 = vunpack.i.l.bf16 %v19796_v46  ;;  %v19797_v55 = vpack.i.bf16 %v14244_v44, %v14242_v3  ;;  %v14733_v16 = vsel %vm1712_vm2, %v14421_v31, %v9493_v34  ;;  %v19801_v44 = vld [vmem:[#allocation76_spill] sm:$0xff] }
 0x27c   : > { %9980 = vrot.lane.b32.xlu1 %v19785_v2, %s11390_s29  ;;  %v14686_v2 = vsel %vm1712_vm2, %v14379_v18, %v9483_v7  ;;  %v19792_v18 = vld [vmem:[#allocation20_spill] sm:$0xff]  ;;  %v14722_v22 = vsel %vm1712_vm2, %v14404_v43, %v9492_v41  ;;  %v14737_v43 = vsel %vm1712_vm2, %v14425_v58, %v9497_v21  ;;  %v14741_v41 = vsel %vm1712_vm2, %v14429_v53, %v9498_v26  ;;  %v2064_v1 = vpop.f32.mrf.mxu0  ;;  %v14756_v26 = vld [vmem:[#allocation2 + $0x1e4] sm:$0xff]  ;;  %v19825_v24 = vld [vmem:[#allocation57_spill] sm:$0xff] }
 0x27d   : > { %9985 = vrot.lane.b32.xlu0 %v19790_v50, %s11390_s29  ;;  %v9502_v7 = vunpack.i.l.bf16 %v19792_v18  ;;  %v14706_v20 = vpop.permute.xlu0 %9705  ;;  %19794 = vst [vmem:[#allocation20_spill] sm:$0xff] %v14716_v36  ;;  %v14718_v50 = vld [vmem:[#allocation2 + $0x1c4] sm:$0xff]  ;;  %v9503_v57 = vunpack.i.h.bf16 %v19792_v18  ;;  %v2073_v3 = vadd.f32 %v8421_v62, %v14697_v40  ;;  %v9512_v31 = vunpack.i.l.bf16 %v19801_v44 }
 0x27e   : > { %19793 = vst [vmem:[#allocation44_spill] sm:$0xff] %v14706_v20  ;;  %19795 = vst [vmem:[#allocation85_spill] sm:$0xff] %v14718_v50  ;;  %v9508_v20 = vunpack.i.h.bf16 %v19796_v46  ;;  %v19798_v46 = vld [vmem:[#allocation42_spill] sm:$0xff]  ;;  %v19799_v18 = vld [vmem:[#allocation39_spill] sm:$0xff]  ;;  %v14750_v34 = vpop.permute.xlu1 %9710  ;;  %v14774_v53 = vsel %vm1712_vm2, %v14461_v9, %v9507_v61  ;;  %v9532_v4 = vunpack.i.l.bf16 %v19824_v39 }
 0x27f   : > { %v19800_v14 = vpack.i.bf16 %v19798_v46, %v19799_v18  ;;  %19802 = vst [vmem:[#allocation21_spill] sm:$0xff] %v14750_v34  ;;  %19803 = vst [vmem:[#allocation42_spill] sm:$0xff] %v14756_v26  ;;  %v14758_v21 = vld [vmem:[#allocation2 + $0x204] sm:$0xff]  ;;  %v2193_v18 = vmax.f32 %v2073_v3, 0.0  ;;  %v2065_v34 = vadd.f32 %v14697_v40, %v2064_v1  ;;  %v8422_v1 = vpop.f32.mrf.mxu0 }
 0x280   : > { %9990 = vrot.lane.b32.xlu1 %v19797_v55, %s11390_s29  ;;  %v9513_v55 = vunpack.i.h.bf16 %v19801_v44  ;;  %19804 = vst [vmem:[#allocation39_spill] sm:$0xff] %v14758_v21  ;;  %v19805_v62 = vld [vmem:[#allocation26_spill] sm:$0xff]  ;;  %v19807_v15 = vld [vmem:[#allocation15_spill] sm:$0xff] }
 0x281   : > { %9995 = vrot.lane.b32.xlu0 %v19800_v14, %s11390_s29  ;;  %v14762_v14 = vsel %vm1712_vm2, %v14453_v5, %v9502_v7  ;;  %v9517_v46 = vunpack.i.l.bf16 %v19805_v62  ;;  %v14765_v44 = vpop.permute.xlu0 %9715  ;;  %v14770_v58 = vsel %vm1712_vm2, %v19807_v15, %v9503_v57  ;;  %v19808_v50 = vld [vmem:[#allocation30_spill] sm:$0xff]  ;;  %v9518_v5 = vunpack.i.h.bf16 %v19805_v62  ;;  %v19809_v7 = vld [vmem:[#allocation81_spill] sm:$0xff]  ;;  %v19810_v3 = vld [vmem:[#allocation47_spill] sm:$0xff]  ;;  %2225 = vst [vmem:[%s14786_s24 + $0x10] sm:$0xff] %v2193_v18 }
 0x282   : > { %19806 = vst [vmem:[#allocation76_spill] sm:$0xff] %v14765_v44  ;;  %v14778_v36 = vsel %vm1712_vm2, %v19808_v50, %v9508_v20  ;;  %v19811_v44 = vpack.i.bf16 %v19809_v7, %v19810_v3  ;;  %v2191_v15 = vmax.f32 %v2065_v34, 0.0  ;;  %v19812_v9 = vld [vmem:[#allocation54_spill] sm:$0xff]  ;;  %v2076_v50 = vadd.f32 %v8422_v1, %v14697_v40  ;;  %v19816_v7 = vld [vmem:[#allocation73_spill] sm:$0xff]  ;;  %v2067_v20 = vpop.f32.mrf.mxu0  ;;  %v19822_v21 = vld [vmem:[#allocation75_spill] sm:$0xff] }
 0x283   : > { %v19813_v61 = vld [vmem:[#allocation82_spill] sm:$0xff]  ;;  %v14802_v18 = vsel %vm1712_vm2, %v19816_v7, %v9512_v31  ;;  %v14806_v34 = vsel %vm1712_vm2, %v14501_v30, %v9513_v55  ;;  %v19817_v3 = vld [vmem:[#allocation49_spill] sm:$0xff]  ;;  %v14816_v62 = vsel %vm1712_vm2, %v14505_v45, %v9517_v46  ;;  %v2068_v55 = vadd.f32 %v14697_v40, %v2067_v20  ;;  %v19826_v45 = vld [vmem:[#allocation56_spill] sm:$0xff] }
 0x284   : > { %10000 = vrot.lane.b32.xlu1 %v19811_v44, %s11390_s29  ;;  %v19814_v57 = vpack.i.bf16 %v19812_v9, %v19813_v61  ;;  %v14798_v44 = vld [vmem:[#allocation2 + $0x224] sm:$0xff]  ;;  %v9522_v9 = vunpack.i.l.bf16 %v19817_v3  ;;  %2223 = vst [vmem:[%s14786_s24] sm:$0xff] %v2191_v15  ;;  %v2194_v7 = vmax.f32 %v2076_v50, 0.0  ;;  %v14825_v52 = vsel %vm1712_vm2, %v19822_v21, %v9518_v5 }
 0x285   : > { %19815 = vst [vmem:[#allocation26_spill] sm:$0xff] %v14798_v44  ;;  %v19818_v61 = vld [vmem:[#allocation62_spill] sm:$0xff]  ;;  %v14820_v30 = vpop.permute.xlu0 %9725  ;;  %19823 = vst [vmem:[#allocation47_spill] sm:$0xff] %v14825_v52  ;;  %v19827_v46 = vpack.i.bf16 %v19825_v24, %v19826_v45  ;;  %v9533_v20 = vunpack.i.h.bf16 %v19824_v39  ;;  %v2192_v21 = vmax.f32 %v2068_v55, 0.0  ;;  %v19829_v5 = vld [vmem:[#allocation83_spill] sm:$0xff] }
 0x286   : > { %10005 = vrot.lane.b32.xlu0 %v19814_v57, %s11391_s30  ;;  %v9527_v1 = vunpack.i.l.bf16 %v19818_v61  ;;  %v14810_v57 = vpop.permute.xlu1 %9720  ;;  %v14812_v26 = vld [vmem:[#allocation2 + $0x244] sm:$0xff]  ;;  %v9528_v31 = vunpack.i.h.bf16 %v19818_v61  ;;  %19821 = vst [vmem:[#allocation81_spill] sm:$0xff] %v14820_v30  ;;  %v8425_v61 = vpop.f32.mrf.mxu0  ;;  %2226 = vst [vmem:[%s14786_s24 + $0x18] sm:$0xff] %v2194_v7  ;;  %v19835_v7 = vld [vmem:[#allocation52_spill] sm:$0xff] }
 0x287   : > { %19819 = vst [vmem:[#allocation15_spill] sm:$0xff] %v14810_v57  ;;  %19820 = vst [vmem:[#allocation30_spill] sm:$0xff] %v14812_v26  ;;  %v14835_v50 = vld [vmem:[#allocation2 + $0x264] sm:$0xff]  ;;  %v19830_v57 = vld [vmem:[#allocation60_spill] sm:$0xff]  ;;  %v2089_v30 = vadd.f32 %v8425_v61, %v14697_v40  ;;  %v9538_v55 = vunpack.i.h.bf16 %v19835_v7 }
 0x288   : > { %10010 = vrot.lane.b32.xlu1 %v19827_v46, %s11391_s30  ;;  %19828 = vst [vmem:[#allocation54_spill] sm:$0xff] %v14835_v50  ;;  %v19831_v3 = vpack.i.bf16 %v19829_v5, %v19830_v57  ;;  %v4340_v45 = vld [vmem:[#allocation2 + $0x284] sm:$0xff]  ;;  %v4341_v46 = vld [vmem:[#allocation2 + $0x28c] sm:$0xff]  ;;  %v9537_v57 = vunpack.i.l.bf16 %v19835_v7  ;;  %v2080_v61 = vpop.f32.mrf.mxu0  ;;  %v14860_v5 = vsel %vm1745_vm3, %v14549_v0, %v9528_v31  ;;  %2224 = vst [vmem:[%s14786_s24 + $0x8] sm:$0xff] %v2192_v21 }
 0x289   : > { %v19832_v15 = vld [vmem:[#allocation51_spill] sm:$0xff]  ;;  %v2197_v24 = vmax.f32 %v2089_v30, 0.0  ;;  %v14870_v7 = vsel %vm1745_vm3, %v14564_v10, %v9532_v4  ;;  %v19840_v31 = vld [vmem:[#allocation29_spill] sm:$0xff] }
 0x28a   : > { %10015 = vrot.lane.b32.xlu0 %v19831_v3, %s11391_s30  ;;  %v14848_v44 = vsel %vm1712_vm2, %v19832_v15, %v9522_v9  ;;  %v19834_v52 = vld [vmem:[#allocation11_spill] sm:$0xff]  ;;  %v14856_v3 = vpop.permute.xlu1 %9730  ;;  %v14863_v9 = vpop.permute.xlu0 %9735  ;;  %v2081_v15 = vadd.f32 %v14697_v40, %v2080_v61  ;;  %19838 = vst [vmem:[#allocation75_spill] sm:$0xff] %v14870_v7  ;;  %v14878_v61 = vpack.i.bf16 %v4341_v46, %v4340_v45  ;;  %v19845_v7 = vld [vmem:[#allocation84_spill] sm:$0xff] }
 0x28b   : > { %19833 = vst [vmem:[#allocation82_spill] sm:$0xff] %v14848_v44  ;;  %v14852_v39 = vsel %vm1745_vm3, %v19834_v52, %v9527_v1  ;;  %19836 = vst [vmem:[#allocation73_spill] sm:$0xff] %v14856_v3  ;;  %v4342_v1 = vld [vmem:[#allocation2 + $0x2a4] sm:$0xff]  ;;  %v4343_v44 = vld [vmem:[#allocation2 + $0x2ac] sm:$0xff]  ;;  %v14882_v52 = vsel %vm1745_vm3, %v14579_v25, %v9533_v20  ;;  %v14893_v45 = vsel %vm1745_vm3, %v14583_v11, %v9537_v57 }
 0x28c   : > { %19837 = vst [vmem:[#allocation62_spill] sm:$0xff] %v14863_v9  ;;  %v19839_v3 = vld [vmem:[#allocation79_spill] sm:$0xff]  ;;  %v8426_v9 = vpop.f32.mrf.mxu0  ;;  %19843 = vst [vmem:[#allocation61_spill] sm:$0xff] %v14878_v61  ;;  %v2195_v4 = vmax.f32 %v2081_v15, 0.0  ;;  %v14897_v25 = vsel %vm1745_vm3, %v14587_v47, %v9538_v55  ;;  %v14902_v15 = vpack.i.bf16 %v4343_v44, %v4342_v1  ;;  %v19851_v1 = vld [vmem:[#allocation24_spill] sm:$0xff] }
 0x28d   : > { %v9543_v26 = vunpack.i.h.bf16 %v19839_v3  ;;  %v9542_v0 = vunpack.i.l.bf16 %v19839_v3  ;;  %v19841_v30 = vld [vmem:[#allocation31_spill] sm:$0xff]  ;;  %2229 = vst [vmem:[%s14786_s24 + $0x30] sm:$0xff] %v2197_v24  ;;  %v19846_v3 = vpack.i.bf16 %v19845_v7, %v14369_v19  ;;  %v19849_v7 = vld [vmem:[#allocation80_spill] sm:$0xff] }
 0x28e   : > { %v19842_v21 = vpack.i.bf16 %v19840_v31, %v19841_v30  ;;  %v19844_v50 = vld [vmem:[#allocation27_spill] sm:$0xff]  ;;  %v2092_v31 = vadd.f32 %v8426_v9, %v14697_v40  ;;  %v14900_v24 = vpop.permute.xlu1 %9740  ;;  %v2083_v46 = vpop.f32.mrf.mxu0  ;;  %19848 = vst [vmem:[#allocation56_spill] sm:$0xff] %v14902_v15  ;;  %v9552_v9 = vunpack.i.l.bf16 %v19849_v7  ;;  %2227 = vst [vmem:[%s14786_s24 + $0x20] sm:$0xff] %v2195_v4 }
 0x28f   : > { %v9547_v10 = vunpack.i.l.bf16 %v19844_v50  ;;  %10025 = vrot.lane.b32.xlu0 %v19846_v3, %s11391_s30  ;;  %v4344_v30 = vld [vmem:[#allocation2 + $0x2c4] sm:$0xff]  ;;  %v9548_v20 = vunpack.i.h.bf16 %v19844_v50  ;;  %19847 = vst [vmem:[#allocation57_spill] sm:$0xff] %v14900_v24  ;;  %v9553_v3 = vunpack.i.h.bf16 %v19849_v7  ;;  %v14907_v11 = vpop.permute.xlu0 %9745  ;;  %v2084_v57 = vadd.f32 %v14697_v40, %v2083_v46  ;;  %v4347_v55 = vld [vmem:[#allocation2 + $0x2ec] sm:$0xff] }
 0x290   : > { %10020 = vrot.lane.b32.xlu1 %v19842_v21, %s11391_s30  ;;  %v4345_v21 = vld [vmem:[#allocation2 + $0x2cc] sm:$0xff]  ;;  %v2198_v61 = vmax.f32 %v2092_v31, 0.0  ;;  %19850 = vst [vmem:[#allocation83_spill] sm:$0xff] %v14907_v11  ;;  %v4346_v47 = vld [vmem:[#allocation2 + $0x2e4] sm:$0xff]  ;;  %v14912_v50 = vsel %vm1745_vm3, %v14609_v63, %v9542_v0  ;;  %v14916_v44 = vsel %vm1745_vm3, %v14613_v48, %v9543_v26  ;;  %v9557_v24 = vunpack.i.l.bf16 %v19851_v1  ;;  %v8429_v31 = vpop.f32.mrf.mxu0 }
 0x291   : > { %v19852_v7 = vld [vmem:[#allocation34_spill] sm:$0xff]  ;;  %v14923_v11 = vpack.i.bf16 %v4345_v21, %v4344_v30  ;;  %v14927_v46 = vsel %vm1745_vm3, %v14617_v17, %v9547_v10  ;;  %v9558_v63 = vunpack.i.h.bf16 %v19851_v1  ;;  %v2196_v48 = vmax.f32 %v2084_v57, 0.0  ;;  %v14938_v30 = vld [vmem:[#allocation2 + $0x110] sm:$0xff]  ;;  %v19859_v10 = vld [vmem:[#allocation25_spill] sm:$0xff] }
 0x292   : > { %v19853_v4 = vpack.i.bf16 %v19852_v7, %v14398_v27  ;;  %2230 = vst [vmem:[%s14786_s24 + $0x38] sm:$0xff] %v2198_v61  ;;  %v19855_v26 = vld [vmem:[#allocation70_spill] sm:$0xff]  ;;  %v2105_v7 = vadd.f32 %v8429_v31, %v14697_v40  ;;  %19858 = vst [vmem:[#allocation11_spill] sm:$0xff] %v14938_v30  ;;  %v14942_v17 = vsel %vm1745_vm3, %v14627_v29, %v9548_v20  ;;  %v9563_v21 = vunpack.i.h.bf16 %v19859_v10  ;;  %v14946_v57 = vpop.permute.xlu1 %9750  ;;  %v2096_v1 = vpop.f32.mrf.mxu0  ;;  %v14952_v31 = vld [vmem:[#allocation2 + $0x130] sm:$0xff] }
 0x293   : > { %19854 = vst [vmem:[#allocation60_spill] sm:$0xff] %v14923_v11  ;;  %v19856_v0 = vpack.i.bf16 %v19855_v26, %v14415_v51  ;;  %v9562_v61 = vunpack.i.l.bf16 %v19859_v10  ;;  %19860 = vst [vmem:[#allocation52_spill] sm:$0xff] %v14946_v57  ;;  %v14948_v11 = vpack.i.bf16 %v4347_v55, %v4346_v47  ;;  %v14950_v26 = vld [vmem:[#allocation2 + $0x128] sm:$0xff]  ;;  %v14960_v29 = vsel %vm1745_vm3, %v14651_v60, %v9553_v3  ;;  %v14963_v10 = vpop.permute.xlu0 %9755  ;;  %v19865_v57 = vld [vmem:[#allocation28_spill] sm:$0xff] }
 0x294   : > { %10030 = vrot.lane.b32.xlu1 %v19853_v4, %s11391_s30  ;;  %v14936_v4 = vld [vmem:[#allocation2 + $0x108] sm:$0xff]  ;;  %19862 = vst [vmem:[#allocation29_spill] sm:$0xff] %v14950_v26  ;;  %19863 = vst [vmem:[#allocation31_spill] sm:$0xff] %v14952_v31  ;;  %v2201_v20 = vmax.f32 %v2105_v7, 0.0  ;;  %v2097_v47 = vadd.f32 %v14697_v40, %v2096_v1  ;;  %v14968_v55 = vsel %vm1745_vm3, %v14655_v6, %v9557_v24  ;;  %v9567_v15 = vunpack.i.l.bf16 %v19865_v57  ;;  %v8430_v60 = vpop.f32.mrf.mxu0  ;;  %v14980_v7 = vld [vmem:[#allocation2 + $0x150] sm:$0xff] }
 0x295   : > { %10035 = vrot.lane.b32.xlu0 %v19856_v0, %s11391_s30  ;;  %19857 = vst [vmem:[#allocation51_spill] sm:$0xff] %v14936_v4  ;;  %19861 = vst [vmem:[#allocation79_spill] sm:$0xff] %v14948_v11  ;;  %v14956_v0 = vsel %vm1745_vm3, %v14638_v23, %v9552_v9  ;;  %v9568_v11 = vunpack.i.h.bf16 %v19865_v57  ;;  %v19866_v23 = vld [vmem:[#allocation43_spill] sm:$0xff]  ;;  %v14984_v6 = vsel %vm1745_vm3, %v14659_v38, %v9558_v63  ;;  %v19870_v57 = vld [vmem:[#allocation33_spill] sm:$0xff] }
 0x296   : > { %2228 = vst [vmem:[%s14786_s24 + $0x28] sm:$0xff] %v2196_v48  ;;  %19864 = vst [vmem:[#allocation27_spill] sm:$0xff] %v14963_v10  ;;  %v19867_v9 = vpack.i.bf16 %v19866_v23, %v14436_v8  ;;  %v14978_v48 = vld [vmem:[#allocation2 + $0x148] sm:$0xff]  ;;  %v2199_v24 = vmax.f32 %v2097_v47, 0.0  ;;  %v19871_v1 = vpack.i.bf16 %v19870_v57, %v14447_v35  ;;  %v2108_v23 = vadd.f32 %v8430_v60, %v14697_v40  ;;  %v14996_v10 = vld [vmem:[#allocation2 + $0x170] sm:$0xff]  ;;  %v15008_v60 = vpop.permute.xlu1 %9760 }
 0x297   : > { %19868 = vst [vmem:[#allocation84_spill] sm:$0xff] %v14978_v48  ;;  %19869 = vst [vmem:[#allocation80_spill] sm:$0xff] %v14980_v7  ;;  %v14994_v3 = vld [vmem:[#allocation2 + $0x168] sm:$0xff]  ;;  %v15000_v38 = vsel %vm1745_vm3, %v14682_v37, %v9562_v61  ;;  %v15004_v63 = vsel %vm1745_vm3, %v14686_v2, %v9563_v21  ;;  %v15012_v4 = vpop.permute.xlu0 %9765  ;;  %v4357_v61 = vld [vmem:[#allocation2 + $0x190] sm:$0xff] }
 0x298   : > { %10040 = vrot.lane.b32.xlu1 %v19867_v9, %s11391_s30  ;;  %2233 = vst [vmem:[%s14786_s24 + $0x50] sm:$0xff] %v2201_v20  ;;  %19872 = vst [vmem:[#allocation24_spill] sm:$0xff] %v14994_v3  ;;  %v19874_v20 = vld [vmem:[#allocation68_spill] sm:$0xff]  ;;  %v19876_v9 = vld [vmem:[#allocation63_spill] sm:$0xff]  ;;  %v2202_v31 = vmax.f32 %v2108_v23, 0.0 }
 0x299   : > { %10045 = vrot.lane.b32.xlu0 %v19871_v1, %s11391_s30  ;;  %19873 = vst [vmem:[#allocation34_spill] sm:$0xff] %v14996_v10  ;;  %v9573_v47 = vunpack.i.h.bf16 %v19874_v20  ;;  %v9572_v57 = vunpack.i.l.bf16 %v19874_v20  ;;  %19875 = vst [vmem:[#allocation70_spill] sm:$0xff] %v15008_v60  ;;  %v2099_v1 = vpop.f32.mrf.mxu0  ;;  %v9577_v26 = vunpack.i.l.bf16 %v19876_v9  ;;  %v4356_v21 = vld [vmem:[#allocation2 + $0x188] sm:$0xff]  ;;  %v15019_v20 = vsel %vm1745_vm3, %v14690_v13, %v9567_v15  ;;  %v19878_v23 = vld [vmem:[#allocation53_spill] sm:$0xff] }
 0x29a   : > { %2231 = vst [vmem:[%s14786_s24 + $0x40] sm:$0xff] %v2199_v24  ;;  %v2100_v37 = vadd.f32 %v14697_v40, %v2099_v1  ;;  %v15023_v60 = vsel %vm1745_vm3, %v14703_v54, %v9568_v11  ;;  %v9578_v24 = vunpack.i.h.bf16 %v19876_v9  ;;  %v19879_v30 = vpack.i.bf16 %v19878_v23, %v14478_v28  ;;  %v19880_v48 = vld [vmem:[#allocation65_spill] sm:$0xff]  ;;  %2234 = vst [vmem:[%s14786_s24 + $0x58] sm:$0xff] %v2202_v31  ;;  %v19881_v54 = vld [vmem:[#allocation74_spill] sm:$0xff] }
 0x29b   : > { %19877 = vst [vmem:[#allocation25_spill] sm:$0xff] %v15023_v60  ;;  %v8433_v1 = vpop.f32.mrf.mxu0  ;;  %v9583_v7 = vunpack.i.h.bf16 %v19880_v48  ;;  %v9582_v13 = vunpack.i.l.bf16 %v19880_v48  ;;  %v19882_v11 = vpack.i.bf16 %v19881_v54, %v14495_v59  ;;  %v4358_v23 = vld [vmem:[#allocation2 + $0x1a8] sm:$0xff]  ;;  %v15042_v60 = vsel %vm1745_vm3, %v14722_v22, %v9572_v57  ;;  %v19884_v48 = vld [vmem:[#allocation64_spill] sm:$0xff]  ;;  %v15059_v57 = vpop.permute.xlu0 %9775 }
 0x29c   : > { %10050 = vrot.lane.b32.xlu1 %v19879_v30, %s11391_s30  ;;  %v2200_v15 = vmax.f32 %v2100_v37, 0.0  ;;  %v2121_v9 = vadd.f32 %v8433_v1, %v14697_v40  ;;  %v4359_v30 = vld [vmem:[#allocation2 + $0x1b0] sm:$0xff]  ;;  %v15046_v2 = vsel %vm1745_vm3, %v14733_v16, %v9573_v47  ;;  %v9587_v31 = vunpack.i.l.bf16 %v19884_v48  ;;  %v15049_v37 = vpop.permute.xlu1 %9770  ;;  %v4360_v47 = vld [vmem:[#allocation2 + $0x1c8] sm:$0xff] }
 0x29d   : > { %10055 = vrot.lane.b32.xlu0 %v19882_v11, %s11391_s30  ;;  %19883 = vst [vmem:[#allocation28_spill] sm:$0xff] %v15046_v2  ;;  %v2112_v3 = vpop.f32.mrf.mxu0  ;;  %v15051_v10 = vpack.i.bf16 %v4357_v61, %v4356_v21  ;;  %v15055_v1 = vsel %vm1745_vm3, %v14737_v43, %v9577_v26  ;;  %v9588_v54 = vunpack.i.h.bf16 %v19884_v48  ;;  %v4361_v11 = vld [vmem:[#allocation2 + $0x1d0] sm:$0xff]  ;;  %v15064_v2 = vsel %vm1745_vm3, %v14741_v41, %v9578_v24  ;;  %v19888_v21 = vld [vmem:[#allocation6_spill] sm:$0xff]  ;;  %v19889_v26 = vld [vmem:[#allocation67_spill] sm:$0xff] }
 0x29e   : > { %19886 = vst [vmem:[#allocation33_spill] sm:$0xff] %v15055_v1  ;;  %2232 = vst [vmem:[%s14786_s24 + $0x48] sm:$0xff] %v2200_v15  ;;  %v2205_v22 = vmax.f32 %v2121_v9, 0.0  ;;  %v2113_v16 = vadd.f32 %v14697_v40, %v2112_v3  ;;  %v9593_v61 = vunpack.i.h.bf16 %v19888_v21  ;;  %v9592_v43 = vunpack.i.l.bf16 %v19888_v21  ;;  %v4362_v1 = vld [vmem:[#allocation2 + $0x1e8] sm:$0xff]  ;;  %v4363_v3 = vld [vmem:[#allocation2 + $0x1f0] sm:$0xff] }
 0x29f   : > { %19885 = vst [vmem:[#allocation43_spill] sm:$0xff] %v15051_v10  ;;  %19887 = vst [vmem:[#allocation68_spill] sm:$0xff] %v15064_v2  ;;  %v19890_v15 = vpack.i.bf16 %v19889_v26, %v14514_v12  ;;  %v8434_v9 = vpop.f32.mrf.mxu0  ;;  %v15072_v48 = vpack.i.bf16 %v4359_v30, %v4358_v23  ;;  %v15076_v10 = vsel %vm1745_vm3, %v14762_v14, %v9582_v13  ;;  %v19894_v21 = vld [vmem:[#allocation13_spill] sm:$0xff] }
 0x2a0   : > { %19892 = vst [vmem:[#allocation53_spill] sm:$0xff] %v15076_v10  ;;  %v15080_v41 = vsel %vm1745_vm3, %v14770_v58, %v9583_v7  ;;  %2237 = vst [vmem:[%s14786_s24 + $0x70] sm:$0xff] %v2205_v22  ;;  %v2203_v24 = vmax.f32 %v2113_v16, 0.0  ;;  %v19895_v26 = vpack.i.bf16 %v19894_v21, %v14525_v42  ;;  %v2124_v23 = vadd.f32 %v8434_v9, %v14697_v40  ;;  %v15094_v10 = vpop.permute.xlu1 %9780  ;;  %v4364_v22 = vld [vmem:[#allocation2 + $0x208] sm:$0xff]  ;;  %v15103_v21 = vpop.permute.xlu0 %9785 }
 0x2a1   : > { %10060 = vrot.lane.b32.xlu1 %v19890_v15, %s11391_s30  ;;  %19891 = vst [vmem:[#allocation63_spill] sm:$0xff] %v15072_v48  ;;  %19893 = vst [vmem:[#allocation65_spill] sm:$0xff] %v15080_v41  ;;  %v15090_v30 = vsel %vm1745_vm3, %v14774_v53, %v9587_v31  ;;  %v19897_v15 = vld [vmem:[#allocation8_spill] sm:$0xff]  ;;  %v2115_v58 = vpop.f32.mrf.mxu0  ;;  %v15096_v7 = vpack.i.bf16 %v4361_v11, %v4360_v47  ;;  %v15100_v16 = vsel %vm1745_vm3, %v14778_v36, %v9588_v54  ;;  %v19903_v54 = vld [vmem:[#allocation7_spill] sm:$0xff] }
 0x2a2   : > { %10065 = vrot.lane.b32.xlu0 %v19895_v26, %s11391_s30  ;;  %19896 = vst [vmem:[#allocation74_spill] sm:$0xff] %v15090_v30  ;;  %v9598_v14 = vunpack.i.h.bf16 %v19897_v15  ;;  %v9597_v13 = vunpack.i.l.bf16 %v19897_v15  ;;  %19899 = vst [vmem:[#allocation6_spill] sm:$0xff] %v15100_v16  ;;  %v2206_v9 = vmax.f32 %v2124_v23, 0.0  ;;  %v2116_v53 = vadd.f32 %v14697_v40, %v2115_v58  ;;  %v4365_v26 = vld [vmem:[#allocation2 + $0x210] sm:$0xff]  ;;  %v4366_v15 = vld [vmem:[#allocation2 + $0x228] sm:$0xff] }
 0x2a3   : > { %19898 = vst [vmem:[#allocation64_spill] sm:$0xff] %v15096_v7  ;;  %2235 = vst [vmem:[%s14786_s24 + $0x60] sm:$0xff] %v2203_v24  ;;  %v15106_v31 = vpack.i.bf16 %v4363_v3, %v4362_v1  ;;  %v4367_v30 = vld [vmem:[#allocation2 + $0x230] sm:$0xff]  ;;  %v15110_v47 = vsel %vm1745_vm3, %v14802_v18, %v9592_v43  ;;  %v15114_v36 = vsel %vm1745_vm3, %v14806_v34, %v9593_v61  ;;  %v9608_v11 = vunpack.i.h.bf16 %v19903_v54  ;;  %v8437_v3 = vpop.f32.mrf.mxu0  ;;  %v4368_v23 = vld [vmem:[#allocation2 + $0x248] sm:$0xff] }
 0x2a4   : > { %19901 = vst [vmem:[#allocation13_spill] sm:$0xff] %v15110_v47  ;;  %19902 = vst [vmem:[#allocation8_spill] sm:$0xff] %v15114_v36  ;;  %v9607_v24 = vunpack.i.l.bf16 %v19903_v54  ;;  %v19904_v1 = vpack.i.bf16 %v14560_v49, %v14558_v56  ;;  %v4369_v58 = vld [vmem:[#allocation2 + $0x250] sm:$0xff]  ;;  %v19905_v16 = vld [vmem:[#allocation9_spill] sm:$0xff]  ;;  %v2204_v34 = vmax.f32 %v2116_v53, 0.0  ;;  %v2137_v54 = vadd.f32 %v8437_v3, %v14697_v40  ;;  %v15146_v2 = vpop.permute.xlu0 %9795 }
 0x2a5   : > { %19900 = vst [vmem:[#allocation67_spill] sm:$0xff] %v15106_v31  ;;  %v9613_v18 = vunpack.i.h.bf16 %v19905_v16  ;;  %v9612_v43 = vunpack.i.l.bf16 %v19905_v16  ;;  %2238 = vst [vmem:[%s14786_s24 + $0x78] sm:$0xff] %v2206_v9  ;;  %v19906_v61 = vld [vmem:[#allocation18_spill] sm:$0xff]  ;;  %v4370_v47 = vld [vmem:[#allocation2 + $0x268] sm:$0xff]  ;;  %v15138_v16 = vpop.permute.xlu1 %9790  ;;  %v2128_v9 = vpop.f32.mrf.mxu0  ;;  %v15140_v53 = vpack.i.bf16 %v4365_v26, %v4364_v22  ;;  %v15142_v7 = vpack.i.bf16 %v4367_v30, %v4366_v15 }
 0x2a6   : > { %10070 = vrot.lane.b32.xlu1 %v19904_v1, %s11391_s30  ;;  %v19907_v36 = vpack.i.bf16 %v19906_v61, %v14573_v32  ;;  %v4371_v49 = vld [vmem:[#allocation2 + $0x270] sm:$0xff]  ;;  %v15132_v1 = vsel %vm1745_vm3, %v14816_v62, %v9597_v13  ;;  %v19909_v41 = vld [vmem:[#allocation47_spill] sm:$0xff]  ;;  %2236 = vst [vmem:[%s14786_s24 + $0x68] sm:$0xff] %v2204_v34  ;;  %v2209_v3 = vmax.f32 %v2137_v54, 0.0  ;;  %v2129_v62 = vadd.f32 %v14697_v40, %v2128_v9 }
 0x2a7   : > { %19908 = vst [vmem:[#allocation7_spill] sm:$0xff] %v15132_v1  ;;  %v15136_v31 = vsel %vm1745_vm3, %v19909_v41, %v9598_v14  ;;  %19911 = vst [vmem:[#allocation18_spill] sm:$0xff] %v15140_v53  ;;  %v15149_v13 = vpack.i.bf16 %v4369_v58, %v4368_v23  ;;  %v4372_v41 = vld [vmem:[#allocation2 + $0x288] sm:$0xff]  ;;  %v4373_v14 = vld [vmem:[#allocation2 + $0x290] sm:$0xff]  ;;  %v15157_v30 = vsel %vm1778_vm4, %v14860_v5, %v9608_v11  ;;  %v8438_v34 = vpop.f32.mrf.mxu0 }
 0x2a8   : > { %10075 = vrot.lane.b32.xlu0 %v19907_v36, %s11391_s30  ;;  %19910 = vst [vmem:[#allocation9_spill] sm:$0xff] %v15136_v31  ;;  %19912 = vst [vmem:[#allocation47_spill] sm:$0xff] %v15142_v7  ;;  %v19913_v36 = vld [vmem:[#allocation23_spill] sm:$0xff]  ;;  %v15153_v31 = vsel %vm1778_vm4, %v14852_v39, %v9607_v24  ;;  %v19915_v26 = vld [vmem:[#allocation16_spill] sm:$0xff]  ;;  %v15164_v23 = vpack.i.bf16 %v4371_v49, %v4370_v47  ;;  %v15172_v39 = vsel %vm1778_vm4, %v14882_v52, %v9613_v18 }
 0x2a9   : > { %v9617_v61 = vunpack.i.l.bf16 %v19913_v36  ;;  %19914 = vst [vmem:[#allocation23_spill] sm:$0xff] %v15149_v13  ;;  %v9618_v22 = vunpack.i.h.bf16 %v19913_v36  ;;  %v19916_v15 = vpack.i.bf16 %v19915_v26, %v14601_v33  ;;  %v19918_v58 = vld [vmem:[#allocation75_spill] sm:$0xff]  ;;  %2241 = vst [vmem:[%s14786_s24 + $0x90] sm:$0xff] %v2209_v3  ;;  %v2207_v5 = vmax.f32 %v2129_v62, 0.0  ;;  %v19919_v11 = vld [vmem:[#allocation45_spill] sm:$0xff] }
 0x2aa   : > { %19917 = vst [vmem:[#allocation16_spill] sm:$0xff] %v15164_v23  ;;  %v15168_v54 = vsel %vm1778_vm4, %v19918_v58, %v9612_v43  ;;  %v19920_v24 = vpack.i.bf16 %v14369_v19, %v19919_v11  ;;  %v2140_v9 = vadd.f32 %v8438_v34, %v14697_v40  ;;  %v19921_v47 = vld [vmem:[#allocation19_spill] sm:$0xff]  ;;  %v19922_v43 = vld [vmem:[#allocation41_spill] sm:$0xff]  ;;  %v2131_v58 = vpop.f32.mrf.mxu0  ;;  %v15185_v52 = vpack.i.bf16 %v4373_v14, %v4372_v41  ;;  %v4375_v3 = vld [vmem:[#allocation2 + $0x2b0] sm:$0xff] }
 0x2ab   : > { %10080 = vrot.lane.b32.xlu1 %v19916_v15, %s11391_s30  ;;  %v9623_v49 = vunpack.i.h.bf16 %v19921_v47  ;;  %v9622_v36 = vunpack.i.l.bf16 %v19921_v47  ;;  %v9627_v26 = vunpack.i.l.bf16 %v19922_v43  ;;  %v15183_v15 = vpop.permute.xlu1 %9800  ;;  %v4374_v18 = vld [vmem:[#allocation2 + $0x2a8] sm:$0xff]  ;;  %v15189_v62 = vsel %vm1778_vm4, %v14893_v45, %v9617_v61  ;;  %2239 = vst [vmem:[%s14786_s24 + $0x80] sm:$0xff] %v2207_v5  ;;  %v4377_v23 = vld [vmem:[#allocation2 + $0x2d0] sm:$0xff]  ;;  %v19927_v61 = vld [vmem:[#allocation46_spill] sm:$0xff] }
 0x2ac   : > { %10085 = vrot.lane.b32.xlu0 %v19920_v24, %s11392_s4  ;;  %19923 = vst [vmem:[#allocation75_spill] sm:$0xff] %v15183_v15  ;;  %19924 = vst [vmem:[#allocation45_spill] sm:$0xff] %v15185_v52  ;;  %v9628_v11 = vunpack.i.h.bf16 %v19922_v43  ;;  %v2210_v34 = vmax.f32 %v2140_v9, 0.0  ;;  %v15193_v24 = vpop.permute.xlu0 %9805  ;;  %v2132_v47 = vadd.f32 %v14697_v40, %v2131_v58  ;;  %v4376_v1 = vld [vmem:[#allocation2 + $0x2c8] sm:$0xff]  ;;  %v15198_v41 = vsel %vm1778_vm4, %v14897_v25, %v9618_v22  ;;  %v19926_v14 = vld [vmem:[#allocation36_spill] sm:$0xff]  ;;  %v8441_v43 = vpop.f32.mrf.mxu0 }
 0x2ad   : > { %19925 = vst [vmem:[#allocation19_spill] sm:$0xff] %v15193_v24  ;;  %v9633_v52 = vunpack.i.h.bf16 %v19926_v14  ;;  %v9632_v45 = vunpack.i.l.bf16 %v19926_v14  ;;  %v9637_v13 = vunpack.i.l.bf16 %v19927_v61  ;;  %v19928_v5 = vld [vmem:[#allocation17_spill] sm:$0xff]  ;;  %v4378_v7 = vld [vmem:[#allocation2 + $0x2e8] sm:$0xff]  ;;  %v4379_v58 = vld [vmem:[#allocation2 + $0x2f0] sm:$0xff]  ;;  %v9638_v53 = vunpack.i.h.bf16 %v19927_v61 }
 0x2ae   : > { %v19929_v9 = vpack.i.bf16 %v14398_v27, %v19928_v5  ;;  %2242 = vst [vmem:[%s14786_s24 + $0x98] sm:$0xff] %v2210_v34  ;;  %v2208_v25 = vmax.f32 %v2132_v47, 0.0  ;;  %v19930_v22 = vld [vmem:[#allocation77_spill] sm:$0xff]  ;;  %v2153_v14 = vadd.f32 %v8441_v43, %v14697_v40  ;;  %v15214_v24 = vpack.i.bf16 %v4375_v3, %v4374_v18  ;;  %v19938_v43 = vld [vmem:[#allocation14_spill] sm:$0xff]  ;;  %v19942_v19 = vld [vmem:[#allocation20_spill] sm:$0xff] }
 0x2af   : > { %v19931_v48 = vpack.i.bf16 %v14415_v51, %v19930_v22  ;;  %v15216_v15 = vld [vmem:[#allocation2 + $0x114] sm:$0xff]  ;;  %v15220_v5 = vsel %vm1778_vm4, %v14912_v50, %v9622_v36  ;;  %v15224_v61 = vsel %vm1778_vm4, %v14916_v44, %v9623_v49  ;;  %v15228_v34 = vsel %vm1778_vm4, %v14927_v46, %v9627_v26  ;;  %v15230_v47 = vpop.permute.xlu1 %9810 }
 0x2b0   : > { %10090 = vrot.lane.b32.xlu1 %v19929_v9, %s11392_s4  ;;  %19932 = vst [vmem:[#allocation41_spill] sm:$0xff] %v15216_v15  ;;  %v15232_v18 = vpack.i.bf16 %v4377_v23, %v4376_v1  ;;  %v15236_v3 = vsel %vm1778_vm4, %v14942_v17, %v9628_v11  ;;  %2240 = vst [vmem:[%s14786_s24 + $0x88] sm:$0xff] %v2208_v25  ;;  %v2213_v50 = vmax.f32 %v2153_v14, 0.0  ;;  %v15239_v36 = vpop.permute.xlu0 %9815  ;;  %v19933_v23 = vld [vmem:[#allocation58_spill] sm:$0xff]  ;;  %v15273_v9 = vld [vmem:[#allocation2 + $0x134] sm:$0xff]  ;;  %v9687_v25 = vunpack.i.l.bf16 %v19938_v43 }
 0x2b1   : > { %10095 = vrot.lane.b32.xlu0 %v19931_v48, %s11392_s4  ;;  %v2144_v48 = vpop.f32.mrf.mxu0  ;;  %v15242_v49 = vpack.i.bf16 %v4379_v58, %v4378_v7  ;;  %v15246_v46 = vsel %vm1778_vm4, %v14956_v0, %v9632_v45  ;;  %v15250_v1 = vsel %vm1778_vm4, %v14960_v29, %v9633_v52  ;;  %v15254_v17 = vsel %vm1778_vm4, %v14968_v55, %v9637_v13  ;;  %v19935_v45 = vld [vmem:[#allocation55_spill] sm:$0xff]  ;;  %v19936_v55 = vld [vmem:[#allocation78_spill] sm:$0xff] }
 0x2b2   : > { %v2145_v44 = vadd.f32 %v14697_v40, %v2144_v48  ;;  %v19934_v26 = vpack.i.bf16 %v14436_v8, %v19933_v23  ;;  %v15264_v0 = vsel %vm1778_vm4, %v14984_v6, %v9638_v53  ;;  %v9642_v29 = vunpack.i.l.bf16 %v19935_v45  ;;  %2245 = vst [vmem:[%s14786_s24 + $0xb0] sm:$0xff] %v2213_v50  ;;  %v19939_v6 = vld [vmem:[#allocation50_spill] sm:$0xff]  ;;  %v15281_v50 = vld [vmem:[#allocation2 + $0x154] sm:$0xff] }
 0x2b3   : > { %v8442_v11 = vpop.f32.mrf.mxu0  ;;  %v19937_v13 = vpack.i.bf16 %v14447_v35, %v19936_v55  ;;  %v9688_v58 = vunpack.i.h.bf16 %v19938_v43  ;;  %v9693_v53 = vunpack.i.h.bf16 %v19939_v6  ;;  %v9692_v22 = vunpack.i.l.bf16 %v19939_v6  ;;  %v15279_v14 = vpop.permute.xlu1 %9820  ;;  %v19941_v43 = vld [vmem:[#allocation22_spill] sm:$0xff]  ;;  %v19944_v23 = vld [vmem:[#allocation85_spill] sm:$0xff] }
 0x2b4   : > { %10100 = vrot.lane.b32.xlu1 %v19934_v26, %s11392_s4  ;;  %v2211_v52 = vmax.f32 %v2145_v44, 0.0  ;;  %v2156_v8 = vadd.f32 %v8442_v11, %v14697_v40  ;;  %v19940_v44 = vld [vmem:[#allocation59_spill] sm:$0xff]  ;;  %v15286_v11 = vpop.permute.xlu0 %9825  ;;  %v9698_v6 = vunpack.i.h.bf16 %v19941_v43  ;;  %v9697_v7 = vunpack.i.l.bf16 %v19941_v43 }
 0x2b5   : > { %10105 = vrot.lane.b32.xlu0 %v19937_v13, %s11392_s4  ;;  %v2147_v48 = vpop.f32.mrf.mxu0  ;;  %v19943_v15 = vpack.i.bf16 %v14478_v28, %v19942_v19  ;;  %v19945_v43 = vpack.i.bf16 %v14495_v59, %v19944_v23  ;;  %v3731_v28 = vsel %vm1811_vm5, %v15168_v54, %v9692_v22  ;;  %v3730_v59 = vsel %vm1811_vm5, %v15157_v30, %v9688_v58 }
 0x2b6   : > { %2243 = vst [vmem:[%s14786_s24 + $0xa0] sm:$0xff] %v2211_v52  ;;  %v2214_v26 = vmax.f32 %v2156_v8, 0.0  ;;  %v2148_v55 = vadd.f32 %v14697_v40, %v2147_v48  ;;  %v15300_v8 = vsel %vm1778_vm4, %v15000_v38, %v9642_v29  ;;  %v9767_v23 = vunpack.i.l.bf16 %v15012_v4 }
 0x2b7   : > { %v8445_v35 = vpop.f32.mrf.mxu0  ;;  %v15314_v38 = vpop.permute.xlu1 %9830  ;;  %v9772_v30 = vunpack.i.l.bf16 %v15049_v37 }
 0x2b8   : > { %10110 = vrot.lane.b32.xlu1 %v19943_v15, %s11392_s4  ;;  %2246 = vst [vmem:[%s14786_s24 + $0xb8] sm:$0xff] %v2214_v26  ;;  %v2212_v48 = vmax.f32 %v2148_v55, 0.0  ;;  %v2169_v13 = vadd.f32 %v8445_v35, %v14697_v40  ;;  %v3732_v15 = vsel %vm1811_vm5, %v15172_v39, %v9693_v53  ;;  %v3729_v26 = vsel %vm1811_vm5, %v15153_v31, %v9687_v25  ;;  %v15323_v54 = vpop.permute.xlu0 %9835 }
 0x2b9   : > { %10115 = vrot.lane.b32.xlu0 %v19945_v43, %s11392_s4  ;;  %v2160_v29 = vpop.f32.mrf.mxu0  ;;  %v9768_v35 = vunpack.i.h.bf16 %v15012_v4  ;;  %v3733_v53 = vsel %vm1811_vm5, %v15189_v62, %v9697_v7  ;;  %v3734_v31 = vsel %vm1811_vm5, %v15198_v41, %v9698_v6  ;;  %v9773_v25 = vunpack.i.h.bf16 %v15049_v37  ;;  %v19946_v4 = vld [vmem:[#allocation42_spill] sm:$0xff]  ;;  %v19948_v41 = vld [vmem:[#allocation39_spill] sm:$0xff]  ;;  %v19950_v37 = vld [vmem:[#allocation48_spill] sm:$0xff] }
 0x2ba   : > { %2244 = vst [vmem:[%s14786_s24 + $0xa8] sm:$0xff] %v2212_v48  ;;  %v2217_v55 = vmax.f32 %v2169_v13, 0.0  ;;  %v2161_v39 = vadd.f32 %v14697_v40, %v2160_v29  ;;  %v19947_v58 = vpack.i.bf16 %v14514_v12, %v19946_v4  ;;  %v9778_v13 = vunpack.i.h.bf16 %v15059_v57  ;;  %v19951_v12 = vld [vmem:[#allocation44_spill] sm:$0xff]  ;;  %v19952_v43 = vld [vmem:[#allocation26_spill] sm:$0xff] }
 0x2bb   : > { %v8446_v22 = vpop.f32.mrf.mxu0  ;;  %v9777_v48 = vunpack.i.l.bf16 %v15059_v57  ;;  %v19949_v7 = vpack.i.bf16 %v14525_v42, %v19948_v41  ;;  %v15348_v19 = vpop.permute.xlu1 %9840  ;;  %v3761_v41 = vsel %vm1844_vm6, %v3729_v26, %v9767_v23  ;;  %v3764_v52 = vsel %vm1844_vm6, %v3732_v15, %v9773_v25 }
 0x2bc   : > { %10120 = vrot.lane.b32.xlu1 %v19947_v58, %s11392_s4  ;;  %2249 = vst [vmem:[%s14786_s24 + $0xd0] sm:$0xff] %v2217_v55  ;;  %v2215_v62 = vmax.f32 %v2161_v39, 0.0  ;;  %v2172_v6 = vadd.f32 %v8446_v22, %v14697_v40  ;;  %v9846_v39 = vpop.permute.xlu0 %9845  ;;  %v3762_v22 = vsel %vm1844_vm6, %v3730_v59, %v9768_v35  ;;  %v19953_v29 = vpack.i.bf16 %v14558_v56, %v19952_v43 }
 0x2bd   : > { %10125 = vrot.lane.b32.xlu0 %v19949_v7, %s11392_s4  ;;  %v2163_v57 = vpop.f32.mrf.mxu0  ;;  %v3763_v7 = vsel %vm1844_vm6, %v3731_v28, %v9772_v30  ;;  %v9848_v4 = vunpack.i.h.bf16 %v9846_v39  ;;  %v9847_v58 = vunpack.i.l.bf16 %v9846_v39  ;;  %v19954_v28 = vld [vmem:[#allocation30_spill] sm:$0xff]  ;;  %v9783_v35 = vunpack.i.h.bf16 %v15094_v10 }
 0x2be   : > { %2247 = vst [vmem:[%s14786_s24 + $0xc0] sm:$0xff] %v2215_v62  ;;  %v2218_v55 = vmax.f32 %v2172_v6, 0.0  ;;  %v2164_v42 = vadd.f32 %v14697_v40, %v2163_v57  ;;  %v3765_v6 = vsel %vm1844_vm6, %v3733_v53, %v9777_v48  ;;  %v3766_v57 = vsel %vm1844_vm6, %v3734_v31, %v9778_v13 }
 0x2bf   : > { %v8449_v62 = vpop.f32.mrf.mxu0  ;;  %v19955_v59 = vpack.i.bf16 %v14573_v32, %v19954_v28  ;;  %v9782_v23 = vunpack.i.l.bf16 %v15094_v10  ;;  %v9851_v56 = vpop.permute.xlu1 %9850  ;;  %v3793_v53 = vsel %vm1877_vm7, %v3761_v41, %v9847_v58  ;;  %v3794_v31 = vsel %vm1877_vm7, %v3762_v22, %v9848_v4  ;;  %v19956_v10 = vld [vmem:[#allocation54_spill] sm:$0xff] }
 0x2c0   : > { %10130 = vrot.lane.b32.xlu1 %v19953_v29, %s11392_s4  ;;  %2250 = vst [vmem:[%s14786_s24 + $0xd8] sm:$0xff] %v2218_v55  ;;  %v2216_v26 = vmax.f32 %v2164_v42, 0.0  ;;  %v2185_v15 = vadd.f32 %v8449_v62, %v14697_v40  ;;  %v9853_v13 = vunpack.i.h.bf16 %v9851_v56  ;;  %v9852_v48 = vunpack.i.l.bf16 %v9851_v56  ;;  %v9856_v43 = vpop.permute.xlu0 %9855  ;;  %v15883_v56 = vld [vmem:[#allocation2 + $0x1c4] sm:$0xff] }
 0x2c1   : > { %10135 = vrot.lane.b32.xlu0 %v19955_v59, %s11392_s4  ;;  %v2176_v25 = vpop.f32.mrf.mxu0  ;;  %v9788_v29 = vunpack.i.h.bf16 %v15103_v21  ;;  %v9858_v55 = vunpack.i.h.bf16 %v9856_v43  ;;  %v9857_v39 = vunpack.i.l.bf16 %v9856_v43  ;;  %v19957_v42 = vpack.i.bf16 %v14601_v33, %v19956_v10 }
 0x2c2   : > { %2248 = vst [vmem:[%s14786_s24 + $0xc8] sm:$0xff] %v2216_v26  ;;  %v2221_v30 = vmax.f32 %v2185_v15, 0.0  ;;  %v2177_v32 = vadd.f32 %v14697_v40, %v2176_v25  ;;  %v8105_v41 = vpack.c.bf16 %v3794_v31, %v3793_v53  ;;  %v3795_v4 = vsel %vm1877_vm7, %v3763_v7, %v9852_v48  ;;  %v19958_v26 = vld [vmem:[#allocation61_spill] sm:$0xff] }
 0x2c3   : > { %v8450_v58 = vpop.f32.mrf.mxu0  ;;  %v3796_v22 = vsel %vm1877_vm7, %v3764_v52, %v9853_v13  ;;  %v9787_v59 = vunpack.i.l.bf16 %v15103_v21  ;;  %v3797_v15 = vsel %vm1877_vm7, %v3765_v6, %v9857_v39  ;;  %v3798_v33 = vsel %vm1877_vm7, %v3766_v57, %v9858_v55  ;;  %v9861_v25 = vpop.permute.xlu1 %9860 }
 0x2c4   : > { %10140 = vrot.lane.b32.xlu1 %v19957_v42, %s11392_s4  ;;  %2253 = vst [vmem:[%s14786_s24 + $0xf0] sm:$0xff] %v2221_v30  ;;  %v2219_v62 = vmax.f32 %v2177_v32, 0.0  ;;  %v2188_v28 = vadd.f32 %v8450_v58, %v14697_v40  ;;  %8467 = vmatprep.mubr.msk.bf16.mxu1 %vm13383_vm9, %v8105_v41  ;;  %v8108_v7 = vpack.c.bf16 %v3796_v22, %v3795_v4  ;;  %v9863_v31 = vunpack.i.h.bf16 %v9861_v25  ;;  %v9866_v13 = vpop.permute.xlu0 %9865  ;;  %v19961_v32 = vld [vmem:[#allocation56_spill] sm:$0xff] }
 0x2c5   : > { %10145 = vrot.lane.b32.xlu0 %v19958_v26, %s11392_s4  ;;  %v2179_v53 = vpop.f32.mrf.mxu0  ;;  %v9862_v30 = vunpack.i.l.bf16 %v9861_v25  ;;  %v19960_v21 = vunpack.i.h.bf16 %v19935_v45  ;;  %v9868_v57 = vunpack.i.h.bf16 %v9866_v13  ;;  %v9867_v43 = vunpack.i.l.bf16 %v9866_v13  ;;  %v19965_v41 = vld [vmem:[#allocation60_spill] sm:$0xff]  ;;  %v19969_v25 = vld [vmem:[#allocation25_spill] sm:$0xff] }
 0x2c6   : > { %2251 = vst [vmem:[%s14786_s24 + $0xe0] sm:$0xff] %v2219_v62  ;;  %v2222_v52 = vmax.f32 %v2188_v28, 0.0  ;;  %v2180_v48 = vadd.f32 %v14697_v40, %v2179_v53  ;;  %8468 = vmatmul.mubr.msk.bf16.vlgmr.msra.gmra.mxu1 %vm13383_vm9, %v8108_v7  ;;  %v8111_v55 = vpack.c.bf16 %v3798_v33, %v3797_v15  ;;  %v19962_v39 = vunpack.i.l.bf16 %v19940_v44  ;;  %v19973_v13 = vld [vmem:[#allocation76_spill] sm:$0xff] }
 0x2c7   : > { %v15396_v6 = vsel %vm1778_vm4, %v15004_v63, %v19960_v21  ;;  %v19963_v45 = vunpack.i.l.bf16 %v19950_v37  ;;  %v19964_v10 = vunpack.i.h.bf16 %v19950_v37  ;;  %v19966_v4 = vunpack.i.l.bf16 %v19951_v12  ;;  %v19974_v21 = vld [vmem:[#allocation11_spill] sm:$0xff] }
 0x2c8   : > { %10150 = vrot.lane.b32.xlu1 %v19961_v32, %s11392_s4  ;;  %v15406_v40 = vsel %vm1778_vm4, %v15019_v20, %v19962_v39  ;;  %2254 = vst [vmem:[%s14786_s24 + $0xf8] sm:$0xff] %v2222_v52  ;;  %v2220_v58 = vmax.f32 %v2180_v48, 0.0  ;;  %v19967_v22 = vunpack.i.h.bf16 %v19951_v12  ;;  %8471 = vmatprep.mubr.msk.bf16.mxu1 %vm13383_vm9, %v8111_v55  ;;  %v9876_v12 = vpop.permute.xlu0 %9875  ;;  %v19972_v52 = vld [vmem:[#allocation21_spill] sm:$0xff]  ;;  %v9718_v48 = vunpack.i.h.bf16 %v19973_v13  ;;  %v19975_v55 = vld [vmem:[#allocation51_spill] sm:$0xff] }
 0x2c9   : > { %v3735_v63 = vsel %vm1811_vm5, %v15220_v5, %v19963_v45  ;;  %v3736_v42 = vsel %vm1811_vm5, %v15224_v61, %v19964_v10  ;;  %10155 = vrot.lane.b32.xlu0 %v19965_v41, %s11392_s4  ;;  %v3737_v20 = vsel %vm1811_vm5, %v15228_v34, %v19966_v4  ;;  %v9871_v61 = vpop.permute.xlu1 %9870  ;;  %v19976_v39 = vpack.i.bf16 %v19974_v21, %v19975_v55  ;;  %v15488_v21 = vld [vmem:[#allocation2 + $0x194] sm:$0xff] }
 0x2ca   : > { %v3738_v5 = vsel %vm1811_vm5, %v15236_v3, %v19967_v22  ;;  %v3767_v37 = vsel %vm1844_vm6, %v3735_v63, %v9782_v23  ;;  %v3768_v62 = vsel %vm1844_vm6, %v3736_v42, %v9783_v35  ;;  %v3769_v28 = vsel %vm1844_vm6, %v3737_v20, %v9787_v59  ;;  %2252 = vst [vmem:[%s14786_s24 + $0xe8] sm:$0xff] %v2220_v58  ;;  %v19970_v35 = vld [vmem:[#allocation37_spill] sm:$0xff] }
 0x2cb   : > { %v3770_v15 = vsel %vm1844_vm6, %v3738_v5, %v9788_v29  ;;  %v3799_v33 = vsel %vm1877_vm7, %v3767_v37, %v9862_v30  ;;  %v3800_v34 = vsel %vm1877_vm7, %v3768_v62, %v9863_v31  ;;  %v19968_v3 = vunpack.i.h.bf16 %v19940_v44  ;;  %v19971_v29 = vld [vmem:[#allocation79_spill] sm:$0xff]  ;;  %v15460_v42 = vld [vmem:[#allocation2 + $0x174] sm:$0xff]  ;;  %v19977_v62 = vld [vmem:[#allocation66_spill] sm:$0xff] }
 0x2cc   : > { %v9653_v53 = vunpack.i.h.bf16 %v19970_v35  ;;  %v3801_v7 = vsel %vm1877_vm7, %v3769_v28, %v9867_v43  ;;  %v3802_v59 = vsel %vm1877_vm7, %v3770_v15, %v9868_v57  ;;  %10160 = vrot.lane.b32.xlu1 %v19971_v29, %s11392_s4  ;;  %v9713_v30 = vunpack.i.h.bf16 %v19972_v52  ;;  %v15463_v22 = vpop.permute.xlu0 %9885 }
 0x2cd   : > { %v15440_v23 = vsel %vm1778_vm4, %v19969_v25, %v19968_v3  ;;  %v9712_v31 = vunpack.i.l.bf16 %v19972_v52  ;;  %v9717_v44 = vunpack.i.l.bf16 %v19973_v13  ;;  %10165 = vrot.lane.b32.xlu0 %v19976_v39, %s11393_s5  ;;  %v9793_v43 = vunpack.i.h.bf16 %v15138_v16  ;;  %v15458_v63 = vpop.permute.xlu1 %9880  ;;  %v19978_v3 = vld [vmem:[#allocation31_spill] sm:$0xff]  ;;  %v19979_v25 = vld [vmem:[#allocation29_spill] sm:$0xff] }
 0x2ce   : > { %v9792_v57 = vunpack.i.l.bf16 %v15138_v16  ;;  %v9798_v45 = vunpack.i.h.bf16 %v15146_v2  ;;  %v8114_v10 = vpack.c.bf16 %v3800_v34, %v3799_v33  ;;  %v9797_v58 = vunpack.i.l.bf16 %v15146_v2  ;;  %v19981_v34 = vld [vmem:[#allocation80_spill] sm:$0xff]  ;;  %v20005_v13 = vld [vmem:[#allocation47_spill] sm:$0xff] }
 0x2cf   : > { %v9873_v4 = vunpack.i.h.bf16 %v9871_v61  ;;  %v9872_v20 = vunpack.i.l.bf16 %v9871_v61  ;;  %v8117_v5 = vpack.c.bf16 %v3802_v59, %v3801_v7  ;;  %v9652_v37 = vunpack.i.l.bf16 %v19970_v35  ;;  %v19982_v7 = vld [vmem:[#allocation84_spill] sm:$0xff] }
 0x2d0   : > { %v9658_v28 = vunpack.i.h.bf16 %v19977_v62  ;;  %v9878_v15 = vunpack.i.h.bf16 %v9876_v12  ;;  %v9877_v16 = vunpack.i.l.bf16 %v9876_v12  ;;  %v19980_v52 = vpack.i.bf16 %v19978_v3, %v19979_v25  ;;  %8472 = vmatmul.mubr.msk.bf16.gmra.mxu1 %vm13383_vm9, %v8114_v10  ;;  %v15484_v59 = vld [vmem:[#allocation2 + $0x16c] sm:$0xff]  ;;  %v15502_v3 = vpop.permute.xlu0 %9895 }
 0x2d1   : > { %v9657_v2 = vunpack.i.l.bf16 %v19977_v62  ;;  %v3739_v61 = vsel %vm1811_vm5, %v15246_v46, %v9712_v31  ;;  %v3740_v33 = vsel %vm1811_vm5, %v15250_v1, %v9713_v30  ;;  %v19983_v12 = vpack.i.bf16 %v19981_v34, %v19982_v7  ;;  %8475 = vmatprep.mubr.msk.bf16.mxu1 %vm13383_vm9, %v8117_v5  ;;  %v15496_v55 = vpop.permute.xlu1 %9890  ;;  %v19991_v34 = vld [vmem:[#allocation19_spill] sm:$0xff] }
 0x2d2   : > { %10170 = vrot.lane.b32.xlu1 %v19980_v52, %s11393_s5  ;;  %v3741_v46 = vsel %vm1811_vm5, %v15254_v17, %v9717_v44  ;;  %v3742_v1 = vsel %vm1811_vm5, %v15264_v0, %v9718_v48  ;;  %v3771_v30 = vsel %vm1844_vm6, %v3739_v61, %v9792_v57  ;;  %v3772_v31 = vsel %vm1844_vm6, %v3740_v33, %v9793_v43  ;;  %v19984_v44 = vld [vmem:[#allocation34_spill] sm:$0xff]  ;;  %v19985_v43 = vld [vmem:[#allocation24_spill] sm:$0xff]  ;;  %v19990_v52 = vld [vmem:[#allocation75_spill] sm:$0xff] }
 0x2d3   : > { %10175 = vrot.lane.b32.xlu0 %v19983_v12, %s11393_s5  ;;  %v3773_v39 = vsel %vm1844_vm6, %v3741_v46, %v9797_v58  ;;  %v3774_v10 = vsel %vm1844_vm6, %v3742_v1, %v9798_v45  ;;  %v3803_v5 = vsel %vm1877_vm7, %v3771_v30, %v9872_v20  ;;  %v3804_v62 = vsel %vm1877_vm7, %v3772_v31, %v9873_v4  ;;  %v15514_v45 = vld [vmem:[#allocation2 + $0x18c] sm:$0xff] }
 0x2d4   : > { %v15506_v17 = vsel %vm1778_vm4, %v15042_v60, %v9652_v37  ;;  %v3805_v0 = vsel %vm1877_vm7, %v3773_v39, %v9877_v16  ;;  %v3806_v48 = vsel %vm1877_vm7, %v3774_v10, %v9878_v15  ;;  %v19986_v57 = vpack.i.bf16 %v19984_v44, %v19985_v43  ;;  %v19987_v4 = vld [vmem:[#allocation15_spill] sm:$0xff]  ;;  %v19988_v60 = vld [vmem:[#allocation81_spill] sm:$0xff]  ;;  %v15532_v39 = vpop.permute.xlu0 %9905  ;;  %v19992_v44 = vld [vmem:[#allocation28_spill] sm:$0xff] }
 0x2d5   : > { %v9723_v20 = vunpack.i.h.bf16 %v19987_v4  ;;  %v9722_v25 = vunpack.i.l.bf16 %v19987_v4  ;;  %v9728_v37 = vunpack.i.h.bf16 %v19988_v60  ;;  %v9727_v16 = vunpack.i.l.bf16 %v19988_v60  ;;  %v19989_v15 = vld [vmem:[#allocation43_spill] sm:$0xff]  ;;  %v15527_v12 = vpop.permute.xlu1 %9900 }
 0x2d6   : > { %10180 = vrot.lane.b32.xlu1 %v19986_v57, %s11393_s5  ;;  %v9803_v61 = vunpack.i.h.bf16 %v19990_v52  ;;  %v9802_v33 = vunpack.i.l.bf16 %v19990_v52  ;;  %v9808_v7 = vunpack.i.h.bf16 %v19991_v34  ;;  %v8120_v46 = vpack.c.bf16 %v3804_v62, %v3803_v5  ;;  %v19993_v57 = vld [vmem:[#allocation33_spill] sm:$0xff]  ;;  %v19994_v62 = vld [vmem:[#allocation63_spill] sm:$0xff]  ;;  %v19997_v52 = vld [vmem:[#allocation64_spill] sm:$0xff] }
 0x2d7   : > { %10185 = vrot.lane.b32.xlu0 %v19989_v15, %s11393_s5  ;;  %v9807_v1 = vunpack.i.l.bf16 %v19991_v34  ;;  %v9883_v30 = vunpack.i.h.bf16 %v15458_v63  ;;  %v9882_v31 = vunpack.i.l.bf16 %v15458_v63  ;;  %v8123_v10 = vpack.c.bf16 %v3806_v48, %v3805_v0  ;;  %v19995_v63 = vld [vmem:[#allocation35_spill] sm:$0xff]  ;;  %v19996_v48 = vld [vmem:[#allocation68_spill] sm:$0xff] }
 0x2d8   : > { %v3716_v43 = vsel %vm1778_vm4, %v19992_v44, %v9653_v53  ;;  %v3717_v4 = vsel %vm1778_vm4, %v19993_v57, %v9657_v2  ;;  %v9888_v60 = vunpack.i.h.bf16 %v15463_v22  ;;  %v9887_v5 = vunpack.i.l.bf16 %v15463_v22  ;;  %8476 = vmatmul.mubr.msk.bf16.gmra.mxu1 %vm13383_vm9, %v8120_v46  ;;  %v15569_v44 = vpop.permute.xlu0 %9915 }
 0x2d9   : > { %v3718_v35 = vsel %vm1778_vm4, %v19996_v48, %v9658_v28  ;;  %v3743_v53 = vsel %vm1811_vm5, %v15300_v8, %v9722_v25  ;;  %v3744_v2 = vsel %vm1811_vm5, %v15396_v6, %v9723_v20  ;;  %8479 = vmatprep.mubr.msk.bf16.mxu1 %vm13383_vm9, %v8123_v10  ;;  %v3745_v22 = vsel %vm1811_vm5, %v15406_v40, %v9727_v16  ;;  %v15563_v8 = vpop.permute.xlu1 %9910  ;;  %v19998_v40 = vld [vmem:[#allocation71_spill] sm:$0xff] }
 0x2da   : > { %10190 = vrot.lane.b32.xlu1 %v19994_v62, %s11393_s5  ;;  %v3746_v34 = vsel %vm1811_vm5, %v15440_v23, %v9728_v37  ;;  %v3775_v28 = vsel %vm1844_vm6, %v3743_v53, %v9802_v33  ;;  %v3776_v46 = vsel %vm1844_vm6, %v3744_v2, %v9803_v61  ;;  %v3777_v6 = vsel %vm1844_vm6, %v3745_v22, %v9807_v1  ;;  %v19999_v33 = vld [vmem:[#allocation67_spill] sm:$0xff]  ;;  %v20000_v1 = vld [vmem:[#allocation73_spill] sm:$0xff]  ;;  %v20002_v53 = vld [vmem:[#allocation18_spill] sm:$0xff] }
 0x2db   : > { %10195 = vrot.lane.b32.xlu0 %v19997_v52, %s11393_s5  ;;  %v3778_v20 = vsel %vm1844_vm6, %v3746_v34, %v9808_v7  ;;  %v3807_v25 = vsel %vm1877_vm7, %v3775_v28, %v9882_v31  ;;  %v3808_v10 = vsel %vm1877_vm7, %v3776_v46, %v9883_v30  ;;  %v9663_v16 = vunpack.i.h.bf16 %v19998_v40  ;;  %v20001_v31 = vld [vmem:[#allocation62_spill] sm:$0xff]  ;;  %v15583_v2 = vld [vmem:[#allocation2 + $0x1b4] sm:$0xff] }
 0x2dc   : > { %v9662_v23 = vunpack.i.l.bf16 %v19998_v40  ;;  %v3809_v37 = vsel %vm1877_vm7, %v3777_v6, %v9887_v5  ;;  %v3810_v61 = vsel %vm1877_vm7, %v3778_v20, %v9888_v60  ;;  %v9733_v57 = vunpack.i.h.bf16 %v20000_v1  ;;  %v15593_v40 = vpop.permute.xlu0 %9925 }
 0x2dd   : > { %v9732_v7 = vunpack.i.l.bf16 %v20000_v1  ;;  %v9738_v48 = vunpack.i.h.bf16 %v20001_v31  ;;  %v9737_v30 = vunpack.i.l.bf16 %v20001_v31  ;;  %v9813_v5 = vunpack.i.h.bf16 %v15230_v47  ;;  %v15588_v34 = vpop.permute.xlu1 %9920  ;;  %20003 = vst [vmem:[#allocation36_spill] sm:$0xff] %v15593_v40  ;;  %v20004_v31 = vld [vmem:[#allocation72_spill] sm:$0xff]  ;;  %v20007_v40 = vld [vmem:[#allocation23_spill] sm:$0xff] }
 0x2de   : > { %10200 = vrot.lane.b32.xlu1 %v19999_v33, %s11393_s5  ;;  %v9812_v60 = vunpack.i.l.bf16 %v15230_v47  ;;  %v9818_v22 = vunpack.i.h.bf16 %v15239_v36  ;;  %v8126_v28 = vpack.c.bf16 %v3808_v10, %v3807_v25  ;;  %v9817_v46 = vunpack.i.l.bf16 %v15239_v36  ;;  %v15602_v36 = vld [vmem:[#allocation2 + $0x1ac] sm:$0xff]  ;;  %v20006_v25 = vld [vmem:[#allocation53_spill] sm:$0xff] }
 0x2df   : > { %10205 = vrot.lane.b32.xlu0 %v20002_v53, %s11393_s5  ;;  %v9893_v6 = vunpack.i.h.bf16 %v15496_v55  ;;  %v9892_v20 = vunpack.i.l.bf16 %v15496_v55  ;;  %v8129_v1 = vpack.c.bf16 %v3810_v61, %v3809_v37  ;;  %v9667_v0 = vunpack.i.l.bf16 %v20004_v31 }
 0x2e0   : > { %v9898_v58 = vunpack.i.h.bf16 %v15502_v3  ;;  %v9897_v47 = vunpack.i.l.bf16 %v15502_v3  ;;  %8480 = vmatmul.mubr.msk.bf16.gmra.mxu1 %vm13383_vm9, %v8126_v28  ;;  %v3719_v10 = vsel %vm1778_vm4, %v20006_v25, %v9662_v23  ;;  %v9668_v37 = vunpack.i.h.bf16 %v20004_v31  ;;  %v15626_v25 = vpop.permute.xlu0 %9935 }
 0x2e1   : > { %v3747_v61 = vsel %vm1811_vm5, %v15506_v17, %v9732_v7  ;;  %v3748_v3 = vsel %vm1811_vm5, %v3716_v43, %v9733_v57  ;;  %8483 = vmatprep.mubr.msk.bf16.mxu1 %vm13383_vm9, %v8129_v1  ;;  %v3749_v28 = vsel %vm1811_vm5, %v3717_v4, %v9737_v30  ;;  %v3750_v55 = vsel %vm1811_vm5, %v3718_v35, %v9738_v48  ;;  %v15620_v31 = vpop.permute.xlu1 %9930  ;;  %v20010_v1 = vld [vmem:[#allocation65_spill] sm:$0xff]  ;;  %v20011_v35 = vld [vmem:[#allocation74_spill] sm:$0xff] }
 0x2e2   : > { %10210 = vrot.lane.b32.xlu1 %v20005_v13, %s11393_s5  ;;  %v3779_v13 = vsel %vm1844_vm6, %v3747_v61, %v9812_v60  ;;  %v3780_v23 = vsel %vm1844_vm6, %v3748_v3, %v9813_v5  ;;  %20008 = vst [vmem:[#allocation46_spill] sm:$0xff] %v15620_v31  ;;  %v3781_v17 = vsel %vm1844_vm6, %v3749_v28, %v9817_v46  ;;  %20009 = vst [vmem:[#allocation17_spill] sm:$0xff] %v15626_v25  ;;  %v20012_v60 = vld [vmem:[#allocation16_spill] sm:$0xff] }
 0x2e3   : > { %10215 = vrot.lane.b32.xlu0 %v20007_v40, %s11393_s5  ;;  %v3782_v43 = vsel %vm1844_vm6, %v3750_v55, %v9818_v22  ;;  %v3811_v57 = vsel %vm1877_vm7, %v3779_v13, %v9892_v20  ;;  %v3812_v7 = vsel %vm1877_vm7, %v3780_v23, %v9893_v6  ;;  %v3720_v4 = vsel %vm1778_vm4, %v20010_v1, %v9663_v16  ;;  %v20013_v22 = vld [vmem:[#allocation57_spill] sm:$0xff]  ;;  %v20014_v6 = vld [vmem:[#allocation83_spill] sm:$0xff] }
 0x2e4   : > { %v3721_v48 = vsel %vm1778_vm4, %v20011_v35, %v9667_v0  ;;  %v3813_v30 = vsel %vm1877_vm7, %v3781_v17, %v9897_v47  ;;  %v3814_v5 = vsel %vm1877_vm7, %v3782_v43, %v9898_v58  ;;  %v9743_v46 = vunpack.i.h.bf16 %v20013_v22  ;;  %v20015_v16 = vld [vmem:[#allocation45_spill] sm:$0xff]  ;;  %v15650_v43 = vpop.permute.xlu0 %9945  ;;  %v20016_v35 = vld [vmem:[#allocation6_spill] sm:$0xff] }
 0x2e5   : > { %v9742_v13 = vunpack.i.l.bf16 %v20013_v22  ;;  %v9748_v20 = vunpack.i.h.bf16 %v20014_v6  ;;  %v9747_v55 = vunpack.i.l.bf16 %v20014_v6  ;;  %v9823_v0 = vunpack.i.h.bf16 %v15279_v14  ;;  %v15645_v61 = vpop.permute.xlu1 %9940  ;;  %v20017_v6 = vld [vmem:[#allocation38_spill] sm:$0xff] }
 0x2e6   : > { %10220 = vrot.lane.b32.xlu1 %v20012_v60, %s11393_s5  ;;  %v9822_v47 = vunpack.i.l.bf16 %v15279_v14  ;;  %v9828_v58 = vunpack.i.h.bf16 %v15286_v11  ;;  %v8132_v3 = vpack.c.bf16 %v3812_v7, %v3811_v57  ;;  %v9827_v28 = vunpack.i.l.bf16 %v15286_v11 }
 0x2e7   : > { %10225 = vrot.lane.b32.xlu0 %v20015_v16, %s11393_s5  ;;  %v9903_v23 = vunpack.i.h.bf16 %v15527_v12  ;;  %v9902_v17 = vunpack.i.l.bf16 %v15527_v12  ;;  %v8135_v1 = vpack.c.bf16 %v3814_v5, %v3813_v30  ;;  %v3722_v22 = vsel %vm1778_vm4, %v20016_v35, %v9668_v37  ;;  %v20018_v12 = vld [vmem:[#allocation10_spill] sm:$0xff] }
 0x2e8   : > { %v9672_v25 = vunpack.i.l.bf16 %v20017_v6  ;;  %v9908_v14 = vunpack.i.h.bf16 %v15532_v39  ;;  %v9907_v31 = vunpack.i.l.bf16 %v15532_v39  ;;  %8484 = vmatmul.mubr.msk.bf16.gmra.mxu1 %vm13383_vm9, %v8132_v3  ;;  %v9673_v11 = vunpack.i.h.bf16 %v20017_v6  ;;  %v15679_v6 = vpop.permute.xlu0 %9955 }
 0x2e9   : > { %v9678_v57 = vunpack.i.h.bf16 %v20018_v12  ;;  %v3751_v7 = vsel %vm1811_vm5, %v3719_v10, %v9742_v13  ;;  %v3752_v37 = vsel %vm1811_vm5, %v3720_v4, %v9743_v46  ;;  %8487 = vmatprep.mubr.msk.bf16.mxu1 %vm13383_vm9, %v8135_v1  ;;  %v3753_v39 = vsel %vm1811_vm5, %v3721_v48, %v9747_v55  ;;  %v15673_v35 = vpop.permute.xlu1 %9950  ;;  %v20019_v1 = vld [vmem:[#allocation13_spill] sm:$0xff] }
 0x2ea   : > { %10230 = vrot.lane.b32.xlu1 %v15214_v24, %s11393_s5  ;;  %v3754_v30 = vsel %vm1811_vm5, %v3722_v22, %v9748_v20  ;;  %v3783_v5 = vsel %vm1844_vm6, %v3751_v7, %v9822_v47  ;;  %v3784_v3 = vsel %vm1844_vm6, %v3752_v37, %v9823_v0  ;;  %v3785_v10 = vsel %vm1844_vm6, %v3753_v39, %v9827_v28  ;;  %v20020_v47 = vld [vmem:[#allocation52_spill] sm:$0xff]  ;;  %v20022_v7 = vld [vmem:[#allocation41_spill] sm:$0xff] }
 0x2eb   : > { %10235 = vrot.lane.b32.xlu0 %v15232_v18, %s11393_s5  ;;  %v3786_v4 = vsel %vm1844_vm6, %v3754_v30, %v9828_v58  ;;  %v3815_v46 = vsel %vm1877_vm7, %v3783_v5, %v9902_v17  ;;  %v3816_v13 = vsel %vm1877_vm7, %v3784_v3, %v9903_v23  ;;  %v3723_v48 = vsel %vm1778_vm4, %v20019_v1, %v9672_v25  ;;  %v20021_v17 = vld [vmem:[#allocation27_spill] sm:$0xff]  ;;  %v20023_v25 = vld [vmem:[#allocation69_spill] sm:$0xff] }
 0x2ec   : > { %v9677_v20 = vunpack.i.l.bf16 %v20018_v12  ;;  %v3817_v55 = vsel %vm1877_vm7, %v3785_v10, %v9907_v31  ;;  %v3818_v0 = vsel %vm1877_vm7, %v3786_v4, %v9908_v14  ;;  %v9753_v58 = vunpack.i.h.bf16 %v20020_v47  ;;  %v15704_v4 = vpop.permute.xlu0 %9965 }
 0x2ed   : > { %v9752_v28 = vunpack.i.l.bf16 %v20020_v47  ;;  %v9758_v23 = vunpack.i.h.bf16 %v20021_v17  ;;  %v9757_v22 = vunpack.i.l.bf16 %v20021_v17  ;;  %v20024_v37 = vpack.i.bf16 %v20022_v7, %v20023_v25  ;;  %v15699_v39 = vpop.permute.xlu1 %9960  ;;  %v20025_v47 = vld [vmem:[#allocation8_spill] sm:$0xff]  ;;  %v20026_v7 = vld [vmem:[#allocation7_spill] sm:$0xff] }
 0x2ee   : > { %10240 = vrot.lane.b32.xlu1 %v15242_v49, %s11393_s5  ;;  %v9833_v31 = vunpack.i.h.bf16 %v15314_v38  ;;  %v9832_v14 = vunpack.i.l.bf16 %v15314_v38  ;;  %v9838_v12 = vunpack.i.h.bf16 %v15323_v54  ;;  %v8138_v30 = vpack.c.bf16 %v3816_v13, %v3815_v46  ;;  %v20028_v46 = vld [vmem:[#allocation9_spill] sm:$0xff] }
 0x2ef   : > { %10245 = vrot.lane.b32.xlu0 %v20024_v37, %s11394_s6  ;;  %v9837_v5 = vunpack.i.l.bf16 %v15323_v54  ;;  %v9913_v3 = vunpack.i.h.bf16 %v15563_v8  ;;  %v9912_v10 = vunpack.i.l.bf16 %v15563_v8  ;;  %v8141_v1 = vpack.c.bf16 %v3818_v0, %v3817_v55 }
 0x2f0   : > { %v3724_v17 = vsel %vm1778_vm4, %v20025_v47, %v9673_v11  ;;  %v3725_v38 = vsel %vm1778_vm4, %v20026_v7, %v9677_v20  ;;  %v9918_v25 = vunpack.i.h.bf16 %v15569_v44  ;;  %v9917_v37 = vunpack.i.l.bf16 %v15569_v44  ;;  %8488 = vmatmul.mubr.msk.bf16.gmra.mxu1 %vm13383_vm9, %v8138_v30  ;;  %v15741_v30 = vpop.permute.xlu0 %9975 }
 0x2f1   : > { %v20027_v54 = vpack.i.bf16 %v15273_v9, %v14398_v27  ;;  %v9602_v8 = vunpack.i.l.bf16 %v19995_v63  ;;  %v3726_v11 = vsel %vm1778_vm4, %v20028_v46, %v9678_v57  ;;  %v3755_v13 = vsel %vm1811_vm5, %v3723_v48, %v9752_v28  ;;  %8491 = vmatprep.mubr.msk.bf16.mxu1 %vm13383_vm9, %v8141_v1  ;;  %v15733_v0 = vpop.permute.xlu1 %9970  ;;  %v15735_v48 = vld [vmem:[#allocation2 + $0x1d4] sm:$0xff]  ;;  %v20037_v46 = vld [vmem:[#allocation82_spill] sm:$0xff] }
 0x2f2   : > { %v3756_v20 = vsel %vm1811_vm5, %v3724_v17, %v9753_v58  ;;  %v20029_v44 = vpack.i.bf16 %v15281_v50, %v14415_v51  ;;  %v3757_v27 = vsel %vm1811_vm5, %v3725_v38, %v9757_v22  ;;  %v3758_v9 = vsel %vm1811_vm5, %v3726_v11, %v9758_v23  ;;  %v20030_v22 = vld [vmem:[#allocation40_spill] sm:$0xff]  ;;  %v20035_v17 = vld [vmem:[#allocation70_spill] sm:$0xff] }
 0x2f3   : > { %10250 = vrot.lane.b32.xlu1 %v20027_v54, %s11394_s6  ;;  %v3787_v55 = vsel %vm1844_vm6, %v3755_v13, %v9832_v14  ;;  %v3788_v57 = vsel %vm1844_vm6, %v3756_v20, %v9833_v31  ;;  %v3789_v58 = vsel %vm1844_vm6, %v3757_v27, %v9837_v5  ;;  %v3790_v51 = vsel %vm1844_vm6, %v3758_v9, %v9838_v12  ;;  %v20032_v12 = vld [vmem:[#allocation49_spill] sm:$0xff] }
 0x2f4   : > { %10255 = vrot.lane.b32.xlu0 %v20029_v44, %s11394_s6  ;;  %v3819_v50 = vsel %vm1877_vm7, %v3787_v55, %v9912_v10  ;;  %v3820_v28 = vsel %vm1877_vm7, %v3788_v57, %v9913_v3  ;;  %v9683_v23 = vunpack.i.h.bf16 %v20030_v22  ;;  %v9682_v14 = vunpack.i.l.bf16 %v20030_v22  ;;  %v20034_v10 = vld [vmem:[#allocation12_spill] sm:$0xff]  ;;  %v15780_v22 = vpop.permute.xlu0 %9985 }
 0x2f5   : > { %v3821_v31 = vsel %vm1877_vm7, %v3789_v58, %v9917_v37  ;;  %v3822_v1 = vsel %vm1877_vm7, %v3790_v51, %v9918_v25  ;;  %v20031_v5 = vpack.i.bf16 %v15460_v42, %v15484_v59  ;;  %v20033_v47 = vunpack.i.h.bf16 %v20032_v12  ;;  %v15761_v25 = vld [vmem:[#allocation2 + $0x1cc] sm:$0xff]  ;;  %v15765_v54 = vld [vmem:[#allocation2 + $0x1f4] sm:$0xff]  ;;  %v15771_v44 = vpop.permute.xlu1 %9980 }
 0x2f6   : > { %v9763_v7 = vunpack.i.h.bf16 %v20035_v17  ;;  %v9762_v38 = vunpack.i.l.bf16 %v20035_v17  ;;  %v20036_v37 = vpack.i.bf16 %v15488_v21, %v15514_v45  ;;  %v10274_v42 = vpack.i.bf16 %v15735_v48, %v15761_v25  ;;  %v15773_v9 = vld [vmem:[#allocation2 + $0x214] sm:$0xff] }
 0x2f7   : > { %10260 = vrot.lane.b32.xlu1 %v20031_v5, %s11394_s6  ;;  %v3664_v3 = vsel %vm1712_vm2, %v20034_v10, %v20033_v47  ;;  %v3695_v11 = vsel %vm1745_vm3, %v20037_v46, %v9602_v8  ;;  %v9843_v13 = vunpack.i.h.bf16 %v15348_v19  ;;  %v9842_v20 = vunpack.i.l.bf16 %v15348_v19  ;;  %v15821_v46 = vld [vmem:[#allocation2 + $0x24c] sm:$0xff] }
 0x2f8   : > { %10265 = vrot.lane.b32.xlu0 %v20036_v37, %s11394_s6  ;;  %v8144_v27 = vpack.c.bf16 %v3820_v28, %v3819_v50  ;;  %v20038_v55 = vunpack.i.h.bf16 %v19995_v63  ;;  %v9923_v58 = vunpack.i.h.bf16 %v15588_v34  ;;  %v9922_v51 = vunpack.i.l.bf16 %v15588_v34  ;;  %v15790_v63 = vld [vmem:[#allocation2 + $0x1ec] sm:$0xff]  ;;  %20041 = vst [vmem:[#allocation58_spill] sm:$0xff] %v15821_v46 }
 0x2f9   : > { %v8147_v8 = vpack.c.bf16 %v3822_v1, %v3821_v31  ;;  %v3727_v5 = vsel %vm1778_vm4, %v3695_v11, %v9682_v14  ;;  %v20039_v50 = vpack.i.bf16 %v15583_v2, %v15602_v36  ;;  %v10279_v34 = vpack.i.bf16 %v15765_v54, %v15790_v63  ;;  %v15803_v1 = vld [vmem:[#allocation2 + $0x234] sm:$0xff]  ;;  %v15807_v10 = vpop.permute.xlu1 %9990  ;;  %v15816_v37 = vld [vmem:[#allocation2 + $0x22c] sm:$0xff] }
 0x2fa   : > { %v3696_v57 = vsel %vm1745_vm3, %v3664_v3, %v20038_v55  ;;  %8492 = vmatmul.mubr.msk.bf16.gmra.mxu1 %vm13383_vm9, %v8144_v27  ;;  %v3759_v28 = vsel %vm1811_vm5, %v3727_v5, %v9762_v38  ;;  %v15809_v3 = vld [vmem:[#allocation2 + $0x254] sm:$0xff]  ;;  %v15813_v38 = vpop.permute.xlu0 %9995  ;;  %20040 = vst [vmem:[#allocation77_spill] sm:$0xff] %v15816_v37 }
 0x2fb   : > { %v3728_v19 = vsel %vm1778_vm4, %v3696_v57, %v9683_v23  ;;  %10270 = vrot.lane.b32.xlu1 %v20039_v50, %s11394_s6  ;;  %8495 = vmatprep.mubr.msk.bf16.mxu1 %vm13383_vm9, %v8147_v8  ;;  %v15799_v23 = vld [vmem:[#allocation2 + $0x20c] sm:$0xff]  ;;  %v3791_v12 = vsel %vm1844_vm6, %v3759_v28, %v9842_v20  ;;  %v10294_v11 = vpack.i.bf16 %v15809_v3, %v15821_v46  ;;  %v4392_v55 = vld [vmem:[#allocation2 + $0x294] sm:$0xff]  ;;  %v15919_v46 = vld [vmem:[#allocation2 + $0x244] sm:$0xff] }
 0x2fc   : > { %v3760_v31 = vsel %vm1811_vm5, %v3728_v19, %v9763_v7  ;;  %10275 = vrot.lane.b32.xlu0 %v10274_v42, %s11394_s6  ;;  %v10284_v14 = vpack.i.bf16 %v15773_v9, %v15799_v23  ;;  %v3823_v17 = vsel %vm1877_vm7, %v3791_v12, %v9922_v51  ;;  %v10289_v42 = vpack.i.bf16 %v15803_v1, %v15816_v37  ;;  %v11273_v8 = vld [vmem:[#allocation2 + $0x28c] sm:$0xff]  ;;  %v4393_v19 = vld [vmem:[#allocation2 + $0x2b4] sm:$0xff] }
 0x2fd   : > { %v3792_v47 = vsel %vm1844_vm6, %v3760_v31, %v9843_v13  ;;  %v15825_v13 = vld [vmem:[#allocation2 + $0x274] sm:$0xff]  ;;  %v15827_v20 = vpop.permute.xlu1 %10000  ;;  %v15839_v5 = vpack.i.bf16 %v4392_v55, %v11273_v8  ;;  %v11274_v31 = vld [vmem:[#allocation2 + $0x2ac] sm:$0xff]  ;;  %20060 = vst [vmem:[#allocation25_spill] sm:$0xff] %v15919_v46 }
 0x2fe   : > { %v3824_v7 = vsel %vm1877_vm7, %v3792_v47, %v9923_v58  ;;  %20042 = vst [vmem:[#allocation55_spill] sm:$0xff] %v15827_v20  ;;  %v15829_v57 = vpop.permute.xlu0 %10005  ;;  %v15834_v58 = vld [vmem:[#allocation2 + $0x26c] sm:$0xff] }
 0x2ff   : > { %10280 = vrot.lane.b32.xlu1 %v10279_v34, %s11394_s6  ;;  %v8150_v27 = vpack.c.bf16 %v3824_v7, %v3823_v17  ;;  %20043 = vst [vmem:[#allocation78_spill] sm:$0xff] %v15829_v57  ;;  %20044 = vst [vmem:[#allocation14_spill] sm:$0xff] %v15834_v58  ;;  %v10299_v51 = vpack.i.bf16 %v15825_v13, %v15834_v58  ;;  %v4394_v34 = vld [vmem:[#allocation2 + $0x2d4] sm:$0xff]  ;;  %v11275_v12 = vld [vmem:[#allocation2 + $0x2cc] sm:$0xff] }
 0x300   : > { %10285 = vrot.lane.b32.xlu0 %v10284_v14, %s11394_s6  ;;  %20045 = vst [vmem:[#allocation50_spill] sm:$0xff] %v15839_v5  ;;  %v15846_v14 = vpack.i.bf16 %v4393_v19, %v11274_v31  ;;  %v15850_v47 = vpack.i.bf16 %v4394_v34, %v11275_v12  ;;  %v4395_v17 = vld [vmem:[#allocation2 + $0x2f4] sm:$0xff]  ;;  %v15868_v19 = vld [vmem:[#allocation2 + $0x1ac] sm:$0xff]  ;;  %v15901_v58 = vld [vmem:[#allocation2 + $0x204] sm:$0xff] }
 0x301   : > { %v15841_v50 = vpop.permute.xlu1 %10010  ;;  %v15872_v31 = vld [vmem:[#allocation2 + $0x1cc] sm:$0xff] }
 0x302   : > { %8496 = vmatmul.mubr.msk.bf16.gmra.mxu1 %vm13383_vm9, %v8150_v27  ;;  %20046 = vst [vmem:[#allocation59_spill] sm:$0xff] %v15841_v50  ;;  %v15843_v28 = vpop.permute.xlu0 %10015  ;;  %20048 = vst [vmem:[#allocation20_spill] sm:$0xff] %v15846_v14  ;;  %v11276_v27 = vld [vmem:[#allocation2 + $0x2ec] sm:$0xff] }
 0x303   : > { %10290 = vrot.lane.b32.xlu1 %v10289_v42, %s11394_s6  ;;  %20047 = vst [vmem:[#allocation22_spill] sm:$0xff] %v15843_v28  ;;  %20049 = vst [vmem:[#allocation85_spill] sm:$0xff] %v15850_v47  ;;  %v15854_v42 = vld [vmem:[#allocation2 + $0x18c] sm:$0xff]  ;;  %v15860_v55 = vpack.i.bf16 %v4395_v17, %v11276_v27  ;;  %v15878_v17 = vld [vmem:[#allocation2 + $0x1a4] sm:$0xff] }
 0x304   : > { %10295 = vrot.lane.b32.xlu0 %v10294_v11, %s11394_s6  ;;  %v10329_v27 = vpack.i.bf16 %v15868_v19, %v15878_v17  ;;  %v15905_v28 = vld [vmem:[#allocation2 + $0x22c] sm:$0xff] }
 0x305   : > { %v15852_v7 = vpop.permute.xlu1 %10020  ;;  %20052 = vst [vmem:[#allocation48_spill] sm:$0xff] %v15860_v55  ;;  %v15909_v50 = vld [vmem:[#allocation2 + $0x24c] sm:$0xff] }
 0x306   : > { %20050 = vst [vmem:[#allocation42_spill] sm:$0xff] %v15852_v7  ;;  %v15856_v11 = vpop.permute.xlu0 %10025  ;;  %v10354_v57 = vpack.i.bf16 %v15909_v50, %v15919_v46  ;;  %v15923_v37 = vld [vmem:[#allocation2 + $0x26c] sm:$0xff] }
 0x307   : > { %10300 = vrot.lane.b32.xlu1 %v10299_v51, %s11394_s6  ;;  %20051 = vst [vmem:[#allocation39_spill] sm:$0xff] %v15856_v11  ;;  %v15864_v51 = vld [vmem:[#allocation2 + $0x184] sm:$0xff]  ;;  %v10334_v11 = vpack.i.bf16 %v15872_v31, %v15883_v56 }
 0x308   : > { %10305 = vrot.lane.b32.xlu0 %v15839_v5, %s11394_s6  ;;  %v10324_v8 = vpack.i.bf16 %v15854_v42, %v15864_v51 }
 0x309   : > { %v15870_v34 = vpop.permute.xlu1 %10030 }
 0x30a   : > { %20053 = vst [vmem:[#allocation44_spill] sm:$0xff] %v15870_v34  ;;  %v15874_v12 = vpop.permute.xlu0 %10035  ;;  %v15887_v34 = vld [vmem:[#allocation2 + $0x1ec] sm:$0xff] }
 0x30b   : > { %10310 = vrot.lane.b32.xlu1 %v15846_v14, %s11394_s6  ;;  %20054 = vst [vmem:[#allocation26_spill] sm:$0xff] %v15874_v12  ;;  %v15891_v12 = vld [vmem:[#allocation2 + $0x20c] sm:$0xff] }
 0x30c   : > { %10315 = vrot.lane.b32.xlu0 %v15850_v47, %s11394_s6  ;;  %v10344_v14 = vpack.i.bf16 %v15891_v12, %v15901_v58 }
 0x30d   : > { %v15889_v7 = vpop.permute.xlu1 %10040 }
 0x30e   : > { %20055 = vst [vmem:[#allocation30_spill] sm:$0xff] %v15889_v7  ;;  %v15893_v47 = vpop.permute.xlu0 %10045 }
 0x30f   : > { %10320 = vrot.lane.b32.xlu1 %v15860_v55, %s11394_s6  ;;  %20056 = vst [vmem:[#allocation54_spill] sm:$0xff] %v15893_v47  ;;  %v15896_v55 = vld [vmem:[#allocation2 + $0x1e4] sm:$0xff] }
 0x310   : > { %10325 = vrot.lane.b32.xlu0 %v10324_v8, %s11395_s7  ;;  %v10339_v8 = vpack.i.bf16 %v15887_v34, %v15896_v55 }
 0x311   : > { %v15907_v7 = vpop.permute.xlu1 %10050 }
 0x312   : > { %20057 = vst [vmem:[#allocation61_spill] sm:$0xff] %v15907_v7  ;;  %v15911_v47 = vpop.permute.xlu0 %10055 }
 0x313   : > { %10330 = vrot.lane.b32.xlu1 %v10329_v27, %s11395_s7  ;;  %20058 = vst [vmem:[#allocation56_spill] sm:$0xff] %v15911_v47  ;;  %v15914_v27 = vld [vmem:[#allocation2 + $0x224] sm:$0xff] }
 0x314   : > { %10335 = vrot.lane.b32.xlu0 %v10334_v11, %s11395_s7  ;;  %20059 = vst [vmem:[#allocation60_spill] sm:$0xff] %v15914_v27  ;;  %v10349_v11 = vpack.i.bf16 %v15905_v28, %v15914_v27 }
 0x315   : > { %v15925_v7 = vpop.permute.xlu1 %10060 }
 0x316   : > { %20061 = vst [vmem:[#allocation37_spill] sm:$0xff] %v15925_v7  ;;  %v15927_v5 = vpop.permute.xlu0 %10065 }
 0x317   : > { %10340 = vrot.lane.b32.xlu1 %v10339_v8, %s11395_s7  ;;  %20062 = vst [vmem:[#allocation79_spill] sm:$0xff] %v15927_v5  ;;  %v15930_v8 = vld [vmem:[#allocation2 + $0x264] sm:$0xff] }
 0x318   : > { %10345 = vrot.lane.b32.xlu0 %v10344_v14, %s11395_s7  ;;  %20063 = vst [vmem:[#allocation21_spill] sm:$0xff] %v15930_v8  ;;  %v10359_v47 = vpack.i.bf16 %v15923_v37, %v15930_v8  ;;  %v4421_v5 = vld [vmem:[#allocation2 + $0x304] sm:$0xff] }
 0x319   : > { %v15935_v14 = vpop.permute.xlu1 %10070 }
 0x31a   : > { %20064 = vst [vmem:[#allocation76_spill] sm:$0xff] %v15935_v14  ;;  %v15937_v27 = vpop.permute.xlu0 %10075 }
 0x31b   : > { %10350 = vrot.lane.b32.xlu1 %v10349_v11, %s11395_s7  ;;  %20065 = vst [vmem:[#allocation11_spill] sm:$0xff] %v15937_v27  ;;  %v15944_v11 = vld [vmem:[#allocation2 + $0x30c] sm:$0xff]  ;;  %v4423_v27 = vld [vmem:[#allocation2 + $0x324] sm:$0xff] }
 0x31c   : > { %10355 = vrot.lane.b32.xlu0 %v10354_v57, %s11395_s7  ;;  %v10384_v57 = vpack.i.bf16 %v15944_v11, %v4421_v5  ;;  %v4427_v5 = vld [vmem:[#allocation2 + $0x364] sm:$0xff] }
 0x31d   : > { %v15942_v7 = vpop.permute.xlu1 %10080 }
 0x31e   : > { %20066 = vst [vmem:[#allocation51_spill] sm:$0xff] %v15942_v7  ;;  %v15946_v46 = vpop.permute.xlu0 %10085  ;;  %v15957_v7 = vld [vmem:[#allocation2 + $0x34c] sm:$0xff] }
 0x31f   : > { %10360 = vrot.lane.b32.xlu1 %v10359_v47, %s11395_s7  ;;  %20067 = vst [vmem:[#allocation66_spill] sm:$0xff] %v15946_v46  ;;  %v15953_v47 = vld [vmem:[#allocation2 + $0x32c] sm:$0xff] }
 0x320   : > { %10365 = vrot.lane.b32.xlu0 %v19958_v26, %s11395_s7  ;;  %v4425_v26 = vld [vmem:[#allocation2 + $0x344] sm:$0xff]  ;;  %v15966_v46 = vld [vmem:[#allocation2 + $0x36c] sm:$0xff] }
 0x321   : > { %20070 = vst [vmem:[#allocation80_spill] sm:$0xff] %v15966_v46 }
 0x322   : > { %v15955_v14 = vpop.permute.xlu1 %10090 }
 0x323   : > { %10370 = vrot.lane.b32.xlu1 %v19961_v32, %s11395_s7  ;;  %20068 = vst [vmem:[#allocation31_spill] sm:$0xff] %v15955_v14  ;;  %v15959_v8 = vpop.permute.xlu0 %10095  ;;  %v10389_v32 = vpack.i.bf16 %v15953_v47, %v4423_v27 }
 0x324   : > { %10375 = vrot.lane.b32.xlu0 %v19965_v41, %s11395_s7  ;;  %20069 = vst [vmem:[#allocation29_spill] sm:$0xff] %v15959_v8  ;;  %v10394_v41 = vpack.i.bf16 %v15957_v7, %v4425_v26  ;;  %v10399_v8 = vpack.i.bf16 %v15966_v46, %v4427_v5  ;;  %v11221_v26 = vld [vmem:[%s18799_s1 + $0xb0] sm:$0xff]   ;;  %v9972_v46 = vunpack.i.l.bf16 %v15733_v0 }
 0x326   : > { %v15968_v20 = vpop.permute.xlu1 %10100 }
 0x327   : > { %10380 = vrot.lane.b32.xlu1 %v19971_v29, %s11395_s7  ;;  %20071 = vst [vmem:[#allocation84_spill] sm:$0xff] %v15968_v20  ;;  %v15970_v14 = vpop.permute.xlu0 %10105  ;;  %v11220_v29 = vld [vmem:[%s18799_s1 + $0xb8] sm:$0xff]  }
 0x328   : > { %10385 = vrot.lane.b32.xlu0 %v10384_v57, %s11395_s7  ;;  %20072 = vst [vmem:[#allocation34_spill] sm:$0xff] %v15970_v14  ;;  %8499 = vmatprep.subr.bf16.mxu0 %v11220_v29  ;;  %v11292_v14 = vld [vmem:[#allocation2 + $0x124] sm:$0xff] }
 0x329   : > { %8500 = vmatpush3.bf16.msra.mxu0 %v11220_v29 }
 0x32a   : > { %v15978_v27 = vpop.permute.xlu1 %10110  ;;  %8501 = vmatprep.subr.bf16.mxu0 %v11221_v26 }
 0x32b   : > { %10390 = vrot.lane.b32.xlu1 %v10389_v32, %s11395_s7  ;;  %20073 = vst [vmem:[#allocation24_spill] sm:$0xff] %v15978_v27  ;;  %v15980_v57 = vpop.permute.xlu0 %10115 }
 0x32c   : > { %10395 = vrot.lane.b32.xlu0 %v10394_v41, %s11395_s7  ;;  %20074 = vst [vmem:[#allocation15_spill] sm:$0xff] %v15980_v57  ;;  %v11290_v57 = vld [vmem:[#allocation2 + $0x104] sm:$0xff] }
 0x32d   : > { %8502 = vmatpush3.bf16.msra.mxu0 %v11221_v26  ;;  %v20081_v26 = vld [vmem:[#allocation47_spill] sm:$0xff] }
 0x32e   : > { %v15988_v32 = vpop.permute.xlu1 %10120 }
 0x32f   : > { %10400 = vrot.lane.b32.xlu1 %v10399_v8, %s11395_s7  ;;  %20075 = vst [vmem:[#allocation81_spill] sm:$0xff] %v15988_v32  ;;  %v15990_v5 = vpop.permute.xlu0 %10125  ;;  %v11222_v8 = vld [vmem:[%s18799_s1 + $0xa8] sm:$0xff]   ;;  %v9958_v32 = vunpack.i.h.bf16 %v15679_v6 }
 0x330   : > { %10405 = vrot.lane.b32.xlu0 %v19989_v15, %s11396_s17  ;;  %20076 = vst [vmem:[#allocation43_spill] sm:$0xff] %v15990_v5  ;;  %8503 = vmatprep.subr.bf16.mxu0 %v11222_v8 }
 0x331   : > { %8504 = vmatpush3.bf16.msra.mxu0 %v11222_v8 }
 0x332   : > { %v15999_v41 = vpop.permute.xlu1 %10130 }
 0x333   : > { %10410 = vrot.lane.b32.xlu1 %v19994_v62, %s11396_s17  ;;  %20077 = vst [vmem:[#allocation75_spill] sm:$0xff] %v15999_v41  ;;  %v16001_v15 = vpop.permute.xlu0 %10135  ;;  %v11223_v62 = vld [vmem:[%s18799_s1 + $0xa0] sm:$0xff]  }
 0x334   : > { %10415 = vrot.lane.b32.xlu0 %v19997_v52, %s11396_s17  ;;  %20078 = vst [vmem:[#allocation19_spill] sm:$0xff] %v16001_v15  ;;  %8505 = vmatprep.subr.bf16.mxu0 %v11223_v62  ;;  %v4458_v15 = vld [vmem:[#allocation2 + $0x350] sm:$0xff] }
 0x335   : > { %8506 = vmatpush3.bf16.msra.mxu0 %v11223_v62  ;;  %v11225_v62 = vld [vmem:[%s18799_s1 + $0x90] sm:$0xff]  }
 0x336   : > { %v16010_v29 = vpop.permute.xlu1 %10140 }
 0x337   : > { %10420 = vrot.lane.b32.xlu1 %v19999_v33, %s11396_s17  ;;  %20079 = vst [vmem:[#allocation28_spill] sm:$0xff] %v16010_v29  ;;  %v16012_v52 = vpop.permute.xlu0 %10145  ;;  %v11224_v33 = vld [vmem:[%s18799_s1 + $0x98] sm:$0xff]   ;;  %v4457_v29 = vld [vmem:[#allocation2 + $0x348] sm:$0xff] }
 0x338   : > { %10425 = vrot.lane.b32.xlu0 %v20002_v53, %s11396_s17  ;;  %20080 = vst [vmem:[#allocation33_spill] sm:$0xff] %v16012_v52  ;;  %8507 = vmatprep.subr.bf16.mxu0 %v11224_v33  ;;  %v4453_v52 = vld [vmem:[#allocation2 + $0x308] sm:$0xff] }
 0x339   : > { %8508 = vmatpush3.bf16.msra.mxu0 %v11224_v33 }
 0x33a   : > { %v16021_v8 = vpop.permute.xlu1 %10150  ;;  %8509 = vmatprep.subr.bf16.mxu0 %v11225_v62 }
 0x33b   : > { %10430 = vrot.lane.b32.xlu1 %v20081_v26, %s11396_s17  ;;  %20082 = vst [vmem:[#allocation63_spill] sm:$0xff] %v16021_v8  ;;  %v16023_v53 = vpop.permute.xlu0 %10155 }
 0x33c   : > { %10435 = vrot.lane.b32.xlu0 %v20007_v40, %s11396_s17  ;;  %20083 = vst [vmem:[#allocation35_spill] sm:$0xff] %v16023_v53  ;;  %v4454_v40 = vld [vmem:[#allocation2 + $0x310] sm:$0xff] }
 0x33d   : > { %8510 = vmatpush3.bf16.msra.mxu0 %v11225_v62  ;;  %v10464_v33 = vpack.i.bf16 %v4454_v40, %v4453_v52  ;;  %v4456_v53 = vld [vmem:[#allocation2 + $0x330] sm:$0xff]  ;;  %v11227_v62 = vld [vmem:[%s18799_s1 + $0x80] sm:$0xff]   ;;  %v4459_v52 = vld [vmem:[#allocation2 + $0x368] sm:$0xff] }
 0x33e   : > { %v16032_v26 = vpop.permute.xlu1 %10160  ;;  %v4460_v40 = vld [vmem:[#allocation2 + $0x370] sm:$0xff] }
 0x33f   : > { %10440 = vrot.lane.b32.xlu1 %v20012_v60, %s11396_s17  ;;  %20084 = vst [vmem:[#allocation68_spill] sm:$0xff] %v16032_v26  ;;  %v16034_v8 = vpop.permute.xlu0 %10165  ;;  %v11226_v60 = vld [vmem:[%s18799_s1 + $0x88] sm:$0xff]  }
 0x340   : > { %10445 = vrot.lane.b32.xlu0 %v20015_v16, %s11396_s17  ;;  %20085 = vst [vmem:[#allocation64_spill] sm:$0xff] %v16034_v8  ;;  %v4455_v16 = vld [vmem:[#allocation2 + $0x328] sm:$0xff]  ;;  %8511 = vmatprep.subr.bf16.mxu0 %v11226_v60 }
 0x341   : > { %8512 = vmatpush3.bf16.msra.mxu0 %v11226_v60  ;;  %v10479_v60 = vpack.i.bf16 %v4460_v40, %v4459_v52  ;;  %v20093_v52 = vld [vmem:[#allocation46_spill] sm:$0xff] }
 0x342   : > { %8513 = vmatprep.subr.bf16.mxu0 %v11227_v62  ;;  %v9932_v40 = vunpack.i.l.bf16 %v20093_v52 }
 0x343   : > { %10450 = vrot.lane.b32.xlu1 %v15214_v24, %s11396_s17  ;;  %v10469_v24 = vpack.i.bf16 %v4456_v53, %v4455_v16  ;;  %v20090_v53 = vld [vmem:[#allocation36_spill] sm:$0xff] }
 0x344   : > { %10455 = vrot.lane.b32.xlu0 %v15232_v18, %s11396_s17  ;;  %v16043_v26 = vpop.permute.xlu1 %10170  ;;  %v10474_v18 = vpack.i.bf16 %v4458_v15, %v4457_v29  ;;  %v9928_v16 = vunpack.i.h.bf16 %v20090_v53  ;;  %v9927_v15 = vunpack.i.l.bf16 %v20090_v53  ;;  %v16076_v53 = vld [vmem:[#allocation2 + $0x314] sm:$0xff] }
 0x345   : > { %20086 = vst [vmem:[#allocation71_spill] sm:$0xff] %v16043_v26  ;;  %v16045_v8 = vpop.permute.xlu0 %10175  ;;  %8514 = vmatpush3.bf16.msra.mxu0 %v11227_v62  ;;  %v4236_v62 = vld [vmem:[#allocation2 + $0x84] sm:$0xff] }
 0x346   : > { %20087 = vst [vmem:[#allocation67_spill] sm:$0xff] %v16045_v8 }
 0x347   : > { %10460 = vrot.lane.b32.xlu1 %v15242_v49, %s11396_s17  ;;  %v10484_v49 = vpack.i.bf16 %v15488_v21, %v15854_v42  ;;  %v20094_v21 = vld [vmem:[#allocation17_spill] sm:$0xff] }
 0x348   : > { %10465 = vrot.lane.b32.xlu0 %v10464_v33, %s11396_s17  ;;  %v16053_v26 = vpop.permute.xlu1 %10180  ;;  %v9938_v42 = vunpack.i.h.bf16 %v20094_v21 }
 0x349   : > { %20088 = vst [vmem:[#allocation73_spill] sm:$0xff] %v16053_v26  ;;  %v16055_v41 = vpop.permute.xlu0 %10185  ;;  %v9937_v26 = vunpack.i.l.bf16 %v20094_v21  ;;  %v9943_v21 = vunpack.i.h.bf16 %v15645_v61 }
 0x34a   : > { %20089 = vst [vmem:[#allocation62_spill] sm:$0xff] %v16055_v41  ;;  %v10489_v41 = vpack.i.bf16 %v15583_v2, %v15868_v19  ;;  %v10499_v2 = vpack.i.bf16 %v15765_v54, %v15887_v34  ;;  %v16099_v34 = vsel %vm170_vm0, %v4236_v62, %v9927_v15  ;;  %v16107_v19 = vld [vmem:[#allocation2 + $0x354] sm:$0xff]  ;;  %v11287_v15 = vld [vmem:[#allocation2 + $0xcc] sm:$0xff] }
 0x34b   : > { %10470 = vrot.lane.b32.xlu1 %v10469_v24, %s11396_s17  ;;  %v10494_v24 = vpack.i.bf16 %v15735_v48, %v15872_v31  ;;  %v10504_v48 = vpack.i.bf16 %v15773_v9, %v15891_v12  ;;  %v16096_v9 = vld [vmem:[#allocation2 + $0x334] sm:$0xff]  ;;  %v4242_v12 = vld [vmem:[#allocation2 + $0xe4] sm:$0xff]  ;;  %v9948_v31 = vunpack.i.h.bf16 %v15650_v43  ;;  %v16116_v62 = vsel %vm170_vm0, %v11287_v15, %v9938_v42  ;;  %v11289_v15 = vld [vmem:[#allocation2 + $0x10c] sm:$0xff] }
 0x34c   : > { %10475 = vrot.lane.b32.xlu0 %v10474_v18, %s11396_s17  ;;  %v16062_v33 = vpop.permute.xlu1 %10190  ;;  %v9933_v18 = vunpack.i.h.bf16 %v20093_v52  ;;  %v11285_v52 = vld [vmem:[#allocation2 + $0x8c] sm:$0xff] }
 0x34d   : > { %20091 = vst [vmem:[#allocation18_spill] sm:$0xff] %v16062_v33  ;;  %v16065_v29 = vpop.permute.xlu0 %10195  ;;  %v4240_v33 = vld [vmem:[#allocation2 + $0xc4] sm:$0xff] }
 0x34e   : > { %20092 = vst [vmem:[#allocation72_spill] sm:$0xff] %v16065_v29  ;;  %v4238_v29 = vld [vmem:[#allocation2 + $0xa4] sm:$0xff] }
 0x34f   : > { %10480 = vrot.lane.b32.xlu1 %v10479_v60, %s11396_s17  ;;  %v16088_v60 = vsel %vm170_vm0, %v11285_v52, %v9928_v16  ;;  %v9947_v16 = vunpack.i.l.bf16 %v15650_v43  ;;  %v16113_v5 = vsel %vm170_vm0, %v4238_v29, %v9932_v40  ;;  %v16119_v43 = vsel %vm170_vm0, %v4240_v33, %v9937_v26  ;;  %v16128_v29 = vld [vmem:[#allocation2 + $0x374] sm:$0xff]  ;;  %v11288_v26 = vld [vmem:[#allocation2 + $0xec] sm:$0xff] }
 0x350   : > { %10485 = vrot.lane.b32.xlu0 %v10484_v49, %s11397_s20  ;;  %v9942_v49 = vunpack.i.l.bf16 %v15645_v61  ;;  %v16092_v8 = vpop.permute.xlu1 %10200  ;;  %v9953_v61 = vunpack.i.h.bf16 %v15673_v35  ;;  %20097 = vst [vmem:[#allocation65_spill] sm:$0xff] %v16128_v29  ;;  %v16132_v40 = vld [vmem:[#allocation2 + $0x10] sm:$0xff] }
 0x351   : > { %20095 = vst [vmem:[#allocation53_spill] sm:$0xff] %v16092_v8  ;;  %v16103_v52 = vpop.permute.xlu0 %10205  ;;  %v11286_v8 = vld [vmem:[#allocation2 + $0xac] sm:$0xff]  ;;  %20099 = vst [vmem:[#allocation16_spill] sm:$0xff] %v16132_v40  ;;  %v16149_v27 = vsel %vm170_vm0, %v11290_v57, %v9947_v16  ;;  %v9973_v57 = vunpack.i.h.bf16 %v15733_v0  ;;  %v9977_v0 = vunpack.i.l.bf16 %v15741_v30 }
 0x352   : > { %20096 = vst [vmem:[#allocation23_spill] sm:$0xff] %v16103_v52  ;;  %v16110_v54 = vsel %vm170_vm0, %v11286_v8, %v9933_v18  ;;  %v9952_v52 = vunpack.i.l.bf16 %v15673_v35  ;;  %v16130_v18 = vld [vmem:[#allocation2 + $0x8] sm:$0xff]  ;;  %v16138_v33 = vsel %vm170_vm0, %v4242_v12, %v9942_v49  ;;  %v9957_v35 = vunpack.i.l.bf16 %v15679_v6 }
 0x353   : > { %10490 = vrot.lane.b32.xlu1 %v10489_v41, %s11397_s20  ;;  %20098 = vst [vmem:[#allocation74_spill] sm:$0xff] %v16130_v18  ;;  %v16135_v41 = vsel %vm170_vm0, %v11288_v26, %v9943_v21  ;;  %v16146_v8 = vsel %vm170_vm0, %v11289_v15, %v9948_v31  ;;  %v9963_v21 = vunpack.i.h.bf16 %v15699_v39  ;;  %v9962_v49 = vunpack.i.l.bf16 %v15699_v39  ;;  %v16155_v6 = vld [vmem:[#allocation2 + $0x28] sm:$0xff]  ;;  %v16157_v26 = vld [vmem:[#allocation2 + $0x30] sm:$0xff] }
 0x354   : > { %10495 = vrot.lane.b32.xlu0 %v10494_v24, %s11397_s20  ;;  %v16141_v42 = vpop.permute.xlu1 %10210  ;;  %20102 = vst [vmem:[#allocation45_spill] sm:$0xff] %v16155_v6  ;;  %20103 = vst [vmem:[#allocation6_spill] sm:$0xff] %v16157_v26  ;;  %v9968_v24 = vunpack.i.h.bf16 %v15704_v4  ;;  %v16166_v16 = vld [vmem:[#allocation2 + $0x48] sm:$0xff]  ;;  %v16168_v39 = vld [vmem:[#allocation2 + $0x50] sm:$0xff]  ;;  %v16174_v20 = vsel %vm170_vm0, %v11292_v14, %v9952_v52 }
 0x355   : > { %20100 = vst [vmem:[#allocation57_spill] sm:$0xff] %v16141_v42  ;;  %v16153_v12 = vpop.permute.xlu0 %10215  ;;  %v9967_v42 = vunpack.i.l.bf16 %v15704_v4  ;;  %20104 = vst [vmem:[#allocation38_spill] sm:$0xff] %v16166_v16  ;;  %v11291_v15 = vld [vmem:[#allocation2 + $0x12c] sm:$0xff]  ;;  %v11294_v31 = vld [vmem:[#allocation2 + $0x144] sm:$0xff] }
 0x356   : > { %20101 = vst [vmem:[#allocation83_spill] sm:$0xff] %v16153_v12  ;;  %20105 = vst [vmem:[#allocation10_spill] sm:$0xff] %v16168_v39  ;;  %v16171_v12 = vsel %vm170_vm0, %v11291_v15, %v9953_v61  ;;  %v11293_v4 = vld [vmem:[#allocation2 + $0x14c] sm:$0xff]  ;;  %v16182_v18 = vsel %vm170_vm0, %v11294_v31, %v9957_v35  ;;  %v9978_v61 = vunpack.i.h.bf16 %v15741_v30  ;;  %v16212_v29 = vsel %vm170_vm0, %v15514_v45, %v9968_v24  ;;  %v20141_v16 = vld [vmem:[#allocation22_spill] sm:$0xff] }
 0x357   : > { %10500 = vrot.lane.b32.xlu1 %v10499_v2, %s11397_s20  ;;  %v16177_v2 = vsel %vm170_vm0, %v11293_v4, %v9958_v32  ;;  %v16190_v52 = vld [vmem:[#allocation2 + $0x68] sm:$0xff]  ;;  %v16192_v32 = vld [vmem:[#allocation2 + $0x70] sm:$0xff]  ;;  %v9982_v30 = vunpack.i.l.bf16 %v15771_v44  ;;  %v16230_v45 = vsel %vm170_vm0, %v15602_v36, %v9973_v57  ;;  %v16246_v36 = vsel %vm170_vm0, %v15878_v17, %v9972_v46 }
 0x358   : > { %10505 = vrot.lane.b32.xlu0 %v10504_v48, %s11397_s20  ;;  %v16186_v15 = vpop.permute.xlu1 %10220  ;;  %20107 = vst [vmem:[#allocation52_spill] sm:$0xff] %v16190_v52  ;;  %20108 = vst [vmem:[#allocation27_spill] sm:$0xff] %v16192_v32  ;;  %v16196_v48 = vsel %vm170_vm0, %v15484_v59, %v9963_v21  ;;  %v11295_v4 = vld [vmem:[#allocation2 + $0x164] sm:$0xff]  ;;  %v16208_v6 = vld [vmem:[#allocation2 + $0x90] sm:$0xff]  ;;  %v16216_v59 = vsel %vm170_vm0, %v15864_v51, %v9967_v42  ;;  %v9983_v21 = vunpack.i.h.bf16 %v15771_v44  ;;  %v9988_v51 = vunpack.i.h.bf16 %v15780_v22 }
 0x359   : > { %20106 = vst [vmem:[#allocation13_spill] sm:$0xff] %v16186_v15  ;;  %v16199_v35 = vsel %vm170_vm0, %v11295_v4, %v9962_v49  ;;  %v16202_v31 = vpop.permute.xlu0 %10225  ;;  %v16206_v14 = vld [vmem:[#allocation2 + $0x88] sm:$0xff]  ;;  %v20111_v49 = vpack.i.bf16 %v15803_v1, %v15905_v28  ;;  %v16226_v15 = vld [vmem:[#allocation2 + $0xb0] sm:$0xff]  ;;  %v9987_v42 = vunpack.i.l.bf16 %v15780_v22  ;;  %v20114_v44 = vpack.i.bf16 %v15809_v3, %v15909_v50 }
 0x35a   : > { %20109 = vst [vmem:[#allocation41_spill] sm:$0xff] %v16202_v31  ;;  %20110 = vst [vmem:[#allocation69_spill] sm:$0xff] %v16206_v14  ;;  %v16224_v4 = vld [vmem:[#allocation2 + $0xa8] sm:$0xff]  ;;  %v16242_v24 = vld [vmem:[#allocation2 + $0xd0] sm:$0xff]  ;;  %v16250_v57 = vsel %vm170_vm0, %v15761_v25, %v9978_v61  ;;  %v9993_v22 = vunpack.i.h.bf16 %v15807_v10  ;;  %v16259_v50 = vsel %vm170_vm0, %v15883_v56, %v9977_v0  ;;  %v9998_v46 = vunpack.i.h.bf16 %v15813_v38 }
 0x35b   : > { %10510 = vrot.lane.b32.xlu1 %v20111_v49, %s11397_s20  ;;  %20112 = vst [vmem:[#allocation8_spill] sm:$0xff] %v16224_v4  ;;  %20113 = vst [vmem:[#allocation7_spill] sm:$0xff] %v16226_v15  ;;  %v16240_v28 = vld [vmem:[#allocation2 + $0xc8] sm:$0xff]  ;;  %v16269_v1 = vld [vmem:[#allocation2 + $0xf0] sm:$0xff]  ;;  %v16273_v3 = vsel %vm170_vm0, %v15790_v63, %v9983_v21  ;;  %v16277_v56 = vsel %vm170_vm0, %v15896_v55, %v9982_v30  ;;  %v20121_v0 = vpack.i.bf16 %v15825_v13, %v15923_v37 }
 0x35c   : > { %10515 = vrot.lane.b32.xlu0 %v20114_v44, %s11397_s20  ;;  %20115 = vst [vmem:[#allocation9_spill] sm:$0xff] %v16240_v28  ;;  %20116 = vst [vmem:[#allocation40_spill] sm:$0xff] %v16242_v24  ;;  %v16253_v49 = vpop.permute.xlu1 %10230  ;;  %v9992_v44 = vunpack.i.l.bf16 %v15807_v10  ;;  %v16267_v61 = vld [vmem:[#allocation2 + $0xe8] sm:$0xff]  ;;  %v9997_v10 = vunpack.i.l.bf16 %v15813_v38  ;;  %v16292_v63 = vsel %vm170_vm0, %v15799_v23, %v9988_v51  ;;  %v16296_v55 = vsel %vm170_vm0, %v15901_v58, %v9987_v42  ;;  %v20125_v13 = vld [vmem:[#allocation50_spill] sm:$0xff] }
 0x35d   : > { %20117 = vst [vmem:[#allocation49_spill] sm:$0xff] %v16253_v49  ;;  %v16263_v17 = vpop.permute.xlu0 %10235  ;;  %20119 = vst [vmem:[#allocation70_spill] sm:$0xff] %v16267_v61  ;;  %v16288_v49 = vld [vmem:[#allocation2 + $0x110] sm:$0xff]  ;;  %v20124_v38 = vld [vmem:[#allocation55_spill] sm:$0xff] }
 0x35e   : > { %20118 = vst [vmem:[#allocation12_spill] sm:$0xff] %v16263_v17  ;;  %20120 = vst [vmem:[#allocation82_spill] sm:$0xff] %v16269_v1  ;;  %v16286_v17 = vld [vmem:[#allocation2 + $0x108] sm:$0xff]  ;;  %v10003_v21 = vunpack.i.h.bf16 %v20124_v38  ;;  %v10002_v37 = vunpack.i.l.bf16 %v20124_v38  ;;  %v20129_v31 = vld [vmem:[#allocation78_spill] sm:$0xff] }
 0x35f   : > { %10520 = vrot.lane.b32.xlu1 %v20121_v0, %s11397_s20  ;;  %20122 = vst [vmem:[#allocation47_spill] sm:$0xff] %v16286_v17  ;;  %20123 = vst [vmem:[#allocation36_spill] sm:$0xff] %v16288_v49  ;;  %v16302_v30 = vld [vmem:[#allocation2 + $0x128] sm:$0xff]  ;;  %v20127_v0 = vld [vmem:[#allocation77_spill] sm:$0xff]  ;;  %v10008_v23 = vunpack.i.h.bf16 %v20129_v31  ;;  %v10007_v51 = vunpack.i.l.bf16 %v20129_v31 }
 0x360   : > { %10525 = vrot.lane.b32.xlu0 %v20125_v13, %s11397_s20  ;;  %20126 = vst [vmem:[#allocation46_spill] sm:$0xff] %v16302_v30  ;;  %v16306_v25 = vsel %vm170_vm0, %v20127_v0, %v9993_v22  ;;  %v16310_v28 = vpop.permute.xlu1 %10240  ;;  %v16314_v42 = vld [vmem:[#allocation2 + $0x130] sm:$0xff]  ;;  %v16316_v38 = vld [vmem:[#allocation2 + $0x148] sm:$0xff]  ;;  %v20135_v22 = vld [vmem:[#allocation58_spill] sm:$0xff] }
 0x361   : > { %20128 = vst [vmem:[#allocation17_spill] sm:$0xff] %v16306_v25  ;;  %20130 = vst [vmem:[#allocation55_spill] sm:$0xff] %v16310_v28  ;;  %v16318_v13 = vld [vmem:[#allocation2 + $0x150] sm:$0xff]  ;;  %v16326_v0 = vsel %vm170_vm0, %v20135_v22, %v9998_v46  ;;  %v20137_v31 = vld [vmem:[#allocation59_spill] sm:$0xff]  ;;  %v16329_v28 = vpop.permute.xlu0 %10245 }
 0x362   : > { %20131 = vst [vmem:[#allocation50_spill] sm:$0xff] %v16314_v42  ;;  %20132 = vst [vmem:[#allocation77_spill] sm:$0xff] %v16316_v38  ;;  %v20134_v4 = vld [vmem:[#allocation60_spill] sm:$0xff]  ;;  %v10012_v52 = vunpack.i.l.bf16 %v20137_v31  ;;  %v20139_v61 = vld [vmem:[#allocation25_spill] sm:$0xff]  ;;  %v10013_v1 = vunpack.i.h.bf16 %v20137_v31 }
 0x363   : > { %20133 = vst [vmem:[#allocation78_spill] sm:$0xff] %v16318_v13  ;;  %v16322_v14 = vsel %vm170_vm0, %v20134_v4, %v9992_v44  ;;  %20136 = vst [vmem:[#allocation60_spill] sm:$0xff] %v16326_v0  ;;  %v16335_v25 = vsel %vm170_vm0, %v20139_v61, %v9997_v10  ;;  %v10018_v4 = vunpack.i.h.bf16 %v20141_v16  ;;  %v10017_v44 = vunpack.i.l.bf16 %v20141_v16  ;;  %v20142_v46 = vld [vmem:[#allocation20_spill] sm:$0xff]  ;;  %v16342_v22 = vld [vmem:[#allocation2 + $0x168] sm:$0xff] }
 0x364   : > { %20138 = vst [vmem:[#allocation58_spill] sm:$0xff] %v16329_v28  ;;  %20140 = vst [vmem:[#allocation59_spill] sm:$0xff] %v16335_v25  ;;  %10530 = vrot.lane.b32.xlu1 %v20142_v46, %s11397_s20  ;;  %v16344_v0 = vld [vmem:[#allocation2 + $0x170] sm:$0xff]  ;;  %v20144_v28 = vld [vmem:[#allocation14_spill] sm:$0xff]  ;;  %v16380_v31 = vsel %vm1679_vm1, %v16113_v5, %v10012_v52 }
 0x365   : > { %20143 = vst [vmem:[#allocation25_spill] sm:$0xff] %v16342_v22  ;;  %v16348_v58 = vsel %vm170_vm0, %v20144_v28, %v10003_v21  ;;  %v20145_v17 = vld [vmem:[#allocation21_spill] sm:$0xff]  ;;  %v16360_v46 = vld [vmem:[#allocation2 + $0x188] sm:$0xff]  ;;  %v16362_v25 = vld [vmem:[#allocation2 + $0x190] sm:$0xff]  ;;  %v16366_v28 = vsel %vm1679_vm1, %v16099_v34, %v10007_v51  ;;  %v16374_v16 = vpop.permute.xlu1 %10250  ;;  %v16400_v5 = vsel %vm1679_vm1, %v16119_v43, %v10017_v44  ;;  %v16404_v52 = vsel %vm1679_vm1, %v16116_v62, %v10018_v4 }
 0x366   : > { %v16352_v61 = vsel %vm170_vm0, %v20145_v17, %v10002_v37  ;;  %v20146_v10 = vld [vmem:[#allocation85_spill] sm:$0xff]  ;;  %20147 = vst [vmem:[#allocation22_spill] sm:$0xff] %v16360_v46  ;;  %20148 = vst [vmem:[#allocation20_spill] sm:$0xff] %v16362_v25  ;;  %v16370_v17 = vsel %vm1679_vm1, %v16088_v60, %v10008_v23  ;;  %v20150_v21 = vld [vmem:[#allocation42_spill] sm:$0xff]  ;;  %v16384_v51 = vpop.permute.xlu0 %10255  ;;  %v20161_v43 = vpack.i.bf16 %v16076_v53, %v15944_v11 }
 0x367   : > { %10535 = vrot.lane.b32.xlu0 %v20146_v10, %s11397_s20  ;;  %20149 = vst [vmem:[#allocation14_spill] sm:$0xff] %v16370_v17  ;;  %v10023_v37 = vunpack.i.h.bf16 %v20150_v21  ;;  %v10022_v10 = vunpack.i.l.bf16 %v20150_v21  ;;  %20151 = vst [vmem:[#allocation21_spill] sm:$0xff] %v16374_v16  ;;  %v16376_v30 = vld [vmem:[#allocation2 + $0x1a8] sm:$0xff]  ;;  %v16388_v23 = vld [vmem:[#allocation2 + $0x1b0] sm:$0xff]  ;;  %v16396_v17 = vsel %vm1679_vm1, %v16110_v54, %v10013_v1  ;;  %v20167_v53 = vpack.i.bf16 %v16096_v9, %v15953_v47 }
 0x368   : > { %20152 = vst [vmem:[#allocation85_spill] sm:$0xff] %v16376_v30  ;;  %20153 = vst [vmem:[#allocation42_spill] sm:$0xff] %v16380_v31  ;;  %v20154_v38 = vld [vmem:[#allocation39_spill] sm:$0xff]  ;;  %v16392_v16 = vld [vmem:[#allocation2 + $0x1d0] sm:$0xff] }
 0x369   : > { %v10028_v13 = vunpack.i.h.bf16 %v20154_v38  ;;  %v10027_v34 = vunpack.i.l.bf16 %v20154_v38  ;;  %20155 = vst [vmem:[#allocation39_spill] sm:$0xff] %v16384_v51  ;;  %v16390_v21 = vld [vmem:[#allocation2 + $0x1c8] sm:$0xff]  ;;  %20157 = vst [vmem:[#allocation87_spill] sm:$0xff] %v16396_v17  ;;  %v20158_v38 = vld [vmem:[#allocation48_spill] sm:$0xff] }
 0x36a   : > { %20156 = vst [vmem:[#allocation86_spill] sm:$0xff] %v16390_v21  ;;  %10540 = vrot.lane.b32.xlu1 %v20158_v38, %s11397_s20  ;;  %v20159_v51 = vld [vmem:[#allocation44_spill] sm:$0xff]  ;;  %v20160_v54 = vld [vmem:[#allocation26_spill] sm:$0xff]  ;;  %v16418_v62 = vld [vmem:[#allocation2 + $0x1e8] sm:$0xff]  ;;  %v16426_v38 = vsel %vm1679_vm1, %v16138_v33, %v10022_v10 }
 0x36b   : > { %v10033_v22 = vunpack.i.h.bf16 %v20159_v51  ;;  %v10032_v31 = vunpack.i.l.bf16 %v20159_v51  ;;  %v10038_v1 = vunpack.i.h.bf16 %v20160_v54  ;;  %v10037_v17 = vunpack.i.l.bf16 %v20160_v54  ;;  %10545 = vrot.lane.b32.xlu0 %v20161_v43, %s11397_s20  ;;  %20162 = vst [vmem:[#allocation48_spill] sm:$0xff] %v16418_v62  ;;  %v16420_v4 = vld [vmem:[#allocation2 + $0x1f0] sm:$0xff]  ;;  %v16422_v44 = vld [vmem:[#allocation2 + $0x18] sm:$0xff]  ;;  %v16432_v54 = vpop.permute.xlu1 %10260  ;;  %v20164_v10 = vld [vmem:[#allocation30_spill] sm:$0xff] }
 0x36c   : > { %v16430_v51 = vsel %vm1679_vm1, %v16135_v41, %v10023_v37  ;;  %20163 = vst [vmem:[#allocation44_spill] sm:$0xff] %v16432_v54  ;;  %v16440_v43 = vsel %vm1679_vm1, %v16149_v27, %v10027_v34  ;;  %v16444_v33 = vsel %vm1679_vm1, %v16146_v8, %v10028_v13  ;;  %v10043_v60 = vunpack.i.h.bf16 %v20164_v10  ;;  %v16448_v37 = vpop.permute.xlu0 %10265  ;;  %v20166_v54 = vld [vmem:[#allocation54_spill] sm:$0xff]  ;;  %v16460_v13 = vld [vmem:[#allocation2 + $0x38] sm:$0xff]  ;;  %v20172_v27 = vld [vmem:[#allocation56_spill] sm:$0xff] }
 0x36d   : > { %v10042_v41 = vunpack.i.l.bf16 %v20164_v10  ;;  %20165 = vst [vmem:[#allocation26_spill] sm:$0xff] %v16448_v37  ;;  %v10048_v46 = vunpack.i.h.bf16 %v20166_v54  ;;  %v10047_v11 = vunpack.i.l.bf16 %v20166_v54  ;;  %20168 = vst [vmem:[#allocation30_spill] sm:$0xff] %v16460_v13  ;;  %v16462_v34 = vld [vmem:[#allocation2 + $0x58] sm:$0xff]  ;;  %v16466_v10 = vsel %vm1679_vm1, %v16174_v20, %v10032_v31 }
 0x36e   : > { %10550 = vrot.lane.b32.xlu1 %v20167_v53, %s11397_s20  ;;  %20169 = vst [vmem:[#allocation54_spill] sm:$0xff] %v16462_v34  ;;  %v16470_v54 = vsel %vm1679_vm1, %v16171_v12, %v10033_v22  ;;  %v16474_v47 = vsel %vm1679_vm1, %v16182_v18, %v10037_v17  ;;  %v16478_v9 = vsel %vm1679_vm1, %v16177_v2, %v10038_v1  ;;  %v20171_v8 = vld [vmem:[#allocation61_spill] sm:$0xff]  ;;  %v10058_v12 = vunpack.i.h.bf16 %v20172_v27  ;;  %v20181_v1 = vld [vmem:[#allocation79_spill] sm:$0xff] }
 0x36f   : > { %v20170_v53 = vpack.i.bf16 %v16107_v19, %v15957_v7  ;;  %v10053_v20 = vunpack.i.h.bf16 %v20171_v8  ;;  %v10052_v31 = vunpack.i.l.bf16 %v20171_v8  ;;  %v10057_v22 = vunpack.i.l.bf16 %v20172_v27  ;;  %v16488_v37 = vpop.permute.xlu1 %10270  ;;  %v16490_v18 = vld [vmem:[#allocation2 + $0x78] sm:$0xff] }
 0x370   : > { %20173 = vst [vmem:[#allocation61_spill] sm:$0xff] %v16488_v37  ;;  %20174 = vst [vmem:[#allocation56_spill] sm:$0xff] %v16490_v18  ;;  %v16492_v17 = vld [vmem:[#allocation2 + $0x98] sm:$0xff]  ;;  %v16496_v2 = vsel %vm1679_vm1, %v16199_v35, %v10042_v41  ;;  %v16500_v7 = vsel %vm1679_vm1, %v16196_v48, %v10043_v60  ;;  %v16502_v19 = vpop.permute.xlu0 %10275  ;;  %v16510_v8 = vsel %vm1679_vm1, %v16216_v59, %v10047_v11  ;;  %v10068_v13 = vunpack.i.h.bf16 %v20181_v1  ;;  %v20182_v59 = vld [vmem:[#allocation74_spill] sm:$0xff] }
 0x371   : > { %10555 = vrot.lane.b32.xlu0 %v20170_v53, %s11397_s20  ;;  %20175 = vst [vmem:[#allocation88_spill] sm:$0xff] %v16492_v17  ;;  %20176 = vst [vmem:[#allocation89_spill] sm:$0xff] %v16502_v19  ;;  %v16514_v35 = vsel %vm1679_vm1, %v16212_v29, %v10048_v46  ;;  %v20177_v41 = vld [vmem:[#allocation37_spill] sm:$0xff]  ;;  %v20179_v19 = vld [vmem:[#allocation80_spill] sm:$0xff]  ;;  %v10067_v27 = vunpack.i.l.bf16 %v20181_v1  ;;  %v20183_v11 = vpack.i.bf16 %v16132_v40, %v20182_v59 }
 0x372   : > { %v10063_v53 = vunpack.i.h.bf16 %v20177_v41  ;;  %v10062_v48 = vunpack.i.l.bf16 %v20177_v41  ;;  %v20178_v60 = vld [vmem:[#allocation65_spill] sm:$0xff]  ;;  %v16546_v1 = vsel %vm1679_vm1, %v16259_v50, %v10057_v22 }
 0x373   : > { %v20180_v37 = vpack.i.bf16 %v20178_v60, %v20179_v19  ;;  %v16532_v41 = vld [vmem:[#allocation2 + $0xb8] sm:$0xff]  ;;  %v16542_v19 = vsel %vm1679_vm1, %v16230_v45, %v10053_v20  ;;  %v16550_v60 = vsel %vm1679_vm1, %v16250_v57, %v10058_v12  ;;  %v16552_v59 = vpop.permute.xlu1 %10280 }
 0x374   : > { %20184 = vst [vmem:[#allocation37_spill] sm:$0xff] %v16532_v41  ;;  %v16534_v34 = vld [vmem:[#allocation2 + $0xd8] sm:$0xff]  ;;  %20186 = vst [vmem:[#allocation80_spill] sm:$0xff] %v16552_v59  ;;  %v16558_v45 = vpop.permute.xlu0 %10285  ;;  %v16566_v57 = vsel %vm1679_vm1, %v16277_v56, %v10062_v48  ;;  %v16570_v12 = vsel %vm1679_vm1, %v16273_v3, %v10063_v53  ;;  %v16582_v59 = vsel %vm1679_vm1, %v16296_v55, %v10067_v27  ;;  %v20194_v3 = vld [vmem:[#allocation51_spill] sm:$0xff] }
 0x375   : > { %10560 = vrot.lane.b32.xlu1 %v20180_v37, %s11397_s20  ;;  %10565 = vrot.lane.b32.xlu0 %v20183_v11, %s11390_s29  ;;  %20185 = vst [vmem:[#allocation65_spill] sm:$0xff] %v16534_v34  ;;  %v16538_v37 = vsel %vm1679_vm1, %v16246_v36, %v10052_v31  ;;  %v20187_v11 = vld [vmem:[#allocation76_spill] sm:$0xff]  ;;  %v20188_v36 = vld [vmem:[#allocation11_spill] sm:$0xff]  ;;  %20189 = vst [vmem:[#allocation79_spill] sm:$0xff] %v16558_v45  ;;  %v16586_v56 = vsel %vm1679_vm1, %v16292_v63, %v10068_v13  ;;  %v10083_v53 = vunpack.i.h.bf16 %v20194_v3 }
 0x376   : > { %v10073_v46 = vunpack.i.h.bf16 %v20187_v11  ;;  %v10072_v29 = vunpack.i.l.bf16 %v20187_v11  ;;  %v10078_v31 = vunpack.i.h.bf16 %v20188_v36  ;;  %v10077_v17 = vunpack.i.l.bf16 %v20188_v36  ;;  %v16560_v20 = vld [vmem:[#allocation2 + $0xf8] sm:$0xff]  ;;  %v20197_v36 = vld [vmem:[#allocation66_spill] sm:$0xff]  ;;  %v20204_v27 = vld [vmem:[#allocation60_spill] sm:$0xff] }
 0x377   : > { %20190 = vst [vmem:[#allocation74_spill] sm:$0xff] %v16560_v20  ;;  %v16562_v50 = vld [vmem:[#allocation2 + $0x118] sm:$0xff]  ;;  %v10082_v48 = vunpack.i.l.bf16 %v20194_v3  ;;  %v10088_v41 = vunpack.i.h.bf16 %v20197_v36  ;;  %v10087_v45 = vunpack.i.l.bf16 %v20197_v36  ;;  %v16596_v34 = vpop.permute.xlu1 %10290  ;;  %v20199_v55 = vld [vmem:[#allocation82_spill] sm:$0xff]  ;;  %v20203_v36 = vld [vmem:[#allocation59_spill] sm:$0xff] }
 0x378   : > { %20191 = vst [vmem:[#allocation76_spill] sm:$0xff] %v16562_v50  ;;  %v20192_v22 = vld [vmem:[#allocation45_spill] sm:$0xff]  ;;  %20198 = vst [vmem:[#allocation11_spill] sm:$0xff] %v16596_v34  ;;  %v16616_v34 = vsel %vm1679_vm1, %v20203_v36, %v10077_v17  ;;  %v16620_v20 = vsel %vm1679_vm1, %v20204_v27, %v10078_v31  ;;  %v16622_v63 = vpop.permute.xlu0 %10295  ;;  %v20206_v50 = vld [vmem:[#allocation31_spill] sm:$0xff] }
 0x379   : > { %v20193_v11 = vpack.i.bf16 %v16157_v26, %v20192_v22  ;;  %v20195_v22 = vld [vmem:[#allocation38_spill] sm:$0xff]  ;;  %v16602_v13 = vld [vmem:[#allocation2 + $0x138] sm:$0xff]  ;;  %v10092_v26 = vunpack.i.l.bf16 %v20206_v50  ;;  %v16638_v31 = vsel %vm1679_vm1, %v16352_v61, %v10082_v48 }
 0x37a   : > { %20200 = vst [vmem:[#allocation45_spill] sm:$0xff] %v16602_v13  ;;  %v16604_v3 = vld [vmem:[#allocation2 + $0x158] sm:$0xff]  ;;  %20205 = vst [vmem:[#allocation38_spill] sm:$0xff] %v16622_v63  ;;  %v20217_v61 = vld [vmem:[#allocation14_spill] sm:$0xff] }
 0x37b   : > { %10570 = vrot.lane.b32.xlu1 %v20193_v11, %s11390_s29  ;;  %v20196_v11 = vpack.i.bf16 %v16168_v39, %v20195_v22  ;;  %20201 = vst [vmem:[#allocation51_spill] sm:$0xff] %v16604_v3  ;;  %v16608_v22 = vsel %vm1679_vm1, %v16322_v14, %v10072_v29  ;;  %v10093_v39 = vunpack.i.h.bf16 %v20206_v50  ;;  %v20207_v14 = vld [vmem:[#allocation29_spill] sm:$0xff]  ;;  %20212 = vst [vmem:[#allocation59_spill] sm:$0xff] %v16638_v31  ;;  %v20224_v63 = vld [vmem:[#allocation42_spill] sm:$0xff] }
 0x37c   : > { %v10098_v29 = vunpack.i.h.bf16 %v20207_v14  ;;  %v10097_v40 = vunpack.i.l.bf16 %v20207_v14  ;;  %v16632_v17 = vld [vmem:[#allocation2 + $0x178] sm:$0xff]  ;;  %v16642_v50 = vsel %vm1679_vm1, %v16348_v58, %v10083_v53  ;;  %v16658_v48 = vsel %vm1712_vm2, %v20217_v61, %v10088_v41  ;;  %v20218_v58 = vld [vmem:[#allocation84_spill] sm:$0xff]  ;;  %v16666_v13 = vpop.permute.xlu0 %10305 }
 0x37d   : > { %10575 = vrot.lane.b32.xlu0 %v20196_v11, %s11390_s29  ;;  %v20202_v11 = vld [vmem:[#allocation17_spill] sm:$0xff]  ;;  %20210 = vst [vmem:[#allocation66_spill] sm:$0xff] %v16632_v17  ;;  %20213 = vst [vmem:[#allocation60_spill] sm:$0xff] %v16642_v50  ;;  %v10103_v53 = vunpack.i.h.bf16 %v20218_v58  ;;  %v10102_v50 = vunpack.i.l.bf16 %v20218_v58  ;;  %v16678_v58 = vsel %vm1712_vm2, %v20224_v63, %v10092_v26  ;;  %v20229_v17 = vld [vmem:[#allocation15_spill] sm:$0xff] }
 0x37e   : > { %v16612_v18 = vsel %vm1679_vm1, %v20202_v11, %v10073_v46  ;;  %v20208_v46 = vld [vmem:[#allocation52_spill] sm:$0xff]  ;;  %v16634_v36 = vld [vmem:[#allocation2 + $0x198] sm:$0xff]  ;;  %20221 = vst [vmem:[#allocation29_spill] sm:$0xff] %v16666_v13 }
 0x37f   : > { %v20209_v11 = vpack.i.bf16 %v16192_v32, %v20208_v46  ;;  %20211 = vst [vmem:[#allocation17_spill] sm:$0xff] %v16634_v36  ;;  %v20214_v27 = vld [vmem:[#allocation69_spill] sm:$0xff]  ;;  %v16654_v32 = vsel %vm1712_vm2, %v16366_v28, %v10087_v45  ;;  %v16690_v28 = vsel %vm1712_vm2, %v16404_v52, %v10098_v29  ;;  %v20226_v45 = vld [vmem:[#allocation8_spill] sm:$0xff]  ;;  %v16706_v29 = vld [vmem:[#allocation2 + $0x100] sm:$0xff] }
 0x380   : > { %v20215_v14 = vpack.i.bf16 %v16208_v6, %v20214_v27  ;;  %v16662_v27 = vpop.permute.xlu1 %10300  ;;  %v16672_v41 = vld [vmem:[#allocation2 + $0x1b8] sm:$0xff]  ;;  %v20227_v13 = vpack.i.bf16 %v16226_v15, %v20226_v45  ;;  %v20228_v36 = vld [vmem:[#allocation24_spill] sm:$0xff]  ;;  %20233 = vst [vmem:[#allocation84_spill] sm:$0xff] %v16706_v29  ;;  %v20245_v29 = vld [vmem:[#allocation19_spill] sm:$0xff] }
 0x381   : > { %10580 = vrot.lane.b32.xlu1 %v20209_v11, %s11390_s29  ;;  %v20216_v11 = vld [vmem:[#allocation78_spill] sm:$0xff]  ;;  %20219 = vst [vmem:[#allocation31_spill] sm:$0xff] %v16662_v27  ;;  %20222 = vst [vmem:[#allocation52_spill] sm:$0xff] %v16672_v41  ;;  %v16674_v61 = vld [vmem:[#allocation2 + $0x1d8] sm:$0xff]  ;;  %v10113_v26 = vunpack.i.h.bf16 %v20228_v36  ;;  %v10112_v63 = vunpack.i.l.bf16 %v20228_v36  ;;  %v16714_v36 = vsel %vm1712_vm2, %v16430_v51, %v10103_v53  ;;  %v16732_v53 = vpop.permute.xlu0 %10315 }
 0x382   : > { %10585 = vrot.lane.b32.xlu0 %v20215_v14, %s11390_s29  ;;  %v20220_v14 = vld [vmem:[#allocation34_spill] sm:$0xff]  ;;  %20223 = vst [vmem:[#allocation69_spill] sm:$0xff] %v16674_v61  ;;  %v20225_v27 = vld [vmem:[#allocation87_spill] sm:$0xff]  ;;  %v16704_v52 = vld [vmem:[#allocation2 + $0x1f8] sm:$0xff] }
 0x383   : > { %v10108_v31 = vunpack.i.h.bf16 %v20220_v14  ;;  %v10107_v46 = vunpack.i.l.bf16 %v20220_v14  ;;  %v16682_v3 = vsel %vm1712_vm2, %v20225_v27, %v10093_v39  ;;  %v16686_v14 = vsel %vm1712_vm2, %v16400_v5, %v10097_v40  ;;  %v20230_v40 = vld [vmem:[#allocation9_spill] sm:$0xff]  ;;  %20232 = vst [vmem:[#allocation14_spill] sm:$0xff] %v16704_v52  ;;  %20236 = vst [vmem:[#allocation42_spill] sm:$0xff] %v16732_v53  ;;  %v16775_v52 = vld [vmem:[#allocation2 + $0x160] sm:$0xff] }
 0x384   : > { %v10118_v39 = vunpack.i.h.bf16 %v20229_v17  ;;  %v10117_v27 = vunpack.i.l.bf16 %v20229_v17  ;;  %v20231_v5 = vpack.i.bf16 %v16242_v24, %v20230_v40  ;;  %v16716_v45 = vpop.permute.xlu1 %10310  ;;  %v20238_v17 = vld [vmem:[#allocation43_spill] sm:$0xff]  ;;  %v16750_v53 = vsel %vm1712_vm2, %v16466_v10, %v10112_v63  ;;  %20248 = vst [vmem:[#allocation15_spill] sm:$0xff] %v16775_v52  ;;  %v16818_v15 = vld [vmem:[#allocation2 + $0x1c0] sm:$0xff] }
 0x385   : > { %10590 = vrot.lane.b32.xlu1 %v20227_v13, %s11390_s29  ;;  %v16710_v13 = vsel %vm1712_vm2, %v16426_v38, %v10102_v50  ;;  %20234 = vst [vmem:[#allocation34_spill] sm:$0xff] %v16716_v45  ;;  %v16728_v38 = vsel %vm1712_vm2, %v16444_v33, %v10108_v31  ;;  %v20235_v50 = vld [vmem:[#allocation81_spill] sm:$0xff]  ;;  %v16734_v45 = vld [vmem:[#allocation2 + $0x120] sm:$0xff]  ;;  %v10128_v41 = vunpack.i.h.bf16 %v20238_v17  ;;  %v10127_v40 = vunpack.i.l.bf16 %v20238_v17  ;;  %v20241_v31 = vld [vmem:[#allocation47_spill] sm:$0xff] }
 0x386   : > { %10595 = vrot.lane.b32.xlu0 %v20231_v5, %s11390_s29  ;;  %v16724_v5 = vsel %vm1712_vm2, %v16440_v43, %v10107_v46  ;;  %v10123_v24 = vunpack.i.h.bf16 %v20235_v50  ;;  %v10122_v51 = vunpack.i.l.bf16 %v20235_v50  ;;  %20237 = vst [vmem:[#allocation87_spill] sm:$0xff] %v16734_v45  ;;  %v20239_v43 = vld [vmem:[#allocation70_spill] sm:$0xff]  ;;  %v16754_v17 = vsel %vm1712_vm2, %v16470_v54, %v10113_v26  ;;  %v20244_v33 = vld [vmem:[#allocation75_spill] sm:$0xff] }
 0x387   : > { %v20240_v46 = vpack.i.bf16 %v20199_v55, %v20239_v43  ;;  %v16746_v50 = vld [vmem:[#allocation2 + $0x140] sm:$0xff]  ;;  %v16758_v43 = vsel %vm1712_vm2, %v16474_v47, %v10117_v27  ;;  %v20243_v61 = vpack.i.bf16 %v16288_v49, %v20241_v31  ;;  %v10133_v10 = vunpack.i.h.bf16 %v20244_v33  ;;  %v16788_v49 = vpop.permute.xlu0 %10325  ;;  %20259 = vst [vmem:[#allocation70_spill] sm:$0xff] %v16818_v15 }
 0x388   : > { %20242 = vst [vmem:[#allocation8_spill] sm:$0xff] %v16746_v50  ;;  %v10132_v63 = vunpack.i.l.bf16 %v20244_v33  ;;  %v10137_v54 = vunpack.i.l.bf16 %v20245_v29  ;;  %v16771_v26 = vpop.permute.xlu1 %10320  ;;  %v20247_v47 = vld [vmem:[#allocation46_spill] sm:$0xff]  ;;  %v10138_v33 = vunpack.i.h.bf16 %v20245_v29  ;;  %20250 = vst [vmem:[#allocation81_spill] sm:$0xff] %v16788_v49  ;;  %v16794_v27 = vsel %vm1712_vm2, %v16510_v8, %v10127_v40  ;;  %v20254_v29 = vld [vmem:[#allocation33_spill] sm:$0xff] }
 0x389   : > { %10600 = vrot.lane.b32.xlu1 %v20240_v46, %s11390_s29  ;;  %v16762_v46 = vsel %vm1712_vm2, %v16478_v9, %v10118_v39  ;;  %20246 = vst [vmem:[#allocation24_spill] sm:$0xff] %v16771_v26  ;;  %v16777_v9 = vld [vmem:[#allocation2 + $0x180] sm:$0xff]  ;;  %v16781_v39 = vsel %vm1712_vm2, %v16496_v2, %v10122_v51  ;;  %v20251_v26 = vld [vmem:[#allocation77_spill] sm:$0xff]  ;;  %v16798_v45 = vsel %vm1712_vm2, %v16514_v35, %v10128_v41  ;;  %v20252_v2 = vld [vmem:[#allocation28_spill] sm:$0xff]  ;;  %v10148_v49 = vunpack.i.h.bf16 %v20254_v29 }
 0x38a   : > { %10605 = vrot.lane.b32.xlu0 %v20243_v61, %s11390_s29  ;;  %20249 = vst [vmem:[#allocation9_spill] sm:$0xff] %v16777_v9  ;;  %v16785_v61 = vsel %vm1712_vm2, %v16500_v7, %v10123_v24  ;;  %v10143_v51 = vunpack.i.h.bf16 %v20252_v2  ;;  %v10142_v24 = vunpack.i.l.bf16 %v20252_v2  ;;  %v20253_v7 = vpack.i.bf16 %v16314_v42, %v20247_v47  ;;  %v20256_v35 = vld [vmem:[#allocation25_spill] sm:$0xff]  ;;  %v20257_v40 = vld [vmem:[#allocation22_spill] sm:$0xff]  ;;  %v20260_v41 = vld [vmem:[#allocation63_spill] sm:$0xff] }
 0x38b   : > { %v10147_v55 = vunpack.i.l.bf16 %v20254_v29  ;;  %v20255_v8 = vpack.i.bf16 %v20216_v11, %v20251_v26  ;;  %v16816_v50 = vld [vmem:[#allocation2 + $0x1a0] sm:$0xff]  ;;  %v16826_v29 = vsel %vm1712_vm2, %v16542_v19, %v10133_v10  ;;  %v10152_v52 = vunpack.i.l.bf16 %v20260_v41  ;;  %v16844_v10 = vpop.permute.xlu0 %10335 }
 0x38c   : > { %20258 = vst [vmem:[#allocation43_spill] sm:$0xff] %v16816_v50  ;;  %v16833_v26 = vpop.permute.xlu1 %10330  ;;  %v16835_v2 = vld [vmem:[#allocation2 + $0x1e0] sm:$0xff]  ;;  %v16839_v9 = vsel %vm1712_vm2, %v16550_v60, %v10138_v33  ;;  %20264 = vst [vmem:[#allocation19_spill] sm:$0xff] %v16844_v10  ;;  %v16854_v42 = vsel %vm1712_vm2, %v16570_v12, %v10143_v51  ;;  %v20265_v60 = vpack.i.bf16 %v16344_v0, %v20256_v35  ;;  %v20266_v12 = vld [vmem:[#allocation64_spill] sm:$0xff] }
 0x38d   : > { %10610 = vrot.lane.b32.xlu1 %v20253_v7, %s11390_s29  ;;  %v16822_v7 = vsel %vm1712_vm2, %v16538_v37, %v10132_v63  ;;  %20261 = vst [vmem:[#allocation47_spill] sm:$0xff] %v16833_v26  ;;  %20262 = vst [vmem:[#allocation75_spill] sm:$0xff] %v16835_v2  ;;  %v10153_v37 = vunpack.i.h.bf16 %v20260_v41  ;;  %v20263_v63 = vld [vmem:[#allocation35_spill] sm:$0xff]  ;;  %v16850_v26 = vsel %vm1712_vm2, %v16566_v57, %v10142_v24  ;;  %v10167_v51 = vunpack.i.l.bf16 %v20266_v12  ;;  %v6217_v33 = vld [vmem:[#allocation2 + $0x220] sm:$0xff] }
 0x38e   : > { %10615 = vrot.lane.b32.xlu0 %v20255_v8, %s11390_s29  ;;  %v16830_v8 = vsel %vm1712_vm2, %v16546_v1, %v10137_v54  ;;  %v10158_v11 = vunpack.i.h.bf16 %v20263_v63  ;;  %v10157_v19 = vunpack.i.l.bf16 %v20263_v63  ;;  %v6215_v1 = vld [vmem:[#allocation2 + $0x200] sm:$0xff]  ;;  %v16846_v54 = vld [vmem:[#allocation2 + $0x208] sm:$0xff]  ;;  %v16866_v63 = vsel %vm1712_vm2, %v16582_v59, %v10147_v55 }
 0x38f   : > { %v16870_v57 = vsel %vm1712_vm2, %v16586_v56, %v10148_v49  ;;  %v20267_v24 = vpack.i.bf16 %v16362_v25, %v20257_v40  ;;  %v16879_v41 = vld [vmem:[#allocation2 + $0x228] sm:$0xff]  ;;  %v16883_v59 = vsel %vm1712_vm2, %v16608_v22, %v10152_v52  ;;  %v10168_v49 = vunpack.i.h.bf16 %v20266_v12  ;;  %v6219_v2 = vld [vmem:[#allocation2 + $0x240] sm:$0xff]  ;;  %v16912_v40 = vpop.permute.xlu0 %10345 }
 0x390   : > { %v20268_v56 = vld [vmem:[#allocation71_spill] sm:$0xff]  ;;  %v16887_v15 = vpop.permute.xlu1 %10340  ;;  %v16901_v22 = vsel %vm1712_vm2, %v16612_v18, %v10153_v37  ;;  %v16905_v52 = vsel %vm1712_vm2, %v16616_v34, %v10157_v19  ;;  %v16909_v12 = vsel %vm1712_vm2, %v16620_v20, %v10158_v11  ;;  %20272 = vst [vmem:[#allocation63_spill] sm:$0xff] %v16912_v40  ;;  %v20276_v34 = vpack.i.bf16 %v16388_v23, %v16376_v30  ;;  %v8469_v20 = vpop.f32.mrf.mxu1  ;;  %v16961_v30 = vld [vmem:[#allocation2 + $0x110] sm:$0xff] }
 0x391   : > { %10620 = vrot.lane.b32.xlu1 %v20265_v60, %s11390_s29  ;;  %v10172_v55 = vunpack.i.l.bf16 %v20268_v56  ;;  %20269 = vst [vmem:[#allocation46_spill] sm:$0xff] %v16887_v15  ;;  %v16895_v60 = vpack.i.bf16 %v16846_v54, %v6215_v1  ;;  %v16897_v50 = vld [vmem:[#allocation2 + $0x248] sm:$0xff]  ;;  %v10173_v15 = vunpack.i.h.bf16 %v20268_v56  ;;  %v6221_v1 = vld [vmem:[#allocation2 + $0x260] sm:$0xff]  ;;  %v16924_v11 = vpack.i.bf16 %v16879_v41, %v6217_v33  ;;  %20284 = vst [vmem:[#allocation91_spill] sm:$0xff] %v16961_v30 }
 0x392   : > { %10625 = vrot.lane.b32.xlu0 %v20267_v24, %s11390_s29  ;;  %v16892_v24 = vld [vmem:[%s18800_s2 + $0x1] ss:$0 sm:$0xff]  ;;  %20271 = vst [vmem:[#allocation33_spill] sm:$0xff] %v16897_v50  ;;  %v20275_v37 = vld [vmem:[#allocation67_spill] sm:$0xff]  ;;  %v16928_v19 = vsel %vm1745_vm3, %v16654_v32, %v10167_v51  ;;  %v20278_v35 = vpack.i.bf16 %v16392_v16, %v16390_v21  ;;  %v16937_v10 = vpack.i.bf16 %v16897_v50, %v6219_v2  ;;  %v20280_v51 = vld [vmem:[#allocation73_spill] sm:$0xff] }
 0x393   : > { %20270 = vst [vmem:[#allocation28_spill] sm:$0xff] %v16895_v60  ;;  %v16914_v60 = vld [vmem:[#allocation2 + $0x268] sm:$0xff]  ;;  %v10177_v25 = vunpack.i.l.bf16 %v20275_v37  ;;  %20277 = vst [vmem:[#allocation64_spill] sm:$0xff] %v16924_v11  ;;  %v10178_v56 = vunpack.i.h.bf16 %v20275_v37  ;;  %v3989_v18 = vadd.f32 %v8469_v20, %v16892_v24  ;;  %v16941_v33 = vsel %vm1745_vm3, %v16658_v48, %v10168_v49  ;;  %v6225_v2 = vld [vmem:[#allocation2 + $0x2a0] sm:$0xff] }
 0x394   : > { %20273 = vst [vmem:[#allocation35_spill] sm:$0xff] %v16914_v60  ;;  %20279 = vst [vmem:[#allocation71_spill] sm:$0xff] %v16937_v10  ;;  %v6224_v40 = vld [vmem:[#allocation2 + $0x288] sm:$0xff]  ;;  %v16945_v32 = vsel %vm1745_vm3, %v16678_v58, %v10172_v55  ;;  %v10182_v37 = vunpack.i.l.bf16 %v20280_v51  ;;  %v16948_v11 = vpop.permute.xlu1 %10350  ;;  %v16951_v20 = vpack.i.bf16 %v16914_v60, %v6221_v1  ;;  %v16955_v21 = vsel %vm1745_vm3, %v16682_v3, %v10173_v15  ;;  %v16958_v58 = vpop.permute.xlu0 %10355  ;;  %v4141_v15 = vld [vmem:[%s14786_s24 + $0x10] sm:$0xff] }
 0x395   : > { %10630 = vrot.lane.b32.xlu1 %v20276_v34, %s11390_s29  ;;  %v6223_v34 = vld [vmem:[#allocation2 + $0x280] sm:$0xff]  ;;  %20281 = vst [vmem:[#allocation67_spill] sm:$0xff] %v16948_v11  ;;  %v6226_v10 = vld [vmem:[#allocation2 + $0x2a8] sm:$0xff]  ;;  %v10183_v48 = vunpack.i.h.bf16 %v20280_v51  ;;  %v4109_v49 = vmax.f32 %v3989_v18, 0.0  ;;  %20283 = vst [vmem:[#allocation90_spill] sm:$0xff] %v16958_v58  ;;  %v16965_v1 = vsel %vm1745_vm3, %v16686_v14, %v10177_v25  ;;  %v20286_v3 = vpack.i.bf16 %v16420_v4, %v16418_v62 }
 0x396   : > { %10635 = vrot.lane.b32.xlu0 %v20278_v35, %s11390_s29  ;;  %v3980_v35 = vpop.f32.mrf.mxu1  ;;  %20282 = vst [vmem:[#allocation73_spill] sm:$0xff] %v16951_v20  ;;  %v20285_v11 = vld [vmem:[#allocation62_spill] sm:$0xff]  ;;  %v16974_v51 = vpack.i.bf16 %v6224_v40, %v6223_v34  ;;  %v20288_v58 = vld [vmem:[#allocation16_spill] sm:$0xff]  ;;  %v16984_v50 = vpack.i.bf16 %v6226_v10, %v6225_v2 }
 0x397   : > { %v3981_v55 = vadd.f32 %v16892_v24, %v3980_v35  ;;  %v10188_v20 = vunpack.i.h.bf16 %v20285_v11  ;;  %v10187_v60 = vunpack.i.l.bf16 %v20285_v11  ;;  %v16978_v35 = vsel %vm1745_vm3, %v16690_v28, %v10178_v56  ;;  %v20290_v40 = vld [vmem:[#allocation18_spill] sm:$0xff] }
 0x398   : > { %v8470_v18 = vpop.f32.mrf.mxu1  ;;  %20287 = vst [vmem:[#allocation62_spill] sm:$0xff] %v16974_v51  ;;  %v4173_v25 = vadd.f32 %v4141_v15, %v4109_v49  ;;  %v20289_v11 = vpack.i.bf16 %v16422_v44, %v20288_v58  ;;  %v10192_v34 = vunpack.i.l.bf16 %v20290_v40  ;;  %v4139_v51 = vld [vmem:[%s14786_s24] sm:$0xff]  ;;  %v16993_v28 = vpop.permute.xlu1 %10360  ;;  %v16997_v44 = vld [vmem:[#allocation2 + $0x130] sm:$0xff]  ;;  %v17001_v10 = vsel %vm1745_vm3, %v16714_v36, %v10183_v48 }
 0x399   : > { %10640 = vrot.lane.b32.xlu1 %v20286_v3, %s11390_s29  ;;  %v4107_v14 = vmax.f32 %v3981_v55, 0.0  ;;  %v16988_v3 = vsel %vm1745_vm3, %v16710_v13, %v10182_v37  ;;  %v3992_v62 = vadd.f32 %v8470_v18, %v16892_v24  ;;  %20291 = vst [vmem:[#allocation16_spill] sm:$0xff] %v16993_v28  ;;  %20292 = vst [vmem:[#allocation18_spill] sm:$0xff] %v16997_v44  ;;  %v10193_v13 = vunpack.i.h.bf16 %v20290_v40  ;;  %v17005_v2 = vpop.permute.xlu0 %10365  ;;  %v20294_v18 = vld [vmem:[#allocation72_spill] sm:$0xff]  ;;  %v20299_v49 = vld [vmem:[#allocation10_spill] sm:$0xff] }
 0x39a   : > { %10645 = vrot.lane.b32.xlu0 %v20289_v11, %s11391_s30  ;;  %v3983_v56 = vpop.f32.mrf.mxu1  ;;  %4205 = vst [vmem:[%s14786_s24 + $0x10] sm:$0xff] %v4173_v25  ;;  %20293 = vst [vmem:[#allocation92_spill] sm:$0xff] %v17005_v2  ;;  %v17010_v55 = vsel %vm1745_vm3, %v16724_v5, %v10187_v60  ;;  %v17014_v15 = vsel %vm1745_vm3, %v16728_v38, %v10188_v20  ;;  %v10197_v36 = vunpack.i.l.bf16 %v20294_v18  ;;  %v20295_v11 = vld [vmem:[#allocation30_spill] sm:$0xff]  ;;  %v10198_v40 = vunpack.i.h.bf16 %v20294_v18 }
 0x39b   : > { %v4171_v37 = vadd.f32 %v4139_v51, %v4107_v14  ;;  %v3984_v58 = vadd.f32 %v16892_v24, %v3983_v56  ;;  %v4110_v48 = vmax.f32 %v3992_v62, 0.0  ;;  %v20296_v25 = vld [vmem:[#allocation6_spill] sm:$0xff]  ;;  %v4142_v56 = vld [vmem:[%s14786_s24 + $0x18] sm:$0xff]  ;;  %v17033_v20 = vsel %vm1745_vm3, %v16750_v53, %v10192_v34 }
 0x39c   : > { %v20297_v51 = vpack.i.bf16 %v20295_v11, %v20296_v25  ;;  %v8473_v14 = vpop.f32.mrf.mxu1  ;;  %v20298_v60 = vld [vmem:[#allocation54_spill] sm:$0xff]  ;;  %v20301_v11 = vld [vmem:[#allocation53_spill] sm:$0xff]  ;;  %v17037_v25 = vpop.permute.xlu1 %10370 }
 0x39d   : > { %4203 = vst [vmem:[%s14786_s24] sm:$0xff] %v4171_v37  ;;  %v4108_v5 = vmax.f32 %v3984_v58, 0.0  ;;  %v20300_v2 = vpack.i.bf16 %v20298_v60, %v20299_v49  ;;  %v4005_v38 = vadd.f32 %v8473_v14, %v16892_v24  ;;  %v10202_v37 = vunpack.i.l.bf16 %v20301_v11  ;;  %v4140_v58 = vld [vmem:[%s14786_s24 + $0x8] sm:$0xff]  ;;  %20302 = vst [vmem:[#allocation72_spill] sm:$0xff] %v17037_v25  ;;  %v20303_v49 = vld [vmem:[#allocation76_spill] sm:$0xff]  ;;  %v17046_v62 = vpop.permute.xlu0 %10375 }
 0x39e   : > { %10650 = vrot.lane.b32.xlu1 %v20297_v51, %s11391_s30  ;;  %v4174_v18 = vadd.f32 %v4142_v56, %v4110_v48  ;;  %v3996_v51 = vpop.f32.mrf.mxu1  ;;  %v17043_v14 = vsel %vm1745_vm3, %v16754_v17, %v10193_v13  ;;  %v10203_v60 = vunpack.i.h.bf16 %v20301_v11  ;;  %20304 = vst [vmem:[#allocation30_spill] sm:$0xff] %v17046_v62  ;;  %v17050_v48 = vsel %vm1745_vm3, %v16758_v43, %v10197_v36  ;;  %v20305_v56 = vld [vmem:[#allocation23_spill] sm:$0xff]  ;;  %v20306_v17 = vld [vmem:[#allocation56_spill] sm:$0xff]  ;;  %v20309_v43 = vld [vmem:[#allocation57_spill] sm:$0xff] }
 0x39f   : > { %10655 = vrot.lane.b32.xlu0 %v20300_v2, %s11391_s30  ;;  %v4172_v53 = vadd.f32 %v4140_v58, %v4108_v5  ;;  %v4113_v34 = vmax.f32 %v4005_v38, 0.0  ;;  %v10208_v25 = vunpack.i.h.bf16 %v20305_v56  ;;  %v10207_v28 = vunpack.i.l.bf16 %v20305_v56  ;;  %v4145_v2 = vld [vmem:[%s14786_s24 + $0x30] sm:$0xff]  ;;  %v20307_v13 = vld [vmem:[#allocation27_spill] sm:$0xff] }
 0x3a0   : > { %4206 = vst [vmem:[%s14786_s24 + $0x18] sm:$0xff] %v4174_v18  ;;  %v3997_v30 = vadd.f32 %v16892_v24, %v3996_v51  ;;  %v20308_v11 = vpack.i.bf16 %v20306_v17, %v20307_v13  ;;  %v8474_v5 = vpop.f32.mrf.mxu1  ;;  %v17063_v38 = vsel %vm1745_vm3, %v16762_v46, %v10198_v40  ;;  %v10212_v36 = vunpack.i.l.bf16 %v20309_v43  ;;  %v20310_v18 = vld [vmem:[#allocation88_spill] sm:$0xff]  ;;  %v17077_v40 = vpop.permute.xlu1 %10380 }
 0x3a1   : > { %4204 = vst [vmem:[%s14786_s24 + $0x8] sm:$0xff] %v4172_v53  ;;  %v4177_v58 = vadd.f32 %v4145_v2, %v4113_v34  ;;  %v20311_v51 = vpack.i.bf16 %v20310_v18, %v16208_v6  ;;  %v4008_v56 = vadd.f32 %v8474_v5, %v16892_v24  ;;  %v17074_v17 = vsel %vm1745_vm3, %v16781_v39, %v10202_v37  ;;  %v20313_v2 = vld [vmem:[#allocation45_spill] sm:$0xff]  ;;  %v6296_v34 = vld [vmem:[#allocation2 + $0x210] sm:$0xff]  ;;  %v20314_v5 = vld [vmem:[#allocation83_spill] sm:$0xff] }
 0x3a2   : > { %10660 = vrot.lane.b32.xlu1 %v20308_v11, %s11391_s30  ;;  %v10213_v13 = vunpack.i.h.bf16 %v20309_v43  ;;  %v4111_v46 = vmax.f32 %v3997_v30, 0.0  ;;  %20312 = vst [vmem:[#allocation6_spill] sm:$0xff] %v17077_v40  ;;  %v3999_v11 = vpop.f32.mrf.mxu1  ;;  %v17083_v6 = vsel %vm1745_vm3, %v16785_v61, %v10203_v60  ;;  %v10217_v18 = vunpack.i.l.bf16 %v20314_v5  ;;  %v4143_v39 = vld [vmem:[%s14786_s24 + $0x20] sm:$0xff]  ;;  %v20317_v40 = vld [vmem:[#allocation7_spill] sm:$0xff] }
 0x3a3   : > { %10665 = vrot.lane.b32.xlu0 %v20311_v51, %s11391_s30  ;;  %4209 = vst [vmem:[%s14786_s24 + $0x30] sm:$0xff] %v4177_v58  ;;  %v4114_v37 = vmax.f32 %v4008_v56, 0.0  ;;  %v17088_v51 = vpop.permute.xlu0 %10385  ;;  %v4000_v30 = vadd.f32 %v16892_v24, %v3999_v11  ;;  %v17093_v43 = vsel %vm1745_vm3, %v16794_v27, %v10207_v28  ;;  %v17097_v53 = vsel %vm1745_vm3, %v16798_v45, %v10208_v25  ;;  %v4146_v58 = vld [vmem:[%s14786_s24 + $0x38] sm:$0xff]  ;;  %v20320_v25 = vld [vmem:[#allocation40_spill] sm:$0xff] }
 0x3a4   : > { %20315 = vst [vmem:[#allocation54_spill] sm:$0xff] %v17088_v51  ;;  %v10218_v61 = vunpack.i.h.bf16 %v20314_v5  ;;  %v4175_v60 = vadd.f32 %v4143_v39, %v4111_v46  ;;  %v20316_v56 = vld [vmem:[#allocation37_spill] sm:$0xff]  ;;  %v8477_v11 = vpop.f32.mrf.mxu1  ;;  %v17107_v27 = vsel %vm1745_vm3, %v16822_v7, %v10212_v36  ;;  %v17114_v46 = vpack.i.bf16 %v6296_v34, %v16846_v54  ;;  %v6297_v5 = vld [vmem:[#allocation2 + $0x230] sm:$0xff]  ;;  %v4144_v36 = vld [vmem:[%s14786_s24 + $0x28] sm:$0xff] }
 0x3a5   : > { %v20318_v51 = vpack.i.bf16 %v20316_v56, %v20317_v40  ;;  %v4178_v28 = vadd.f32 %v4146_v58, %v4114_v37  ;;  %v4112_v62 = vmax.f32 %v4000_v30, 0.0  ;;  %v20319_v45 = vld [vmem:[#allocation65_spill] sm:$0xff]  ;;  %v17118_v40 = vsel %vm1745_vm3, %v16826_v29, %v10213_v13  ;;  %v17125_v30 = vpop.permute.xlu1 %10390 }
 0x3a6   : > { %v20321_v44 = vpack.i.bf16 %v20319_v45, %v20320_v25  ;;  %20322 = vst [vmem:[#allocation10_spill] sm:$0xff] %v17118_v40  ;;  %v20323_v39 = vld [vmem:[#allocation13_spill] sm:$0xff]  ;;  %4207 = vst [vmem:[%s14786_s24 + $0x20] sm:$0xff] %v4175_v60  ;;  %v4021_v37 = vadd.f32 %v8477_v11, %v16892_v24  ;;  %v17129_v58 = vsel %vm1745_vm3, %v16830_v8, %v10217_v18  ;;  %v20328_v40 = vld [vmem:[#allocation82_spill] sm:$0xff] }
 0x3a7   : > { %10670 = vrot.lane.b32.xlu1 %v20318_v51, %s11391_s30  ;;  %v10223_v51 = vunpack.i.h.bf16 %v20323_v39  ;;  %v10222_v7 = vunpack.i.l.bf16 %v20323_v39  ;;  %20324 = vst [vmem:[#allocation53_spill] sm:$0xff] %v17125_v30  ;;  %v6312_v54 = vld [vmem:[#allocation2 + $0x218] sm:$0xff]  ;;  %4210 = vst [vmem:[%s14786_s24 + $0x38] sm:$0xff] %v4178_v28  ;;  %v4176_v56 = vadd.f32 %v4144_v36, %v4112_v62  ;;  %v17133_v45 = vpop.permute.xlu0 %10395  ;;  %v17138_v11 = vsel %vm1745_vm3, %v16839_v9, %v10218_v61  ;;  %v20327_v30 = vld [vmem:[#allocation74_spill] sm:$0xff] }
 0x3a8   : > { %10675 = vrot.lane.b32.xlu0 %v20321_v44, %s11391_s30  ;;  %v4012_v44 = vpop.f32.mrf.mxu1  ;;  %v20325_v29 = vld [vmem:[#allocation41_spill] sm:$0xff]  ;;  %20326 = vst [vmem:[#allocation76_spill] sm:$0xff] %v17133_v45  ;;  %v4117_v39 = vmax.f32 %v4021_v37, 0.0  ;;  %v20329_v8 = vpack.i.bf16 %v20327_v30, %v20328_v40  ;;  %v17146_v62 = vpack.i.bf16 %v6297_v5, %v16879_v41  ;;  %v20331_v9 = vld [vmem:[#allocation36_spill] sm:$0xff] }
 0x3a9   : > { %v10227_v13 = vunpack.i.l.bf16 %v20325_v29  ;;  %v4013_v60 = vadd.f32 %v16892_v24, %v4012_v44  ;;  %v10228_v25 = vunpack.i.h.bf16 %v20325_v29  ;;  %v20330_v28 = vld [vmem:[#allocation49_spill] sm:$0xff]  ;;  %4208 = vst [vmem:[%s14786_s24 + $0x28] sm:$0xff] %v4176_v56  ;;  %v4149_v44 = vld [vmem:[%s14786_s24 + $0x50] sm:$0xff]  ;;  %v20332_v61 = vpack.i.bf16 %v20303_v49, %v20331_v9  ;;  %v17168_v9 = vpop.permute.xlu1 %10400 }
 0x3aa   : > { %v8478_v18 = vpop.f32.mrf.mxu1  ;;  %v10232_v36 = vunpack.i.l.bf16 %v20330_v28  ;;  %v17156_v29 = vpack.i.bf16 %v6312_v54, %v6296_v34  ;;  %v6313_v40 = vld [vmem:[#allocation2 + $0x238] sm:$0xff]  ;;  %v17160_v41 = vsel %vm1745_vm3, %v16850_v26, %v10222_v7  ;;  %v17164_v30 = vsel %vm1745_vm3, %v16854_v42, %v10223_v51  ;;  %20336 = vst [vmem:[#allocation57_spill] sm:$0xff] %v17168_v9  ;;  %v17170_v34 = vld [vmem:[#allocation2 + $0x150] sm:$0xff] }
 0x3ab   : > { %10680 = vrot.lane.b32.xlu1 %v20329_v8, %s11391_s30  ;;  %v4115_v45 = vmax.f32 %v4013_v60, 0.0  ;;  %v4024_v37 = vadd.f32 %v8478_v18, %v16892_v24  ;;  %20334 = vst [vmem:[#allocation56_spill] sm:$0xff] %v17160_v41  ;;  %20335 = vst [vmem:[#allocation27_spill] sm:$0xff] %v17164_v30  ;;  %v10233_v56 = vunpack.i.h.bf16 %v20330_v28  ;;  %v4181_v60 = vadd.f32 %v4149_v44, %v4117_v39  ;;  %v4147_v8 = vld [vmem:[%s14786_s24 + $0x40] sm:$0xff]  ;;  %v20339_v26 = vld [vmem:[#allocation12_spill] sm:$0xff]  ;;  %v17177_v42 = vpop.permute.xlu0 %10405 }
 0x3ac   : > { %10685 = vrot.lane.b32.xlu0 %v20332_v61, %s11391_s30  ;;  %20333 = vst [vmem:[#allocation23_spill] sm:$0xff] %v17156_v29  ;;  %v4015_v18 = vpop.f32.mrf.mxu1  ;;  %20337 = vst [vmem:[#allocation88_spill] sm:$0xff] %v17170_v34  ;;  %v17174_v54 = vsel %vm1745_vm3, %v16866_v63, %v10227_v13  ;;  %v10237_v7 = vunpack.i.l.bf16 %v20339_v26  ;;  %v17181_v51 = vsel %vm1745_vm3, %v16870_v57, %v10228_v25  ;;  %v10238_v39 = vunpack.i.h.bf16 %v20339_v26  ;;  %v4150_v28 = vld [vmem:[%s14786_s24 + $0x58] sm:$0xff]  ;;  %v20341_v63 = vld [vmem:[#allocation50_spill] sm:$0xff] }
 0x3ad   : > { %20338 = vst [vmem:[#allocation45_spill] sm:$0xff] %v17174_v54  ;;  %v4179_v61 = vadd.f32 %v4147_v8, %v4115_v45  ;;  %v4118_v41 = vmax.f32 %v4024_v37, 0.0  ;;  %20340 = vst [vmem:[#allocation83_spill] sm:$0xff] %v17181_v51  ;;  %v4016_v44 = vadd.f32 %v16892_v24, %v4015_v18  ;;  %v20342_v13 = vpack.i.bf16 %v20313_v2, %v20341_v63  ;;  %v20345_v25 = vld [vmem:[#allocation51_spill] sm:$0xff]  ;;  %v20348_v26 = vld [vmem:[#allocation77_spill] sm:$0xff] }
 0x3ae   : > { %4213 = vst [vmem:[%s14786_s24 + $0x50] sm:$0xff] %v4181_v60  ;;  %v8481_v9 = vpop.f32.mrf.mxu1  ;;  %v17191_v45 = vpack.i.bf16 %v6313_v40, %v6297_v5  ;;  %v17195_v37 = vsel %vm1745_vm3, %v16883_v59, %v10232_v36  ;;  %v20346_v60 = vld [vmem:[#allocation78_spill] sm:$0xff]  ;;  %v17207_v5 = vsel %vm1745_vm3, %v16901_v22, %v10233_v56  ;;  %v4148_v22 = vld [vmem:[%s14786_s24 + $0x48] sm:$0xff]  ;;  %v20358_v30 = vld [vmem:[#allocation17_spill] sm:$0xff] }
 0x3af   : > { %10690 = vrot.lane.b32.xlu1 %v20342_v13, %s11391_s30  ;;  %20344 = vst [vmem:[#allocation7_spill] sm:$0xff] %v17195_v37  ;;  %4211 = vst [vmem:[%s14786_s24 + $0x40] sm:$0xff] %v4179_v61  ;;  %v4182_v57 = vadd.f32 %v4150_v28, %v4118_v41  ;;  %v20347_v8 = vpack.i.bf16 %v20345_v25, %v20346_v60  ;;  %v4037_v18 = vadd.f32 %v8481_v9, %v16892_v24  ;;  %v20350_v40 = vld [vmem:[#allocation58_spill] sm:$0xff]  ;;  %v17211_v61 = vpop.permute.xlu1 %10410  ;;  %v17213_v13 = vld [vmem:[#allocation2 + $0x170] sm:$0xff]  ;;  %v17222_v63 = vpop.permute.xlu0 %10415 }
 0x3b0   : > { %20343 = vst [vmem:[#allocation37_spill] sm:$0xff] %v17191_v45  ;;  %20349 = vst [vmem:[#allocation65_spill] sm:$0xff] %v17207_v5  ;;  %v10248_v59 = vunpack.i.h.bf16 %v20350_v40  ;;  %v10247_v36 = vunpack.i.l.bf16 %v20350_v40  ;;  %v4116_v41 = vmax.f32 %v4016_v44, 0.0  ;;  %v4028_v28 = vpop.f32.mrf.mxu1  ;;  %v17217_v9 = vsel %vm1745_vm3, %v16905_v52, %v10237_v7  ;;  %v20353_v60 = vld [vmem:[#allocation21_spill] sm:$0xff]  ;;  %v20355_v37 = vld [vmem:[#allocation39_spill] sm:$0xff] }
 0x3b1   : > { %10695 = vrot.lane.b32.xlu0 %v20347_v8, %s11391_s30  ;;  %20351 = vst [vmem:[#allocation40_spill] sm:$0xff] %v17213_v13  ;;  %20352 = vst [vmem:[#allocation13_spill] sm:$0xff] %v17217_v9  ;;  %v10252_v8 = vunpack.i.l.bf16 %v20353_v60  ;;  %v4121_v56 = vmax.f32 %v4037_v18, 0.0  ;;  %v4029_v40 = vadd.f32 %v16892_v24, %v4028_v28  ;;  %v17227_v44 = vsel %vm1745_vm3, %v16909_v12, %v10238_v39  ;;  %v4153_v9 = vld [vmem:[%s14786_s24 + $0x70] sm:$0xff]  ;;  %v6314_v25 = vld [vmem:[#allocation2 + $0x258] sm:$0xff] }
 0x3b2   : > { %4214 = vst [vmem:[%s14786_s24 + $0x58] sm:$0xff] %v4182_v57  ;;  %20354 = vst [vmem:[#allocation41_spill] sm:$0xff] %v17227_v44  ;;  %v10253_v5 = vunpack.i.h.bf16 %v20353_v60  ;;  %v10257_v52 = vunpack.i.l.bf16 %v20355_v37  ;;  %v4180_v7 = vadd.f32 %v4148_v22, %v4116_v41  ;;  %v20356_v57 = vld [vmem:[#allocation66_spill] sm:$0xff]  ;;  %v8482_v51 = vpop.f32.mrf.mxu1  ;;  %v20359_v12 = vld [vmem:[#allocation20_spill] sm:$0xff]  ;;  %v17246_v22 = vsel %vm1778_vm4, %v16928_v19, %v10247_v36 }
 0x3b3   : > { %v20357_v18 = vpack.i.bf16 %v20356_v57, %v16344_v0  ;;  %v4185_v28 = vadd.f32 %v4153_v9, %v4121_v56  ;;  %v4119_v54 = vmax.f32 %v4029_v40, 0.0  ;;  %v20360_v39 = vpack.i.bf16 %v20358_v30, %v20359_v12  ;;  %v20361_v44 = vld [vmem:[#allocation25_spill] sm:$0xff]  ;;  %v4151_v56 = vld [vmem:[%s14786_s24 + $0x60] sm:$0xff]  ;;  %v17256_v40 = vpop.permute.xlu1 %10420  ;;  %v17263_v36 = vpop.permute.xlu0 %10425 }
 0x3b4   : > { %v17250_v0 = vsel %vm1778_vm4, %v16941_v33, %v10248_v59  ;;  %v10258_v9 = vunpack.i.h.bf16 %v20355_v37  ;;  %4212 = vst [vmem:[%s14786_s24 + $0x48] sm:$0xff] %v4180_v7  ;;  %v4040_v30 = vadd.f32 %v8482_v51, %v16892_v24  ;;  %v17260_v12 = vsel %vm1778_vm4, %v16945_v32, %v10252_v8  ;;  %v6298_v59 = vld [vmem:[#allocation2 + $0x250] sm:$0xff]  ;;  %v20365_v37 = vld [vmem:[#allocation26_spill] sm:$0xff]  ;;  %v20366_v60 = vld [vmem:[#allocation69_spill] sm:$0xff] }
 0x3b5   : > { %10700 = vrot.lane.b32.xlu1 %v20357_v18, %s11391_s30  ;;  %10705 = vrot.lane.b32.xlu0 %v20360_v39, %s11391_s30  ;;  %v4031_v18 = vpop.f32.mrf.mxu1  ;;  %4217 = vst [vmem:[%s14786_s24 + $0x70] sm:$0xff] %v4185_v28  ;;  %v4183_v19 = vadd.f32 %v4151_v56, %v4119_v54  ;;  %v17270_v51 = vsel %vm1778_vm4, %v16955_v21, %v10253_v5  ;;  %v20362_v8 = vld [vmem:[#allocation44_spill] sm:$0xff]  ;;  %v10267_v41 = vunpack.i.l.bf16 %v20365_v37  ;;  %v4154_v21 = vld [vmem:[%s14786_s24 + $0x78] sm:$0xff] }
 0x3b6   : > { %v4032_v33 = vadd.f32 %v16892_v24, %v4031_v18  ;;  %v17274_v32 = vsel %vm1778_vm4, %v16965_v1, %v10257_v52  ;;  %v10262_v7 = vunpack.i.l.bf16 %v20362_v8  ;;  %v4122_v54 = vmax.f32 %v4040_v30, 0.0  ;;  %v20363_v28 = vld [vmem:[#allocation52_spill] sm:$0xff] }
 0x3b7   : > { %v20364_v39 = vpack.i.bf16 %v20363_v28, %v16388_v23  ;;  %v8485_v56 = vpop.f32.mrf.mxu1  ;;  %v10263_v18 = vunpack.i.h.bf16 %v20362_v8  ;;  %4215 = vst [vmem:[%s14786_s24 + $0x60] sm:$0xff] %v4183_v19  ;;  %v20367_v1 = vpack.i.bf16 %v20366_v60, %v16392_v16  ;;  %v17292_v30 = vsel %vm1778_vm4, %v16978_v35, %v10258_v9  ;;  %v4152_v28 = vld [vmem:[%s14786_s24 + $0x68] sm:$0xff]  ;;  %v17296_v19 = vpop.permute.xlu1 %10430  ;;  %v20370_v16 = vld [vmem:[#allocation61_spill] sm:$0xff] }
 0x3b8   : > { %v4120_v5 = vmax.f32 %v4032_v33, 0.0  ;;  %v4053_v52 = vadd.f32 %v8485_v56, %v16892_v24  ;;  %v10268_v23 = vunpack.i.h.bf16 %v20365_v37  ;;  %v4186_v8 = vadd.f32 %v4154_v21, %v4122_v54  ;;  %v17303_v9 = vpop.permute.xlu0 %10435  ;;  %v6299_v37 = vld [vmem:[#allocation2 + $0x270] sm:$0xff]  ;;  %v20371_v21 = vld [vmem:[#allocation89_spill] sm:$0xff] }
 0x3b9   : > { %10710 = vrot.lane.b32.xlu1 %v20364_v39, %s11391_s30  ;;  %10715 = vrot.lane.b32.xlu0 %v20367_v1, %s11391_s30  ;;  %v4044_v33 = vpop.f32.mrf.mxu1  ;;  %v20368_v39 = vld [vmem:[#allocation33_spill] sm:$0xff]  ;;  %v10273_v60 = vunpack.i.h.bf16 %v20370_v16  ;;  %v10272_v56 = vunpack.i.l.bf16 %v20370_v16  ;;  %v17307_v54 = vsel %vm1778_vm4, %v16988_v3, %v10262_v7  ;;  %v10278_v13 = vunpack.i.h.bf16 %v20371_v21  ;;  %v20372_v16 = vld [vmem:[#allocation14_spill] sm:$0xff] }
 0x3ba   : > { %v17299_v57 = vpack.i.bf16 %v6298_v59, %v20368_v39  ;;  %v4184_v1 = vadd.f32 %v4152_v28, %v4120_v5  ;;  %v4125_v35 = vmax.f32 %v4053_v52, 0.0  ;;  %v10277_v39 = vunpack.i.l.bf16 %v20371_v21  ;;  %4218 = vst [vmem:[%s14786_s24 + $0x78] sm:$0xff] %v4186_v8  ;;  %v20374_v28 = vld [vmem:[#allocation84_spill] sm:$0xff] }
 0x3bb   : > { %v4045_v34 = vadd.f32 %v16892_v24, %v4044_v33  ;;  %v20373_v5 = vpack.i.bf16 %v20372_v16, %v16420_v4  ;;  %v8486_v52 = vpop.f32.mrf.mxu1  ;;  %v17320_v3 = vsel %vm1778_vm4, %v17001_v10, %v10263_v18  ;;  %v17324_v7 = vsel %vm1778_vm4, %v17010_v55, %v10267_v41  ;;  %v17336_v10 = vpop.permute.xlu1 %10440  ;;  %v20376_v55 = vld [vmem:[#allocation35_spill] sm:$0xff] }
 0x3bc   : > { %20369 = vst [vmem:[#allocation74_spill] sm:$0xff] %v17299_v57  ;;  %v4157_v57 = vld [vmem:[%s14786_s24 + $0x90] sm:$0xff]  ;;  %4216 = vst [vmem:[%s14786_s24 + $0x68] sm:$0xff] %v4184_v1  ;;  %v20375_v33 = vpack.i.bf16 %v20241_v31, %v20374_v28  ;;  %v4056_v4 = vadd.f32 %v8486_v52, %v16892_v24  ;;  %v17334_v21 = vsel %vm1778_vm4, %v17014_v15, %v10268_v23  ;;  %v4155_v15 = vld [vmem:[%s14786_s24 + $0x80] sm:$0xff]  ;;  %v17353_v23 = vpop.permute.xlu0 %10445 }
 0x3bd   : > { %10720 = vrot.lane.b32.xlu1 %v20373_v5, %s11391_s30  ;;  %v4189_v8 = vadd.f32 %v4157_v57, %v4125_v35  ;;  %v4123_v16 = vmax.f32 %v4045_v34, 0.0  ;;  %v4047_v18 = vpop.f32.mrf.mxu1  ;;  %v17339_v41 = vpack.i.bf16 %v6299_v37, %v20376_v55  ;;  %v17341_v57 = vpack.i.bf16 %v6314_v25, %v6298_v59  ;;  %v6315_v52 = vld [vmem:[#allocation2 + $0x278] sm:$0xff] }
 0x3be   : > { %10725 = vrot.lane.b32.xlu0 %v20375_v33, %s11392_s4  ;;  %v17345_v1 = vsel %vm1778_vm4, %v17033_v20, %v10272_v56  ;;  %v17349_v35 = vsel %vm1778_vm4, %v17043_v14, %v10273_v60  ;;  %v4126_v34 = vmax.f32 %v4056_v4, 0.0  ;;  %v4048_v5 = vadd.f32 %v16892_v24, %v4047_v18  ;;  %v20379_v14 = vld [vmem:[#allocation80_spill] sm:$0xff]  ;;  %v4158_v56 = vld [vmem:[%s14786_s24 + $0x98] sm:$0xff]  ;;  %v20382_v18 = vld [vmem:[#allocation79_spill] sm:$0xff] }
 0x3bf   : > { %20377 = vst [vmem:[#allocation82_spill] sm:$0xff] %v17339_v41  ;;  %20378 = vst [vmem:[#allocation49_spill] sm:$0xff] %v17341_v57  ;;  %v17358_v25 = vsel %vm1778_vm4, %v17050_v48, %v10277_v39  ;;  %v17362_v20 = vsel %vm1778_vm4, %v17063_v38, %v10278_v13  ;;  %v10283_v59 = vunpack.i.h.bf16 %v20379_v14  ;;  %v4187_v60 = vadd.f32 %v4155_v15, %v4123_v16  ;;  %v8489_v33 = vpop.f32.mrf.mxu1  ;;  %v20383_v38 = vld [vmem:[#allocation8_spill] sm:$0xff]  ;;  %v20385_v15 = vld [vmem:[#allocation81_spill] sm:$0xff]  ;;  %v17381_v41 = vpop.permute.xlu1 %10450 }
 0x3c0   : > { %4221 = vst [vmem:[%s14786_s24 + $0x90] sm:$0xff] %v4189_v8  ;;  %v20380_v8 = vld [vmem:[#allocation87_spill] sm:$0xff]  ;;  %v10282_v4 = vunpack.i.l.bf16 %v20379_v14  ;;  %v4190_v39 = vadd.f32 %v4158_v56, %v4126_v34  ;;  %v4124_v55 = vmax.f32 %v4048_v5, 0.0  ;;  %v20384_v13 = vpack.i.bf16 %v20348_v26, %v20383_v38  ;;  %20386 = vst [vmem:[#allocation36_spill] sm:$0xff] %v17381_v41  ;;  %v17385_v34 = vld [vmem:[#allocation2 + $0x190] sm:$0xff]  ;;  %v17390_v48 = vpop.permute.xlu0 %10455 }
 0x3c1   : > { %v20381_v28 = vpack.i.bf16 %v20247_v47, %v20380_v8  ;;  %v10287_v16 = vunpack.i.l.bf16 %v20382_v18  ;;  %v10327_v57 = vunpack.i.l.bf16 %v20385_v15  ;;  %4219 = vst [vmem:[%s14786_s24 + $0x80] sm:$0xff] %v4187_v60  ;;  %v4156_v8 = vld [vmem:[%s14786_s24 + $0x88] sm:$0xff]  ;;  %v4060_v14 = vpop.f32.mrf.mxu1  ;;  %v17383_v45 = vpack.i.bf16 %v6315_v52, %v6299_v37  ;;  %20389 = vst [vmem:[#allocation50_spill] sm:$0xff] %v17390_v48 }
 0x3c2   : > { %10735 = vrot.lane.b32.xlu0 %v20384_v13, %s11392_s4  ;;  %v10328_v5 = vunpack.i.h.bf16 %v20385_v15  ;;  %v20388_v56 = vld [vmem:[#allocation47_spill] sm:$0xff]  ;;  %4222 = vst [vmem:[%s14786_s24 + $0x98] sm:$0xff] %v4190_v39  ;;  %v4188_v13 = vadd.f32 %v4156_v8, %v4124_v55  ;;  %v4061_v60 = vadd.f32 %v16892_v24, %v4060_v14  ;;  %v11228_v39 = vld [vmem:[%s18799_s1 + $0xf8] sm:$0xff]   ;;  %v17405_v55 = vsel %vm1778_vm4, %v17074_v17, %v10282_v4  ;;  %v4161_v8 = vld [vmem:[%s14786_s24 + $0xb0] sm:$0xff] }
 0x3c3   : > { %10730 = vrot.lane.b32.xlu1 %v20381_v28, %s11392_s4  ;;  %v4069_v28 = vadd.f32 %v8489_v33, %v16892_v24  ;;  %20387 = vst [vmem:[#allocation12_spill] sm:$0xff] %v17383_v45  ;;  %v10332_v38 = vunpack.i.l.bf16 %v20388_v56  ;;  %v10333_v33 = vunpack.i.h.bf16 %v20388_v56  ;;  %v20390_v41 = vld [vmem:[#allocation19_spill] sm:$0xff]  ;;  %v8490_v15 = vpop.f32.mrf.mxu1  ;;  %v17420_v48 = vsel %vm1778_vm4, %v17083_v6, %v10283_v59  ;;  %8547 = vmatprep.subr.bf16.mxu1 %v11228_v39 }
 0x3c4   : > { %v10338_v26 = vunpack.i.h.bf16 %v20390_v41  ;;  %v10337_v37 = vunpack.i.l.bf16 %v20390_v41  ;;  %v20391_v45 = vld [vmem:[#allocation15_spill] sm:$0xff]  ;;  %4220 = vst [vmem:[%s14786_s24 + $0x88] sm:$0xff] %v4188_v13  ;;  %v4127_v14 = vmax.f32 %v4061_v60, 0.0  ;;  %v20393_v41 = vld [vmem:[#allocation22_spill] sm:$0xff]  ;;  %v17424_v17 = vsel %vm1778_vm4, %v17093_v43, %v10287_v16  ;;  %v17435_v16 = vpop.permute.xlu0 %10465  ;;  %8548 = vmatpush3.bf16.msra.mxu1 %v11228_v39 }
 0x3c5   : > { %v4129_v52 = vmax.f32 %v4069_v28, 0.0  ;;  %v20392_v29 = vpack.i.bf16 %v20361_v44, %v20391_v45  ;;  %v20394_v28 = vld [vmem:[#allocation9_spill] sm:$0xff]  ;;  %v4072_v45 = vadd.f32 %v8490_v15, %v16892_v24  ;;  %v5629_v4 = vsel %vm1811_vm5, %v17246_v22, %v10327_v57  ;;  %v4159_v60 = vld [vmem:[%s14786_s24 + $0xa0] sm:$0xff]  ;;  %v17429_v15 = vpop.permute.xlu1 %10460  ;;  %20398 = vst [vmem:[#allocation21_spill] sm:$0xff] %v17435_v16 }
 0x3c6   : > { %v20395_v56 = vpack.i.bf16 %v20393_v41, %v20394_v28  ;;  %20397 = vst [vmem:[#allocation58_spill] sm:$0xff] %v17429_v15  ;;  %v4063_v41 = vpop.f32.mrf.mxu1  ;;  %v5630_v28 = vsel %vm1811_vm5, %v17250_v0, %v10328_v5  ;;  %v5631_v6 = vsel %vm1811_vm5, %v17260_v12, %v10332_v38  ;;  %v4191_v43 = vadd.f32 %v4159_v60, %v4127_v14  ;;  %v4162_v0 = vld [vmem:[%s14786_s24 + $0xb8] sm:$0xff]  ;;  %v20400_v38 = vld [vmem:[#allocation43_spill] sm:$0xff]  ;;  %v20404_v39 = vld [vmem:[#allocation70_spill] sm:$0xff] }
 0x3c7   : > { %10740 = vrot.lane.b32.xlu1 %v20392_v29, %s11392_s4  ;;  %v17414_v29 = vld [vmem:[#allocation2 + $0x188] sm:$0xff]  ;;  %v4193_v13 = vadd.f32 %v4161_v8, %v4129_v52  ;;  %v4130_v59 = vmax.f32 %v4072_v45, 0.0  ;;  %v5632_v22 = vsel %vm1811_vm5, %v17270_v51, %v10333_v33  ;;  %v5633_v57 = vsel %vm1811_vm5, %v17274_v32, %v10337_v37  ;;  %v20399_v12 = vld [vmem:[#allocation85_spill] sm:$0xff]  ;;  %v11229_v51 = vld [vmem:[%s18799_s1 + $0xf0] sm:$0xff]  }
 0x3c8   : > { %10745 = vrot.lane.b32.xlu0 %v20395_v56, %s11392_s4  ;;  %20396 = vst [vmem:[#allocation78_spill] sm:$0xff] %v17414_v29  ;;  %v5634_v52 = vsel %vm1811_vm5, %v17292_v30, %v10338_v26  ;;  %v4064_v5 = vadd.f32 %v16892_v24, %v4063_v41  ;;  %v20401_v8 = vpack.i.bf16 %v20399_v12, %v20400_v38  ;;  %v8493_v14 = vpop.f32.mrf.mxu1  ;;  %v20402_v33 = vld [vmem:[#allocation46_spill] sm:$0xff]  ;;  %v10407_v26 = vunpack.i.l.bf16 %v17177_v42  ;;  %v4165_v29 = vld [vmem:[%s14786_s24 + $0xd0] sm:$0xff] }
 0x3c9   : > { %4225 = vst [vmem:[%s14786_s24 + $0xb0] sm:$0xff] %v4193_v13  ;;  %v10342_v32 = vunpack.i.l.bf16 %v20402_v33  ;;  %4223 = vst [vmem:[%s14786_s24 + $0xa0] sm:$0xff] %v4191_v43  ;;  %v4194_v30 = vadd.f32 %v4162_v0, %v4130_v59  ;;  %v20403_v37 = vld [vmem:[#allocation86_spill] sm:$0xff]  ;;  %v4085_v45 = vadd.f32 %v8493_v14, %v16892_v24  ;;  %v10408_v13 = vunpack.i.h.bf16 %v17177_v42  ;;  %v17464_v38 = vpop.permute.xlu1 %10470  ;;  %8549 = vmatprep.subr.bf16.mxu1 %v11229_v51  ;;  %v4160_v0 = vld [vmem:[%s14786_s24 + $0xa8] sm:$0xff]  ;;  %v17470_v14 = vpop.permute.xlu0 %10475 }
 0x3ca   : > { %v20405_v56 = vpack.i.bf16 %v20403_v37, %v20404_v39  ;;  %v10413_v60 = vunpack.i.h.bf16 %v17211_v61  ;;  %v10412_v41 = vunpack.i.l.bf16 %v17211_v61  ;;  %v4128_v12 = vmax.f32 %v4064_v5, 0.0  ;;  %20406 = vst [vmem:[#allocation39_spill] sm:$0xff] %v17464_v38  ;;  %20407 = vst [vmem:[#allocation17_spill] sm:$0xff] %v17470_v14  ;;  %8550 = vmatpush3.bf16.msra.mxu1 %v11229_v51  ;;  %v20408_v5 = vld [vmem:[#allocation63_spill] sm:$0xff]  ;;  %v4163_v61 = vld [vmem:[%s14786_s24 + $0xc0] sm:$0xff] }
 0x3cb   : > { %10750 = vrot.lane.b32.xlu1 %v20401_v8, %s11392_s4  ;;  %v4076_v8 = vpop.f32.mrf.mxu1  ;;  %v10418_v43 = vunpack.i.h.bf16 %v17222_v63  ;;  %v10417_v59 = vunpack.i.l.bf16 %v17222_v63  ;;  %4226 = vst [vmem:[%s14786_s24 + $0xb8] sm:$0xff] %v4194_v30  ;;  %v4133_v37 = vmax.f32 %v4085_v45, 0.0  ;;  %v20409_v63 = vld [vmem:[#allocation48_spill] sm:$0xff]  ;;  %v20410_v30 = vld [vmem:[#allocation75_spill] sm:$0xff]  ;;  %v5661_v39 = vsel %vm1844_vm6, %v5629_v4, %v10407_v26 }
 0x3cc   : > { %10755 = vrot.lane.b32.xlu0 %v20405_v56, %s11392_s4  ;;  %v4077_v42 = vadd.f32 %v16892_v24, %v4076_v8  ;;  %v4192_v44 = vadd.f32 %v4160_v0, %v4128_v12  ;;  %v20411_v38 = vpack.i.bf16 %v20409_v63, %v20410_v30  ;;  %v11230_v51 = vld [vmem:[%s18799_s1 + $0xe8] sm:$0xff]   ;;  %v17486_v8 = vsel %vm1811_vm5, %v17307_v54, %v10342_v32  ;;  %v20412_v0 = vld [vmem:[#allocation28_spill] sm:$0xff] }
 0x3cd   : > { %v8494_v45 = vpop.f32.mrf.mxu1  ;;  %v4197_v56 = vadd.f32 %v4165_v29, %v4133_v37  ;;  %v5662_v63 = vsel %vm1844_vm6, %v5630_v28, %v10408_v13  ;;  %v5664_v30 = vsel %vm1844_vm6, %v5632_v22, %v10413_v60  ;;  %v17497_v54 = vpop.permute.xlu1 %10480  ;;  %8551 = vmatprep.subr.bf16.mxu1 %v11230_v51  ;;  %v5665_v29 = vsel %vm1844_vm6, %v5633_v57, %v10417_v59  ;;  %v4166_v37 = vld [vmem:[%s14786_s24 + $0xd8] sm:$0xff] }
 0x3ce   : > { %v4131_v12 = vmax.f32 %v4077_v42, 0.0  ;;  %4224 = vst [vmem:[%s14786_s24 + $0xa8] sm:$0xff] %v4192_v44  ;;  %v4088_v14 = vadd.f32 %v8494_v45, %v16892_v24  ;;  %20413 = vst [vmem:[#allocation20_spill] sm:$0xff] %v17497_v54  ;;  %v5666_v4 = vsel %vm1844_vm6, %v5634_v52, %v10418_v43  ;;  %v10486_v26 = vpop.permute.xlu0 %10485  ;;  %8552 = vmatpush3.bf16.msra.mxu1 %v11230_v51  ;;  %v11231_v52 = vld [vmem:[%s18799_s1 + $0xe0] sm:$0xff]  }
 0x3cf   : > { %10760 = vrot.lane.b32.xlu1 %v20411_v38, %s11392_s4  ;;  %v5663_v38 = vsel %vm1844_vm6, %v5631_v6, %v10412_v41  ;;  %v4079_v32 = vpop.f32.mrf.mxu1  ;;  %4229 = vst [vmem:[%s14786_s24 + $0xd0] sm:$0xff] %v4197_v56  ;;  %v10488_v13 = vunpack.i.h.bf16 %v10486_v26  ;;  %v10487_v60 = vunpack.i.l.bf16 %v10486_v26  ;;  %v20414_v41 = vld [vmem:[#allocation64_spill] sm:$0xff]  ;;  %v10427_v56 = vunpack.i.l.bf16 %v17263_v36  ;;  %8553 = vmatprep.subr.bf16.mxu1 %v11231_v52 }
 0x3d0   : > { %10765 = vrot.lane.b32.xlu0 %v20412_v0, %s11392_s4  ;;  %v4195_v28 = vadd.f32 %v4163_v61, %v4131_v12  ;;  %v4080_v6 = vadd.f32 %v16892_v24, %v4079_v32  ;;  %v4134_v22 = vmax.f32 %v4088_v14, 0.0  ;;  %v20415_v14 = vld [vmem:[#allocation71_spill] sm:$0xff] }
 0x3d1   : > { %v8497_v57 = vpop.f32.mrf.mxu1  ;;  %v5693_v51 = vsel %vm1877_vm7, %v5661_v39, %v10487_v60  ;;  %v5694_v12 = vsel %vm1877_vm7, %v5662_v63, %v10488_v13  ;;  %v4164_v32 = vld [vmem:[%s14786_s24 + $0xc8] sm:$0xff]  ;;  %v10491_v26 = vpop.permute.xlu1 %10490  ;;  %v20416_v39 = vld [vmem:[#allocation73_spill] sm:$0xff] }
 0x3d2   : > { %4227 = vst [vmem:[%s14786_s24 + $0xc0] sm:$0xff] %v4195_v28  ;;  %v4132_v42 = vmax.f32 %v4080_v6, 0.0  ;;  %v4101_v61 = vadd.f32 %v8497_v57, %v16892_v24  ;;  %v4198_v45 = vadd.f32 %v4166_v37, %v4134_v22  ;;  %v10493_v44 = vunpack.i.h.bf16 %v10491_v26  ;;  %v10496_v54 = vpop.permute.xlu0 %10495  ;;  %8554 = vmatpush3.bf16.msra.mxu1 %v11231_v52  ;;  %v4169_v57 = vld [vmem:[%s14786_s24 + $0xf0] sm:$0xff]  ;;  %v11232_v60 = vld [vmem:[%s18799_s1 + $0xd8] sm:$0xff]  }
 0x3d3   : > { %10770 = vrot.lane.b32.xlu1 %v20414_v41, %s11392_s4  ;;  %v4092_v59 = vpop.f32.mrf.mxu1  ;;  %v10492_v43 = vunpack.i.l.bf16 %v10491_v26  ;;  %v10498_v16 = vunpack.i.h.bf16 %v10496_v54  ;;  %v10497_v15 = vunpack.i.l.bf16 %v10496_v54  ;;  %v8179_v13 = vpack.c.bf16 %v5694_v12, %v5693_v51  ;;  %v20417_v54 = vld [vmem:[#allocation62_spill] sm:$0xff]  ;;  %8555 = vmatprep.subr.bf16.mxu1 %v11232_v60 }
 0x3d4   : > { %10775 = vrot.lane.b32.xlu0 %v20415_v14, %s11392_s4  ;;  %v4196_v28 = vadd.f32 %v4164_v32, %v4132_v42  ;;  %v4137_v6 = vmax.f32 %v4101_v61, 0.0  ;;  %4230 = vst [vmem:[%s14786_s24 + $0xd8] sm:$0xff] %v4198_v45  ;;  %v4093_v22 = vadd.f32 %v16892_v24, %v4092_v59  ;;  %v5696_v42 = vsel %vm1877_vm7, %v5664_v30, %v10493_v44  ;;  %v18618_v32 = vld [vmem:[%s18800_s2 + $0x3] ss:$0 sm:$0xff] }
 0x3d5   : > { %v8498_v63 = vpop.f32.mrf.mxu1  ;;  %v5695_v52 = vsel %vm1877_vm7, %v5663_v38, %v10492_v43  ;;  %v5697_v45 = vsel %vm1877_vm7, %v5665_v29, %v10497_v15  ;;  %v5698_v51 = vsel %vm1877_vm7, %v5666_v4, %v10498_v16  ;;  %8515 = vmatprep.mubr.msk.bf16.mxu0 %vm13383_vm9, %v8179_v13  ;;  %v10501_v26 = vpop.permute.xlu1 %10500  ;;  %v4167_v38 = vld [vmem:[%s14786_s24 + $0xe0] sm:$0xff]  ;;  %v4170_v29 = vld [vmem:[%s14786_s24 + $0xf8] sm:$0xff] }
 0x3d6   : > { %4228 = vst [vmem:[%s14786_s24 + $0xc8] sm:$0xff] %v4196_v28  ;;  %v4201_v37 = vadd.f32 %v4169_v57, %v4137_v6  ;;  %v4104_v59 = vadd.f32 %v8498_v63, %v16892_v24  ;;  %v8182_v61 = vpack.c.bf16 %v5696_v42, %v5695_v52  ;;  %v4135_v12 = vmax.f32 %v4093_v22, 0.0  ;;  %v10506_v6 = vpop.permute.xlu0 %10505  ;;  %8556 = vmatpush3.bf16.msra.mxu1 %v11232_v60  ;;  %v11233_v63 = vld [vmem:[%s18799_s1 + $0xd0] sm:$0xff]  }
 0x3d7   : > { %10780 = vrot.lane.b32.xlu1 %v20416_v39, %s11392_s4  ;;  %v4095_v28 = vpop.f32.mrf.mxu1  ;;  %v10503_v44 = vunpack.i.h.bf16 %v10501_v26  ;;  %v10502_v43 = vunpack.i.l.bf16 %v10501_v26  ;;  %v10508_v16 = vunpack.i.h.bf16 %v10506_v6  ;;  %v10507_v4 = vunpack.i.l.bf16 %v10506_v6  ;;  %8557 = vmatprep.subr.bf16.mxu1 %v11233_v63 }
 0x3d8   : > { %10785 = vrot.lane.b32.xlu0 %v20417_v54, %s11392_s4  ;;  %4233 = vst [vmem:[%s14786_s24 + $0xf0] sm:$0xff] %v4201_v37  ;;  %v4138_v30 = vmax.f32 %v4104_v59, 0.0  ;;  %v4096_v57 = vadd.f32 %v16892_v24, %v4095_v28  ;;  %v4199_v15 = vadd.f32 %v4167_v38, %v4135_v12  ;;  %8516 = vmatmul.mubr.msk.bf16.vlgmr.msra.gmra.mxu0 %vm13383_vm9, %v8182_v61  ;;  %v20419_v24 = vunpack.i.h.bf16 %v20402_v33  ;;  %v20421_v59 = vld [vmem:[#allocation91_spill] sm:$0xff] }
 0x3d9   : > { %v8185_v22 = vpack.c.bf16 %v5698_v51, %v5697_v45  ;;  %v20420_v60 = vunpack.i.l.bf16 %v20408_v5  ;;  %v20422_v61 = vpack.i.bf16 %v20421_v59, %v20241_v31  ;;  %v20423_v45 = vunpack.i.h.bf16 %v20408_v5  ;;  %v4168_v28 = vld [vmem:[%s14786_s24 + $0xe8] sm:$0xff]  ;;  %v10511_v31 = vpop.permute.xlu1 %10510 }
 0x3da   : > { %v5636_v13 = vsel %vm1811_vm5, %v17320_v3, %v20419_v24  ;;  %v4202_v52 = vadd.f32 %v4170_v29, %v4138_v30  ;;  %v4136_v42 = vmax.f32 %v4096_v57, 0.0  ;;  %v20424_v51 = vunpack.i.l.bf16 %v17256_v40  ;;  %4231 = vst [vmem:[%s14786_s24 + $0xe0] sm:$0xff] %v4199_v15  ;;  %v10516_v30 = vpop.permute.xlu0 %10515  ;;  %v20428_v57 = vld [vmem:[#allocation11_spill] sm:$0xff]  ;;  %8558 = vmatpush3.bf16.msra.mxu1 %v11233_v63 }
 0x3db   : > { %10790 = vrot.lane.b32.xlu1 %v16984_v50, %s11392_s4  ;;  %v5637_v37 = vsel %vm1811_vm5, %v17324_v7, %v20420_v60  ;;  %v5638_v33 = vsel %vm1811_vm5, %v17334_v21, %v20423_v45  ;;  %v20425_v12 = vunpack.i.h.bf16 %v17256_v40  ;;  %8519 = vmatprep.mubr.msk.bf16.mxu0 %vm13383_vm9, %v8185_v22  ;;  %v20426_v5 = vunpack.i.h.bf16 %v17263_v36 }
 0x3dc   : > { %10795 = vrot.lane.b32.xlu0 %v20422_v61, %s11393_s5  ;;  %v5667_v3 = vsel %vm1844_vm6, %v17486_v8, %v20424_v51  ;;  %v5669_v26 = vsel %vm1844_vm6, %v5637_v37, %v10427_v56  ;;  %4234 = vst [vmem:[%s14786_s24 + $0xf8] sm:$0xff] %v4202_v52  ;;  %v4200_v8 = vadd.f32 %v4168_v28, %v4136_v42  ;;  %v20427_v56 = vunpack.i.h.bf16 %v20382_v18  ;;  %v11234_v18 = vld [vmem:[%s18799_s1 + $0xc8] sm:$0xff]   ;;  %v17613_v61 = vld [vmem:[#allocation2 + $0x1b0] sm:$0xff] }
 0x3dd   : > { %v5668_v7 = vsel %vm1844_vm6, %v5636_v13, %v20425_v12  ;;  %v5670_v21 = vsel %vm1844_vm6, %v5638_v33, %v20426_v5  ;;  %v5699_v38 = vsel %vm1877_vm7, %v5667_v3, %v10502_v43  ;;  %v10293_v15 = vunpack.i.h.bf16 %v20428_v57  ;;  %v20429_v43 = vld [vmem:[#allocation18_spill] sm:$0xff]  ;;  %v17611_v52 = vpop.permute.xlu1 %10520  ;;  %8559 = vmatprep.subr.bf16.mxu1 %v11234_v18 }
 0x3de   : > { %v5700_v40 = vsel %vm1877_vm7, %v5668_v7, %v10503_v44  ;;  %v17587_v6 = vsel %vm1778_vm4, %v17097_v53, %v20427_v56  ;;  %v5701_v36 = vsel %vm1877_vm7, %v5669_v26, %v10507_v4  ;;  %v5702_v29 = vsel %vm1877_vm7, %v5670_v21, %v10508_v16  ;;  %v20431_v44 = vld [vmem:[#allocation67_spill] sm:$0xff]  ;;  %v20432_v13 = vld [vmem:[#allocation90_spill] sm:$0xff]  ;;  %4232 = vst [vmem:[%s14786_s24 + $0xe8] sm:$0xff] %v4200_v8  ;;  %v17616_v3 = vpop.permute.xlu0 %10525 }
 0x3df   : > { %v20430_v22 = vpack.i.bf16 %v20429_v43, %v20247_v47  ;;  %v10353_v24 = vunpack.i.h.bf16 %v20431_v44  ;;  %v10352_v53 = vunpack.i.l.bf16 %v20431_v44  ;;  %v10358_v60 = vunpack.i.h.bf16 %v20432_v13  ;;  %v20434_v12 = vld [vmem:[#allocation38_spill] sm:$0xff]  ;;  %8560 = vmatpush3.bf16.msra.mxu1 %v11234_v18 }
 0x3e0   : > { %v10357_v4 = vunpack.i.l.bf16 %v20432_v13  ;;  %v20433_v16 = vpack.i.bf16 %v20303_v49, %v20421_v59  ;;  %v10433_v47 = vunpack.i.h.bf16 %v17296_v19  ;;  %v10432_v63 = vunpack.i.l.bf16 %v17296_v19 }
 0x3e1   : > { %10800 = vrot.lane.b32.xlu1 %v20430_v22, %s11393_s5  ;;  %v10438_v37 = vunpack.i.h.bf16 %v17303_v9  ;;  %v8188_v42 = vpack.c.bf16 %v5700_v40, %v5699_v38  ;;  %v10437_v45 = vunpack.i.l.bf16 %v17303_v9  ;;  %v10513_v33 = vunpack.i.h.bf16 %v10511_v31  ;;  %v11235_v9 = vld [vmem:[%s18799_s1 + $0xc0] sm:$0xff]   ;;  %v17642_v40 = vld [vmem:[#allocation2 + $0x198] sm:$0xff] }
 0x3e2   : > { %10805 = vrot.lane.b32.xlu0 %v20433_v16, %s11394_s6  ;;  %v10512_v51 = vunpack.i.l.bf16 %v10511_v31  ;;  %v8191_v49 = vpack.c.bf16 %v5702_v29, %v5701_v36  ;;  %v10292_v59 = vunpack.i.l.bf16 %v20428_v57  ;;  %v10298_v7 = vunpack.i.h.bf16 %v20434_v12  ;;  %v17656_v22 = vpop.permute.xlu0 %10535  ;;  %8561 = vmatprep.subr.bf16.mxu1 %v11235_v9 }
 0x3e3   : > { %v10518_v19 = vunpack.i.h.bf16 %v10516_v30  ;;  %v10517_v26 = vunpack.i.l.bf16 %v10516_v30  ;;  %v20435_v28 = vpack.i.bf16 %v20313_v2, %v20429_v43  ;;  %8520 = vmatmul.mubr.msk.bf16.gmra.mxu0 %vm13383_vm9, %v8188_v42  ;;  %v10297_v31 = vunpack.i.l.bf16 %v20434_v12  ;;  %v17638_v2 = vld [vmem:[#allocation2 + $0x1a8] sm:$0xff]  ;;  %v17650_v30 = vpop.permute.xlu1 %10530  ;;  %8562 = vmatpush3.bf16.msra.mxu1 %v11235_v9 }
 0x3e4   : > { %v5639_v5 = vsel %vm1811_vm5, %v17345_v1, %v10352_v53  ;;  %v5640_v21 = vsel %vm1811_vm5, %v17349_v35, %v10353_v24  ;;  %8523 = vmatprep.mubr.msk.bf16.mxu0 %vm13383_vm9, %v8191_v49  ;;  %v10899_v38 = vpack.i.bf16 %v17613_v61, %v17638_v2  ;;  %v5641_v8 = vsel %vm1811_vm5, %v17358_v25, %v10357_v4  ;;  %v20436_v24 = vld [vmem:[#allocation16_spill] sm:$0xff] }
 0x3e5   : > { %10810 = vrot.lane.b32.xlu1 %v20435_v28, %s11394_s6  ;;  %v5642_v1 = vsel %vm1811_vm5, %v17362_v20, %v10358_v60  ;;  %v5671_v35 = vsel %vm1844_vm6, %v5639_v5, %v10432_v63  ;;  %v5673_v56 = vsel %vm1844_vm6, %v5641_v8, %v10437_v45  ;;  %v17660_v25 = vsel %vm1778_vm4, %v17107_v27, %v10292_v59  ;;  %v20437_v60 = vld [vmem:[#allocation92_spill] sm:$0xff]  ;;  %v20438_v59 = vld [vmem:[#allocation10_spill] sm:$0xff]  ;;  %v20440_v28 = vld [vmem:[#allocation23_spill] sm:$0xff] }
 0x3e6   : > { %10815 = vrot.lane.b32.xlu0 %v20412_v0, %s11395_s7  ;;  %v5672_v0 = vsel %vm1844_vm6, %v5640_v21, %v10433_v47  ;;  %v5674_v36 = vsel %vm1844_vm6, %v5642_v1, %v10438_v37  ;;  %v5703_v29 = vsel %vm1877_vm7, %v5671_v35, %v10512_v51  ;;  %v5705_v20 = vsel %vm1877_vm7, %v5673_v56, %v10517_v26  ;;  %v17682_v51 = vpop.permute.xlu0 %10545  ;;  %v20442_v56 = vld [vmem:[#allocation37_spill] sm:$0xff] }
 0x3e7   : > { %v5704_v43 = vsel %vm1877_vm7, %v5672_v0, %v10513_v33  ;;  %v5706_v44 = vsel %vm1877_vm7, %v5674_v36, %v10518_v19  ;;  %v10904_v18 = vpack.i.bf16 %v17642_v40, %v17385_v34  ;;  %v10363_v53 = vunpack.i.h.bf16 %v20436_v24  ;;  %v17677_v63 = vpop.permute.xlu1 %10540  ;;  %v20443_v36 = vld [vmem:[#allocation72_spill] sm:$0xff] }
 0x3e8   : > { %v10362_v13 = vunpack.i.l.bf16 %v20436_v24  ;;  %v10368_v4 = vunpack.i.h.bf16 %v20437_v60  ;;  %v10367_v16 = vunpack.i.l.bf16 %v20437_v60  ;;  %v10443_v27 = vunpack.i.h.bf16 %v17336_v10 }
 0x3e9   : > { %10820 = vrot.lane.b32.xlu1 %v20414_v41, %s11395_s7  ;;  %v10442_v47 = vunpack.i.l.bf16 %v17336_v10  ;;  %v10448_v41 = vunpack.i.h.bf16 %v17353_v23  ;;  %v8194_v37 = vpack.c.bf16 %v5704_v43, %v5703_v29  ;;  %v10447_v42 = vunpack.i.l.bf16 %v17353_v23  ;;  %v20439_v23 = vld [vmem:[#allocation55_spill] sm:$0xff] }
 0x3ea   : > { %10825 = vrot.lane.b32.xlu0 %v17114_v46, %s11396_s17  ;;  %v10523_v45 = vunpack.i.h.bf16 %v17611_v52  ;;  %v10522_v33 = vunpack.i.l.bf16 %v17611_v52  ;;  %v8197_v49 = vpack.c.bf16 %v5706_v44, %v5705_v20  ;;  %v5616_v10 = vsel %vm1778_vm4, %v20438_v59, %v10293_v15  ;;  %v17719_v8 = vpop.permute.xlu0 %10555  ;;  %v20444_v20 = vld [vmem:[#allocation30_spill] sm:$0xff] }
 0x3eb   : > { %v5617_v12 = vsel %vm1778_vm4, %v17129_v58, %v10297_v31  ;;  %v10528_v19 = vunpack.i.h.bf16 %v17616_v3  ;;  %v10527_v26 = vunpack.i.l.bf16 %v17616_v3  ;;  %8524 = vmatmul.mubr.msk.bf16.gmra.mxu0 %vm13383_vm9, %v8194_v37  ;;  %v10243_v52 = vunpack.i.h.bf16 %v20439_v23 }
 0x3ec   : > { %v5618_v57 = vsel %vm1778_vm4, %v17138_v11, %v10298_v7  ;;  %v5643_v15 = vsel %vm1811_vm5, %v17405_v55, %v10362_v13  ;;  %v5644_v58 = vsel %vm1811_vm5, %v17420_v48, %v10363_v53  ;;  %8527 = vmatprep.mubr.msk.bf16.mxu0 %vm13383_vm9, %v8197_v49  ;;  %v5645_v3 = vsel %vm1811_vm5, %v17424_v17, %v10367_v16  ;;  %v17713_v55 = vpop.permute.xlu1 %10550  ;;  %v20441_v17 = vld [vmem:[#allocation31_spill] sm:$0xff]  ;;  %v20445_v53 = vld [vmem:[#allocation88_spill] sm:$0xff]  ;;  %v20446_v13 = vld [vmem:[#allocation77_spill] sm:$0xff] }
 0x3ed   : > { %10830 = vrot.lane.b32.xlu1 %v17146_v62, %s11396_s17  ;;  %v5646_v9 = vsel %vm1811_vm5, %v17587_v6, %v10368_v4  ;;  %v5675_v11 = vsel %vm1844_vm6, %v5643_v15, %v10442_v47  ;;  %v5676_v7 = vsel %vm1844_vm6, %v5644_v58, %v10443_v27  ;;  %v5677_v48 = vsel %vm1844_vm6, %v5645_v3, %v10447_v42  ;;  %v20448_v4 = vld [vmem:[#allocation36_spill] sm:$0xff]  ;;  %v20449_v47 = vld [vmem:[#allocation50_spill] sm:$0xff] }
 0x3ee   : > { %10835 = vrot.lane.b32.xlu0 %v20440_v28, %s11397_s20  ;;  %v5678_v31 = vsel %vm1844_vm6, %v5646_v9, %v10448_v41  ;;  %v5707_v5 = vsel %vm1877_vm7, %v5675_v11, %v10522_v33  ;;  %v5708_v21 = vsel %vm1877_vm7, %v5676_v7, %v10523_v45  ;;  %v10303_v1 = vunpack.i.h.bf16 %v20441_v17  ;;  %v17743_v59 = vpop.permute.xlu0 %10565  ;;  %v20451_v9 = vld [vmem:[#allocation40_spill] sm:$0xff]  ;;  %v20452_v11 = vld [vmem:[#allocation25_spill] sm:$0xff] }
 0x3ef   : > { %v10302_v6 = vunpack.i.l.bf16 %v20441_v17  ;;  %v5709_v35 = vsel %vm1877_vm7, %v5677_v48, %v10527_v26  ;;  %v5710_v0 = vsel %vm1877_vm7, %v5678_v31, %v10528_v19  ;;  %v10373_v29 = vunpack.i.h.bf16 %v20443_v36  ;;  %v20450_v26 = vld [vmem:[#allocation29_spill] sm:$0xff]  ;;  %v20454_v31 = vld [vmem:[#allocation56_spill] sm:$0xff] }
 0x3f0   : > { %v10372_v43 = vunpack.i.l.bf16 %v20443_v36  ;;  %v10378_v44 = vunpack.i.h.bf16 %v20444_v20  ;;  %v10377_v24 = vunpack.i.l.bf16 %v20444_v20  ;;  %v20447_v60 = vpack.i.bf16 %v20445_v53, %v20446_v13  ;;  %v17738_v37 = vpop.permute.xlu1 %10560  ;;  %v17754_v48 = vld [vmem:[#allocation2 + $0x1b8] sm:$0xff] }
 0x3f1   : > { %10840 = vrot.lane.b32.xlu1 %v20442_v56, %s11397_s20  ;;  %v10453_v16 = vunpack.i.h.bf16 %v20448_v4  ;;  %v10452_v27 = vunpack.i.l.bf16 %v20448_v4  ;;  %v10458_v41 = vunpack.i.h.bf16 %v20449_v47  ;;  %v8200_v42 = vpack.c.bf16 %v5708_v21, %v5707_v5  ;;  %v20457_v4 = vld [vmem:[#allocation27_spill] sm:$0xff] }
 0x3f2   : > { %10845 = vrot.lane.b32.xlu0 %v20447_v60, %s11393_s5  ;;  %v10457_v45 = vunpack.i.l.bf16 %v20449_v47  ;;  %v10533_v33 = vunpack.i.h.bf16 %v17650_v30  ;;  %v10532_v49 = vunpack.i.l.bf16 %v17650_v30  ;;  %v8203_v19 = vpack.c.bf16 %v5710_v0, %v5709_v35  ;;  %v20455_v35 = vld [vmem:[#allocation51_spill] sm:$0xff] }
 0x3f3   : > { %v10307_v15 = vunpack.i.l.bf16 %v20450_v26  ;;  %v10538_v58 = vunpack.i.h.bf16 %v17656_v22  ;;  %v10537_v3 = vunpack.i.l.bf16 %v17656_v22  ;;  %v20453_v7 = vpack.i.bf16 %v20451_v9, %v20452_v11  ;;  %8528 = vmatmul.mubr.msk.bf16.gmra.mxu0 %vm13383_vm9, %v8200_v42 }
 0x3f4   : > { %v10909_v30 = vpack.i.bf16 %v17754_v48, %v17613_v61  ;;  %v5619_v5 = vsel %vm1778_vm4, %v20454_v31, %v10302_v6  ;;  %v10308_v21 = vunpack.i.h.bf16 %v20450_v26  ;;  %v5647_v22 = vsel %vm1811_vm5, %v17660_v25, %v10372_v43  ;;  %8531 = vmatprep.mubr.msk.bf16.mxu0 %vm13383_vm9, %v8203_v19  ;;  %v17774_v60 = vpop.permute.xlu1 %10570  ;;  %v20463_v19 = vld [vmem:[#allocation58_spill] sm:$0xff] }
 0x3f5   : > { %10850 = vrot.lane.b32.xlu1 %v20453_v7, %s11393_s5  ;;  %v5648_v17 = vsel %vm1811_vm5, %v5616_v10, %v10373_v29  ;;  %v20456_v0 = vpack.i.bf16 %v20455_v35, %v20445_v53  ;;  %v5649_v36 = vsel %vm1811_vm5, %v5617_v12, %v10377_v24  ;;  %v5650_v20 = vsel %vm1811_vm5, %v5618_v57, %v10378_v44  ;;  %v17780_v53 = vpop.permute.xlu0 %10575  ;;  %v20458_v57 = vld [vmem:[#allocation45_spill] sm:$0xff] }
 0x3f6   : > { %v5679_v6 = vsel %vm1844_vm6, %v5647_v22, %v10452_v27  ;;  %v5680_v13 = vsel %vm1844_vm6, %v5648_v17, %v10453_v16  ;;  %v5681_v25 = vsel %vm1844_vm6, %v5649_v36, %v10457_v45  ;;  %v5682_v10 = vsel %vm1844_vm6, %v5650_v20, %v10458_v41  ;;  %v20459_v27 = vld [vmem:[#allocation66_spill] sm:$0xff] }
 0x3f7   : > { %10855 = vrot.lane.b32.xlu0 %v20456_v0, %s11394_s6  ;;  %v5711_v29 = vsel %vm1877_vm7, %v5679_v6, %v10532_v49  ;;  %v5712_v43 = vsel %vm1877_vm7, %v5680_v13, %v10533_v33  ;;  %v5620_v12 = vsel %vm1778_vm4, %v20457_v4, %v10303_v1  ;;  %v5621_v44 = vsel %vm1778_vm4, %v20458_v57, %v10307_v15  ;;  %v20461_v41 = vld [vmem:[#allocation6_spill] sm:$0xff]  ;;  %v20465_v0 = vld [vmem:[#allocation83_spill] sm:$0xff] }
 0x3f8   : > { %v5713_v24 = vsel %vm1877_vm7, %v5681_v25, %v10537_v3  ;;  %v5714_v16 = vsel %vm1877_vm7, %v5682_v10, %v10538_v58  ;;  %v20460_v47 = vpack.i.bf16 %v20459_v27, %v20451_v9  ;;  %v10383_v42 = vunpack.i.h.bf16 %v20461_v41  ;;  %v20462_v33 = vld [vmem:[#allocation54_spill] sm:$0xff]  ;;  %v20464_v58 = vld [vmem:[#allocation21_spill] sm:$0xff]  ;;  %v17801_v11 = vpop.permute.xlu1 %10580 }
 0x3f9   : > { %v10382_v45 = vunpack.i.l.bf16 %v20461_v41  ;;  %v10388_v49 = vunpack.i.h.bf16 %v20462_v33  ;;  %v10387_v1 = vunpack.i.l.bf16 %v20462_v33  ;;  %v10463_v26 = vunpack.i.h.bf16 %v20463_v19  ;;  %v17806_v17 = vpop.permute.xlu0 %10585  ;;  %v20466_v36 = vld [vmem:[#allocation34_spill] sm:$0xff]  ;;  %v20469_v41 = vld [vmem:[#allocation7_spill] sm:$0xff] }
 0x3fa   : > { %10860 = vrot.lane.b32.xlu1 %v20460_v47, %s11394_s6  ;;  %v10462_v15 = vunpack.i.l.bf16 %v20463_v19  ;;  %v10468_v3 = vunpack.i.h.bf16 %v20464_v58  ;;  %v8206_v9 = vpack.c.bf16 %v5712_v43, %v5711_v29  ;;  %v10467_v7 = vunpack.i.l.bf16 %v20464_v58  ;;  %v20467_v25 = vld [vmem:[#allocation42_spill] sm:$0xff] }
 0x3fb   : > { %10865 = vrot.lane.b32.xlu0 %v20415_v14, %s11395_s7  ;;  %v10543_v31 = vunpack.i.h.bf16 %v17677_v63  ;;  %v10542_v22 = vunpack.i.l.bf16 %v17677_v63  ;;  %v8209_v35 = vpack.c.bf16 %v5714_v16, %v5713_v24  ;;  %v5622_v14 = vsel %vm1778_vm4, %v20465_v0, %v10308_v21  ;;  %v20468_v43 = vld [vmem:[#allocation74_spill] sm:$0xff] }
 0x3fc   : > { %v10312_v20 = vunpack.i.l.bf16 %v20466_v36  ;;  %v10548_v6 = vunpack.i.h.bf16 %v17682_v51  ;;  %v10547_v13 = vunpack.i.l.bf16 %v17682_v51  ;;  %8532 = vmatmul.mubr.msk.bf16.gmra.mxu0 %vm13383_vm9, %v8206_v9  ;;  %v10313_v63 = vunpack.i.h.bf16 %v20466_v36  ;;  %v17829_v24 = vpop.permute.xlu1 %10590  ;;  %v20473_v9 = vld [vmem:[#allocation49_spill] sm:$0xff] }
 0x3fd   : > { %v10318_v10 = vunpack.i.h.bf16 %v20467_v25  ;;  %v5651_v29 = vsel %vm1811_vm5, %v5619_v5, %v10382_v45  ;;  %v5652_v21 = vsel %vm1811_vm5, %v5620_v12, %v10383_v42  ;;  %8535 = vmatprep.mubr.msk.bf16.mxu0 %vm13383_vm9, %v8209_v35  ;;  %v5653_v51 = vsel %vm1811_vm5, %v5621_v44, %v10387_v1  ;;  %v17835_v47 = vpop.permute.xlu0 %10595  ;;  %v20471_v1 = vld [vmem:[#allocation53_spill] sm:$0xff] }
 0x3fe   : > { %10870 = vrot.lane.b32.xlu1 %v20416_v39, %s11395_s7  ;;  %v5654_v39 = vsel %vm1811_vm5, %v5622_v14, %v10388_v49  ;;  %v5683_v4 = vsel %vm1844_vm6, %v5651_v29, %v10462_v15  ;;  %v5684_v57 = vsel %vm1844_vm6, %v5652_v21, %v10463_v26  ;;  %v5685_v5 = vsel %vm1844_vm6, %v5653_v51, %v10467_v7  ;;  %v20470_v49 = vld [vmem:[#allocation82_spill] sm:$0xff]  ;;  %v20472_v15 = vld [vmem:[#allocation76_spill] sm:$0xff]  ;;  %v20474_v7 = vld [vmem:[#allocation39_spill] sm:$0xff] }
 0x3ff   : > { %10875 = vrot.lane.b32.xlu0 %v20468_v43, %s11396_s17  ;;  %v5686_v12 = vsel %vm1844_vm6, %v5654_v39, %v10468_v3  ;;  %v5715_v16 = vsel %vm1877_vm7, %v5683_v4, %v10542_v22  ;;  %v5716_v27 = vsel %vm1877_vm7, %v5684_v57, %v10543_v31  ;;  %v5623_v44 = vsel %vm1778_vm4, %v20469_v41, %v10312_v20  ;;  %v20475_v35 = vld [vmem:[#allocation17_spill] sm:$0xff] }
 0x400   : > { %v10317_v42 = vunpack.i.l.bf16 %v20467_v25  ;;  %v5717_v45 = vsel %vm1877_vm7, %v5685_v5, %v10547_v13  ;;  %v5718_v33 = vsel %vm1877_vm7, %v5686_v12, %v10548_v6  ;;  %v10393_v19 = vunpack.i.h.bf16 %v20471_v1  ;;  %v17853_v14 = vpop.permute.xlu1 %10600  ;;  %v20476_v21 = vld [vmem:[#allocation65_spill] sm:$0xff]  ;;  %v20478_v12 = vld [vmem:[#allocation12_spill] sm:$0xff] }
 0x401   : > { %v10392_v26 = vunpack.i.l.bf16 %v20471_v1  ;;  %v10398_v58 = vunpack.i.h.bf16 %v20472_v15  ;;  %v10397_v3 = vunpack.i.l.bf16 %v20472_v15  ;;  %v10473_v31 = vunpack.i.h.bf16 %v20474_v7  ;;  %v17858_v25 = vpop.permute.xlu0 %10605  ;;  %v20477_v39 = vld [vmem:[#allocation13_spill] sm:$0xff] }
 0x402   : > { %10880 = vrot.lane.b32.xlu1 %v20470_v49, %s11396_s17  ;;  %v10472_v22 = vunpack.i.l.bf16 %v20474_v7  ;;  %v10478_v0 = vunpack.i.h.bf16 %v20475_v35  ;;  %v8212_v36 = vpack.c.bf16 %v5716_v27, %v5715_v16  ;;  %v10477_v20 = vunpack.i.l.bf16 %v20475_v35  ;;  %v20479_v16 = vld [vmem:[#allocation41_spill] sm:$0xff] }
 0x403   : > { %10885 = vrot.lane.b32.xlu0 %v20473_v9, %s11397_s20  ;;  %v10553_v6 = vunpack.i.h.bf16 %v17713_v55  ;;  %v10552_v13 = vunpack.i.l.bf16 %v17713_v55  ;;  %v8215_v29 = vpack.c.bf16 %v5718_v33, %v5717_v45  ;;  %v5624_v51 = vsel %vm1778_vm4, %v20476_v21, %v10313_v63  ;;  %v20489_v21 = vld [vmem:[#allocation60_spill] sm:$0xff] }
 0x404   : > { %v5625_v4 = vsel %vm1778_vm4, %v20477_v39, %v10317_v42  ;;  %v10558_v57 = vunpack.i.h.bf16 %v17719_v8  ;;  %v10557_v5 = vunpack.i.l.bf16 %v17719_v8  ;;  %8536 = vmatmul.mubr.msk.bf16.gmra.mxu0 %vm13383_vm9, %v8212_v36  ;;  %v10242_v55 = vunpack.i.l.bf16 %v20439_v23  ;;  %v20480_v42 = vld [vmem:[#allocation78_spill] sm:$0xff]  ;;  %v17885_v15 = vpop.permute.xlu1 %10610  ;;  %v20484_v36 = vld [vmem:[#allocation24_spill] sm:$0xff]  ;;  %v20490_v39 = vld [vmem:[#allocation57_spill] sm:$0xff] }
 0x405   : > { %v5626_v27 = vsel %vm1778_vm4, %v20479_v16, %v10318_v10  ;;  %v5655_v63 = vsel %vm1811_vm5, %v5623_v44, %v10392_v26  ;;  %v5656_v41 = vsel %vm1811_vm5, %v5624_v51, %v10393_v19  ;;  %v20481_v45 = vpack.i.bf16 %v17385_v34, %v20480_v42  ;;  %8539 = vmatprep.mubr.msk.bf16.mxu0 %vm13383_vm9, %v8215_v29  ;;  %v17891_v35 = vpop.permute.xlu0 %10615 }
 0x406   : > { %10890 = vrot.lane.b32.xlu1 %v20478_v12, %s11397_s20  ;;  %v5657_v8 = vsel %vm1811_vm5, %v5625_v4, %v10397_v3  ;;  %v5658_v33 = vsel %vm1811_vm5, %v5626_v27, %v10398_v58  ;;  %v5687_v1 = vsel %vm1844_vm6, %v5655_v63, %v10472_v22  ;;  %v5688_v10 = vsel %vm1844_vm6, %v5656_v41, %v10473_v31  ;;  %v6300_v41 = vld [vmem:[#allocation2 + $0x290] sm:$0xff] }
 0x407   : > { %10895 = vrot.lane.b32.xlu0 %v20481_v45, %s11393_s5  ;;  %20482 = vst [vmem:[#allocation44_spill] sm:$0xff] %v17885_v15  ;;  %v5689_v44 = vsel %vm1844_vm6, %v5657_v8, %v10477_v20  ;;  %v5690_v19 = vsel %vm1844_vm6, %v5658_v33, %v10478_v0  ;;  %v5719_v26 = vsel %vm1877_vm7, %v5687_v1, %v10552_v13  ;;  %20483 = vst [vmem:[#allocation52_spill] sm:$0xff] %v17891_v35  ;;  %v20485_v0 = vld [vmem:[#allocation68_spill] sm:$0xff]  ;;  %v20487_v13 = vld [vmem:[#allocation59_spill] sm:$0xff] }
 0x408   : > { %v5720_v7 = vsel %vm1877_vm7, %v5688_v10, %v10553_v6  ;;  %v10323_v3 = vunpack.i.h.bf16 %v20484_v36  ;;  %v10322_v58 = vunpack.i.l.bf16 %v20484_v36  ;;  %v5721_v22 = vsel %vm1877_vm7, %v5689_v44, %v10557_v5  ;;  %v17918_v27 = vpop.permute.xlu1 %10620  ;;  %v6301_v1 = vld [vmem:[#allocation2 + $0x2b0] sm:$0xff]  ;;  %v6316_v10 = vld [vmem:[#allocation2 + $0x298] sm:$0xff] }
 0x409   : > { %v5722_v31 = vsel %vm1877_vm7, %v5690_v19, %v10558_v57  ;;  %v20486_v20 = vunpack.i.l.bf16 %v20485_v0  ;;  %v20488_v29 = vunpack.i.h.bf16 %v20485_v0  ;;  %v10403_v4 = vunpack.i.h.bf16 %v20490_v39  ;;  %20492 = vst [vmem:[#allocation26_spill] sm:$0xff] %v17918_v27  ;;  %v17925_v34 = vpop.permute.xlu0 %10625 }
 0x40a   : > { %10900 = vrot.lane.b32.xlu1 %v10899_v38, %s11393_s5  ;;  %v10402_v5 = vunpack.i.l.bf16 %v20490_v39  ;;  %v20491_v38 = vld [vmem:[#allocation20_spill] sm:$0xff]  ;;  %v8218_v63 = vpack.c.bf16 %v5720_v7, %v5719_v26  ;;  %v10563_v45 = vunpack.i.h.bf16 %v17738_v37  ;;  %v10562_v8 = vunpack.i.l.bf16 %v17738_v37  ;;  %20493 = vst [vmem:[#allocation69_spill] sm:$0xff] %v17925_v34  ;;  %v11299_v37 = vld [vmem:[#allocation2 + $0x288] sm:$0xff] }
 0x40b   : > { %v5563_v6 = vsel %vm1712_vm2, %v20487_v13, %v20486_v20  ;;  %v5564_v51 = vsel %vm1712_vm2, %v20489_v21, %v20488_v29  ;;  %10905 = vrot.lane.b32.xlu0 %v10904_v18, %s11394_s6  ;;  %v10483_v57 = vunpack.i.h.bf16 %v20491_v38  ;;  %v10482_v16 = vunpack.i.l.bf16 %v20491_v38  ;;  %v11301_v20 = vld [vmem:[#allocation2 + $0x1c8] sm:$0xff]  ;;  %v6253_v21 = vld [vmem:[#allocation2 + $0x1d8] sm:$0xff] }
 0x40c   : > { %v5595_v2 = vsel %vm1745_vm3, %v5563_v6, %v10242_v55  ;;  %v5596_v42 = vsel %vm1745_vm3, %v5564_v51, %v10243_v52  ;;  %v8221_v40 = vpack.c.bf16 %v5722_v31, %v5721_v22  ;;  %8540 = vmatmul.mubr.msk.bf16.gmra.mxu0 %vm13383_vm9, %v8218_v63  ;;  %v17941_v33 = vpack.i.bf16 %v6300_v41, %v11299_v37  ;;  %v6237_v31 = vld [vmem:[#allocation2 + $0x1d0] sm:$0xff]  ;;  %v11302_v39 = vld [vmem:[#allocation2 + $0x1e8] sm:$0xff] }
 0x40d   : > { %v5627_v18 = vsel %vm1778_vm4, %v5595_v2, %v10322_v58  ;;  %v5628_v55 = vsel %vm1778_vm4, %v5596_v42, %v10323_v3  ;;  %v17949_v26 = vpop.permute.xlu0 %10635  ;;  %v17957_v36 = vpack.i.bf16 %v6316_v10, %v6300_v41  ;;  %v6317_v3 = vld [vmem:[#allocation2 + $0x2b8] sm:$0xff]  ;;  %v10944_v13 = vpack.i.bf16 %v6237_v31, %v11301_v20  ;;  %v6238_v6 = vld [vmem:[#allocation2 + $0x1f0] sm:$0xff] }
 0x40e   : > { %10910 = vrot.lane.b32.xlu1 %v10909_v30, %s11394_s6  ;;  %v5659_v23 = vsel %vm1811_vm5, %v5627_v18, %v10402_v5  ;;  %v5660_v52 = vsel %vm1811_vm5, %v5628_v55, %v10403_v4  ;;  %8543 = vmatprep.mubr.msk.bf16.mxu0 %vm13383_vm9, %v8221_v40  ;;  %v17945_v30 = vpop.permute.xlu1 %10630  ;;  %20495 = vst [vmem:[#allocation61_spill] sm:$0xff] %v17949_v26  ;;  %v6254_v2 = vld [vmem:[#allocation2 + $0x1f8] sm:$0xff]  ;;  %v6302_v18 = vld [vmem:[#allocation2 + $0x2d0] sm:$0xff] }
 0x40f   : > { %10915 = vrot.lane.b32.xlu0 %v20417_v54, %s11395_s7  ;;  %v5691_v61 = vsel %vm1844_vm6, %v5659_v23, %v10482_v16  ;;  %v5692_v48 = vsel %vm1844_vm6, %v5660_v52, %v10483_v57  ;;  %20494 = vst [vmem:[#allocation33_spill] sm:$0xff] %v17945_v30  ;;  %v11300_v54 = vld [vmem:[#allocation2 + $0x2a8] sm:$0xff]  ;;  %v10949_v4 = vpack.i.bf16 %v6238_v6, %v11302_v39  ;;  %v6276_v57 = vld [vmem:[#allocation2 + $0x2c0] sm:$0xff]  ;;  %v6303_v37 = vld [vmem:[#allocation2 + $0x2f0] sm:$0xff] }
 0x410   : > { %v5723_v44 = vsel %vm1877_vm7, %v5691_v61, %v10562_v8  ;;  %v5724_v19 = vsel %vm1877_vm7, %v5692_v48, %v10563_v45  ;;  %v17953_v7 = vpack.i.bf16 %v6301_v1, %v11300_v54  ;;  %v10954_v5 = vpack.i.bf16 %v6253_v21, %v6237_v31  ;;  %v6277_v16 = vld [vmem:[#allocation2 + $0x2c8] sm:$0xff]  ;;  %v6278_v45 = vld [vmem:[#allocation2 + $0x2e0] sm:$0xff]  ;;  %v6318_v61 = vld [vmem:[#allocation2 + $0x2d8] sm:$0xff] }
 0x411   : > { %v8224_v22 = vpack.c.bf16 %v5724_v19, %v5723_v44  ;;  %v17961_v0 = vpop.permute.xlu0 %10645  ;;  %v10959_v41 = vpack.i.bf16 %v6254_v2, %v6238_v6  ;;  %v17984_v42 = vpack.i.bf16 %v6277_v16, %v6276_v57  ;;  %v6279_v8 = vld [vmem:[#allocation2 + $0x2e8] sm:$0xff]  ;;  %v17995_v52 = vpack.i.bf16 %v6302_v18, %v6277_v16  ;;  %v6319_v19 = vld [vmem:[#allocation2 + $0x2f8] sm:$0xff]  ;;  %v6280_v6 = vld [vmem:[#allocation2 + $0x300] sm:$0xff] }
 0x412   : > { %10920 = vrot.lane.b32.xlu1 %v16984_v50, %s11395_s7  ;;  %v17959_v58 = vpop.permute.xlu1 %10640  ;;  %v17967_v50 = vpack.i.bf16 %v6317_v3, %v6301_v1  ;;  %v17991_v23 = vpack.i.bf16 %v6279_v8, %v6278_v45  ;;  %v18003_v10 = vpack.i.bf16 %v6303_v37, %v6279_v8  ;;  %v18007_v44 = vpack.i.bf16 %v6318_v61, %v6302_v18  ;;  %v6281_v21 = vld [vmem:[#allocation2 + $0x308] sm:$0xff]  ;;  %v6304_v16 = vld [vmem:[#allocation2 + $0x310] sm:$0xff]  ;;  %v6320_v18 = vld [vmem:[#allocation2 + $0x318] sm:$0xff] }
 0x413   : > { %10925 = vrot.lane.b32.xlu0 %v17941_v33, %s11396_s17  ;;  %20496 = vst [vmem:[#allocation89_spill] sm:$0xff] %v17959_v58  ;;  %v6283_v2 = vld [vmem:[#allocation2 + $0x328] sm:$0xff]  ;;  %v11024_v45 = vpack.i.bf16 %v6304_v16, %v6281_v21  ;;  %v6305_v8 = vld [vmem:[#allocation2 + $0x330] sm:$0xff]  ;;  %v11034_v61 = vpack.i.bf16 %v6320_v18, %v6304_v16  ;;  %v6284_v16 = vld [vmem:[#allocation2 + $0x340] sm:$0xff] }
 0x414   : > { %8544 = vmatmul.mubr.msk.bf16.gmra.mxu0 %vm13383_vm9, %v8224_v22  ;;  %v18015_v22 = vpack.i.bf16 %v6319_v19, %v6303_v37  ;;  %v11029_v37 = vpack.i.bf16 %v6305_v8, %v6283_v2  ;;  %v6321_v19 = vld [vmem:[#allocation2 + $0x338] sm:$0xff]  ;;  %v6286_v18 = vld [vmem:[#allocation2 + $0x360] sm:$0xff] }
 0x415   : > { %v17973_v51 = vpop.permute.xlu0 %10655  ;;  %v6322_v58 = vld [vmem:[#allocation2 + $0x358] sm:$0xff]  ;;  %v6137_v30 = vld [vmem:[#allocation2 + $0x20] sm:$0xff] }
 0x416   : > { %10930 = vrot.lane.b32.xlu1 %v17953_v7, %s11396_s17  ;;  %v17971_v29 = vpop.permute.xlu1 %10650 }
 0x417   : > { %10935 = vrot.lane.b32.xlu0 %v17957_v36, %s11397_s20  ;;  %v10652_v27 = vunpack.i.l.bf16 %v17971_v29 }
 0x419   : > { %v17980_v63 = vpop.permute.xlu0 %10665 }
 0x41a   : > { %10940 = vrot.lane.b32.xlu1 %v17967_v50, %s11397_s20  ;;  %v17978_v38 = vpop.permute.xlu1 %10660 }
 0x41b   : > { %10945 = vrot.lane.b32.xlu0 %v10944_v13, %s11393_s5 }
 0x41d   : > { %v17988_v55 = vpop.permute.xlu0 %10675 }
 0x41e   : > { %10950 = vrot.lane.b32.xlu1 %v10949_v4, %s11393_s5  ;;  %v17986_v40 = vpop.permute.xlu1 %10670  ;;  %v11014_v4 = vpack.i.bf16 %v6281_v21, %v6280_v6  ;;  %v11039_v21 = vpack.i.bf16 %v6321_v19, %v6305_v8  ;;  %v6306_v19 = vld [vmem:[#allocation2 + $0x350] sm:$0xff] }
 0x41f   : > { %10955 = vrot.lane.b32.xlu0 %v10954_v5, %s11394_s6  ;;  %v6282_v5 = vld [vmem:[#allocation2 + $0x320] sm:$0xff]  ;;  %v11084_v26 = vpack.i.bf16 %v6322_v58, %v6306_v19 }
 0x421   : > { %v17999_v48 = vpop.permute.xlu0 %10685 }
 0x422   : > { %10960 = vrot.lane.b32.xlu1 %v10959_v41, %s11394_s6  ;;  %v17997_v1 = vpop.permute.xlu1 %10680  ;;  %20497 = vst [vmem:[#allocation14_spill] sm:$0xff] %v17999_v48 }
 0x423   : > { %10965 = vrot.lane.b32.xlu0 %v17984_v42, %s11395_s7 }
 0x425   : > { %v18011_v3 = vpop.permute.xlu0 %10695 }
 0x426   : > { %10970 = vrot.lane.b32.xlu1 %v17991_v23, %s11395_s7  ;;  %v18009_v54 = vpop.permute.xlu1 %10690  ;;  %20499 = vst [vmem:[#allocation35_spill] sm:$0xff] %v18011_v3  ;;  %v10647_v3 = vunpack.i.l.bf16 %v17961_v0 }
 0x427   : > { %10975 = vrot.lane.b32.xlu0 %v17995_v52, %s11396_s17  ;;  %20498 = vst [vmem:[#allocation84_spill] sm:$0xff] %v18009_v54 }
 0x429   : > { %v18021_v20 = vpop.permute.xlu0 %10705 }
 0x42a   : > { %10980 = vrot.lane.b32.xlu1 %v18003_v10, %s11396_s17  ;;  %v18019_v31 = vpop.permute.xlu1 %10700  ;;  %20501 = vst [vmem:[#allocation87_spill] sm:$0xff] %v18021_v20 }
 0x42b   : > { %10985 = vrot.lane.b32.xlu0 %v18007_v44, %s11397_s20  ;;  %20500 = vst [vmem:[#allocation80_spill] sm:$0xff] %v18019_v31  ;;  %v10648_v31 = vunpack.i.h.bf16 %v17961_v0 }
 0x42d   : > { %v18029_v39 = vpop.permute.xlu0 %10715 }
 0x42e   : > { %10990 = vrot.lane.b32.xlu1 %v18015_v22, %s11397_s20  ;;  %v18027_v13 = vpop.permute.xlu1 %10710  ;;  %20503 = vst [vmem:[#allocation8_spill] sm:$0xff] %v18029_v39  ;;  %v6307_v39 = vld [vmem:[#allocation2 + $0x370] sm:$0xff] }
 0x42f   : > { %10995 = vrot.lane.b32.xlu0 %v17114_v46, %s11393_s5  ;;  %20502 = vst [vmem:[#allocation79_spill] sm:$0xff] %v18027_v13  ;;  %v11019_v46 = vpack.i.bf16 %v6283_v2, %v6282_v5  ;;  %v6323_v13 = vld [vmem:[#allocation2 + $0x378] sm:$0xff] }
 0x431   : > { %v18037_v41 = vpop.permute.xlu0 %10725 }
 0x432   : > { %11000 = vrot.lane.b32.xlu1 %v17146_v62, %s11393_s5  ;;  %v18035_v57 = vpop.permute.xlu1 %10720 }
 0x433   : > { %11005 = vrot.lane.b32.xlu0 %v20440_v28, %s11394_s6  ;;  %20504 = vst [vmem:[#allocation81_spill] sm:$0xff] %v18035_v57 }
 0x435   : > { %v18044_v28 = vpop.permute.xlu0 %10735 }
 0x436   : > { %11010 = vrot.lane.b32.xlu1 %v20442_v56, %s11394_s6  ;;  %v18042_v62 = vpop.permute.xlu1 %10730 }
 0x437   : > { %11015 = vrot.lane.b32.xlu0 %v11014_v4, %s11395_s7  ;;  %v10733_v54 = vunpack.i.h.bf16 %v18042_v62  ;;  %v10732_v48 = vunpack.i.l.bf16 %v18042_v62 }
 0x43a   : > { %11020 = vrot.lane.b32.xlu1 %v11019_v46, %s11395_s7  ;;  %v18048_v6 = vpop.permute.xlu1 %10740  ;;  %v18050_v56 = vpop.permute.xlu0 %10745  ;;  %v6285_v46 = vld [vmem:[#allocation2 + $0x348] sm:$0xff] }
 0x43b   : > { %11025 = vrot.lane.b32.xlu0 %v11024_v45, %s11396_s17  ;;  %v11064_v8 = vpack.i.bf16 %v6285_v46, %v6284_v16  ;;  %v11074_v57 = vpack.i.bf16 %v6306_v19, %v6285_v46  ;;  %v11089_v46 = vpack.i.bf16 %v6323_v13, %v6307_v39  ;;  %v10568_v19 = vunpack.i.h.bf16 %v17743_v59 }
 0x43c   : > { %v10572_v13 = vunpack.i.l.bf16 %v17774_v60 }
 0x43e   : > { %11030 = vrot.lane.b32.xlu1 %v11029_v37, %s11396_s17  ;;  %v18054_v4 = vpop.permute.xlu1 %10750  ;;  %v18056_v5 = vpop.permute.xlu0 %10755  ;;  %v6287_v37 = vld [vmem:[#allocation2 + $0x368] sm:$0xff] }
 0x43f   : > { %11035 = vrot.lane.b32.xlu0 %v11034_v61, %s11397_s20  ;;  %v11079_v16 = vpack.i.bf16 %v6307_v39, %v6287_v37 }
 0x442   : > { %11040 = vrot.lane.b32.xlu1 %v11039_v21, %s11397_s20  ;;  %v18061_v2 = vpop.permute.xlu1 %10760  ;;  %v18063_v45 = vpop.permute.xlu0 %10765 }
 0x443   : > { %11045 = vrot.lane.b32.xlu0 %v20468_v43, %s11393_s5  ;;  %20505 = vst [vmem:[#allocation47_spill] sm:$0xff] %v18063_v45  ;;  %v11069_v43 = vpack.i.bf16 %v6287_v37, %v6286_v18  ;;  %v18089_v18 = vld [vmem:[#allocation2 + $0x388] sm:$0xff]  ;;  %v7274_v45 = vsel %vm170_vm0, %v6137_v30, %v10572_v13 }
 0x444   : > { %v18094_v37 = vld [vmem:[#allocation2 + $0x3a8] sm:$0xff] }
 0x446   : > { %11050 = vrot.lane.b32.xlu1 %v20470_v49, %s11393_s5  ;;  %v18069_v61 = vpop.permute.xlu1 %10770  ;;  %v18071_v21 = vpop.permute.xlu0 %10775 }
 0x447   : > { %11055 = vrot.lane.b32.xlu0 %v20473_v9, %s11394_s6  ;;  %20506 = vst [vmem:[#allocation19_spill] sm:$0xff] %v18069_v61  ;;  %20507 = vst [vmem:[#allocation15_spill] sm:$0xff] %v18071_v21  ;;  %v10573_v21 = vunpack.i.h.bf16 %v17774_v60  ;;  %v11304_v60 = vld [vmem:[#allocation2 + $0x28] sm:$0xff] }
 0x44a   : > { %11060 = vrot.lane.b32.xlu1 %v20478_v12, %s11394_s6  ;;  %v18076_v49 = vpop.permute.xlu1 %10780  ;;  %v18078_v9 = vpop.permute.xlu0 %10785 }
 0x44b   : > { %11065 = vrot.lane.b32.xlu0 %v11064_v8, %s11395_s7  ;;  %20508 = vst [vmem:[#allocation22_spill] sm:$0xff] %v18076_v49  ;;  %20509 = vst [vmem:[#allocation9_spill] sm:$0xff] %v18078_v9  ;;  %v18087_v8 = vld [vmem:[#allocation2 + $0x380] sm:$0xff] }
 0x44c   : > { %v18092_v9 = vld [vmem:[#allocation2 + $0x3a0] sm:$0xff]  ;;  %v11114_v34 = vpack.i.bf16 %v18089_v18, %v18087_v8  ;;  %v10727_v8 = vunpack.i.l.bf16 %v18037_v41 }
 0x44d   : > { %v11119_v49 = vpack.i.bf16 %v18094_v37, %v18092_v9 }
 0x44e   : > { %11070 = vrot.lane.b32.xlu1 %v11069_v43, %s11395_s7  ;;  %v18082_v20 = vpop.permute.xlu1 %10790  ;;  %v18084_v12 = vpop.permute.xlu0 %10795  ;;  %v10567_v43 = vunpack.i.l.bf16 %v17743_v59  ;;  %v11303_v59 = vld [vmem:[#allocation2 + $0x8] sm:$0xff] }
 0x44f   : > { %11075 = vrot.lane.b32.xlu0 %v11074_v57, %s11396_s17  ;;  %20510 = vst [vmem:[#allocation85_spill] sm:$0xff] %v18082_v20  ;;  %v18096_v57 = vld [vmem:[#allocation2 + $0x390] sm:$0xff]  ;;  %v18105_v20 = vld [vmem:[#allocation2 + $0x398] sm:$0xff]  ;;  %v7273_v0 = vsel %vm170_vm0, %v11303_v59, %v10568_v19  ;;  %v10798_v15 = vunpack.i.h.bf16 %v18084_v12  ;;  %v10797_v9 = vunpack.i.l.bf16 %v18084_v12  ;;  %v7275_v19 = vsel %vm170_vm0, %v11304_v60, %v10573_v21 }
 0x450   : > { %v7305_v30 = vsel %vm1679_vm1, %v7273_v0, %v10648_v31 }
 0x452   : > { %11080 = vrot.lane.b32.xlu1 %v11079_v16, %s11396_s17  ;;  %v18103_v16 = vld [vmem:[#allocation2 + $0x3b0] sm:$0xff] }
 0x453   : > { %11085 = vrot.lane.b32.xlu0 %v11084_v26, %s11397_s20  ;;  %v18098_v58 = vpop.permute.xlu1 %10800  ;;  %v6135_v26 = vld [vmem:[#allocation2] sm:$0xff] }
 0x454   : > { %v10806_v39 = vpop.permute.xlu0 %10805  ;;  %v7272_v61 = vsel %vm170_vm0, %v6135_v26, %v10567_v43  ;;  %v10802_v21 = vunpack.i.l.bf16 %v18098_v58 }
 0x455   : > { %v7304_v43 = vsel %vm1679_vm1, %v7272_v61, %v10647_v3  ;;  %v10808_v12 = vunpack.i.h.bf16 %v10806_v39  ;;  %v10807_v26 = vunpack.i.l.bf16 %v10806_v39  ;;  %v10803_v39 = vunpack.i.h.bf16 %v18098_v58 }
 0x456   : > { %11090 = vrot.lane.b32.xlu1 %v11089_v46, %s11397_s20  ;;  %v10653_v46 = vunpack.i.h.bf16 %v17971_v29  ;;  %v7336_v13 = vsel %vm1712_vm2, %v7304_v43, %v10727_v8 }
 0x457   : > { %11095 = vrot.lane.b32.xlu0 %v17941_v33, %s11393_s5  ;;  %v18122_v35 = vpop.permute.xlu1 %10810  ;;  %v10728_v33 = vunpack.i.h.bf16 %v18037_v41  ;;  %v7306_v41 = vsel %vm1679_vm1, %v7274_v45, %v10652_v27 }
 0x458   : > { %v10816_v29 = vpop.permute.xlu0 %10815  ;;  %v7307_v62 = vsel %vm1679_vm1, %v7275_v19, %v10653_v46  ;;  %v7338_v31 = vsel %vm1712_vm2, %v7306_v41, %v10732_v48  ;;  %v10812_v46 = vunpack.i.l.bf16 %v18122_v35 }
 0x459   : > { %v10818_v60 = vunpack.i.h.bf16 %v10816_v29  ;;  %v10817_v3 = vunpack.i.l.bf16 %v10816_v29  ;;  %v7339_v27 = vsel %vm1712_vm2, %v7307_v62, %v10733_v54  ;;  %v10813_v54 = vunpack.i.h.bf16 %v18122_v35 }
 0x45a   : > { %11100 = vrot.lane.b32.xlu1 %v17953_v7, %s11393_s5  ;;  %v7337_v7 = vsel %vm1712_vm2, %v7305_v30, %v10728_v33 }
 0x45b   : > { %11105 = vrot.lane.b32.xlu0 %v17957_v36, %s11394_s6  ;;  %v10821_v59 = vpop.permute.xlu1 %10820  ;;  %v7368_v36 = vsel %vm1745_vm3, %v7336_v13, %v10797_v9  ;;  %v7369_v45 = vsel %vm1745_vm3, %v7337_v7, %v10798_v15  ;;  %v7370_v15 = vsel %vm1745_vm3, %v7338_v31, %v10802_v21  ;;  %v7371_v13 = vsel %vm1745_vm3, %v7339_v27, %v10803_v39 }
 0x45c   : > { %v10826_v61 = vpop.permute.xlu0 %10825  ;;  %v7400_v33 = vsel %vm1778_vm4, %v7368_v36, %v10807_v26  ;;  %v7401_v48 = vsel %vm1778_vm4, %v7369_v45, %v10808_v12  ;;  %v10822_v9 = vunpack.i.l.bf16 %v10821_v59  ;;  %v10823_v19 = vunpack.i.h.bf16 %v10821_v59  ;;  %v6325_v59 = vld [vmem:[#allocation2 + $0x3b8] sm:$0xff] }
 0x45d   : > { %v10828_v8 = vunpack.i.h.bf16 %v10826_v61  ;;  %v10827_v0 = vunpack.i.l.bf16 %v10826_v61  ;;  %v7433_v58 = vsel %vm1811_vm5, %v7401_v48, %v10818_v60  ;;  %v7402_v35 = vsel %vm1778_vm4, %v7370_v15, %v10812_v46 }
 0x45e   : > { %11110 = vrot.lane.b32.xlu1 %v17967_v50, %s11394_s6  ;;  %v7432_v50 = vsel %vm1811_vm5, %v7400_v33, %v10817_v3  ;;  %v20511_v7 = vpack.i.bf16 %v18096_v57, %v18089_v18  ;;  %v7403_v21 = vsel %vm1778_vm4, %v7371_v13, %v10813_v54  ;;  %v7434_v60 = vsel %vm1811_vm5, %v7402_v35, %v10822_v9  ;;  %v18194_v9 = vld [vmem:[#allocation2 + $0x3c0] sm:$0xff] }
 0x45f   : > { %11115 = vrot.lane.b32.xlu0 %v11114_v34, %s11395_s7  ;;  %v10831_v29 = vpop.permute.xlu1 %10830  ;;  %v7464_v12 = vsel %vm1844_vm6, %v7432_v50, %v10827_v0  ;;  %v7465_v26 = vsel %vm1844_vm6, %v7433_v58, %v10828_v8  ;;  %v7435_v31 = vsel %vm1811_vm5, %v7403_v21, %v10823_v19  ;;  %v20512_v8 = vpack.i.bf16 %v18103_v16, %v18094_v37  ;;  %v11305_v21 = vld [vmem:[#allocation2 + $0x48] sm:$0xff] }
 0x460   : > { %v10836_v43 = vpop.permute.xlu0 %10835  ;;  %v10833_v30 = vunpack.i.h.bf16 %v10831_v29  ;;  %v10832_v41 = vunpack.i.l.bf16 %v10831_v29  ;;  %v11139_v0 = vpack.i.bf16 %v6325_v59, %v18103_v16  ;;  %v20513_v54 = vpack.i.bf16 %v18105_v20, %v18096_v57  ;;  %v18196_v29 = vld [vmem:[#allocation2 + $0x3c8] sm:$0xff]  ;;  %v18207_v57 = vld [vmem:[#allocation2 + $0x3d0] sm:$0xff] }
 0x461   : > { %v10838_v62 = vunpack.i.h.bf16 %v10836_v43  ;;  %v10837_v34 = vunpack.i.l.bf16 %v10836_v43  ;;  %v10578_v16 = vunpack.i.h.bf16 %v17780_v53  ;;  %v10577_v50 = vunpack.i.l.bf16 %v17780_v53  ;;  %v18203_v43 = vld [vmem:[#allocation2 + $0x3e0] sm:$0xff]  ;;  %v18205_v20 = vld [vmem:[#allocation2 + $0x3e8] sm:$0xff] }
 0x462   : > { %11120 = vrot.lane.b32.xlu1 %v11119_v49, %s11395_s7  ;;  %v7466_v18 = vsel %vm1844_vm6, %v7434_v60, %v10832_v41  ;;  %v7467_v46 = vsel %vm1844_vm6, %v7435_v31, %v10833_v30  ;;  %v10582_v58 = vunpack.i.l.bf16 %v17801_v11  ;;  %v6139_v30 = vld [vmem:[#allocation2 + $0x40] sm:$0xff]  ;;  %v10583_v53 = vunpack.i.h.bf16 %v17801_v11 }
 0x463   : > { %11125 = vrot.lane.b32.xlu0 %v20511_v7, %s11396_s17  ;;  %v7496_v49 = vsel %vm1877_vm7, %v7464_v12, %v10837_v34  ;;  %v7497_v3 = vsel %vm1877_vm7, %v7465_v26, %v10838_v62  ;;  %v10841_v61 = vpop.permute.xlu1 %10840  ;;  %v6141_v41 = vld [vmem:[#allocation2 + $0x60] sm:$0xff]  ;;  %v11174_v62 = vpack.i.bf16 %v18196_v29, %v18194_v9  ;;  %v10658_v34 = vunpack.i.h.bf16 %v17973_v51 }
 0x464   : > { %v8253_v27 = vpack.c.bf16 %v7497_v3, %v7496_v49  ;;  %v10843_v36 = vunpack.i.h.bf16 %v10841_v61  ;;  %v10842_v45 = vunpack.i.l.bf16 %v10841_v61  ;;  %v18177_v39 = vpop.permute.xlu0 %10845  ;;  %v10657_v13 = vunpack.i.l.bf16 %v17973_v51 }
 0x465   : > { %v10662_v35 = vunpack.i.l.bf16 %v17978_v38  ;;  %v10663_v12 = vunpack.i.h.bf16 %v17978_v38  ;;  %v10737_v26 = vunpack.i.l.bf16 %v18044_v28  ;;  %v11179_v59 = vpack.i.bf16 %v18205_v20, %v18203_v43 }
 0x466   : > { %11130 = vrot.lane.b32.xlu1 %v20512_v8, %s11396_s17  ;;  %v7498_v33 = vsel %vm1877_vm7, %v7466_v18, %v10842_v45  ;;  %v7499_v48 = vsel %vm1877_vm7, %v7467_v46, %v10843_v36  ;;  %8563 = vmatprep.mubr.msk.bf16.mxu1 %vm13383_vm9, %v8253_v27  ;;  %v11184_v11 = vpack.i.bf16 %v18207_v57, %v18196_v29  ;;  %v10743_v3 = vunpack.i.h.bf16 %v18048_v6  ;;  %v11306_v36 = vld [vmem:[#allocation2 + $0x68] sm:$0xff] }
 0x467   : > { %11135 = vrot.lane.b32.xlu0 %v20513_v54, %s11397_s20  ;;  %v8256_v37 = vpack.c.bf16 %v7499_v48, %v7498_v33  ;;  %v18198_v15 = vpop.permute.xlu1 %10850  ;;  %v7277_v51 = vsel %vm170_vm0, %v11305_v21, %v10578_v16  ;;  %v7276_v60 = vsel %vm170_vm0, %v6139_v30, %v10577_v50  ;;  %v7278_v49 = vsel %vm170_vm0, %v6141_v41, %v10582_v58 }
 0x468   : > { %v10742_v61 = vunpack.i.l.bf16 %v18048_v6  ;;  %v10848_v31 = vunpack.i.h.bf16 %v18177_v39  ;;  %v10847_v27 = vunpack.i.l.bf16 %v18177_v39  ;;  %v7279_v45 = vsel %vm170_vm0, %v11306_v36, %v10583_v53  ;;  %v6311_v36 = vld [vmem:[#allocation2 + $0x3f0] sm:$0xff] }
 0x469   : > { %v10856_v19 = vpop.permute.xlu0 %10855  ;;  %8564 = vmatmul.mubr.msk.bf16.vlgmr.msra.gmra.mxu1 %vm13383_vm9, %v8256_v37  ;;  %v7308_v18 = vsel %vm1679_vm1, %v7276_v60, %v10657_v13  ;;  %v7309_v46 = vsel %vm1679_vm1, %v7277_v51, %v10658_v34  ;;  %v7311_v6 = vsel %vm1679_vm1, %v7279_v45, %v10663_v12  ;;  %v10852_v48 = vunpack.i.l.bf16 %v18198_v15 }
 0x46a   : > { %11140 = vrot.lane.b32.xlu1 %v11139_v0, %s11397_s20  ;;  %v7340_v8 = vsel %vm1712_vm2, %v7308_v18, %v10737_v26  ;;  %v10858_v39 = vunpack.i.h.bf16 %v10856_v19  ;;  %v10857_v0 = vunpack.i.l.bf16 %v10856_v19  ;;  %v7343_v58 = vsel %vm1712_vm2, %v7311_v6, %v10743_v3  ;;  %v6326_v6 = vld [vmem:[#allocation2 + $0x3d8] sm:$0xff] }
 0x46b   : > { %11145 = vrot.lane.b32.xlu0 %v17984_v42, %s11392_s4  ;;  %v10738_v42 = vunpack.i.h.bf16 %v18044_v28  ;;  %v7310_v28 = vsel %vm1679_vm1, %v7278_v49, %v10662_v35  ;;  %v10853_v19 = vunpack.i.h.bf16 %v18198_v15 }
 0x46c   : > { %v18222_v7 = vpop.permute.xlu1 %10860  ;;  %v7342_v50 = vsel %vm1712_vm2, %v7310_v28, %v10742_v61 }
 0x46d   : > { %v10866_v38 = vpop.permute.xlu0 %10865  ;;  %v10862_v41 = vunpack.i.l.bf16 %v18222_v7  ;;  %v10863_v12 = vunpack.i.h.bf16 %v18222_v7  ;;  %v7374_v51 = vsel %vm1745_vm3, %v7342_v50, %v10852_v48  ;;  %v7375_v61 = vsel %vm1745_vm3, %v7343_v58, %v10853_v19  ;;  %v6327_v50 = vld [vmem:[#allocation2 + $0x3f8] sm:$0xff]  ;;  %v6143_v19 = vld [vmem:[#allocation2 + $0x80] sm:$0xff] }
 0x46e   : > { %11150 = vrot.lane.b32.xlu1 %v17991_v23, %s11392_s4  ;;  %v7341_v23 = vsel %vm1712_vm2, %v7309_v46, %v10738_v42  ;;  %v10868_v54 = vunpack.i.h.bf16 %v10866_v38  ;;  %v10867_v37 = vunpack.i.l.bf16 %v10866_v38  ;;  %v11189_v48 = vpack.i.bf16 %v6311_v36, %v18205_v20 }
 0x46f   : > { %11155 = vrot.lane.b32.xlu0 %v17995_v52, %s11393_s5  ;;  %v7372_v52 = vsel %vm1745_vm3, %v7340_v8, %v10847_v27  ;;  %v7373_v30 = vsel %vm1745_vm3, %v7341_v23, %v10848_v31  ;;  %v7406_v7 = vsel %vm1778_vm4, %v7374_v51, %v10862_v41  ;;  %v7407_v45 = vsel %vm1778_vm4, %v7375_v61, %v10863_v12  ;;  %v6145_v41 = vld [vmem:[#allocation2 + $0xa0] sm:$0xff]  ;;  %v11307_v12 = vld [vmem:[#allocation2 + $0x88] sm:$0xff] }
 0x470   : > { %v10871_v33 = vpop.permute.xlu1 %10870  ;;  %v7404_v13 = vsel %vm1778_vm4, %v7372_v52, %v10857_v0  ;;  %v7405_v35 = vsel %vm1778_vm4, %v7373_v30, %v10858_v39  ;;  %v10588_v20 = vunpack.i.h.bf16 %v17806_v17  ;;  %v10592_v52 = vunpack.i.l.bf16 %v17829_v24 }
 0x471   : > { %v10876_v16 = vpop.permute.xlu0 %10875  ;;  %v10872_v26 = vunpack.i.l.bf16 %v10871_v33  ;;  %v7437_v15 = vsel %vm1811_vm5, %v7405_v35, %v10868_v54  ;;  %v10873_v60 = vunpack.i.h.bf16 %v10871_v33  ;;  %v11199_v29 = vpack.i.bf16 %v6327_v50, %v6311_v36 }
 0x472   : > { %11160 = vrot.lane.b32.xlu1 %v18003_v10, %s11393_s5  ;;  %v10878_v53 = vunpack.i.h.bf16 %v10876_v16  ;;  %v10877_v34 = vunpack.i.l.bf16 %v10876_v16  ;;  %v7436_v10 = vsel %vm1811_vm5, %v7404_v13, %v10867_v37  ;;  %v11194_v16 = vpack.i.bf16 %v6326_v6, %v18207_v57 }
 0x473   : > { %11165 = vrot.lane.b32.xlu0 %v18007_v44, %s11394_s6  ;;  %v7438_v18 = vsel %vm1811_vm5, %v7406_v7, %v10872_v26  ;;  %v7439_v8 = vsel %vm1811_vm5, %v7407_v45, %v10873_v60  ;;  %v10593_v57 = vunpack.i.h.bf16 %v17829_v24  ;;  %v10747_v13 = vunpack.i.l.bf16 %v18050_v56 }
 0x474   : > { %v10881_v21 = vpop.permute.xlu1 %10880  ;;  %v7468_v31 = vsel %vm1844_vm6, %v7436_v10, %v10877_v34  ;;  %v7469_v27 = vsel %vm1844_vm6, %v7437_v15, %v10878_v53  ;;  %v10667_v53 = vunpack.i.l.bf16 %v17980_v63  ;;  %v10672_v34 = vunpack.i.l.bf16 %v17986_v40 }
 0x475   : > { %v10886_v49 = vpop.permute.xlu0 %10885  ;;  %v10883_v42 = vunpack.i.h.bf16 %v10881_v21  ;;  %v10882_v38 = vunpack.i.l.bf16 %v10881_v21  ;;  %v7281_v26 = vsel %vm170_vm0, %v11307_v12, %v10588_v20  ;;  %v7282_v24 = vsel %vm170_vm0, %v6145_v41, %v10592_v52 }
 0x476   : > { %v10888_v3 = vunpack.i.h.bf16 %v10886_v49  ;;  %v10887_v44 = vunpack.i.l.bf16 %v10886_v49  ;;  %11170 = vrot.lane.b32.xlu1 %v18015_v22, %s11394_s6  ;;  %v10748_v51 = vunpack.i.h.bf16 %v18050_v56  ;;  %v10752_v15 = vunpack.i.l.bf16 %v18054_v4 }
 0x477   : > { %11175 = vrot.lane.b32.xlu0 %v11174_v62, %s11395_s7  ;;  %v7470_v9 = vsel %vm1844_vm6, %v7438_v18, %v10882_v38  ;;  %v7471_v62 = vsel %vm1844_vm6, %v7439_v8, %v10883_v42 }
 0x478   : > { %v7500_v22 = vsel %vm1877_vm7, %v7468_v31, %v10887_v44  ;;  %v7501_v46 = vsel %vm1877_vm7, %v7469_v27, %v10888_v3  ;;  %v10891_v28 = vpop.permute.xlu1 %10890  ;;  %v7314_v44 = vsel %vm1679_vm1, %v7282_v24, %v10672_v34 }
 0x479   : > { %v8259_v39 = vpack.c.bf16 %v7501_v46, %v7500_v22  ;;  %v10893_v0 = vunpack.i.h.bf16 %v10891_v28  ;;  %v10892_v33 = vunpack.i.l.bf16 %v10891_v28  ;;  %v10896_v23 = vpop.permute.xlu0 %10895  ;;  %v7346_v46 = vsel %vm1712_vm2, %v7314_v44, %v10752_v15 }
 0x47a   : > { %11180 = vrot.lane.b32.xlu1 %v11179_v59, %s11395_s7  ;;  %v10587_v59 = vunpack.i.l.bf16 %v17806_v17  ;;  %v10673_v17 = vunpack.i.h.bf16 %v17986_v40  ;;  %v10898_v60 = vunpack.i.h.bf16 %v10896_v23  ;;  %v10897_v49 = vunpack.i.l.bf16 %v10896_v23  ;;  %v11308_v40 = vld [vmem:[#allocation2 + $0xa8] sm:$0xff] }
 0x47b   : > { %v7502_v54 = vsel %vm1877_vm7, %v7470_v9, %v10892_v33  ;;  %v7503_v37 = vsel %vm1877_vm7, %v7471_v62, %v10893_v0  ;;  %11185 = vrot.lane.b32.xlu0 %v11184_v11, %s11396_s17  ;;  %8567 = vmatprep.mubr.msk.bf16.mxu1 %vm13383_vm9, %v8259_v39  ;;  %v10668_v11 = vunpack.i.h.bf16 %v17980_v63  ;;  %v10753_v63 = vunpack.i.h.bf16 %v18054_v4 }
 0x47c   : > { %v8262_v58 = vpack.c.bf16 %v7503_v37, %v7502_v54  ;;  %v18295_v43 = vpop.permute.xlu1 %10900  ;;  %v7280_v21 = vsel %vm170_vm0, %v6143_v19, %v10587_v59  ;;  %v7283_v42 = vsel %vm170_vm0, %v11308_v40, %v10593_v57 }
 0x47d   : > { %v10906_v30 = vpop.permute.xlu0 %10905  ;;  %v7312_v38 = vsel %vm1679_vm1, %v7280_v21, %v10667_v53  ;;  %v7313_v3 = vsel %vm1679_vm1, %v7281_v26, %v10668_v11  ;;  %v7315_v56 = vsel %vm1679_vm1, %v7283_v42, %v10673_v17  ;;  %v10902_v36 = vunpack.i.l.bf16 %v18295_v43 }
 0x47e   : > { %11190 = vrot.lane.b32.xlu1 %v11189_v48, %s11396_s17  ;;  %8568 = vmatmul.mubr.msk.bf16.gmra.mxu1 %vm13383_vm9, %v8262_v58  ;;  %v7344_v61 = vsel %vm1712_vm2, %v7312_v38, %v10747_v13  ;;  %v10908_v7 = vunpack.i.h.bf16 %v10906_v30  ;;  %v10907_v31 = vunpack.i.l.bf16 %v10906_v30  ;;  %v7345_v27 = vsel %vm1712_vm2, %v7313_v3, %v10748_v51  ;;  %s8306_s17 = sshll.u32 %s11441_s16, 12  ;;  %s18757_s16 = scalar_lea.sflag [#allocation4], %s161_s9 }
 0x47f   : > { %11195 = vrot.lane.b32.xlu0 %v11194_v16, %s11397_s20  ;;  %v7347_v28 = vsel %vm1712_vm2, %v7315_v56, %v10753_v63  ;;  %v7376_v6 = vsel %vm1745_vm3, %v7344_v61, %v10897_v49  ;;  %v7377_v8 = vsel %vm1745_vm3, %v7345_v27, %v10898_v60  ;;  %v10903_v39 = vunpack.i.h.bf16 %v18295_v43  ;;  %v6147_v56 = vld [vmem:[#allocation2 + $0xc0] sm:$0xff]  ;;  %s18749_s29 = scalar_lea.hbm %s18801_s3, %s8306_s17 }
 0x480   : > { %v10911_v35 = vpop.permute.xlu1 %10910  ;;  %v7408_v9 = vsel %vm1778_vm4, %v7376_v6, %v10907_v31  ;;  %v7409_v62 = vsel %vm1778_vm4, %v7377_v8, %v10908_v7  ;;  %v7378_v16 = vsel %vm1745_vm3, %v7346_v46, %v10902_v36  ;;  %v10598_v42 = vunpack.i.h.bf16 %v17835_v47  ;;  %v6149_v61 = vld [vmem:[#allocation2 + $0xe0] sm:$0xff] }
 0x481   : > { %v10916_v10 = vpop.permute.xlu0 %10915  ;;  %v10912_v0 = vunpack.i.l.bf16 %v10911_v35  ;;  %v10913_v48 = vunpack.i.h.bf16 %v10911_v35  ;;  %v7379_v41 = vsel %vm1745_vm3, %v7347_v28, %v10903_v39  ;;  %v10597_v38 = vunpack.i.l.bf16 %v17835_v47 }
 0x482   : > { %11200 = vrot.lane.b32.xlu1 %v11199_v29, %s11397_s20  ;;  %v10918_v45 = vunpack.i.h.bf16 %v10916_v10  ;;  %v10917_v18 = vunpack.i.l.bf16 %v10916_v10  ;;  %v10602_v3 = vunpack.i.l.bf16 %v17853_v14  ;;  %v10603_v7 = vunpack.i.h.bf16 %v17853_v14  ;;  %s7952_s20 = sshll.u32 %s14786_s24, 4  ;;  %s18752_s20 = int_to_ptr.vmem [resolvable:$true] %s7952_s20 }
 0x483   : > { %v7410_v29 = vsel %vm1778_vm4, %v7378_v16, %v10912_v0  ;;  %v7411_v53 = vsel %vm1778_vm4, %v7379_v41, %v10913_v48  ;;  %v10678_v31 = vunpack.i.h.bf16 %v17988_v55  ;;  %v10682_v27 = vunpack.i.l.bf16 %v17997_v1  ;;  %s11327_s27 = scalar_lea.vmem %s18752_s20, 4096  ;;  %p11334_p0 = scmp.lt.s32.totalorder %s18752_s20, %s11332_s8 }
 0x484   : > { %v10921_v4 = vpop.permute.xlu1 %10920  ;;  %v7440_v50 = vsel %vm1811_vm5, %v7408_v9, %v10917_v18  ;;  %v7441_v58 = vsel %vm1811_vm5, %v7409_v62, %v10918_v45  ;;  %v10683_v36 = vunpack.i.h.bf16 %v17997_v1  ;;  %v10757_v47 = vunpack.i.l.bf16 %v18056_v5  ;;  %v11309_v18 = vld [vmem:[#allocation2 + $0xc8] sm:$0xff]  ;;  %p11328_p11 = scmp.ne.s32.totalorder %s18752_s20, %s11327_s27  ;;  %p11335_p1 = scmp.lt.s32.totalorder %s11333_s10, %s11327_s27 }
 0x485   : > { %v10926_v22 = vpop.permute.xlu0 %10925  ;;  %v10922_v54 = vunpack.i.l.bf16 %v10921_v4  ;;  %v10923_v20 = vunpack.i.h.bf16 %v10921_v4  ;;  %v10677_v4 = vunpack.i.l.bf16 %v17988_v55  ;;  %v7284_v46 = vsel %vm170_vm0, %v6147_v56, %v10597_v38  ;;  %v11310_v1 = vld [vmem:[#allocation2 + $0xe8] sm:$0xff] }
 0x486   : > { %v10928_v33 = vunpack.i.h.bf16 %v10926_v22  ;;  %v10927_v23 = vunpack.i.l.bf16 %v10926_v22  ;;  %v7285_v22 = vsel %vm170_vm0, %v11309_v18, %v10598_v42  ;;  %v7286_v28 = vsel %vm170_vm0, %v6149_v61, %v10602_v3  ;;  %p11329_p12 = pnand %p11328_p11, %p11458_p5  ;;  %p11336_p2 = por %p11335_p1, %p11334_p0 }
 0x487   : > { %v7442_v34 = vsel %vm1811_vm5, %v7410_v29, %v10922_v54  ;;  %v7443_v12 = vsel %vm1811_vm5, %v7411_v53, %v10923_v20  ;;  %v10758_v14 = vunpack.i.h.bf16 %v18056_v5  ;;  %v10763_v8 = vunpack.i.h.bf16 %v18061_v2 }
 0x488   : > { %v10931_v37 = vpop.permute.xlu1 %10930  ;;  %v7472_v57 = vsel %vm1844_vm6, %v7440_v50, %v10927_v23  ;;  %v7473_v11 = vsel %vm1844_vm6, %v7441_v58, %v10928_v33  ;;  %v10762_v55 = vunpack.i.l.bf16 %v18061_v2  ;;  %v7287_v33 = vsel %vm170_vm0, %v11310_v1, %v10603_v7  ;;  %p11330_p13 = pneg %p11329_p12 }
 0x489   : > { %v10936_v59 = vpop.permute.xlu0 %10935  ;;  %v10933_v52 = vunpack.i.h.bf16 %v10931_v37  ;;  %v10932_v43 = vunpack.i.l.bf16 %v10931_v37  ;;  %v7316_v23 = vsel %vm1679_vm1, %v7284_v46, %v10677_v4  ;;  %v7317_v9 = vsel %vm1679_vm1, %v7285_v22, %v10678_v31 }
 0x48a   : > { %v10938_v30 = vunpack.i.h.bf16 %v10936_v59  ;;  %v10937_v19 = vunpack.i.l.bf16 %v10936_v59  ;;  %v7318_v62 = vsel %vm1679_vm1, %v7286_v28, %v10682_v27  ;;  %v7319_v48 = vsel %vm1679_vm1, %v7287_v33, %v10683_v36  ;;  %v20515_v33 = vld [vmem:[#allocation14_spill] sm:$0xff]  ;;  %p11337_p3 = pnand %p11336_p2, %p11330_p13 }
 0x48b   : > { %v7474_v10 = vsel %vm1844_vm6, %v7442_v34, %v10932_v43  ;;  %v7475_v63 = vsel %vm1844_vm6, %v7443_v12, %v10933_v52  ;;  %v7348_v5 = vsel %vm1712_vm2, %v7316_v23, %v10757_v47  ;;  %v7349_v2 = vsel %vm1712_vm2, %v7317_v9, %v10758_v14 }
 0x48c   : > { %v7504_v17 = vsel %vm1877_vm7, %v7472_v57, %v10937_v19  ;;  %v7505_v13 = vsel %vm1877_vm7, %v7473_v11, %v10938_v30  ;;  %v10941_v35 = vpop.permute.xlu1 %10940  ;;  %v7350_v52 = vsel %vm1712_vm2, %v7318_v62, %v10762_v55  ;;  %v7351_v43 = vsel %vm1712_vm2, %v7319_v48, %v10763_v8  ;;  %v20514_v55 = vld [vmem:[#allocation44_spill] sm:$0xff] }
 0x48d   : > { %v8265_v26 = vpack.c.bf16 %v7505_v13, %v7504_v17  ;;  %v10943_v21 = vunpack.i.h.bf16 %v10941_v35  ;;  %v10942_v24 = vunpack.i.l.bf16 %v10941_v35  ;;  %v10946_v51 = vpop.permute.xlu0 %10945  ;;  %v10607_v8 = vunpack.i.l.bf16 %v17858_v25  ;;  %v20516_v62 = vld [vmem:[#allocation84_spill] sm:$0xff] }
 0x48e   : > { %v10948_v39 = vunpack.i.h.bf16 %v10946_v51  ;;  %v10947_v0 = vunpack.i.l.bf16 %v10946_v51  ;;  %v10613_v1 = vunpack.i.h.bf16 %v20514_v55  ;;  %v10688_v23 = vunpack.i.h.bf16 %v20515_v33 }
 0x48f   : > { %v7506_v15 = vsel %vm1877_vm7, %v7474_v10, %v10942_v24  ;;  %v7507_v60 = vsel %vm1877_vm7, %v7475_v63, %v10943_v21  ;;  %8571 = vmatprep.mubr.msk.bf16.mxu1 %vm13383_vm9, %v8265_v26  ;;  %v10687_v9 = vunpack.i.l.bf16 %v20515_v33  ;;  %v10692_v48 = vunpack.i.l.bf16 %v20516_v62 }
 0x490   : > { %v8268_v49 = vpack.c.bf16 %v7507_v60, %v7506_v15  ;;  %v18350_v40 = vpop.permute.xlu1 %10950  ;;  %v7380_v30 = vsel %vm1745_vm3, %v7348_v5, %v10947_v0  ;;  %v7381_v19 = vsel %vm1745_vm3, %v7349_v2, %v10948_v39  ;;  %v10612_v39 = vunpack.i.l.bf16 %v20514_v55 }
 0x491   : > { %v10956_v44 = vpop.permute.xlu0 %10955  ;;  %v10952_v50 = vunpack.i.l.bf16 %v18350_v40  ;;  %v10953_v41 = vunpack.i.h.bf16 %v18350_v40  ;;  %v10693_v5 = vunpack.i.h.bf16 %v20516_v62 }
 0x492   : > { %8572 = vmatmul.mubr.msk.bf16.gmra.mxu1 %vm13383_vm9, %v8268_v49  ;;  %v10958_v54 = vunpack.i.h.bf16 %v10956_v44  ;;  %v10957_v37 = vunpack.i.l.bf16 %v10956_v44 }
 0x493   : > { %v7382_v12 = vsel %vm1745_vm3, %v7350_v52, %v10952_v50  ;;  %v7383_v49 = vsel %vm1745_vm3, %v7351_v43, %v10953_v41  ;;  %v11312_v50 = vld [vmem:[#allocation2 + $0x100] sm:$0xff] }
 0x494   : > { %v10961_v45 = vpop.permute.xlu1 %10960  ;;  %v7412_v53 = vsel %vm1778_vm4, %v7380_v30, %v10957_v37  ;;  %v7413_v34 = vsel %vm1778_vm4, %v7381_v19, %v10958_v54  ;;  %v20517_v54 = vld [vmem:[#allocation47_spill] sm:$0xff] }
 0x495   : > { %v10966_v6 = vpop.permute.xlu0 %10965  ;;  %v10962_v29 = vunpack.i.l.bf16 %v10961_v45  ;;  %v10963_v17 = vunpack.i.h.bf16 %v10961_v45  ;;  %v10767_v37 = vunpack.i.l.bf16 %v20517_v54  ;;  %v10768_v52 = vunpack.i.h.bf16 %v20517_v54  ;;  %v20518_v30 = vld [vmem:[#allocation19_spill] sm:$0xff] }
 0x496   : > { %v10968_v58 = vunpack.i.h.bf16 %v10966_v6  ;;  %v10967_v20 = vunpack.i.l.bf16 %v10966_v6  ;;  %v10608_v6 = vunpack.i.h.bf16 %v17858_v25  ;;  %v11311_v25 = vld [vmem:[#allocation2 + $0x108] sm:$0xff]  ;;  %v10773_v19 = vunpack.i.h.bf16 %v20518_v30 }
 0x497   : > { %v7414_v40 = vsel %vm1778_vm4, %v7382_v12, %v10962_v29  ;;  %v7415_v3 = vsel %vm1778_vm4, %v7383_v49, %v10963_v17  ;;  %v10772_v41 = vunpack.i.l.bf16 %v20518_v30 }
 0x498   : > { %v10971_v16 = vpop.permute.xlu1 %10970  ;;  %v7444_v26 = vsel %vm1811_vm5, %v7412_v53, %v10967_v20  ;;  %v7445_v21 = vsel %vm1811_vm5, %v7413_v34, %v10968_v58  ;;  %v7289_v2 = vsel %vm170_vm0, %v11311_v25, %v10608_v6  ;;  %v7288_v58 = vsel %vm170_vm0, %v11312_v50, %v10607_v8  ;;  %v11313_v20 = vld [vmem:[#allocation2 + $0x120] sm:$0xff] }
 0x499   : > { %v10976_v59 = vpop.permute.xlu0 %10975  ;;  %v10972_v13 = vunpack.i.l.bf16 %v10971_v16  ;;  %v10973_v24 = vunpack.i.h.bf16 %v10971_v16  ;;  %v7320_v34 = vsel %vm1679_vm1, %v7288_v58, %v10687_v9  ;;  %v7321_v17 = vsel %vm1679_vm1, %v7289_v2, %v10688_v23 }
 0x49a   : > { %v10978_v57 = vunpack.i.h.bf16 %v10976_v59  ;;  %v10977_v11 = vunpack.i.l.bf16 %v10976_v59  ;;  %v7290_v59 = vsel %vm170_vm0, %v11313_v20, %v10612_v39  ;;  %v7352_v12 = vsel %vm1712_vm2, %v7320_v34, %v10767_v37 }
 0x49b   : > { %v7446_v44 = vsel %vm1811_vm5, %v7414_v40, %v10972_v13  ;;  %v7447_v31 = vsel %vm1811_vm5, %v7415_v3, %v10973_v24  ;;  %v7322_v13 = vsel %vm1679_vm1, %v7290_v59, %v10692_v48 }
 0x49c   : > { %v10981_v35 = vpop.permute.xlu1 %10980  ;;  %v7476_v42 = vsel %vm1844_vm6, %v7444_v26, %v10977_v11  ;;  %v7477_v38 = vsel %vm1844_vm6, %v7445_v21, %v10978_v57  ;;  %v11314_v11 = vld [vmem:[#allocation2 + $0x128] sm:$0xff]  ;;  %v7354_v49 = vsel %vm1712_vm2, %v7322_v13, %v10772_v41  ;;  %v20520_v41 = vld [vmem:[#allocation26_spill] sm:$0xff]  ;;  %v20522_v13 = vld [vmem:[#allocation80_spill] sm:$0xff] }
 0x49d   : > { %v10986_v51 = vpop.permute.xlu0 %10985  ;;  %v10983_v10 = vunpack.i.h.bf16 %v10981_v35  ;;  %v10982_v63 = vunpack.i.l.bf16 %v10981_v35  ;;  %v7291_v53 = vsel %vm170_vm0, %v11314_v11, %v10613_v1  ;;  %v10623_v11 = vunpack.i.h.bf16 %v20520_v41 }
 0x49e   : > { %v10988_v15 = vunpack.i.h.bf16 %v10986_v51  ;;  %v10987_v60 = vunpack.i.l.bf16 %v10986_v51  ;;  %v7323_v35 = vsel %vm1679_vm1, %v7291_v53, %v10693_v5  ;;  %v7353_v51 = vsel %vm1712_vm2, %v7321_v17, %v10768_v52  ;;  %v20521_v53 = vld [vmem:[#allocation35_spill] sm:$0xff] }
 0x49f   : > { %v7478_v45 = vsel %vm1844_vm6, %v7446_v44, %v10982_v63  ;;  %v7479_v18 = vsel %vm1844_vm6, %v7447_v31, %v10983_v10  ;;  %v7355_v40 = vsel %vm1712_vm2, %v7323_v35, %v10773_v19  ;;  %v10698_v34 = vunpack.i.h.bf16 %v20521_v53 }
 0x4a0   : > { %v7508_v56 = vsel %vm1877_vm7, %v7476_v42, %v10987_v60  ;;  %v7509_v61 = vsel %vm1877_vm7, %v7477_v38, %v10988_v15  ;;  %v10991_v7 = vpop.permute.xlu1 %10990  ;;  %v10697_v17 = vunpack.i.l.bf16 %v20521_v53  ;;  %v10702_v35 = vunpack.i.l.bf16 %v20522_v13 }
 0x4a1   : > { %v8271_v4 = vpack.c.bf16 %v7509_v61, %v7508_v56  ;;  %v10993_v27 = vunpack.i.h.bf16 %v10991_v7  ;;  %v10992_v36 = vunpack.i.l.bf16 %v10991_v7  ;;  %v10996_v47 = vpop.permute.xlu0 %10995 }
 0x4a2   : > { %v10998_v29 = vunpack.i.h.bf16 %v10996_v47  ;;  %v10997_v57 = vunpack.i.l.bf16 %v10996_v47 }
 0x4a3   : > { %v7510_v22 = vsel %vm1877_vm7, %v7478_v45, %v10992_v36  ;;  %v7511_v46 = vsel %vm1877_vm7, %v7479_v18, %v10993_v27  ;;  %8575 = vmatprep.mubr.msk.bf16.mxu1 %vm13383_vm9, %v8271_v4 }
 0x4a4   : > { %v8274_v28 = vpack.c.bf16 %v7511_v46, %v7510_v22  ;;  %v18402_v14 = vpop.permute.xlu1 %11000  ;;  %v7384_v42 = vsel %vm1745_vm3, %v7352_v12, %v10997_v57  ;;  %v7385_v38 = vsel %vm1745_vm3, %v7353_v51, %v10998_v29  ;;  %v10622_v29 = vunpack.i.l.bf16 %v20520_v41  ;;  %v11315_v51 = vld [vmem:[#allocation2 + $0x148] sm:$0xff] }
 0x4a5   : > { %v11006_v0 = vpop.permute.xlu0 %11005  ;;  %v11002_v10 = vunpack.i.l.bf16 %v18402_v14  ;;  %v11003_v3 = vunpack.i.h.bf16 %v18402_v14  ;;  %v10703_v12 = vunpack.i.h.bf16 %v20522_v13 }
 0x4a6   : > { %8576 = vmatmul.mubr.msk.bf16.gmra.mxu1 %vm13383_vm9, %v8274_v28  ;;  %v11008_v26 = vunpack.i.h.bf16 %v11006_v0  ;;  %v11007_v21 = vunpack.i.l.bf16 %v11006_v0 }
 0x4a7   : > { %v7386_v47 = vsel %vm1745_vm3, %v7354_v49, %v11002_v10  ;;  %v7387_v55 = vsel %vm1745_vm3, %v7355_v40, %v11003_v3 }
 0x4a8   : > { %v11011_v16 = vpop.permute.xlu1 %11010  ;;  %v7416_v7 = vsel %vm1778_vm4, %v7384_v42, %v11007_v21  ;;  %v7417_v31 = vsel %vm1778_vm4, %v7385_v38, %v11008_v26  ;;  %v20523_v26 = vld [vmem:[#allocation15_spill] sm:$0xff]  ;;  %v20524_v38 = vld [vmem:[#allocation22_spill] sm:$0xff] }
 0x4a9   : > { %v11016_v43 = vpop.permute.xlu0 %11015  ;;  %v11012_v44 = vunpack.i.l.bf16 %v11011_v16  ;;  %v11013_v4 = vunpack.i.h.bf16 %v11011_v16  ;;  %v10777_v21 = vunpack.i.l.bf16 %v20523_v26  ;;  %v10778_v40 = vunpack.i.h.bf16 %v20523_v26 }
 0x4aa   : > { %v11018_v63 = vunpack.i.h.bf16 %v11016_v43  ;;  %v11017_v15 = vunpack.i.l.bf16 %v11016_v43  ;;  %v20519_v43 = vld [vmem:[#allocation52_spill] sm:$0xff]  ;;  %v10783_v3 = vunpack.i.h.bf16 %v20524_v38 }
 0x4ab   : > { %v7418_v39 = vsel %vm1778_vm4, %v7386_v47, %v11012_v44  ;;  %v7419_v33 = vsel %vm1778_vm4, %v7387_v55, %v11013_v4  ;;  %v10618_v30 = vunpack.i.h.bf16 %v20519_v43  ;;  %v10617_v19 = vunpack.i.l.bf16 %v20519_v43 }
 0x4ac   : > { %v11021_v24 = vpop.permute.xlu1 %11020  ;;  %v7448_v45 = vsel %vm1811_vm5, %v7416_v7, %v11017_v15  ;;  %v7449_v18 = vsel %vm1811_vm5, %v7417_v31, %v11018_v63  ;;  %v11316_v63 = vld [vmem:[#allocation2 + $0x140] sm:$0xff]  ;;  %v10782_v44 = vunpack.i.l.bf16 %v20524_v38  ;;  %v11318_v7 = vld [vmem:[#allocation2 + $0x168] sm:$0xff] }
 0x4ad   : > { %v11026_v60 = vpop.permute.xlu0 %11025  ;;  %v11022_v27 = vunpack.i.l.bf16 %v11021_v24  ;;  %v11023_v22 = vunpack.i.h.bf16 %v11021_v24  ;;  %v7293_v10 = vsel %vm170_vm0, %v11315_v51, %v10618_v30  ;;  %v7292_v15 = vsel %vm170_vm0, %v11316_v63, %v10617_v19 }
 0x4ae   : > { %v11028_v56 = vunpack.i.h.bf16 %v11026_v60  ;;  %v11027_v61 = vunpack.i.l.bf16 %v11026_v60  ;;  %v11317_v60 = vld [vmem:[#allocation2 + $0x160] sm:$0xff]  ;;  %v7295_v31 = vsel %vm170_vm0, %v11318_v7, %v10623_v11  ;;  %v7324_v4 = vsel %vm1679_vm1, %v7292_v15, %v10697_v17 }
 0x4af   : > { %v7450_v23 = vsel %vm1811_vm5, %v7418_v39, %v11022_v27  ;;  %v7451_v5 = vsel %vm1811_vm5, %v7419_v33, %v11023_v22  ;;  %v7294_v49 = vsel %vm170_vm0, %v11317_v60, %v10622_v29  ;;  %v7325_v27 = vsel %vm1679_vm1, %v7293_v10, %v10698_v34 }
 0x4b0   : > { %v11031_v36 = vpop.permute.xlu1 %11030  ;;  %v7480_v0 = vsel %vm1844_vm6, %v7448_v45, %v11027_v61  ;;  %v7481_v1 = vsel %vm1844_vm6, %v7449_v18, %v11028_v56  ;;  %v7327_v47 = vsel %vm1679_vm1, %v7295_v31, %v10703_v12  ;;  %v7356_v45 = vsel %vm1712_vm2, %v7324_v4, %v10777_v21  ;;  %v20527_v31 = vld [vmem:[#allocation87_spill] sm:$0xff] }
 0x4b1   : > { %v11036_v46 = vpop.permute.xlu0 %11035  ;;  %v11033_v28 = vunpack.i.h.bf16 %v11031_v36  ;;  %v11032_v14 = vunpack.i.l.bf16 %v11031_v36  ;;  %v7326_v36 = vsel %vm1679_vm1, %v7294_v49, %v10702_v35  ;;  %v10708_v4 = vunpack.i.h.bf16 %v20527_v31 }
 0x4b2   : > { %v11038_v6 = vunpack.i.h.bf16 %v11036_v46  ;;  %v11037_v8 = vunpack.i.l.bf16 %v11036_v46  ;;  %v7358_v39 = vsel %vm1712_vm2, %v7326_v36, %v10782_v44  ;;  %v20526_v44 = vld [vmem:[#allocation33_spill] sm:$0xff]  ;;  %v20528_v36 = vld [vmem:[#allocation79_spill] sm:$0xff] }
 0x4b3   : > { %v7482_v2 = vsel %vm1844_vm6, %v7450_v23, %v11032_v14  ;;  %v7483_v50 = vsel %vm1844_vm6, %v7451_v5, %v11033_v28  ;;  %v7357_v28 = vsel %vm1712_vm2, %v7325_v27, %v10778_v40  ;;  %v10633_v7 = vunpack.i.h.bf16 %v20526_v44 }
 0x4b4   : > { %v7512_v9 = vsel %vm1877_vm7, %v7480_v0, %v11037_v8  ;;  %v7513_v62 = vsel %vm1877_vm7, %v7481_v1, %v11038_v6  ;;  %v11041_v48 = vpop.permute.xlu1 %11040  ;;  %v7359_v0 = vsel %vm1712_vm2, %v7327_v47, %v10783_v3  ;;  %v10707_v27 = vunpack.i.l.bf16 %v20527_v31 }
 0x4b5   : > { %v8277_v54 = vpack.c.bf16 %v7513_v62, %v7512_v9  ;;  %v11043_v37 = vunpack.i.h.bf16 %v11041_v48  ;;  %v11042_v16 = vunpack.i.l.bf16 %v11041_v48  ;;  %v11046_v25 = vpop.permute.xlu0 %11045  ;;  %v10712_v47 = vunpack.i.l.bf16 %v20528_v36 }
 0x4b6   : > { %v11048_v56 = vunpack.i.h.bf16 %v11046_v25  ;;  %v11047_v61 = vunpack.i.l.bf16 %v11046_v25 }
 0x4b7   : > { %v7514_v58 = vsel %vm1877_vm7, %v7482_v2, %v11042_v16  ;;  %v7515_v20 = vsel %vm1877_vm7, %v7483_v50, %v11043_v37  ;;  %8579 = vmatprep.mubr.msk.bf16.mxu1 %vm13383_vm9, %v8277_v54 }
 0x4b8   : > { %v8280_v59 = vpack.c.bf16 %v7515_v20, %v7514_v58  ;;  %v18454_v52 = vpop.permute.xlu1 %11050  ;;  %v7388_v1 = vsel %vm1745_vm3, %v7356_v45, %v11047_v61  ;;  %v7389_v33 = vsel %vm1745_vm3, %v7357_v28, %v11048_v56  ;;  %v10632_v56 = vunpack.i.l.bf16 %v20526_v44  ;;  %v11319_v28 = vld [vmem:[#allocation2 + $0x188] sm:$0xff] }
 0x4b9   : > { %v11056_v57 = vpop.permute.xlu0 %11055  ;;  %v11052_v14 = vunpack.i.l.bf16 %v18454_v52  ;;  %v11053_v23 = vunpack.i.h.bf16 %v18454_v52  ;;  %v10713_v45 = vunpack.i.h.bf16 %v20528_v36 }
 0x4ba   : > { %8580 = vmatmul.mubr.msk.bf16.gmra.mxu1 %vm13383_vm9, %v8280_v59  ;;  %v11058_v18 = vunpack.i.h.bf16 %v11056_v57  ;;  %v11057_v22 = vunpack.i.l.bf16 %v11056_v57 }
 0x4bb   : > { %v7390_v2 = vsel %vm1745_vm3, %v7358_v39, %v11052_v14  ;;  %v7391_v41 = vsel %vm1745_vm3, %v7359_v0, %v11053_v23 }
 0x4bc   : > { %v11061_v24 = vpop.permute.xlu1 %11060  ;;  %v7420_v5 = vsel %vm1778_vm4, %v7388_v1, %v11057_v22  ;;  %v7421_v54 = vsel %vm1778_vm4, %v7389_v33, %v11058_v18  ;;  %v20529_v18 = vld [vmem:[#allocation9_spill] sm:$0xff] }
 0x4bd   : > { %v11066_v42 = vpop.permute.xlu0 %11065  ;;  %v11062_v9 = vunpack.i.l.bf16 %v11061_v24  ;;  %v11063_v37 = vunpack.i.h.bf16 %v11061_v24  ;;  %v10787_v22 = vunpack.i.l.bf16 %v20529_v18  ;;  %v10788_v0 = vunpack.i.h.bf16 %v20529_v18  ;;  %v20530_v33 = vld [vmem:[#allocation85_spill] sm:$0xff] }
 0x4be   : > { %v11068_v6 = vunpack.i.h.bf16 %v11066_v42  ;;  %v11067_v8 = vunpack.i.l.bf16 %v11066_v42  ;;  %v20525_v42 = vld [vmem:[#allocation69_spill] sm:$0xff]  ;;  %v10793_v23 = vunpack.i.h.bf16 %v20530_v33 }
 0x4bf   : > { %v7422_v29 = vsel %vm1778_vm4, %v7390_v2, %v11062_v9  ;;  %v7423_v53 = vsel %vm1778_vm4, %v7391_v41, %v11063_v37  ;;  %v10628_v38 = vunpack.i.h.bf16 %v20525_v42  ;;  %v10627_v3 = vunpack.i.l.bf16 %v20525_v42 }
 0x4c0   : > { %v11071_v46 = vpop.permute.xlu1 %11070  ;;  %v7452_v50 = vsel %vm1811_vm5, %v7420_v5, %v11067_v8  ;;  %v7453_v58 = vsel %vm1811_vm5, %v7421_v54, %v11068_v6  ;;  %v11320_v6 = vld [vmem:[#allocation2 + $0x180] sm:$0xff]  ;;  %v10792_v9 = vunpack.i.l.bf16 %v20530_v33  ;;  %v11322_v5 = vld [vmem:[#allocation2 + $0x1a8] sm:$0xff] }
 0x4c1   : > { %v11076_v55 = vpop.permute.xlu0 %11075  ;;  %v11072_v16 = vunpack.i.l.bf16 %v11071_v46  ;;  %v11073_v20 = vunpack.i.h.bf16 %v11071_v46  ;;  %v7297_v14 = vsel %vm170_vm0, %v11319_v28, %v10628_v38  ;;  %v7296_v8 = vsel %vm170_vm0, %v11320_v6, %v10627_v3 }
 0x4c2   : > { %v11078_v62 = vunpack.i.h.bf16 %v11076_v55  ;;  %v11077_v48 = vunpack.i.l.bf16 %v11076_v55  ;;  %v11321_v55 = vld [vmem:[#allocation2 + $0x1a0] sm:$0xff]  ;;  %v7299_v54 = vsel %vm170_vm0, %v11322_v5, %v10633_v7  ;;  %v7328_v37 = vsel %vm1679_vm1, %v7296_v8, %v10707_v27 }
 0x4c3   : > { %v7454_v34 = vsel %vm1811_vm5, %v7422_v29, %v11072_v16  ;;  %v7455_v12 = vsel %vm1811_vm5, %v7423_v53, %v11073_v20  ;;  %v7298_v39 = vsel %vm170_vm0, %v11321_v55, %v10632_v56  ;;  %v7329_v16 = vsel %vm1679_vm1, %v7297_v14, %v10708_v4 }
 0x4c4   : > { %v11081_v25 = vpop.permute.xlu1 %11080  ;;  %v7484_v57 = vsel %vm1844_vm6, %v7452_v50, %v11077_v48  ;;  %v7485_v11 = vsel %vm1844_vm6, %v7453_v58, %v11078_v62  ;;  %v7331_v2 = vsel %vm1679_vm1, %v7299_v54, %v10713_v45  ;;  %v7360_v50 = vsel %vm1712_vm2, %v7328_v37, %v10787_v22 }
 0x4c5   : > { %v11086_v59 = vpop.permute.xlu0 %11085  ;;  %v11083_v43 = vunpack.i.h.bf16 %v11081_v25  ;;  %v11082_v52 = vunpack.i.l.bf16 %v11081_v25  ;;  %v7330_v25 = vsel %vm1679_vm1, %v7298_v39, %v10712_v47 }
 0x4c6   : > { %v11088_v30 = vunpack.i.h.bf16 %v11086_v59  ;;  %v11087_v19 = vunpack.i.l.bf16 %v11086_v59  ;;  %v7362_v29 = vsel %vm1712_vm2, %v7330_v25, %v10792_v9 }
 0x4c7   : > { %v7486_v10 = vsel %vm1844_vm6, %v7454_v34, %v11082_v52  ;;  %v7487_v63 = vsel %vm1844_vm6, %v7455_v12, %v11083_v43  ;;  %v7361_v43 = vsel %vm1712_vm2, %v7329_v16, %v10788_v0  ;;  %v20533_v16 = vld [vmem:[#allocation8_spill] sm:$0xff] }
 0x4c8   : > { %v7516_v17 = vsel %vm1877_vm7, %v7484_v57, %v11087_v19  ;;  %v7517_v13 = vsel %vm1877_vm7, %v7485_v11, %v11088_v30  ;;  %v11091_v35 = vpop.permute.xlu1 %11090  ;;  %v7363_v57 = vsel %vm1712_vm2, %v7331_v2, %v10793_v23  ;;  %v20531_v23 = vld [vmem:[#allocation61_spill] sm:$0xff]  ;;  %v10718_v25 = vunpack.i.h.bf16 %v20533_v16 }
 0x4c9   : > { %v8283_v26 = vpack.c.bf16 %v7517_v13, %v7516_v17  ;;  %v11093_v21 = vunpack.i.h.bf16 %v11091_v35  ;;  %v11092_v24 = vunpack.i.l.bf16 %v11091_v35  ;;  %v11096_v51 = vpop.permute.xlu0 %11095  ;;  %v10638_v9 = vunpack.i.h.bf16 %v20531_v23 }
 0x4ca   : > { %v11098_v62 = vunpack.i.h.bf16 %v11096_v51  ;;  %v11097_v48 = vunpack.i.l.bf16 %v11096_v51  ;;  %v10717_v2 = vunpack.i.l.bf16 %v20533_v16 }
 0x4cb   : > { %v7518_v15 = vsel %vm1877_vm7, %v7486_v10, %v11092_v24  ;;  %v7519_v60 = vsel %vm1877_vm7, %v7487_v63, %v11093_v21  ;;  %8583 = vmatprep.mubr.msk.bf16.mxu1 %vm13383_vm9, %v8283_v26 }
 0x4cc   : > { %v8286_v49 = vpack.c.bf16 %v7519_v60, %v7518_v15  ;;  %v18506_v40 = vpop.permute.xlu1 %11100  ;;  %v7392_v11 = vsel %vm1745_vm3, %v7360_v50, %v11097_v48  ;;  %v7393_v53 = vsel %vm1745_vm3, %v7361_v43, %v11098_v62  ;;  %v10637_v62 = vunpack.i.l.bf16 %v20531_v23  ;;  %v20532_v48 = vld [vmem:[#allocation89_spill] sm:$0xff] }
 0x4cd   : > { %v11106_v61 = vpop.permute.xlu0 %11105  ;;  %v11102_v52 = vunpack.i.l.bf16 %v18506_v40  ;;  %v11103_v34 = vunpack.i.h.bf16 %v18506_v40  ;;  %v10642_v5 = vunpack.i.l.bf16 %v20532_v48  ;;  %v10643_v37 = vunpack.i.h.bf16 %v20532_v48  ;;  %v20534_v50 = vld [vmem:[#allocation81_spill] sm:$0xff] }
 0x4ce   : > { %8584 = vmatmul.mubr.msk.bf16.gmra.mxu1 %vm13383_vm9, %v8286_v49  ;;  %v11108_v58 = vunpack.i.h.bf16 %v11106_v61  ;;  %v11107_v20 = vunpack.i.l.bf16 %v11106_v61 }
 0x4cf   : > { %v7394_v10 = vsel %vm1745_vm3, %v7362_v29, %v11102_v52  ;;  %v7395_v44 = vsel %vm1745_vm3, %v7363_v57, %v11103_v34  ;;  %v11323_v52 = vld [vmem:[#allocation2 + $0x1c8] sm:$0xff]  ;;  %v11325_v29 = vld [vmem:[#allocation2 + $0x1e0] sm:$0xff] }
 0x4d0   : > { %v11111_v46 = vpop.permute.xlu1 %11110  ;;  %v7424_v12 = vsel %vm1778_vm4, %v7392_v11, %v11107_v20  ;;  %v7425_v26 = vsel %vm1778_vm4, %v7393_v53, %v11108_v58  ;;  %v10722_v58 = vunpack.i.l.bf16 %v20534_v50  ;;  %v10723_v20 = vunpack.i.h.bf16 %v20534_v50 }
 0x4d1   : > { %v11116_v1 = vpop.permute.xlu0 %11115  ;;  %v11112_v17 = vunpack.i.l.bf16 %v11111_v46  ;;  %v11113_v21 = vunpack.i.h.bf16 %v11111_v46  ;;  %v7302_v57 = vsel %vm170_vm0, %v11325_v29, %v10642_v5  ;;  %v8517_v29 = vpop.f32.mrf.mxu0 }
 0x4d2   : > { %v11118_v30 = vunpack.i.h.bf16 %v11116_v1  ;;  %v11117_v19 = vunpack.i.l.bf16 %v11116_v1 }
 0x4d3   : > { %v7426_v56 = vsel %vm1778_vm4, %v7394_v10, %v11112_v17  ;;  %v7427_v31 = vsel %vm1778_vm4, %v7395_v44, %v11113_v21 }
 0x4d4   : > { %v11121_v59 = vpop.permute.xlu1 %11120  ;;  %v7456_v63 = vsel %vm1811_vm5, %v7424_v12, %v11117_v19  ;;  %v7457_v15 = vsel %vm1811_vm5, %v7425_v26, %v11118_v30  ;;  %v7301_v30 = vsel %vm170_vm0, %v11323_v52, %v10638_v9  ;;  %v11324_v19 = vld [vmem:[#allocation2 + $0x1c0] sm:$0xff]  ;;  %v11326_v12 = vld [vmem:[#allocation2 + $0x1e8] sm:$0xff] }
 0x4d5   : > { %v11126_v41 = vpop.permute.xlu0 %11125  ;;  %v11122_v24 = vunpack.i.l.bf16 %v11121_v59  ;;  %v11123_v60 = vunpack.i.h.bf16 %v11121_v59  ;;  %v7303_v26 = vsel %vm170_vm0, %v11326_v12, %v10643_v37 }
 0x4d6   : > { %v11128_v13 = vunpack.i.h.bf16 %v11126_v41  ;;  %v11127_v35 = vunpack.i.l.bf16 %v11126_v41  ;;  %v7300_v41 = vsel %vm170_vm0, %v11324_v19, %v10637_v62  ;;  %v7335_v10 = vsel %vm1679_vm1, %v7303_v26, %v10723_v20 }
 0x4d7   : > { %v7458_v4 = vsel %vm1811_vm5, %v7426_v56, %v11122_v24  ;;  %v7459_v45 = vsel %vm1811_vm5, %v7427_v31, %v11123_v60  ;;  %v7332_v21 = vsel %vm1679_vm1, %v7300_v41, %v10717_v2  ;;  %v7333_v24 = vsel %vm1679_vm1, %v7301_v30, %v10718_v25 }
 0x4d8   : > { %v11131_v51 = vpop.permute.xlu1 %11130  ;;  %v7488_v61 = vsel %vm1844_vm6, %v7456_v63, %v11127_v35  ;;  %v7489_v7 = vsel %vm1844_vm6, %v7457_v15, %v11128_v13 }
 0x4d9   : > { %v11136_v49 = vpop.permute.xlu0 %11135  ;;  %v11133_v42 = vunpack.i.h.bf16 %v11131_v51  ;;  %v11132_v40 = vunpack.i.l.bf16 %v11131_v51  ;;  %v7334_v51 = vsel %vm1679_vm1, %v7302_v57, %v10722_v58  ;;  %v5880_v57 = vpop.f32.mrf.mxu0 }
 0x4da   : > { %v11138_v38 = vunpack.i.h.bf16 %v11136_v49  ;;  %v11137_v3 = vunpack.i.l.bf16 %v11136_v49 }
 0x4db   : > { %v7490_v14 = vsel %vm1844_vm6, %v7458_v4, %v11132_v40  ;;  %v7491_v6 = vsel %vm1844_vm6, %v7459_v45, %v11133_v42 }
 0x4dc   : > { %v7520_v27 = vsel %vm1877_vm7, %v7488_v61, %v11137_v3  ;;  %v7521_v36 = vsel %vm1877_vm7, %v7489_v7, %v11138_v38  ;;  %v11141_v47 = vpop.permute.xlu1 %11140 }
 0x4dd   : > { %v8289_v18 = vpack.c.bf16 %v7521_v36, %v7520_v27  ;;  %v11143_v22 = vunpack.i.h.bf16 %v11141_v47  ;;  %v11142_v46 = vunpack.i.l.bf16 %v11141_v47  ;;  %v11146_v28 = vpop.permute.xlu0 %11145 }
 0x4de   : > { %v11147_v59 = vunpack.i.l.bf16 %v11146_v28  ;;  %v11148_v11 = vunpack.i.h.bf16 %v11146_v28 }
 0x4df   : > { %v7522_v8 = vsel %vm1877_vm7, %v7490_v14, %v11142_v46  ;;  %v7523_v55 = vsel %vm1877_vm7, %v7491_v6, %v11143_v22  ;;  %8587 = vmatprep.mubr.msk.bf16.mxu1 %vm13383_vm9, %v8289_v18 }
 0x4e0   : > { %v8292_v39 = vpack.c.bf16 %v7523_v55, %v7522_v8  ;;  %v11151_v0 = vpop.permute.xlu1 %11150  ;;  %v7364_v63 = vsel %vm1712_vm2, %v7332_v21, %v11147_v59  ;;  %v7365_v42 = vsel %vm1712_vm2, %v7333_v24, %v11148_v11  ;;  %v18611_v11 = vld [vmem:[%s18800_s2 + $0x2] ss:$0 sm:$0xff] }
 0x4e1   : > { %v11156_v1 = vpop.permute.xlu0 %11155  ;;  %v11153_v34 = vunpack.i.h.bf16 %v11151_v0  ;;  %v11152_v17 = vunpack.i.l.bf16 %v11151_v0 }
 0x4e2   : > { %8588 = vmatmul.mubr.msk.bf16.gmra.mxu1 %vm13383_vm9, %v8292_v39  ;;  %v11158_v13 = vunpack.i.h.bf16 %v11156_v1  ;;  %v11157_v35 = vunpack.i.l.bf16 %v11156_v1 }
 0x4e3   : > { %v7366_v56 = vsel %vm1712_vm2, %v7334_v51, %v11152_v17  ;;  %v7367_v61 = vsel %vm1712_vm2, %v7335_v10, %v11153_v34  ;;  %v5889_v34 = vadd.f32 %v8517_v29, %v18611_v11  ;;  %v5881_v17 = vadd.f32 %v18611_v11, %v5880_v57  ;;  %v6041_v10 = vld [vmem:[%s14786_s24 + $0x10] sm:$0xff] }
 0x4e4   : > { %v18560_v33 = vpop.permute.xlu1 %11160  ;;  %v7396_v7 = vsel %vm1745_vm3, %v7364_v63, %v11157_v35  ;;  %v7397_v31 = vsel %vm1745_vm3, %v7365_v42, %v11158_v13 }
 0x4e5   : > { %v11166_v54 = vpop.permute.xlu0 %11165  ;;  %v11162_v40 = vunpack.i.l.bf16 %v18560_v33  ;;  %v11163_v4 = vunpack.i.h.bf16 %v18560_v33  ;;  %v6009_v35 = vmax.f32 %v5889_v34, 0.0  ;;  %v6007_v26 = vmax.f32 %v5881_v17, 0.0 }
 0x4e6   : > { %v11168_v15 = vunpack.i.h.bf16 %v11166_v54  ;;  %v11167_v60 = vunpack.i.l.bf16 %v11166_v54 }
 0x4e7   : > { %v7398_v14 = vsel %vm1745_vm3, %v7366_v56, %v11162_v40  ;;  %v7399_v9 = vsel %vm1745_vm3, %v7367_v61, %v11163_v4 }
 0x4e8   : > { %v11171_v43 = vpop.permute.xlu1 %11170  ;;  %v7428_v45 = vsel %vm1778_vm4, %v7396_v7, %v11167_v60  ;;  %v7429_v18 = vsel %vm1778_vm4, %v7397_v31, %v11168_v15  ;;  %v6073_v15 = vadd.f32 %v6041_v10, %v6009_v35  ;;  %v6039_v60 = vld [vmem:[%s14786_s24] sm:$0xff]  ;;  %v6042_v31 = vld [vmem:[%s14786_s24 + $0x18] sm:$0xff]  ;;  %v6044_v35 = vld [vmem:[%s14786_s24 + $0x28] sm:$0xff] }
 0x4e9   : > { %v11176_v53 = vpop.permute.xlu0 %11175  ;;  %v11172_v27 = vunpack.i.l.bf16 %v11171_v43  ;;  %v11173_v22 = vunpack.i.h.bf16 %v11171_v43 }
 0x4ea   : > { %v11178_v38 = vunpack.i.h.bf16 %v11176_v53  ;;  %v11177_v3 = vunpack.i.l.bf16 %v11176_v53  ;;  %v8518_v53 = vpop.f32.mrf.mxu0 }
 0x4eb   : > { %v7430_v62 = vsel %vm1778_vm4, %v7398_v14, %v11172_v27  ;;  %v7431_v54 = vsel %vm1778_vm4, %v7399_v9, %v11173_v22  ;;  %v5892_v12 = vadd.f32 %v8518_v53, %v18611_v11  ;;  %v6040_v22 = vld [vmem:[%s14786_s24 + $0x8] sm:$0xff] }
 0x4ec   : > { %v11181_v49 = vpop.permute.xlu1 %11180  ;;  %v7460_v6 = vsel %vm1811_vm5, %v7428_v45, %v11177_v3  ;;  %v7461_v8 = vsel %vm1811_vm5, %v7429_v18, %v11178_v38  ;;  %v5883_v13 = vpop.f32.mrf.mxu0  ;;  %v6071_v38 = vadd.f32 %v6039_v60, %v6007_v26 }
 0x4ed   : > { %v11186_v44 = vpop.permute.xlu0 %11185  ;;  %v11182_v46 = vunpack.i.l.bf16 %v11181_v49  ;;  %v11183_v55 = vunpack.i.h.bf16 %v11181_v49  ;;  %v5884_v24 = vadd.f32 %v18611_v11, %v5883_v13  ;;  %v6010_v49 = vmax.f32 %v5892_v12, 0.0 }
 0x4ee   : > { %v11188_v36 = vunpack.i.h.bf16 %v11186_v44  ;;  %v11187_v47 = vunpack.i.l.bf16 %v11186_v44  ;;  %v8521_v4 = vpop.f32.mrf.mxu0 }
 0x4ef   : > { %v7462_v37 = vsel %vm1811_vm5, %v7430_v62, %v11182_v46  ;;  %v7463_v50 = vsel %vm1811_vm5, %v7431_v54, %v11183_v55  ;;  %v6008_v44 = vmax.f32 %v5884_v24, 0.0  ;;  %v6045_v54 = vld [vmem:[%s14786_s24 + $0x30] sm:$0xff] }
 0x4f0   : > { %v11191_v28 = vpop.permute.xlu1 %11190  ;;  %v7492_v48 = vsel %vm1844_vm6, %v7460_v6, %v11187_v47  ;;  %v7493_v5 = vsel %vm1844_vm6, %v7461_v8, %v11188_v36  ;;  %v6074_v36 = vadd.f32 %v6042_v31, %v6010_v49  ;;  %v5896_v6 = vpop.f32.mrf.mxu0  ;;  %v6047_v31 = vld [vmem:[%s14786_s24 + $0x40] sm:$0xff] }
 0x4f1   : > { %v11196_v39 = vpop.permute.xlu0 %11195  ;;  %v11193_v0 = vunpack.i.h.bf16 %v11191_v28  ;;  %v11192_v1 = vunpack.i.l.bf16 %v11191_v28  ;;  %v6072_v46 = vadd.f32 %v6040_v22, %v6008_v44 }
 0x4f2   : > { %v11198_v33 = vunpack.i.h.bf16 %v11196_v39  ;;  %v11197_v23 = vunpack.i.l.bf16 %v11196_v39  ;;  %v8522_v55 = vpop.f32.mrf.mxu0  ;;  %v5905_v39 = vadd.f32 %v8521_v4, %v18611_v11 }
 0x4f3   : > { %v7494_v43 = vsel %vm1844_vm6, %v7462_v37, %v11192_v1  ;;  %v7495_v52 = vsel %vm1844_vm6, %v7463_v50, %v11193_v0  ;;  %v5897_v0 = vadd.f32 %v18611_v11, %v5896_v6 }
 0x4f4   : > { %v7524_v16 = vsel %vm1877_vm7, %v7492_v48, %v11197_v23  ;;  %v7525_v25 = vsel %vm1877_vm7, %v7493_v5, %v11198_v33  ;;  %v11201_v2 = vpop.permute.xlu1 %11200  ;;  %v5899_v1 = vpop.f32.mrf.mxu0  ;;  %v6013_v33 = vmax.f32 %v5905_v39, 0.0  ;;  %v5908_v23 = vadd.f32 %v8522_v55, %v18611_v11 }
 0x4f5   : > { %v8295_v58 = vpack.c.bf16 %v7525_v25, %v7524_v16  ;;  %v11203_v20 = vunpack.i.h.bf16 %v11201_v2  ;;  %v11202_v59 = vunpack.i.l.bf16 %v11201_v2  ;;  %v6011_v9 = vmax.f32 %v5897_v0, 0.0  ;;  %v6043_v25 = vld [vmem:[%s14786_s24 + $0x20] sm:$0xff] }
 0x4f6   : > { %v5900_v48 = vadd.f32 %v18611_v11, %v5899_v1  ;;  %v6077_v16 = vadd.f32 %v6045_v54, %v6013_v33  ;;  %v6014_v2 = vmax.f32 %v5908_v23, 0.0  ;;  %v8525_v29 = vpop.f32.mrf.mxu0  ;;  %v6048_v33 = vld [vmem:[%s14786_s24 + $0x48] sm:$0xff] }
 0x4f7   : > { %v7526_v30 = vsel %vm1877_vm7, %v7494_v43, %v11202_v59  ;;  %v7527_v19 = vsel %vm1877_vm7, %v7495_v52, %v11203_v20  ;;  %8591 = vmatprep.mubr.msk.bf16.mxu1 %vm13383_vm9, %v8295_v58  ;;  %v6075_v20 = vadd.f32 %v6043_v25, %v6011_v9 }
 0x4f8   : > { %v8298_v41 = vpack.c.bf16 %v7527_v19, %v7526_v30  ;;  %v6012_v43 = vmax.f32 %v5900_v48, 0.0  ;;  %v5912_v24 = vpop.f32.mrf.mxu0 }
 0x4fa   : > { %8592 = vmatmul.mubr.msk.bf16.gmra.mxu1 %vm13383_vm9, %v8298_v41  ;;  %v6046_v41 = vld [vmem:[%s14786_s24 + $0x38] sm:$0xff]  ;;  %v6076_v12 = vadd.f32 %v6044_v35, %v6012_v43  ;;  %v8526_v10 = vpop.f32.mrf.mxu0 }
 0x4fb   : > { %v6078_v53 = vadd.f32 %v6046_v41, %v6014_v2  ;;  %v6051_v41 = vld [vmem:[%s14786_s24 + $0x60] sm:$0xff] }
 0x4fc   : > { %v5915_v60 = vpop.f32.mrf.mxu0 }
 0x4fe   : > { %v8529_v6 = vpop.f32.mrf.mxu0 }
 0x500   : > { %v5928_v48 = vpop.f32.mrf.mxu0 }
 0x502   : > { %v8530_v54 = vpop.f32.mrf.mxu0 }
 0x504   : > { %v5931_v25 = vpop.f32.mrf.mxu0 }
 0x529   : > { %v8565_v21 = vpop.f32.mrf.mxu1 }
 0x52a   : > { %v7692_v51 = vadd.f32 %v8565_v21, %v18618_v32 }
 0x52b   : > { %v7683_v63 = vpop.f32.mrf.mxu1 }
 0x52c   : > { %v7812_v42 = vmax.f32 %v7692_v51, 0.0  ;;  %v7684_v40 = vadd.f32 %v18618_v32, %v7683_v63  ;;  %v5921_v63 = vadd.f32 %v8525_v29, %v18611_v11 }
 0x52d   : > { %v8566_v3 = vpop.f32.mrf.mxu1 }
 0x52e   : > { %v7876_v56 = vadd.f32 %v7812_v42, %v6073_v15  ;;  %v7810_v61 = vmax.f32 %v7684_v40, 0.0  ;;  %v7695_v7 = vadd.f32 %v8566_v3, %v18618_v32  ;;  %v5913_v15 = vadd.f32 %v18611_v11, %v5912_v24  ;;  %v8533_v24 = vpop.f32.mrf.mxu0 }
 0x52f   : > { %v7686_v27 = vpop.f32.mrf.mxu1  ;;  %v6017_v49 = vmax.f32 %v5921_v63, 0.0  ;;  %v5924_v42 = vadd.f32 %v8526_v10, %v18611_v11  ;;  %v5916_v3 = vadd.f32 %v18611_v11, %v5915_v60 }
 0x530   : > { %7908 = vst [vmem:[%s14786_s24 + $0x10] sm:$0xff] %v7876_v56  ;;  %v7874_v47 = vadd.f32 %v7810_v61, %v6071_v38  ;;  %v7813_v45 = vmax.f32 %v7695_v7, 0.0  ;;  %v7687_v18 = vadd.f32 %v18618_v32, %v7686_v27  ;;  %v6015_v40 = vmax.f32 %v5913_v15, 0.0  ;;  %v6049_v56 = vld [vmem:[%s14786_s24 + $0x50] sm:$0xff] }
 0x531   : > { %v6081_v7 = vadd.f32 %v6049_v56, %v6017_v49  ;;  %v6018_v4 = vmax.f32 %v5924_v42, 0.0  ;;  %v6052_v49 = vld [vmem:[%s14786_s24 + $0x68] sm:$0xff] }
 0x532   : > { %7906 = vst [vmem:[%s14786_s24] sm:$0xff] %v7874_v47  ;;  %v7877_v28 = vadd.f32 %v7813_v45, %v6074_v36  ;;  %v7811_v14 = vmax.f32 %v7687_v18, 0.0  ;;  %v6079_v47 = vadd.f32 %v6047_v31, %v6015_v40  ;;  %v6016_v18 = vmax.f32 %v5916_v3, 0.0  ;;  %v5944_v3 = vpop.f32.mrf.mxu0 }
 0x534   : > { %7909 = vst [vmem:[%s14786_s24 + $0x18] sm:$0xff] %v7877_v28  ;;  %v7875_v8 = vadd.f32 %v7811_v14, %v6072_v46  ;;  %v6050_v14 = vld [vmem:[%s14786_s24 + $0x58] sm:$0xff]  ;;  %v6080_v23 = vadd.f32 %v6048_v33, %v6016_v18  ;;  %v8534_v56 = vpop.f32.mrf.mxu0 }
 0x535   : > { %v6082_v55 = vadd.f32 %v6050_v14, %v6018_v4  ;;  %v6055_v14 = vld [vmem:[%s14786_s24 + $0x80] sm:$0xff] }
 0x536   : > { %7907 = vst [vmem:[%s14786_s24 + $0x8] sm:$0xff] %v7875_v8  ;;  %v5947_v31 = vpop.f32.mrf.mxu0 }
 0x53e   : > { %v8569_v62 = vpop.f32.mrf.mxu1 }
 0x53f   : > { %v7708_v5 = vadd.f32 %v8569_v62, %v18618_v32 }
 0x540   : > { %v7699_v37 = vpop.f32.mrf.mxu1 }
 0x541   : > { %v7816_v50 = vmax.f32 %v7708_v5, 0.0  ;;  %v7700_v58 = vadd.f32 %v18618_v32, %v7699_v37  ;;  %v5937_v37 = vadd.f32 %v8529_v6, %v18611_v11 }
 0x542   : > { %v8570_v59 = vpop.f32.mrf.mxu1 }
 0x543   : > { %v7880_v52 = vadd.f32 %v7816_v50, %v6077_v16  ;;  %v7814_v30 = vmax.f32 %v7700_v58, 0.0  ;;  %v7711_v19 = vadd.f32 %v8570_v59, %v18618_v32  ;;  %v5929_v16 = vadd.f32 %v18611_v11, %v5928_v48  ;;  %v8537_v48 = vpop.f32.mrf.mxu0 }
 0x544   : > { %v7702_v57 = vpop.f32.mrf.mxu1  ;;  %v6021_v2 = vmax.f32 %v5937_v37, 0.0  ;;  %v5940_v50 = vadd.f32 %v8530_v54, %v18611_v11  ;;  %v5932_v59 = vadd.f32 %v18611_v11, %v5931_v25 }
 0x545   : > { %7912 = vst [vmem:[%s14786_s24 + $0x30] sm:$0xff] %v7880_v52  ;;  %v7878_v34 = vadd.f32 %v7814_v30, %v6075_v20  ;;  %v7817_v17 = vmax.f32 %v7711_v19, 0.0  ;;  %v7703_v13 = vadd.f32 %v18618_v32, %v7702_v57  ;;  %v6019_v58 = vmax.f32 %v5929_v16, 0.0  ;;  %v6053_v52 = vld [vmem:[%s14786_s24 + $0x70] sm:$0xff] }
 0x546   : > { %v6085_v19 = vadd.f32 %v6053_v52, %v6021_v2  ;;  %v6022_v29 = vmax.f32 %v5940_v50, 0.0  ;;  %v6056_v2 = vld [vmem:[%s14786_s24 + $0x88] sm:$0xff] }
 0x547   : > { %7910 = vst [vmem:[%s14786_s24 + $0x20] sm:$0xff] %v7878_v34  ;;  %v7881_v26 = vadd.f32 %v7817_v17, %v6078_v53  ;;  %v7815_v21 = vmax.f32 %v7703_v13, 0.0  ;;  %v6083_v34 = vadd.f32 %v6051_v41, %v6019_v58  ;;  %v6020_v13 = vmax.f32 %v5932_v59, 0.0  ;;  %v5960_v59 = vpop.f32.mrf.mxu0 }
 0x549   : > { %7913 = vst [vmem:[%s14786_s24 + $0x38] sm:$0xff] %v7881_v26  ;;  %v7879_v51 = vadd.f32 %v7815_v21, %v6076_v12  ;;  %v6054_v21 = vld [vmem:[%s14786_s24 + $0x78] sm:$0xff]  ;;  %v6084_v42 = vadd.f32 %v6052_v49, %v6020_v13  ;;  %v8538_v52 = vpop.f32.mrf.mxu0 }
 0x54a   : > { %v6086_v10 = vadd.f32 %v6054_v21, %v6022_v29  ;;  %v6059_v21 = vld [vmem:[%s14786_s24 + $0xa0] sm:$0xff] }
 0x54b   : > { %7911 = vst [vmem:[%s14786_s24 + $0x28] sm:$0xff] %v7879_v51  ;;  %v5963_v41 = vpop.f32.mrf.mxu0 }
 0x552   : > { %v8573_v38 = vpop.f32.mrf.mxu1 }
 0x553   : > { %v7724_v44 = vadd.f32 %v8573_v38, %v18618_v32 }
 0x554   : > { %v7715_v61 = vpop.f32.mrf.mxu1 }
 0x555   : > { %v7820_v27 = vmax.f32 %v7724_v44, 0.0  ;;  %v7716_v36 = vadd.f32 %v18618_v32, %v7715_v61  ;;  %v5953_v61 = vadd.f32 %v8533_v24, %v18611_v11 }
 0x556   : > { %v8574_v45 = vpop.f32.mrf.mxu1 }
 0x557   : > { %v7884_v22 = vadd.f32 %v7820_v27, %v6081_v7  ;;  %v7818_v46 = vmax.f32 %v7716_v36, 0.0  ;;  %v7727_v28 = vadd.f32 %v8574_v45, %v18618_v32  ;;  %v5945_v7 = vadd.f32 %v18611_v11, %v5944_v3  ;;  %v8541_v3 = vpop.f32.mrf.mxu0 }
 0x558   : > { %v7718_v8 = vpop.f32.mrf.mxu1  ;;  %v6025_v4 = vmax.f32 %v5953_v61, 0.0  ;;  %v5956_v27 = vadd.f32 %v8534_v56, %v18611_v11  ;;  %v5948_v45 = vadd.f32 %v18611_v11, %v5947_v31 }
 0x559   : > { %7916 = vst [vmem:[%s14786_s24 + $0x50] sm:$0xff] %v7884_v22  ;;  %v7882_v39 = vadd.f32 %v7818_v46, %v6079_v47  ;;  %v7821_v0 = vmax.f32 %v7727_v28, 0.0  ;;  %v7719_v1 = vadd.f32 %v18618_v32, %v7718_v8  ;;  %v6023_v36 = vmax.f32 %v5945_v7, 0.0  ;;  %v6057_v22 = vld [vmem:[%s14786_s24 + $0x90] sm:$0xff] }
 0x55a   : > { %v6089_v28 = vadd.f32 %v6057_v22, %v6025_v4  ;;  %v6026_v6 = vmax.f32 %v5956_v27, 0.0  ;;  %v6060_v4 = vld [vmem:[%s14786_s24 + $0xa8] sm:$0xff] }
 0x55b   : > { %7914 = vst [vmem:[%s14786_s24 + $0x40] sm:$0xff] %v7882_v39  ;;  %v7885_v9 = vadd.f32 %v7821_v0, %v6082_v55  ;;  %v7819_v62 = vmax.f32 %v7719_v1, 0.0  ;;  %v6087_v39 = vadd.f32 %v6055_v14, %v6023_v36  ;;  %v6024_v1 = vmax.f32 %v5948_v45, 0.0  ;;  %v5976_v45 = vpop.f32.mrf.mxu0 }
 0x55d   : > { %7917 = vst [vmem:[%s14786_s24 + $0x58] sm:$0xff] %v7885_v9  ;;  %v7883_v5 = vadd.f32 %v7819_v62, %v6080_v23  ;;  %v6058_v62 = vld [vmem:[%s14786_s24 + $0x98] sm:$0xff]  ;;  %v6088_v50 = vadd.f32 %v6056_v2, %v6024_v1  ;;  %v8542_v22 = vpop.f32.mrf.mxu0 }
 0x55e   : > { %v6090_v54 = vadd.f32 %v6058_v62, %v6026_v6  ;;  %v6063_v62 = vld [vmem:[%s14786_s24 + $0xc0] sm:$0xff] }
 0x55f   : > { %7915 = vst [vmem:[%s14786_s24 + $0x48] sm:$0xff] %v7883_v5  ;;  %v5979_v14 = vpop.f32.mrf.mxu0 }
 0x566   : > { %v8577_v20 = vpop.f32.mrf.mxu1 }
 0x567   : > { %v7740_v43 = vadd.f32 %v8577_v20, %v18618_v32 }
 0x568   : > { %v7731_v30 = vpop.f32.mrf.mxu1 }
 0x569   : > { %v7824_v57 = vmax.f32 %v7740_v43, 0.0  ;;  %v7732_v53 = vadd.f32 %v18618_v32, %v7731_v30  ;;  %v5969_v30 = vadd.f32 %v8537_v48, %v18611_v11 }
 0x56a   : > { %v8578_v17 = vpop.f32.mrf.mxu1 }
 0x56b   : > { %v7888_v35 = vadd.f32 %v7824_v57, %v6085_v19  ;;  %v7822_v12 = vmax.f32 %v7732_v53, 0.0  ;;  %v7743_v26 = vadd.f32 %v8578_v17, %v18618_v32  ;;  %v5961_v19 = vadd.f32 %v18611_v11, %v5960_v59 }
 0x56c   : > { %v7734_v51 = vpop.f32.mrf.mxu1  ;;  %v6029_v29 = vmax.f32 %v5969_v30, 0.0  ;;  %v5972_v57 = vadd.f32 %v8538_v52, %v18611_v11  ;;  %v5964_v17 = vadd.f32 %v18611_v11, %v5963_v41  ;;  %v6064_v41 = vld [vmem:[%s14786_s24 + $0xc8] sm:$0xff] }
 0x56d   : > { %7920 = vst [vmem:[%s14786_s24 + $0x70] sm:$0xff] %v7888_v35  ;;  %v7886_v63 = vadd.f32 %v7822_v12, %v6083_v34  ;;  %v7825_v15 = vmax.f32 %v7743_v26, 0.0  ;;  %v7735_v60 = vadd.f32 %v18618_v32, %v7734_v51  ;;  %v6027_v53 = vmax.f32 %v5961_v19, 0.0  ;;  %v6061_v35 = vld [vmem:[%s14786_s24 + $0xb0] sm:$0xff] }
 0x56e   : > { %v6093_v26 = vadd.f32 %v6061_v35, %v6029_v29  ;;  %v6030_v24 = vmax.f32 %v5972_v57, 0.0 }
 0x56f   : > { %7918 = vst [vmem:[%s14786_s24 + $0x60] sm:$0xff] %v7886_v63  ;;  %v7889_v40 = vadd.f32 %v7825_v15, %v6086_v10  ;;  %v7823_v38 = vmax.f32 %v7735_v60, 0.0  ;;  %v6091_v63 = vadd.f32 %v6059_v21, %v6027_v53  ;;  %v6028_v60 = vmax.f32 %v5964_v17, 0.0 }
 0x571   : > { %7921 = vst [vmem:[%s14786_s24 + $0x78] sm:$0xff] %v7889_v40  ;;  %v7887_v44 = vadd.f32 %v7823_v38, %v6084_v42  ;;  %v6062_v38 = vld [vmem:[%s14786_s24 + $0xb8] sm:$0xff]  ;;  %v6092_v27 = vadd.f32 %v6060_v4, %v6028_v60 }
 0x572   : > { %v6094_v56 = vadd.f32 %v6062_v38, %v6030_v24  ;;  %v6067_v38 = vld [vmem:[%s14786_s24 + $0xe0] sm:$0xff] }
 0x573   : > { %7919 = vst [vmem:[%s14786_s24 + $0x68] sm:$0xff] %v7887_v44 }
 0x57a   : > { %v8581_v47 = vpop.f32.mrf.mxu1 }
 0x57b   : > { %v7756_v18 = vadd.f32 %v8581_v47, %v18618_v32 }
 0x57c   : > { %v7747_v46 = vpop.f32.mrf.mxu1 }
 0x57d   : > { %v7828_v8 = vmax.f32 %v7756_v18, 0.0  ;;  %v7748_v55 = vadd.f32 %v18618_v32, %v7747_v46  ;;  %v5985_v46 = vadd.f32 %v8541_v3, %v18611_v11 }
 0x57e   : > { %v8582_v0 = vpop.f32.mrf.mxu1 }
 0x57f   : > { %v7892_v33 = vadd.f32 %v7828_v8, %v6089_v28  ;;  %v7826_v23 = vmax.f32 %v7748_v55, 0.0  ;;  %v7759_v9 = vadd.f32 %v8582_v0, %v18618_v32  ;;  %v5977_v28 = vadd.f32 %v18611_v11, %v5976_v45 }
 0x580   : > { %v7750_v5 = vpop.f32.mrf.mxu1  ;;  %v6033_v6 = vmax.f32 %v5985_v46, 0.0  ;;  %v5988_v8 = vadd.f32 %v8542_v22, %v18611_v11  ;;  %v5980_v0 = vadd.f32 %v18611_v11, %v5979_v14 }
 0x581   : > { %7924 = vst [vmem:[%s14786_s24 + $0x90] sm:$0xff] %v7892_v33  ;;  %v7890_v37 = vadd.f32 %v7826_v23, %v6087_v39  ;;  %v7829_v16 = vmax.f32 %v7759_v9, 0.0  ;;  %v7751_v25 = vadd.f32 %v18618_v32, %v7750_v5  ;;  %v6031_v55 = vmax.f32 %v5977_v28, 0.0  ;;  %v6065_v33 = vld [vmem:[%s14786_s24 + $0xd0] sm:$0xff]  ;;  %v6068_v28 = vld [vmem:[%s14786_s24 + $0xe8] sm:$0xff] }
 0x582   : > { %v6097_v9 = vadd.f32 %v6065_v33, %v6033_v6  ;;  %v6034_v48 = vmax.f32 %v5988_v8, 0.0 }
 0x583   : > { %7922 = vst [vmem:[%s14786_s24 + $0x80] sm:$0xff] %v7890_v37  ;;  %v7893_v58 = vadd.f32 %v7829_v16, %v6090_v54  ;;  %v7827_v20 = vmax.f32 %v7751_v25, 0.0  ;;  %v6095_v37 = vadd.f32 %v6063_v62, %v6031_v55  ;;  %v6032_v25 = vmax.f32 %v5980_v0, 0.0 }
 0x585   : > { %7925 = vst [vmem:[%s14786_s24 + $0x98] sm:$0xff] %v7893_v58  ;;  %v7891_v43 = vadd.f32 %v7827_v20, %v6088_v50  ;;  %v6066_v20 = vld [vmem:[%s14786_s24 + $0xd8] sm:$0xff]  ;;  %v6096_v29 = vadd.f32 %v6064_v41, %v6032_v25 }
 0x587   : > { %7923 = vst [vmem:[%s14786_s24 + $0x88] sm:$0xff] %v7891_v43  ;;  %v6098_v43 = vadd.f32 %v6066_v20, %v6034_v48 }
 0x58e   : > { %v8585_v34 = vpop.f32.mrf.mxu1 }
 0x58f   : > { %v7772_v13 = vadd.f32 %v8585_v34, %v18618_v32  ;;  %v8545_v34 = vpop.f32.mrf.mxu0 }
 0x590   : > { %v7763_v12 = vpop.f32.mrf.mxu1 }
 0x591   : > { %v7832_v51 = vmax.f32 %v7772_v13, 0.0  ;;  %v7764_v10 = vadd.f32 %v18618_v32, %v7763_v12  ;;  %v5992_v13 = vpop.f32.mrf.mxu0  ;;  %v6001_v12 = vadd.f32 %v8545_v34, %v18611_v11 }
 0x592   : > { %v8586_v15 = vpop.f32.mrf.mxu1 }
 0x593   : > { %v7896_v49 = vadd.f32 %v7832_v51, %v6093_v26  ;;  %v7830_v42 = vmax.f32 %v7764_v10, 0.0  ;;  %v7775_v40 = vadd.f32 %v8586_v15, %v18618_v32  ;;  %v8546_v35 = vpop.f32.mrf.mxu0  ;;  %v5993_v26 = vadd.f32 %v18611_v11, %v5992_v13 }
 0x594   : > { %v7766_v44 = vpop.f32.mrf.mxu1  ;;  %v6037_v24 = vmax.f32 %v6001_v12, 0.0  ;;  %v6004_v51 = vadd.f32 %v8546_v35, %v18611_v11 }
 0x595   : > { %7928 = vst [vmem:[%s14786_s24 + $0xb0] sm:$0xff] %v7896_v49  ;;  %v7894_v61 = vadd.f32 %v7830_v42, %v6091_v63  ;;  %v7833_v7 = vmax.f32 %v7775_v40, 0.0  ;;  %v7767_v31 = vadd.f32 %v18618_v32, %v7766_v44  ;;  %v5995_v21 = vpop.f32.mrf.mxu0  ;;  %v6035_v10 = vmax.f32 %v5993_v26, 0.0  ;;  %v6069_v49 = vld [vmem:[%s14786_s24 + $0xf0] sm:$0xff] }
 0x596   : > { %v5996_v15 = vadd.f32 %v18611_v11, %v5995_v21  ;;  %v6101_v40 = vadd.f32 %v6069_v49, %v6037_v24  ;;  %v6038_v3 = vmax.f32 %v6004_v51, 0.0 }
 0x597   : > { %7926 = vst [vmem:[%s14786_s24 + $0xa0] sm:$0xff] %v7894_v61  ;;  %v7897_v36 = vadd.f32 %v7833_v7, %v6094_v56  ;;  %v7831_v47 = vmax.f32 %v7767_v31, 0.0  ;;  %v6099_v61 = vadd.f32 %v6067_v38, %v6035_v10 }
 0x598   : > { %v6036_v31 = vmax.f32 %v5996_v15, 0.0 }
 0x599   : > { %7929 = vst [vmem:[%s14786_s24 + $0xb8] sm:$0xff] %v7897_v36  ;;  %v7895_v18 = vadd.f32 %v7831_v47, %v6092_v27  ;;  %v6070_v36 = vld [vmem:[%s14786_s24 + $0xf8] sm:$0xff] }
 0x59a   : > { %v6102_v45 = vadd.f32 %v6070_v36, %v6038_v3  ;;  %v6100_v14 = vadd.f32 %v6068_v28, %v6036_v31 }
 0x59b   : > { %7927 = vst [vmem:[%s14786_s24 + $0xa8] sm:$0xff] %v7895_v18 }
 0x5a2   : > { %v8589_v39 = vpop.f32.mrf.mxu1 }
 0x5a3   : > { %v7788_v1 = vadd.f32 %v8589_v39, %v18618_v32 }
 0x5a4   : > { %v7779_v23 = vpop.f32.mrf.mxu1 }
 0x5a5   : > { %v7836_v5 = vmax.f32 %v7788_v1, 0.0  ;;  %v7780_v54 = vadd.f32 %v18618_v32, %v7779_v23 }
 0x5a6   : > { %v8590_v16 = vpop.f32.mrf.mxu1 }
 0x5a7   : > { %v7900_v2 = vadd.f32 %v7836_v5, %v6097_v9  ;;  %v7834_v50 = vmax.f32 %v7780_v54, 0.0  ;;  %v7791_v58 = vadd.f32 %v8590_v16, %v18618_v32 }
 0x5a8   : > { %v7782_v59 = vpop.f32.mrf.mxu1 }
 0x5a9   : > { %7932 = vst [vmem:[%s14786_s24 + $0xd0] sm:$0xff] %v7900_v2  ;;  %v7898_v52 = vadd.f32 %v7834_v50, %v6095_v37  ;;  %v7837_v30 = vmax.f32 %v7791_v58, 0.0  ;;  %v7783_v19 = vadd.f32 %v18618_v32, %v7782_v59 }
 0x5ab   : > { %7930 = vst [vmem:[%s14786_s24 + $0xc0] sm:$0xff] %v7898_v52  ;;  %v7901_v57 = vadd.f32 %v7837_v30, %v6098_v43  ;;  %v7835_v53 = vmax.f32 %v7783_v19, 0.0 }
 0x5ad   : > { %7933 = vst [vmem:[%s14786_s24 + $0xd8] sm:$0xff] %v7901_v57  ;;  %v7899_v17 = vadd.f32 %v7835_v53, %v6096_v29 }
 0x5af   : > { %7931 = vst [vmem:[%s14786_s24 + $0xc8] sm:$0xff] %v7899_v17 }
 0x5ba   : > { %v8593_v63 = vpop.f32.mrf.mxu1 }
 0x5bb   : > { %v7804_v60 = vadd.f32 %v8593_v63, %v18618_v32 }
 0x5bc   : > { %v7795_v42 = vpop.f32.mrf.mxu1 }
 0x5bd   : > { %v7840_v44 = vmax.f32 %v7804_v60, 0.0  ;;  %v7796_v56 = vadd.f32 %v18618_v32, %v7795_v42 }
 0x5be   : > { %v8594_v7 = vpop.f32.mrf.mxu1 }
 0x5bf   : > { %v7904_v4 = vadd.f32 %v7840_v44, %v6101_v40  ;;  %v7838_v11 = vmax.f32 %v7796_v56, 0.0  ;;  %v7807_v27 = vadd.f32 %v8594_v7, %v18618_v32 }
 0x5c0   : > { %v7798_v47 = vpop.f32.mrf.mxu1 }
 0x5c1   : > { %7936 = vst [vmem:[%s14786_s24 + $0xf0] sm:$0xff] %v7904_v4  ;;  %v7902_v18 = vadd.f32 %v7838_v11, %v6099_v61  ;;  %v7841_v22 = vmax.f32 %v7807_v27, 0.0  ;;  %v7799_v46 = vadd.f32 %v18618_v32, %v7798_v47 }
 0x5c3   : > { %7934 = vst [vmem:[%s14786_s24 + $0xe0] sm:$0xff] %v7902_v18  ;;  %v7905_v6 = vadd.f32 %v7841_v22, %v6102_v45  ;;  %v7839_v8 = vmax.f32 %v7799_v46, 0.0 }
 0x5c5   : > { %7937 = vst [vmem:[%s14786_s24 + $0xf8] sm:$0xff] %v7905_v6  ;;  %v7903_v55 = vadd.f32 %v7839_v8, %v6100_v14 }
 0x5c7   : > { %7935 = vst [vmem:[%s14786_s24 + $0xe8] sm:$0xff] %v7903_v55 }
 0x5c8   : > { %11340 = shalt.err (!%p11337_p3)
}
 0x5c9   : > { %s11341_s9 = scalar_lea.hbm %s18749_s29, 4096  ;;  %s11345_s19 = scalar_lea.hbm %s18801_s3, 8192 }
 0x5ca   : > { %p11342_p4 = scmp.ne.s32.totalorder %s18749_s29, %s11341_s9  ;;  %p11346_p9 = scmp.lt.s32.totalorder %s18749_s29, %s18801_s3 }
 0x5cb   : > { %p11347_p10 = scmp.lt.s32.totalorder %s11345_s19, %s11341_s9 }
 0x5cc   : > { %p11343_p7 = pnand %p11342_p4, %p11458_p5 }
 0x5cd   : > { %p11348_p11 = por %p11347_p10, %p11346_p9 }
 0x5ce   : > { %p11344_p8 = pneg %p11343_p7 }
 0x5d0   : > { %p11349_p12 = pnand %p11348_p11, %p11344_p8 }
 0x5d2   : > { %11352 = shalt.err (!%p11349_p12)
}
 0x5d3   : > { %s11399_s6 = smov 128  }
 0x5d4   : > { %8595 = dma.vmem_to_hbm [thread:$0]  (%p11458_p5), %s18752_s20, 4096, %s18749_s29, %s18757_s16, %s11399_s6, %s11399_s6, %s11391_s30  }
 0x5d5 PF: > { %p8601_p13 = scmp.ge.s32.totalorder %s11387_s15, 2  ;;  %s7967_s7 = sand.u32 1, %s11375_s12  }
 0x5d6   : > { %s7968_s17 = scalar_lea.sflag [#allocation4], %s7967_s7 }
 0x5d7   : > { %p8598_p0 = pnand %p8601_p13, %p11462_p6 }
 0x5d9   : > { %p8599_p1 = pneg %p8598_p0 }
 0x5db   : > { %11370 = dma.done.wait (%p8599_p1), %s7968_s17, 4096  }
 0x5dc   : > { %11372 = vsyncadd (%p8599_p1), %s7968_s17, 4294963200  ;;  %p13_p2 = scmp.ge.s32.totalorder %s11445_s18, 4   ;;  %s20535_s12 = smov %s11379_s13 }
 0x5dd   : > { %s20536_s13 = smov %s11383_s14  ;;  %s20537_s14 = smov %s11456_s21 }
 0x5de   : > { %s20538_s15 = smov %s11445_s18  ;;  %15 = sbr.rel (!%p13_p2) target bundleno = 3 (0x3), region = 82 }
 0x5e3   :  { %7973 = vsyncpa [#allocation4], 1 }
 0x5e4   :  { %7975 = vsyncpa [#allocation4 + $0x1], 1 }

</bundles_post_ra>
